<compile_context>
chip_gen: v7x
topology: tpu7x:2x2x1
jax: 0.10.0
libtpu: 0.0.40
codegen_flags: <defaults>
</compile_context>

<pallas_src>
import jax
import jax.numpy as jnp
from jax.experimental import pallas as pl
from jax.experimental.pallas import tpu as pltpu


# --------------------------------- fused kernel -------------------------------
def _convnet_kernel(x_ref, w1_ref, bn1_ref, w2_ref, bn2_ref, w3_ref, bn3_ref,
                    lw1_ref, lb1_ref, lw2_ref, lb2_ref, o_ref,
                    xb, a1, p1, a2, p2, a3):
    # bf16 copy of the current image (feeds the MXU); rows are h*W + w, lanes = channels.
    xb[...] = x_ref[0].astype(jnp.bfloat16)

    def conv_relu_bn(pin, w_in, k, oh, ow, w_ref, bn_ref, a_ref):
        # Valid conv as k*k shifted-row matmuls.  Output row index = oh_*w_in + ow_
        # (same row pitch as the input image); rows with ow_ >= ow are junk.
        L = (oh - 1) * w_in + ow
        cout = a_ref.shape[1]
        acc = jnp.zeros((L, cout), jnp.float32)
        for kh in range(k):
            for kw in range(k):
                lhs = pin[pl.ds(kh * w_in + kw, L), :]            # (L, Cin) bf16
                acc = acc + jnp.dot(lhs, w_ref[kh * k + kw],
                                    preferred_element_type=jnp.float32)
        bias, scale, shift = bn_ref[0:1, :], bn_ref[1:2, :], bn_ref[2:3, :]
        a_ref[...] = jnp.maximum(acc + bias, 0.0) * scale + shift  # conv bias + ReLU + BN(eval)

    def maxpool2x2(a_ref, w_in, ph_n, pw_n, p_ref):
        # 2x2/stride-2 max pool via sublane-strided reads of the conv output buffer.
        for ph in range(ph_n):
            base = 2 * ph * w_in
            e00 = a_ref[pl.ds(base,            pw_n, stride=2), :]
            e01 = a_ref[pl.ds(base + 1,        pw_n, stride=2), :]
            e10 = a_ref[pl.ds(base + w_in,     pw_n, stride=2), :]
            e11 = a_ref[pl.ds(base + w_in + 1, pw_n, stride=2), :]
            m = jnp.maximum(jnp.maximum(e00, e01), jnp.maximum(e10, e11))
            p_ref[pl.ds(ph * pw_n, pw_n), :] = m.astype(p_ref.dtype)

    # Stage 1: 24x24x3 --conv5--> 20x20x16 --pool--> 10x10x16
    conv_relu_bn(xb, 24, 5, 20, 20, w1_ref, bn1_ref, a1)
    maxpool2x2(a1, 24, 10, 10, p1)
    # Stage 2: 10x10x16 --conv3--> 8x8x32 --pool--> 4x4x32
    conv_relu_bn(p1, 10, 3, 8, 8, w2_ref, bn2_ref, a2)
    maxpool2x2(a2, 10, 4, 4, p2)
    # Stage 3: 4x4x32 --conv3--> 2x2x64 --pool--> 1x1x64
    conv_relu_bn(p2, 4, 3, 2, 2, w3_ref, bn3_ref, a3)
    feat = jnp.maximum(jnp.maximum(a3[0:1, :], a3[1:2, :]),
                       jnp.maximum(a3[4:5, :], a3[5:6, :]))        # (1, 64)

    # Head: Linear(64,32) + ReLU, Linear(32,1), Sigmoid (all in f32).
    h = jnp.maximum(
        jnp.dot(feat, lw1_ref[...], preferred_element_type=jnp.float32) + lb1_ref[...], 0.0)
    y = jnp.dot(h, lw2_ref[...], preferred_element_type=jnp.float32) + lb2_ref[...]
    o_ref[0] = jnp.broadcast_to(jax.nn.sigmoid(y), (1, 128))


# --------------------------------- wrapper ------------------------------------
def convnet_forward(x_nchw, params):
    B, C, H, W = x_nchw.shape
    assert (C, H, W) == (3, 24, 24), "spec (Linear after flatten is 64-wide) implies 3x24x24 input"
    x = jnp.transpose(x_nchw, (0, 2, 3, 1)).reshape(B, H * W, C)   # one-time NCHW->(B, H*W, C)

    # Weight-only prep (tiny): PyTorch (Cout,Cin,kh,kw) -> (kh*kw, Cin, Cout), bf16 for the MXU.
    def conv_w(w):
        k = w.shape[-1]
        return (jnp.transpose(w, (2, 3, 1, 0))
                .reshape(k * k, w.shape[1], w.shape[0]).astype(jnp.bfloat16))

    w1r, w2r, w3r = conv_w(params['w1']), conv_w(params['w2']), conv_w(params['w3'])
    bn1 = jnp.stack([params['b1'], params['s1'], params['t1']])    # rows: bias, scale, shift
    bn2 = jnp.stack([params['b2'], params['s2'], params['t2']])
    bn3 = jnp.stack([params['b3'], params['s3'], params['t3']])
    lw1, lw2 = params['lw1'], params['lw2']
    lb1, lb2 = params['lb1'].reshape(1, 32), params['lb2'].reshape(1, 1)

    out = pl.pallas_call(
        _convnet_kernel,
        out_shape=jax.ShapeDtypeStruct((B, 1, 128), jnp.float32),
        grid=(B,),
        in_specs=[
            pl.BlockSpec((1, H * W, C), lambda b: (b, 0, 0)),      # image
            pl.BlockSpec((25, 3, 16), lambda b: (0, 0, 0)),        # conv1 W
            pl.BlockSpec((3, 16), lambda b: (0, 0)),               # conv1 bias/scale/shift
            pl.BlockSpec((9, 16, 32), lambda b: (0, 0, 0)),        # conv2 W
            pl.BlockSpec((3, 32), lambda b: (0, 0)),
            pl.BlockSpec((9, 32, 64), lambda b: (0, 0, 0)),        # conv3 W
            pl.BlockSpec((3, 64), lambda b: (0, 0)),
            pl.BlockSpec((64, 32), lambda b: (0, 0)),              # linear1 W
            pl.BlockSpec((1, 32), lambda b: (0, 0)),               # linear1 b
            pl.BlockSpec((32, 1), lambda b: (0, 0)),               # linear2 W
            pl.BlockSpec((1, 1), lambda b: (0, 0)),                # linear2 b
        ],
        out_specs=pl.BlockSpec((1, 1, 128), lambda b: (b, 0, 0)),
        scratch_shapes=[
            pltpu.VMEM((576, 3), jnp.bfloat16),   # bf16 image copy
            pltpu.VMEM((476, 16), jnp.float32),   # conv1 out (rows oh*24+ow)
            pltpu.VMEM((100, 16), jnp.bfloat16),  # pool1 out (10x10x16)
            pltpu.VMEM((78, 32), jnp.float32),    # conv2 out (rows oh*10+ow)
            pltpu.VMEM((16, 32), jnp.bfloat16),   # pool2 out (4x4x32)
            pltpu.VMEM((6, 64), jnp.float32),     # conv3 out (rows oh*4+ow)
        ],
        compiler_params=pltpu.CompilerParams(dimension_semantics=("parallel",)),
    )(x, w1r, bn1, w2r, bn2, w3r, bn3, lw1, lb1, lw2, lb2)
    return out[:, 0, :1]                                           # (B, 1)


# --------------------------------- params -------------------------------------
def init_params(key):
    ks = jax.random.split(key, 8)
    eps = 1e-5
    # TODO(synk): BatchNorm is implemented in eval mode with as-constructed statistics
    # (running_mean=0, running_var=1, gamma=1, beta=0); training-mode batch statistics
    # are not computed.
    def bn(c):
        scale = jnp.full((c,), (1.0 + eps) ** -0.5, jnp.float32)   # gamma / sqrt(var + eps)
        shift = jnp.zeros((c,), jnp.float32)                       # beta - mean * scale
        return scale, shift

    s1, t1 = bn(16); s2, t2 = bn(32); s3, t3 = bn(64)
    return dict(
        w1=jax.random.normal(ks[0], (16, 3, 5, 5), jnp.float32) * 0.1,
        b1=jax.random.normal(ks[1], (16,), jnp.float32) * 0.1,
        w2=jax.random.normal(ks[2], (32, 16, 3, 3), jnp.float32) * 0.1,
        b2=jax.random.normal(ks[3], (32,), jnp.float32) * 0.1,
        w3=jax.random.normal(ks[4], (64, 32, 3, 3), jnp.float32) * 0.1,
        b3=jax.random.normal(ks[5], (64,), jnp.float32) * 0.1,
        s1=s1, t1=t1, s2=s2, t2=t2, s3=s3, t3=t3,
        lw1=jax.random.normal(ks[6], (64, 32), jnp.float32) * 0.1,
        lb1=jnp.zeros((32,), jnp.float32),
        lw2=jax.random.normal(ks[7], (32, 1), jnp.float32) * 0.1,
        lb2=jnp.zeros((1,), jnp.float32),
    )


# --------------------------- pure-JAX reference (check) ------------------------
def reference_forward(x_nchw, p):
    x = jnp.transpose(x_nchw, (0, 2, 3, 1))

    def block(x, w, b, s, t):
        y = jax.lax.conv_general_dilated(
            x, jnp.transpose(w, (2, 3, 1, 0)), (1, 1), 'VALID',
            dimension_numbers=('NHWC', 'HWIO', 'NHWC'),
            precision=jax.lax.Precision.HIGHEST)
        y = jnp.maximum(y + b, 0.0) * s + t
        return jax.lax.reduce_window(y, -jnp.inf, jax.lax.max,
                                     (1, 2, 2, 1), (1, 2, 2, 1), 'VALID')

    x = block(x, p['w1'], p['b1'], p['s1'], p['t1'])
    x = block(x, p['w2'], p['b2'], p['s2'], p['t2'])
    x = block(x, p['w3'], p['b3'], p['s3'], p['t3'])
    x = x.reshape(x.shape[0], -1)
    h = jnp.maximum(x @ p['lw1'] + p['lb1'], 0.0)
    return jax.nn.sigmoid(h @ p['lw2'] + p['lb2'])


# ---------------------------------- main ---------------------------------------
if __name__ == "__main__":
    key = jax.random.PRNGKey(0)
    kx, kp = jax.random.split(key)
    x = jax.random.normal(kx, (2, 3, 24, 24), jnp.float32)   # PyTorch-equivalent NCHW input
    params = init_params(kp)

    out = jax.block_until_ready(jax.jit(convnet_forward)(x, params))
    assert out.shape == (2, 1) and out.dtype == jnp.float32

    ref = jax.block_until_ready(jax.jit(reference_forward)(x, params))
    assert jnp.allclose(out, ref, atol=3e-2), (out, ref)

    print("KERNEL_OK")
</pallas_src>

<mosaic_0001>
module attributes {stable_mosaic.version = 11 : i64} {
  func.func @_convnet_kernel(%arg0: i32, %arg1: memref<1x576x3xf32, #tpu.memory_space<vmem>>, %arg2: memref<25x3x16xbf16, #tpu.memory_space<vmem>>, %arg3: memref<3x16xf32, #tpu.memory_space<vmem>>, %arg4: memref<9x16x32xbf16, #tpu.memory_space<vmem>>, %arg5: memref<3x32xf32, #tpu.memory_space<vmem>>, %arg6: memref<9x32x64xbf16, #tpu.memory_space<vmem>>, %arg7: memref<3x64xf32, #tpu.memory_space<vmem>>, %arg8: memref<64x32xf32, #tpu.memory_space<vmem>>, %arg9: memref<1x32xf32, #tpu.memory_space<vmem>>, %arg10: memref<32x1xf32, #tpu.memory_space<vmem>>, %arg11: memref<1x1xf32, #tpu.memory_space<vmem>>, %arg12: memref<1x1x128xf32, #tpu.memory_space<vmem>>, %arg13: memref<576x3xbf16, #tpu.memory_space<vmem>>, %arg14: memref<476x16xf32, #tpu.memory_space<vmem>>, %arg15: memref<100x16xbf16, #tpu.memory_space<vmem>>, %arg16: memref<78x32xf32, #tpu.memory_space<vmem>>, %arg17: memref<16x32xbf16, #tpu.memory_space<vmem>>, %arg18: memref<6x64xf32, #tpu.memory_space<vmem>>) attributes {dimension_semantics = [#tpu.dimension_semantics<parallel>], iteration_bounds = array<i64: 2>, scalar_prefetch = 0 : i64, scratch_operands = 6 : i64, tpu.core_type = #tpu.core_type<tc>, window_params = [{transform_indices = @transform_0, window_bounds = array<i64: 1, 576, 3>}, {pipeline_mode = #tpu.pipeline_mode<synchronous>, transform_indices = @transform_1, window_bounds = array<i64: 25, 3, 16>}, {pipeline_mode = #tpu.pipeline_mode<synchronous>, transform_indices = @transform_2, window_bounds = array<i64: 3, 16>}, {pipeline_mode = #tpu.pipeline_mode<synchronous>, transform_indices = @transform_3, window_bounds = array<i64: 9, 16, 32>}, {pipeline_mode = #tpu.pipeline_mode<synchronous>, transform_indices = @transform_4, window_bounds = array<i64: 3, 32>}, {pipeline_mode = #tpu.pipeline_mode<synchronous>, transform_indices = @transform_5, window_bounds = array<i64: 9, 32, 64>}, {pipeline_mode = #tpu.pipeline_mode<synchronous>, transform_indices = @transform_6, window_bounds = array<i64: 3, 64>}, {pipeline_mode = #tpu.pipeline_mode<synchronous>, transform_indices = @transform_7, window_bounds = array<i64: 64, 32>}, {pipeline_mode = #tpu.pipeline_mode<synchronous>, transform_indices = @transform_8, window_bounds = array<i64: 1, 32>}, {pipeline_mode = #tpu.pipeline_mode<synchronous>, transform_indices = @transform_9, window_bounds = array<i64: 32, 1>}, {pipeline_mode = #tpu.pipeline_mode<synchronous>, transform_indices = @transform_10, window_bounds = array<i64: 1, 1>}, {transform_indices = @transform_11, window_bounds = array<i64: 1, 1, 128>}]} {
    %c0 = arith.constant 0 : index
    %c0_0 = arith.constant 0 : index
    %c0_1 = arith.constant 0 : index
    %0 = vector.load %arg1[%c0, %c0_0, %c0_1] : memref<1x576x3xf32, #tpu.memory_space<vmem>>, vector<1x576x3xf32>
    %1 = vector.shape_cast %0 : vector<1x576x3xf32> to vector<576x3xf32>
    %2 = arith.truncf %1 : vector<576x3xf32> to vector<576x3xbf16>
    %c0_2 = arith.constant 0 : index
    %c0_3 = arith.constant 0 : index
    %3 = vector.load %arg13[%c0_2, %c0_3] : memref<576x3xbf16, #tpu.memory_space<vmem>>, vector<576x3xbf16>
    tpu.vector_store %arg13[%c0_2, %c0_3], %2 {strides = array<i32>} : memref<576x3xbf16, #tpu.memory_space<vmem>>, vector<576x3xbf16>,
    %cst = arith.constant 0.000000e+00 : f32
    %4 = vector.broadcast %cst : f32 to vector<476x16xf32>
    %c0_4 = arith.constant 0 : index
    %c0_5 = arith.constant 0 : index
    %5 = vector.load %arg13[%c0_4, %c0_5] : memref<576x3xbf16, #tpu.memory_space<vmem>>, vector<476x3xbf16>
    %c0_6 = arith.constant 0 : index
    %c0_7 = arith.constant 0 : index
    %c0_8 = arith.constant 0 : index
    %6 = vector.load %arg2[%c0_6, %c0_7, %c0_8] : memref<25x3x16xbf16, #tpu.memory_space<vmem>>, vector<1x3x16xbf16>
    %7 = vector.shape_cast %6 : vector<1x3x16xbf16> to vector<3x16xbf16>
    %cst_9 = arith.constant dense<0.000000e+00> : vector<476x16xf32>
    %8 = tpu.matmul %5, %7, %cst_9 {dimension_numbers = #tpu.dot_dimension_numbers<[1], [0], [0], [1], [0, 0, 1, 1], [], []>} : vector<476x3xbf16>, vector<3x16xbf16>, vector<476x16xf32> -> vector<476x16xf32>
    %9 = arith.addf %4, %8 : vector<476x16xf32>
    %c1 = arith.constant 1 : index
    %c0_10 = arith.constant 0 : index
    %10 = vector.load %arg13[%c1, %c0_10] : memref<576x3xbf16, #tpu.memory_space<vmem>>, vector<476x3xbf16>
    %c1_11 = arith.constant 1 : index
    %c0_12 = arith.constant 0 : index
    %c0_13 = arith.constant 0 : index
    %11 = vector.load %arg2[%c1_11, %c0_12, %c0_13] : memref<25x3x16xbf16, #tpu.memory_space<vmem>>, vector<1x3x16xbf16>
    %12 = vector.shape_cast %11 : vector<1x3x16xbf16> to vector<3x16xbf16>
    %cst_14 = arith.constant dense<0.000000e+00> : vector<476x16xf32>
    %13 = tpu.matmul %10, %12, %cst_14 {dimension_numbers = #tpu.dot_dimension_numbers<[1], [0], [0], [1], [0, 0, 1, 1], [], []>} : vector<476x3xbf16>, vector<3x16xbf16>, vector<476x16xf32> -> vector<476x16xf32>
    %14 = arith.addf %9, %13 : vector<476x16xf32>
    %c2 = arith.constant 2 : index
    %c0_15 = arith.constant 0 : index
    %15 = vector.load %arg13[%c2, %c0_15] : memref<576x3xbf16, #tpu.memory_space<vmem>>, vector<476x3xbf16>
    %c2_16 = arith.constant 2 : index
    %c0_17 = arith.constant 0 : index
    %c0_18 = arith.constant 0 : index
    %16 = vector.load %arg2[%c2_16, %c0_17, %c0_18] : memref<25x3x16xbf16, #tpu.memory_space<vmem>>, vector<1x3x16xbf16>
    %17 = vector.shape_cast %16 : vector<1x3x16xbf16> to vector<3x16xbf16>
    %cst_19 = arith.constant dense<0.000000e+00> : vector<476x16xf32>
    %18 = tpu.matmul %15, %17, %cst_19 {dimension_numbers = #tpu.dot_dimension_numbers<[1], [0], [0], [1], [0, 0, 1, 1], [], []>} : vector<476x3xbf16>, vector<3x16xbf16>, vector<476x16xf32> -> vector<476x16xf32>
    %19 = arith.addf %14, %18 : vector<476x16xf32>
    %c3 = arith.constant 3 : index
    %c0_20 = arith.constant 0 : index
    %20 = vector.load %arg13[%c3, %c0_20] : memref<576x3xbf16, #tpu.memory_space<vmem>>, vector<476x3xbf16>
    %c3_21 = arith.constant 3 : index
    %c0_22 = arith.constant 0 : index
    %c0_23 = arith.constant 0 : index
    %21 = vector.load %arg2[%c3_21, %c0_22, %c0_23] : memref<25x3x16xbf16, #tpu.memory_space<vmem>>, vector<1x3x16xbf16>
    %22 = vector.shape_cast %21 : vector<1x3x16xbf16> to vector<3x16xbf16>
    %cst_24 = arith.constant dense<0.000000e+00> : vector<476x16xf32>
    %23 = tpu.matmul %20, %22, %cst_24 {dimension_numbers = #tpu.dot_dimension_numbers<[1], [0], [0], [1], [0, 0, 1, 1], [], []>} : vector<476x3xbf16>, vector<3x16xbf16>, vector<476x16xf32> -> vector<476x16xf32>
    %24 = arith.addf %19, %23 : vector<476x16xf32>
    %c4 = arith.constant 4 : index
    %c0_25 = arith.constant 0 : index
    %25 = vector.load %arg13[%c4, %c0_25] : memref<576x3xbf16, #tpu.memory_space<vmem>>, vector<476x3xbf16>
    %c4_26 = arith.constant 4 : index
    %c0_27 = arith.constant 0 : index
    %c0_28 = arith.constant 0 : index
    %26 = vector.load %arg2[%c4_26, %c0_27, %c0_28] : memref<25x3x16xbf16, #tpu.memory_space<vmem>>, vector<1x3x16xbf16>
    %27 = vector.shape_cast %26 : vector<1x3x16xbf16> to vector<3x16xbf16>
    %cst_29 = arith.constant dense<0.000000e+00> : vector<476x16xf32>
    %28 = tpu.matmul %25, %27, %cst_29 {dimension_numbers = #tpu.dot_dimension_numbers<[1], [0], [0], [1], [0, 0, 1, 1], [], []>} : vector<476x3xbf16>, vector<3x16xbf16>, vector<476x16xf32> -> vector<476x16xf32>
    %29 = arith.addf %24, %28 : vector<476x16xf32>
    %c24 = arith.constant 24 : index
    %c0_30 = arith.constant 0 : index
    %30 = vector.load %arg13[%c24, %c0_30] : memref<576x3xbf16, #tpu.memory_space<vmem>>, vector<476x3xbf16>
    %c5 = arith.constant 5 : index
    %c0_31 = arith.constant 0 : index
    %c0_32 = arith.constant 0 : index
    %31 = vector.load %arg2[%c5, %c0_31, %c0_32] : memref<25x3x16xbf16, #tpu.memory_space<vmem>>, vector<1x3x16xbf16>
    %32 = vector.shape_cast %31 : vector<1x3x16xbf16> to vector<3x16xbf16>
    %cst_33 = arith.constant dense<0.000000e+00> : vector<476x16xf32>
    %33 = tpu.matmul %30, %32, %cst_33 {dimension_numbers = #tpu.dot_dimension_numbers<[1], [0], [0], [1], [0, 0, 1, 1], [], []>} : vector<476x3xbf16>, vector<3x16xbf16>, vector<476x16xf32> -> vector<476x16xf32>
    %34 = arith.addf %29, %33 : vector<476x16xf32>
    %c25 = arith.constant 25 : index
    %c0_34 = arith.constant 0 : index
    %35 = vector.load %arg13[%c25, %c0_34] : memref<576x3xbf16, #tpu.memory_space<vmem>>, vector<476x3xbf16>
    %c6 = arith.constant 6 : index
    %c0_35 = arith.constant 0 : index
    %c0_36 = arith.constant 0 : index
    %36 = vector.load %arg2[%c6, %c0_35, %c0_36] : memref<25x3x16xbf16, #tpu.memory_space<vmem>>, vector<1x3x16xbf16>
    %37 = vector.shape_cast %36 : vector<1x3x16xbf16> to vector<3x16xbf16>
    %cst_37 = arith.constant dense<0.000000e+00> : vector<476x16xf32>
    %38 = tpu.matmul %35, %37, %cst_37 {dimension_numbers = #tpu.dot_dimension_numbers<[1], [0], [0], [1], [0, 0, 1, 1], [], []>} : vector<476x3xbf16>, vector<3x16xbf16>, vector<476x16xf32> -> vector<476x16xf32>
    %39 = arith.addf %34, %38 : vector<476x16xf32>
    %c26 = arith.constant 26 : index
    %c0_38 = arith.constant 0 : index
    %40 = vector.load %arg13[%c26, %c0_38] : memref<576x3xbf16, #tpu.memory_space<vmem>>, vector<476x3xbf16>
    %c7 = arith.constant 7 : index
    %c0_39 = arith.constant 0 : index
    %c0_40 = arith.constant 0 : index
    %41 = vector.load %arg2[%c7, %c0_39, %c0_40] : memref<25x3x16xbf16, #tpu.memory_space<vmem>>, vector<1x3x16xbf16>
    %42 = vector.shape_cast %41 : vector<1x3x16xbf16> to vector<3x16xbf16>
    %cst_41 = arith.constant dense<0.000000e+00> : vector<476x16xf32>
    %43 = tpu.matmul %40, %42, %cst_41 {dimension_numbers = #tpu.dot_dimension_numbers<[1], [0], [0], [1], [0, 0, 1, 1], [], []>} : vector<476x3xbf16>, vector<3x16xbf16>, vector<476x16xf32> -> vector<476x16xf32>
    %44 = arith.addf %39, %43 : vector<476x16xf32>
    %c27 = arith.constant 27 : index
    %c0_42 = arith.constant 0 : index
    %45 = vector.load %arg13[%c27, %c0_42] : memref<576x3xbf16, #tpu.memory_space<vmem>>, vector<476x3xbf16>
    %c8 = arith.constant 8 : index
    %c0_43 = arith.constant 0 : index
    %c0_44 = arith.constant 0 : index
    %46 = vector.load %arg2[%c8, %c0_43, %c0_44] : memref<25x3x16xbf16, #tpu.memory_space<vmem>>, vector<1x3x16xbf16>
    %47 = vector.shape_cast %46 : vector<1x3x16xbf16> to vector<3x16xbf16>
    %cst_45 = arith.constant dense<0.000000e+00> : vector<476x16xf32>
    %48 = tpu.matmul %45, %47, %cst_45 {dimension_numbers = #tpu.dot_dimension_numbers<[1], [0], [0], [1], [0, 0, 1, 1], [], []>} : vector<476x3xbf16>, vector<3x16xbf16>, vector<476x16xf32> -> vector<476x16xf32>
    %49 = arith.addf %44, %48 : vector<476x16xf32>
    %c28 = arith.constant 28 : index
    %c0_46 = arith.constant 0 : index
    %50 = vector.load %arg13[%c28, %c0_46] : memref<576x3xbf16, #tpu.memory_space<vmem>>, vector<476x3xbf16>
    %c9 = arith.constant 9 : index
    %c0_47 = arith.constant 0 : index
    %c0_48 = arith.constant 0 : index
    %51 = vector.load %arg2[%c9, %c0_47, %c0_48] : memref<25x3x16xbf16, #tpu.memory_space<vmem>>, vector<1x3x16xbf16>
    %52 = vector.shape_cast %51 : vector<1x3x16xbf16> to vector<3x16xbf16>
    %cst_49 = arith.constant dense<0.000000e+00> : vector<476x16xf32>
    %53 = tpu.matmul %50, %52, %cst_49 {dimension_numbers = #tpu.dot_dimension_numbers<[1], [0], [0], [1], [0, 0, 1, 1], [], []>} : vector<476x3xbf16>, vector<3x16xbf16>, vector<476x16xf32> -> vector<476x16xf32>
    %54 = arith.addf %49, %53 : vector<476x16xf32>
    %c48 = arith.constant 48 : index
    %c0_50 = arith.constant 0 : index
    %55 = vector.load %arg13[%c48, %c0_50] : memref<576x3xbf16, #tpu.memory_space<vmem>>, vector<476x3xbf16>
    %c10 = arith.constant 10 : index
    %c0_51 = arith.constant 0 : index
    %c0_52 = arith.constant 0 : index
    %56 = vector.load %arg2[%c10, %c0_51, %c0_52] : memref<25x3x16xbf16, #tpu.memory_space<vmem>>, vector<1x3x16xbf16>
    %57 = vector.shape_cast %56 : vector<1x3x16xbf16> to vector<3x16xbf16>
    %cst_53 = arith.constant dense<0.000000e+00> : vector<476x16xf32>
    %58 = tpu.matmul %55, %57, %cst_53 {dimension_numbers = #tpu.dot_dimension_numbers<[1], [0], [0], [1], [0, 0, 1, 1], [], []>} : vector<476x3xbf16>, vector<3x16xbf16>, vector<476x16xf32> -> vector<476x16xf32>
    %59 = arith.addf %54, %58 : vector<476x16xf32>
    %c49 = arith.constant 49 : index
    %c0_54 = arith.constant 0 : index
    %60 = vector.load %arg13[%c49, %c0_54] : memref<576x3xbf16, #tpu.memory_space<vmem>>, vector<476x3xbf16>
    %c11 = arith.constant 11 : index
    %c0_55 = arith.constant 0 : index
    %c0_56 = arith.constant 0 : index
    %61 = vector.load %arg2[%c11, %c0_55, %c0_56] : memref<25x3x16xbf16, #tpu.memory_space<vmem>>, vector<1x3x16xbf16>
    %62 = vector.shape_cast %61 : vector<1x3x16xbf16> to vector<3x16xbf16>
    %cst_57 = arith.constant dense<0.000000e+00> : vector<476x16xf32>
    %63 = tpu.matmul %60, %62, %cst_57 {dimension_numbers = #tpu.dot_dimension_numbers<[1], [0], [0], [1], [0, 0, 1, 1], [], []>} : vector<476x3xbf16>, vector<3x16xbf16>, vector<476x16xf32> -> vector<476x16xf32>
    %64 = arith.addf %59, %63 : vector<476x16xf32>
    %c50 = arith.constant 50 : index
    %c0_58 = arith.constant 0 : index
    %65 = vector.load %arg13[%c50, %c0_58] : memref<576x3xbf16, #tpu.memory_space<vmem>>, vector<476x3xbf16>
    %c12 = arith.constant 12 : index
    %c0_59 = arith.constant 0 : index
    %c0_60 = arith.constant 0 : index
    %66 = vector.load %arg2[%c12, %c0_59, %c0_60] : memref<25x3x16xbf16, #tpu.memory_space<vmem>>, vector<1x3x16xbf16>
    %67 = vector.shape_cast %66 : vector<1x3x16xbf16> to vector<3x16xbf16>
    %cst_61 = arith.constant dense<0.000000e+00> : vector<476x16xf32>
    %68 = tpu.matmul %65, %67, %cst_61 {dimension_numbers = #tpu.dot_dimension_numbers<[1], [0], [0], [1], [0, 0, 1, 1], [], []>} : vector<476x3xbf16>, vector<3x16xbf16>, vector<476x16xf32> -> vector<476x16xf32>
    %69 = arith.addf %64, %68 : vector<476x16xf32>
    %c51 = arith.constant 51 : index
    %c0_62 = arith.constant 0 : index
    %70 = vector.load %arg13[%c51, %c0_62] : memref<576x3xbf16, #tpu.memory_space<vmem>>, vector<476x3xbf16>
    %c13 = arith.constant 13 : index
    %c0_63 = arith.constant 0 : index
    %c0_64 = arith.constant 0 : index
    %71 = vector.load %arg2[%c13, %c0_63, %c0_64] : memref<25x3x16xbf16, #tpu.memory_space<vmem>>, vector<1x3x16xbf16>
    %72 = vector.shape_cast %71 : vector<1x3x16xbf16> to vector<3x16xbf16>
    %cst_65 = arith.constant dense<0.000000e+00> : vector<476x16xf32>
    %73 = tpu.matmul %70, %72, %cst_65 {dimension_numbers = #tpu.dot_dimension_numbers<[1], [0], [0], [1], [0, 0, 1, 1], [], []>} : vector<476x3xbf16>, vector<3x16xbf16>, vector<476x16xf32> -> vector<476x16xf32>
    %74 = arith.addf %69, %73 : vector<476x16xf32>
    %c52 = arith.constant 52 : index
    %c0_66 = arith.constant 0 : index
    %75 = vector.load %arg13[%c52, %c0_66] : memref<576x3xbf16, #tpu.memory_space<vmem>>, vector<476x3xbf16>
    %c14 = arith.constant 14 : index
    %c0_67 = arith.constant 0 : index
    %c0_68 = arith.constant 0 : index
    %76 = vector.load %arg2[%c14, %c0_67, %c0_68] : memref<25x3x16xbf16, #tpu.memory_space<vmem>>, vector<1x3x16xbf16>
    %77 = vector.shape_cast %76 : vector<1x3x16xbf16> to vector<3x16xbf16>
    %cst_69 = arith.constant dense<0.000000e+00> : vector<476x16xf32>
    %78 = tpu.matmul %75, %77, %cst_69 {dimension_numbers = #tpu.dot_dimension_numbers<[1], [0], [0], [1], [0, 0, 1, 1], [], []>} : vector<476x3xbf16>, vector<3x16xbf16>, vector<476x16xf32> -> vector<476x16xf32>
    %79 = arith.addf %74, %78 : vector<476x16xf32>
    %c72 = arith.constant 72 : index
    %c0_70 = arith.constant 0 : index
    %80 = vector.load %arg13[%c72, %c0_70] : memref<576x3xbf16, #tpu.memory_space<vmem>>, vector<476x3xbf16>
    %c15 = arith.constant 15 : index
    %c0_71 = arith.constant 0 : index
    %c0_72 = arith.constant 0 : index
    %81 = vector.load %arg2[%c15, %c0_71, %c0_72] : memref<25x3x16xbf16, #tpu.memory_space<vmem>>, vector<1x3x16xbf16>
    %82 = vector.shape_cast %81 : vector<1x3x16xbf16> to vector<3x16xbf16>
    %cst_73 = arith.constant dense<0.000000e+00> : vector<476x16xf32>
    %83 = tpu.matmul %80, %82, %cst_73 {dimension_numbers = #tpu.dot_dimension_numbers<[1], [0], [0], [1], [0, 0, 1, 1], [], []>} : vector<476x3xbf16>, vector<3x16xbf16>, vector<476x16xf32> -> vector<476x16xf32>
    %84 = arith.addf %79, %83 : vector<476x16xf32>
    %c73 = arith.constant 73 : index
    %c0_74 = arith.constant 0 : index
    %85 = vector.load %arg13[%c73, %c0_74] : memref<576x3xbf16, #tpu.memory_space<vmem>>, vector<476x3xbf16>
    %c16 = arith.constant 16 : index
    %c0_75 = arith.constant 0 : index
    %c0_76 = arith.constant 0 : index
    %86 = vector.load %arg2[%c16, %c0_75, %c0_76] : memref<25x3x16xbf16, #tpu.memory_space<vmem>>, vector<1x3x16xbf16>
    %87 = vector.shape_cast %86 : vector<1x3x16xbf16> to vector<3x16xbf16>
    %cst_77 = arith.constant dense<0.000000e+00> : vector<476x16xf32>
    %88 = tpu.matmul %85, %87, %cst_77 {dimension_numbers = #tpu.dot_dimension_numbers<[1], [0], [0], [1], [0, 0, 1, 1], [], []>} : vector<476x3xbf16>, vector<3x16xbf16>, vector<476x16xf32> -> vector<476x16xf32>
    %89 = arith.addf %84, %88 : vector<476x16xf32>
    %c74 = arith.constant 74 : index
    %c0_78 = arith.constant 0 : index
    %90 = vector.load %arg13[%c74, %c0_78] : memref<576x3xbf16, #tpu.memory_space<vmem>>, vector<476x3xbf16>
    %c17 = arith.constant 17 : index
    %c0_79 = arith.constant 0 : index
    %c0_80 = arith.constant 0 : index
    %91 = vector.load %arg2[%c17, %c0_79, %c0_80] : memref<25x3x16xbf16, #tpu.memory_space<vmem>>, vector<1x3x16xbf16>
    %92 = vector.shape_cast %91 : vector<1x3x16xbf16> to vector<3x16xbf16>
    %cst_81 = arith.constant dense<0.000000e+00> : vector<476x16xf32>
    %93 = tpu.matmul %90, %92, %cst_81 {dimension_numbers = #tpu.dot_dimension_numbers<[1], [0], [0], [1], [0, 0, 1, 1], [], []>} : vector<476x3xbf16>, vector<3x16xbf16>, vector<476x16xf32> -> vector<476x16xf32>
    %94 = arith.addf %89, %93 : vector<476x16xf32>
    %c75 = arith.constant 75 : index
    %c0_82 = arith.constant 0 : index
    %95 = vector.load %arg13[%c75, %c0_82] : memref<576x3xbf16, #tpu.memory_space<vmem>>, vector<476x3xbf16>
    %c18 = arith.constant 18 : index
    %c0_83 = arith.constant 0 : index
    %c0_84 = arith.constant 0 : index
    %96 = vector.load %arg2[%c18, %c0_83, %c0_84] : memref<25x3x16xbf16, #tpu.memory_space<vmem>>, vector<1x3x16xbf16>
    %97 = vector.shape_cast %96 : vector<1x3x16xbf16> to vector<3x16xbf16>
    %cst_85 = arith.constant dense<0.000000e+00> : vector<476x16xf32>
    %98 = tpu.matmul %95, %97, %cst_85 {dimension_numbers = #tpu.dot_dimension_numbers<[1], [0], [0], [1], [0, 0, 1, 1], [], []>} : vector<476x3xbf16>, vector<3x16xbf16>, vector<476x16xf32> -> vector<476x16xf32>
    %99 = arith.addf %94, %98 : vector<476x16xf32>
    %c76 = arith.constant 76 : index
    %c0_86 = arith.constant 0 : index
    %100 = vector.load %arg13[%c76, %c0_86] : memref<576x3xbf16, #tpu.memory_space<vmem>>, vector<476x3xbf16>
    %c19 = arith.constant 19 : index
    %c0_87 = arith.constant 0 : index
    %c0_88 = arith.constant 0 : index
    %101 = vector.load %arg2[%c19, %c0_87, %c0_88] : memref<25x3x16xbf16, #tpu.memory_space<vmem>>, vector<1x3x16xbf16>
    %102 = vector.shape_cast %101 : vector<1x3x16xbf16> to vector<3x16xbf16>
    %cst_89 = arith.constant dense<0.000000e+00> : vector<476x16xf32>
    %103 = tpu.matmul %100, %102, %cst_89 {dimension_numbers = #tpu.dot_dimension_numbers<[1], [0], [0], [1], [0, 0, 1, 1], [], []>} : vector<476x3xbf16>, vector<3x16xbf16>, vector<476x16xf32> -> vector<476x16xf32>
    %104 = arith.addf %99, %103 : vector<476x16xf32>
    %c96 = arith.constant 96 : index
    %c0_90 = arith.constant 0 : index
    %105 = vector.load %arg13[%c96, %c0_90] : memref<576x3xbf16, #tpu.memory_space<vmem>>, vector<476x3xbf16>
    %c20 = arith.constant 20 : index
    %c0_91 = arith.constant 0 : index
    %c0_92 = arith.constant 0 : index
    %106 = vector.load %arg2[%c20, %c0_91, %c0_92] : memref<25x3x16xbf16, #tpu.memory_space<vmem>>, vector<1x3x16xbf16>
    %107 = vector.shape_cast %106 : vector<1x3x16xbf16> to vector<3x16xbf16>
    %cst_93 = arith.constant dense<0.000000e+00> : vector<476x16xf32>
    %108 = tpu.matmul %105, %107, %cst_93 {dimension_numbers = #tpu.dot_dimension_numbers<[1], [0], [0], [1], [0, 0, 1, 1], [], []>} : vector<476x3xbf16>, vector<3x16xbf16>, vector<476x16xf32> -> vector<476x16xf32>
    %109 = arith.addf %104, %108 : vector<476x16xf32>
    %c97 = arith.constant 97 : index
    %c0_94 = arith.constant 0 : index
    %110 = vector.load %arg13[%c97, %c0_94] : memref<576x3xbf16, #tpu.memory_space<vmem>>, vector<476x3xbf16>
    %c21 = arith.constant 21 : index
    %c0_95 = arith.constant 0 : index
    %c0_96 = arith.constant 0 : index
    %111 = vector.load %arg2[%c21, %c0_95, %c0_96] : memref<25x3x16xbf16, #tpu.memory_space<vmem>>, vector<1x3x16xbf16>
    %112 = vector.shape_cast %111 : vector<1x3x16xbf16> to vector<3x16xbf16>
    %cst_97 = arith.constant dense<0.000000e+00> : vector<476x16xf32>
    %113 = tpu.matmul %110, %112, %cst_97 {dimension_numbers = #tpu.dot_dimension_numbers<[1], [0], [0], [1], [0, 0, 1, 1], [], []>} : vector<476x3xbf16>, vector<3x16xbf16>, vector<476x16xf32> -> vector<476x16xf32>
    %114 = arith.addf %109, %113 : vector<476x16xf32>
    %c98 = arith.constant 98 : index
    %c0_98 = arith.constant 0 : index
    %115 = vector.load %arg13[%c98, %c0_98] : memref<576x3xbf16, #tpu.memory_space<vmem>>, vector<476x3xbf16>
    %c22 = arith.constant 22 : index
    %c0_99 = arith.constant 0 : index
    %c0_100 = arith.constant 0 : index
    %116 = vector.load %arg2[%c22, %c0_99, %c0_100] : memref<25x3x16xbf16, #tpu.memory_space<vmem>>, vector<1x3x16xbf16>
    %117 = vector.shape_cast %116 : vector<1x3x16xbf16> to vector<3x16xbf16>
    %cst_101 = arith.constant dense<0.000000e+00> : vector<476x16xf32>
    %118 = tpu.matmul %115, %117, %cst_101 {dimension_numbers = #tpu.dot_dimension_numbers<[1], [0], [0], [1], [0, 0, 1, 1], [], []>} : vector<476x3xbf16>, vector<3x16xbf16>, vector<476x16xf32> -> vector<476x16xf32>
    %119 = arith.addf %114, %118 : vector<476x16xf32>
    %c99 = arith.constant 99 : index
    %c0_102 = arith.constant 0 : index
    %120 = vector.load %arg13[%c99, %c0_102] : memref<576x3xbf16, #tpu.memory_space<vmem>>, vector<476x3xbf16>
    %c23 = arith.constant 23 : index
    %c0_103 = arith.constant 0 : index
    %c0_104 = arith.constant 0 : index
    %121 = vector.load %arg2[%c23, %c0_103, %c0_104] : memref<25x3x16xbf16, #tpu.memory_space<vmem>>, vector<1x3x16xbf16>
    %122 = vector.shape_cast %121 : vector<1x3x16xbf16> to vector<3x16xbf16>
    %cst_105 = arith.constant dense<0.000000e+00> : vector<476x16xf32>
    %123 = tpu.matmul %120, %122, %cst_105 {dimension_numbers = #tpu.dot_dimension_numbers<[1], [0], [0], [1], [0, 0, 1, 1], [], []>} : vector<476x3xbf16>, vector<3x16xbf16>, vector<476x16xf32> -> vector<476x16xf32>
    %124 = arith.addf %119, %123 : vector<476x16xf32>
    %c100 = arith.constant 100 : index
    %c0_106 = arith.constant 0 : index
    %125 = vector.load %arg13[%c100, %c0_106] : memref<576x3xbf16, #tpu.memory_space<vmem>>, vector<476x3xbf16>
    %c24_107 = arith.constant 24 : index
    %c0_108 = arith.constant 0 : index
    %c0_109 = arith.constant 0 : index
    %126 = vector.load %arg2[%c24_107, %c0_108, %c0_109] : memref<25x3x16xbf16, #tpu.memory_space<vmem>>, vector<1x3x16xbf16>
    %127 = vector.shape_cast %126 : vector<1x3x16xbf16> to vector<3x16xbf16>
    %cst_110 = arith.constant dense<0.000000e+00> : vector<476x16xf32>
    %128 = tpu.matmul %125, %127, %cst_110 {dimension_numbers = #tpu.dot_dimension_numbers<[1], [0], [0], [1], [0, 0, 1, 1], [], []>} : vector<476x3xbf16>, vector<3x16xbf16>, vector<476x16xf32> -> vector<476x16xf32>
    %129 = arith.addf %124, %128 : vector<476x16xf32>
    %c0_111 = arith.constant 0 : index
    %c0_112 = arith.constant 0 : index
    %130 = vector.load %arg3[%c0_111, %c0_112] : memref<3x16xf32, #tpu.memory_space<vmem>>, vector<1x16xf32>
    %c1_113 = arith.constant 1 : index
    %c0_114 = arith.constant 0 : index
    %131 = vector.load %arg3[%c1_113, %c0_114] : memref<3x16xf32, #tpu.memory_space<vmem>>, vector<1x16xf32>
    %c2_115 = arith.constant 2 : index
    %c0_116 = arith.constant 0 : index
    %132 = vector.load %arg3[%c2_115, %c0_116] : memref<3x16xf32, #tpu.memory_space<vmem>>, vector<1x16xf32>
    %133 = vector.broadcast %130 : vector<1x16xf32> to vector<476x16xf32>
    %134 = arith.addf %129, %133 : vector<476x16xf32>
    %cst_117 = arith.constant 0.000000e+00 : f32
    %135 = vector.broadcast %cst_117 : f32 to vector<476x16xf32>
    %136 = arith.maximumf %134, %135 : vector<476x16xf32>
    %137 = vector.broadcast %131 : vector<1x16xf32> to vector<476x16xf32>
    %138 = arith.mulf %136, %137 : vector<476x16xf32>
    %139 = vector.broadcast %132 : vector<1x16xf32> to vector<476x16xf32>
    %140 = arith.addf %138, %139 : vector<476x16xf32>
    %c0_118 = arith.constant 0 : index
    %c0_119 = arith.constant 0 : index
    %141 = vector.load %arg14[%c0_118, %c0_119] : memref<476x16xf32, #tpu.memory_space<vmem>>, vector<476x16xf32>
    tpu.vector_store %arg14[%c0_118, %c0_119], %140 {strides = array<i32>} : memref<476x16xf32, #tpu.memory_space<vmem>>, vector<476x16xf32>,
    %c0_120 = arith.constant 0 : index
    %c0_121 = arith.constant 0 : index
    %142 = tpu.strided_load %arg14[%c0_120, %c0_121] {strides = array<i32: 2, 1>} : memref<476x16xf32, #tpu.memory_space<vmem>>, vector<10x16xf32>
    %c1_122 = arith.constant 1 : index
    %c0_123 = arith.constant 0 : index
    %143 = tpu.strided_load %arg14[%c1_122, %c0_123] {strides = array<i32: 2, 1>} : memref<476x16xf32, #tpu.memory_space<vmem>>, vector<10x16xf32>
    %c24_124 = arith.constant 24 : index
    %c0_125 = arith.constant 0 : index
    %144 = tpu.strided_load %arg14[%c24_124, %c0_125] {strides = array<i32: 2, 1>} : memref<476x16xf32, #tpu.memory_space<vmem>>, vector<10x16xf32>
    %c25_126 = arith.constant 25 : index
    %c0_127 = arith.constant 0 : index
    %145 = tpu.strided_load %arg14[%c25_126, %c0_127] {strides = array<i32: 2, 1>} : memref<476x16xf32, #tpu.memory_space<vmem>>, vector<10x16xf32>
    %146 = arith.maximumf %142, %143 : vector<10x16xf32>
    %147 = arith.maximumf %144, %145 : vector<10x16xf32>
    %148 = arith.maximumf %146, %147 : vector<10x16xf32>
    %149 = arith.truncf %148 : vector<10x16xf32> to vector<10x16xbf16>
    %c0_128 = arith.constant 0 : index
    %c0_129 = arith.constant 0 : index
    %150 = vector.load %arg15[%c0_128, %c0_129] : memref<100x16xbf16, #tpu.memory_space<vmem>>, vector<10x16xbf16>
    tpu.vector_store %arg15[%c0_128, %c0_129], %149 {strides = array<i32>} : memref<100x16xbf16, #tpu.memory_space<vmem>>, vector<10x16xbf16>,
    %c48_130 = arith.constant 48 : index
    %c0_131 = arith.constant 0 : index
    %151 = tpu.strided_load %arg14[%c48_130, %c0_131] {strides = array<i32: 2, 1>} : memref<476x16xf32, #tpu.memory_space<vmem>>, vector<10x16xf32>
    %c49_132 = arith.constant 49 : index
    %c0_133 = arith.constant 0 : index
    %152 = tpu.strided_load %arg14[%c49_132, %c0_133] {strides = array<i32: 2, 1>} : memref<476x16xf32, #tpu.memory_space<vmem>>, vector<10x16xf32>
    %c72_134 = arith.constant 72 : index
    %c0_135 = arith.constant 0 : index
    %153 = tpu.strided_load %arg14[%c72_134, %c0_135] {strides = array<i32: 2, 1>} : memref<476x16xf32, #tpu.memory_space<vmem>>, vector<10x16xf32>
    %c73_136 = arith.constant 73 : index
    %c0_137 = arith.constant 0 : index
    %154 = tpu.strided_load %arg14[%c73_136, %c0_137] {strides = array<i32: 2, 1>} : memref<476x16xf32, #tpu.memory_space<vmem>>, vector<10x16xf32>
    %155 = arith.maximumf %151, %152 : vector<10x16xf32>
    %156 = arith.maximumf %153, %154 : vector<10x16xf32>
    %157 = arith.maximumf %155, %156 : vector<10x16xf32>
    %158 = arith.truncf %157 : vector<10x16xf32> to vector<10x16xbf16>
    %c10_138 = arith.constant 10 : index
    %c0_139 = arith.constant 0 : index
    %159 = vector.load %arg15[%c10_138, %c0_139] : memref<100x16xbf16, #tpu.memory_space<vmem>>, vector<10x16xbf16>
    tpu.vector_store %arg15[%c10_138, %c0_139], %158 {strides = array<i32>} : memref<100x16xbf16, #tpu.memory_space<vmem>>, vector<10x16xbf16>,
    %c96_140 = arith.constant 96 : index
    %c0_141 = arith.constant 0 : index
    %160 = tpu.strided_load %arg14[%c96_140, %c0_141] {strides = array<i32: 2, 1>} : memref<476x16xf32, #tpu.memory_space<vmem>>, vector<10x16xf32>
    %c97_142 = arith.constant 97 : index
    %c0_143 = arith.constant 0 : index
    %161 = tpu.strided_load %arg14[%c97_142, %c0_143] {strides = array<i32: 2, 1>} : memref<476x16xf32, #tpu.memory_space<vmem>>, vector<10x16xf32>
    %c120 = arith.constant 120 : index
    %c0_144 = arith.constant 0 : index
    %162 = tpu.strided_load %arg14[%c120, %c0_144] {strides = array<i32: 2, 1>} : memref<476x16xf32, #tpu.memory_space<vmem>>, vector<10x16xf32>
    %c121 = arith.constant 121 : index
    %c0_145 = arith.constant 0 : index
    %163 = tpu.strided_load %arg14[%c121, %c0_145] {strides = array<i32: 2, 1>} : memref<476x16xf32, #tpu.memory_space<vmem>>, vector<10x16xf32>
    %164 = arith.maximumf %160, %161 : vector<10x16xf32>
    %165 = arith.maximumf %162, %163 : vector<10x16xf32>
    %166 = arith.maximumf %164, %165 : vector<10x16xf32>
    %167 = arith.truncf %166 : vector<10x16xf32> to vector<10x16xbf16>
    %c20_146 = arith.constant 20 : index
    %c0_147 = arith.constant 0 : index
    %168 = vector.load %arg15[%c20_146, %c0_147] : memref<100x16xbf16, #tpu.memory_space<vmem>>, vector<10x16xbf16>
    tpu.vector_store %arg15[%c20_146, %c0_147], %167 {strides = array<i32>} : memref<100x16xbf16, #tpu.memory_space<vmem>>, vector<10x16xbf16>,
    %c144 = arith.constant 144 : index
    %c0_148 = arith.constant 0 : index
    %169 = tpu.strided_load %arg14[%c144, %c0_148] {strides = array<i32: 2, 1>} : memref<476x16xf32, #tpu.memory_space<vmem>>, vector<10x16xf32>
    %c145 = arith.constant 145 : index
    %c0_149 = arith.constant 0 : index
    %170 = tpu.strided_load %arg14[%c145, %c0_149] {strides = array<i32: 2, 1>} : memref<476x16xf32, #tpu.memory_space<vmem>>, vector<10x16xf32>
    %c168 = arith.constant 168 : index
    %c0_150 = arith.constant 0 : index
    %171 = tpu.strided_load %arg14[%c168, %c0_150] {strides = array<i32: 2, 1>} : memref<476x16xf32, #tpu.memory_space<vmem>>, vector<10x16xf32>
    %c169 = arith.constant 169 : index
    %c0_151 = arith.constant 0 : index
    %172 = tpu.strided_load %arg14[%c169, %c0_151] {strides = array<i32: 2, 1>} : memref<476x16xf32, #tpu.memory_space<vmem>>, vector<10x16xf32>
    %173 = arith.maximumf %169, %170 : vector<10x16xf32>
    %174 = arith.maximumf %171, %172 : vector<10x16xf32>
    %175 = arith.maximumf %173, %174 : vector<10x16xf32>
    %176 = arith.truncf %175 : vector<10x16xf32> to vector<10x16xbf16>
    %c30 = arith.constant 30 : index
    %c0_152 = arith.constant 0 : index
    %177 = vector.load %arg15[%c30, %c0_152] : memref<100x16xbf16, #tpu.memory_space<vmem>>, vector<10x16xbf16>
    tpu.vector_store %arg15[%c30, %c0_152], %176 {strides = array<i32>} : memref<100x16xbf16, #tpu.memory_space<vmem>>, vector<10x16xbf16>,
    %c192 = arith.constant 192 : index
    %c0_153 = arith.constant 0 : index
    %178 = tpu.strided_load %arg14[%c192, %c0_153] {strides = array<i32: 2, 1>} : memref<476x16xf32, #tpu.memory_space<vmem>>, vector<10x16xf32>
    %c193 = arith.constant 193 : index
    %c0_154 = arith.constant 0 : index
    %179 = tpu.strided_load %arg14[%c193, %c0_154] {strides = array<i32: 2, 1>} : memref<476x16xf32, #tpu.memory_space<vmem>>, vector<10x16xf32>
    %c216 = arith.constant 216 : index
    %c0_155 = arith.constant 0 : index
    %180 = tpu.strided_load %arg14[%c216, %c0_155] {strides = array<i32: 2, 1>} : memref<476x16xf32, #tpu.memory_space<vmem>>, vector<10x16xf32>
    %c217 = arith.constant 217 : index
    %c0_156 = arith.constant 0 : index
    %181 = tpu.strided_load %arg14[%c217, %c0_156] {strides = array<i32: 2, 1>} : memref<476x16xf32, #tpu.memory_space<vmem>>, vector<10x16xf32>
    %182 = arith.maximumf %178, %179 : vector<10x16xf32>
    %183 = arith.maximumf %180, %181 : vector<10x16xf32>
    %184 = arith.maximumf %182, %183 : vector<10x16xf32>
    %185 = arith.truncf %184 : vector<10x16xf32> to vector<10x16xbf16>
    %c40 = arith.constant 40 : index
    %c0_157 = arith.constant 0 : index
    %186 = vector.load %arg15[%c40, %c0_157] : memref<100x16xbf16, #tpu.memory_space<vmem>>, vector<10x16xbf16>
    tpu.vector_store %arg15[%c40, %c0_157], %185 {strides = array<i32>} : memref<100x16xbf16, #tpu.memory_space<vmem>>, vector<10x16xbf16>,
    %c240 = arith.constant 240 : index
    %c0_158 = arith.constant 0 : index
    %187 = tpu.strided_load %arg14[%c240, %c0_158] {strides = array<i32: 2, 1>} : memref<476x16xf32, #tpu.memory_space<vmem>>, vector<10x16xf32>
    %c241 = arith.constant 241 : index
    %c0_159 = arith.constant 0 : index
    %188 = tpu.strided_load %arg14[%c241, %c0_159] {strides = array<i32: 2, 1>} : memref<476x16xf32, #tpu.memory_space<vmem>>, vector<10x16xf32>
    %c264 = arith.constant 264 : index
    %c0_160 = arith.constant 0 : index
    %189 = tpu.strided_load %arg14[%c264, %c0_160] {strides = array<i32: 2, 1>} : memref<476x16xf32, #tpu.memory_space<vmem>>, vector<10x16xf32>
    %c265 = arith.constant 265 : index
    %c0_161 = arith.constant 0 : index
    %190 = tpu.strided_load %arg14[%c265, %c0_161] {strides = array<i32: 2, 1>} : memref<476x16xf32, #tpu.memory_space<vmem>>, vector<10x16xf32>
    %191 = arith.maximumf %187, %188 : vector<10x16xf32>
    %192 = arith.maximumf %189, %190 : vector<10x16xf32>
    %193 = arith.maximumf %191, %192 : vector<10x16xf32>
    %194 = arith.truncf %193 : vector<10x16xf32> to vector<10x16xbf16>
    %c50_162 = arith.constant 50 : index
    %c0_163 = arith.constant 0 : index
    %195 = vector.load %arg15[%c50_162, %c0_163] : memref<100x16xbf16, #tpu.memory_space<vmem>>, vector<10x16xbf16>
    tpu.vector_store %arg15[%c50_162, %c0_163], %194 {strides = array<i32>} : memref<100x16xbf16, #tpu.memory_space<vmem>>, vector<10x16xbf16>,
    %c288 = arith.constant 288 : index
    %c0_164 = arith.constant 0 : index
    %196 = tpu.strided_load %arg14[%c288, %c0_164] {strides = array<i32: 2, 1>} : memref<476x16xf32, #tpu.memory_space<vmem>>, vector<10x16xf32>
    %c289 = arith.constant 289 : index
    %c0_165 = arith.constant 0 : index
    %197 = tpu.strided_load %arg14[%c289, %c0_165] {strides = array<i32: 2, 1>} : memref<476x16xf32, #tpu.memory_space<vmem>>, vector<10x16xf32>
    %c312 = arith.constant 312 : index
    %c0_166 = arith.constant 0 : index
    %198 = tpu.strided_load %arg14[%c312, %c0_166] {strides = array<i32: 2, 1>} : memref<476x16xf32, #tpu.memory_space<vmem>>, vector<10x16xf32>
    %c313 = arith.constant 313 : index
    %c0_167 = arith.constant 0 : index
    %199 = tpu.strided_load %arg14[%c313, %c0_167] {strides = array<i32: 2, 1>} : memref<476x16xf32, #tpu.memory_space<vmem>>, vector<10x16xf32>
    %200 = arith.maximumf %196, %197 : vector<10x16xf32>
    %201 = arith.maximumf %198, %199 : vector<10x16xf32>
    %202 = arith.maximumf %200, %201 : vector<10x16xf32>
    %203 = arith.truncf %202 : vector<10x16xf32> to vector<10x16xbf16>
    %c60 = arith.constant 60 : index
    %c0_168 = arith.constant 0 : index
    %204 = vector.load %arg15[%c60, %c0_168] : memref<100x16xbf16, #tpu.memory_space<vmem>>, vector<10x16xbf16>
    tpu.vector_store %arg15[%c60, %c0_168], %203 {strides = array<i32>} : memref<100x16xbf16, #tpu.memory_space<vmem>>, vector<10x16xbf16>,
    %c336 = arith.constant 336 : index
    %c0_169 = arith.constant 0 : index
    %205 = tpu.strided_load %arg14[%c336, %c0_169] {strides = array<i32: 2, 1>} : memref<476x16xf32, #tpu.memory_space<vmem>>, vector<10x16xf32>
    %c337 = arith.constant 337 : index
    %c0_170 = arith.constant 0 : index
    %206 = tpu.strided_load %arg14[%c337, %c0_170] {strides = array<i32: 2, 1>} : memref<476x16xf32, #tpu.memory_space<vmem>>, vector<10x16xf32>
    %c360 = arith.constant 360 : index
    %c0_171 = arith.constant 0 : index
    %207 = tpu.strided_load %arg14[%c360, %c0_171] {strides = array<i32: 2, 1>} : memref<476x16xf32, #tpu.memory_space<vmem>>, vector<10x16xf32>
    %c361 = arith.constant 361 : index
    %c0_172 = arith.constant 0 : index
    %208 = tpu.strided_load %arg14[%c361, %c0_172] {strides = array<i32: 2, 1>} : memref<476x16xf32, #tpu.memory_space<vmem>>, vector<10x16xf32>
    %209 = arith.maximumf %205, %206 : vector<10x16xf32>
    %210 = arith.maximumf %207, %208 : vector<10x16xf32>
    %211 = arith.maximumf %209, %210 : vector<10x16xf32>
    %212 = arith.truncf %211 : vector<10x16xf32> to vector<10x16xbf16>
    %c70 = arith.constant 70 : index
    %c0_173 = arith.constant 0 : index
    %213 = vector.load %arg15[%c70, %c0_173] : memref<100x16xbf16, #tpu.memory_space<vmem>>, vector<10x16xbf16>
    tpu.vector_store %arg15[%c70, %c0_173], %212 {strides = array<i32>} : memref<100x16xbf16, #tpu.memory_space<vmem>>, vector<10x16xbf16>,
    %c384 = arith.constant 384 : index
    %c0_174 = arith.constant 0 : index
    %214 = tpu.strided_load %arg14[%c384, %c0_174] {strides = array<i32: 2, 1>} : memref<476x16xf32, #tpu.memory_space<vmem>>, vector<10x16xf32>
    %c385 = arith.constant 385 : index
    %c0_175 = arith.constant 0 : index
    %215 = tpu.strided_load %arg14[%c385, %c0_175] {strides = array<i32: 2, 1>} : memref<476x16xf32, #tpu.memory_space<vmem>>, vector<10x16xf32>
    %c408 = arith.constant 408 : index
    %c0_176 = arith.constant 0 : index
    %216 = tpu.strided_load %arg14[%c408, %c0_176] {strides = array<i32: 2, 1>} : memref<476x16xf32, #tpu.memory_space<vmem>>, vector<10x16xf32>
    %c409 = arith.constant 409 : index
    %c0_177 = arith.constant 0 : index
    %217 = tpu.strided_load %arg14[%c409, %c0_177] {strides = array<i32: 2, 1>} : memref<476x16xf32, #tpu.memory_space<vmem>>, vector<10x16xf32>
    %218 = arith.maximumf %214, %215 : vector<10x16xf32>
    %219 = arith.maximumf %216, %217 : vector<10x16xf32>
    %220 = arith.maximumf %218, %219 : vector<10x16xf32>
    %221 = arith.truncf %220 : vector<10x16xf32> to vector<10x16xbf16>
    %c80 = arith.constant 80 : index
    %c0_178 = arith.constant 0 : index
    %222 = vector.load %arg15[%c80, %c0_178] : memref<100x16xbf16, #tpu.memory_space<vmem>>, vector<10x16xbf16>
    tpu.vector_store %arg15[%c80, %c0_178], %221 {strides = array<i32>} : memref<100x16xbf16, #tpu.memory_space<vmem>>, vector<10x16xbf16>,
    %c432 = arith.constant 432 : index
    %c0_179 = arith.constant 0 : index
    %223 = tpu.strided_load %arg14[%c432, %c0_179] {strides = array<i32: 2, 1>} : memref<476x16xf32, #tpu.memory_space<vmem>>, vector<10x16xf32>
    %c433 = arith.constant 433 : index
    %c0_180 = arith.constant 0 : index
    %224 = tpu.strided_load %arg14[%c433, %c0_180] {strides = array<i32: 2, 1>} : memref<476x16xf32, #tpu.memory_space<vmem>>, vector<10x16xf32>
    %c456 = arith.constant 456 : index
    %c0_181 = arith.constant 0 : index
    %225 = tpu.strided_load %arg14[%c456, %c0_181] {strides = array<i32: 2, 1>} : memref<476x16xf32, #tpu.memory_space<vmem>>, vector<10x16xf32>
    %c457 = arith.constant 457 : index
    %c0_182 = arith.constant 0 : index
    %226 = tpu.strided_load %arg14[%c457, %c0_182] {strides = array<i32: 2, 1>} : memref<476x16xf32, #tpu.memory_space<vmem>>, vector<10x16xf32>
    %227 = arith.maximumf %223, %224 : vector<10x16xf32>
    %228 = arith.maximumf %225, %226 : vector<10x16xf32>
    %229 = arith.maximumf %227, %228 : vector<10x16xf32>
    %230 = arith.truncf %229 : vector<10x16xf32> to vector<10x16xbf16>
    %c90 = arith.constant 90 : index
    %c0_183 = arith.constant 0 : index
    %231 = vector.load %arg15[%c90, %c0_183] : memref<100x16xbf16, #tpu.memory_space<vmem>>, vector<10x16xbf16>
    tpu.vector_store %arg15[%c90, %c0_183], %230 {strides = array<i32>} : memref<100x16xbf16, #tpu.memory_space<vmem>>, vector<10x16xbf16>,
    %cst_184 = arith.constant 0.000000e+00 : f32
    %232 = vector.broadcast %cst_184 : f32 to vector<78x32xf32>
    %c0_185 = arith.constant 0 : index
    %c0_186 = arith.constant 0 : index
    %233 = vector.load %arg15[%c0_185, %c0_186] : memref<100x16xbf16, #tpu.memory_space<vmem>>, vector<78x16xbf16>
    %c0_187 = arith.constant 0 : index
    %c0_188 = arith.constant 0 : index
    %c0_189 = arith.constant 0 : index
    %234 = vector.load %arg4[%c0_187, %c0_188, %c0_189] : memref<9x16x32xbf16, #tpu.memory_space<vmem>>, vector<1x16x32xbf16>
    %235 = vector.shape_cast %234 : vector<1x16x32xbf16> to vector<16x32xbf16>
    %cst_190 = arith.constant dense<0.000000e+00> : vector<78x32xf32>
    %236 = tpu.matmul %233, %235, %cst_190 {dimension_numbers = #tpu.dot_dimension_numbers<[1], [0], [0], [1], [0, 0, 1, 1], [], []>} : vector<78x16xbf16>, vector<16x32xbf16>, vector<78x32xf32> -> vector<78x32xf32>
    %237 = arith.addf %232, %236 : vector<78x32xf32>
    %c1_191 = arith.constant 1 : index
    %c0_192 = arith.constant 0 : index
    %238 = vector.load %arg15[%c1_191, %c0_192] : memref<100x16xbf16, #tpu.memory_space<vmem>>, vector<78x16xbf16>
    %c1_193 = arith.constant 1 : index
    %c0_194 = arith.constant 0 : index
    %c0_195 = arith.constant 0 : index
    %239 = vector.load %arg4[%c1_193, %c0_194, %c0_195] : memref<9x16x32xbf16, #tpu.memory_space<vmem>>, vector<1x16x32xbf16>
    %240 = vector.shape_cast %239 : vector<1x16x32xbf16> to vector<16x32xbf16>
    %cst_196 = arith.constant dense<0.000000e+00> : vector<78x32xf32>
    %241 = tpu.matmul %238, %240, %cst_196 {dimension_numbers = #tpu.dot_dimension_numbers<[1], [0], [0], [1], [0, 0, 1, 1], [], []>} : vector<78x16xbf16>, vector<16x32xbf16>, vector<78x32xf32> -> vector<78x32xf32>
    %242 = arith.addf %237, %241 : vector<78x32xf32>
    %c2_197 = arith.constant 2 : index
    %c0_198 = arith.constant 0 : index
    %243 = vector.load %arg15[%c2_197, %c0_198] : memref<100x16xbf16, #tpu.memory_space<vmem>>, vector<78x16xbf16>
    %c2_199 = arith.constant 2 : index
    %c0_200 = arith.constant 0 : index
    %c0_201 = arith.constant 0 : index
    %244 = vector.load %arg4[%c2_199, %c0_200, %c0_201] : memref<9x16x32xbf16, #tpu.memory_space<vmem>>, vector<1x16x32xbf16>
    %245 = vector.shape_cast %244 : vector<1x16x32xbf16> to vector<16x32xbf16>
    %cst_202 = arith.constant dense<0.000000e+00> : vector<78x32xf32>
    %246 = tpu.matmul %243, %245, %cst_202 {dimension_numbers = #tpu.dot_dimension_numbers<[1], [0], [0], [1], [0, 0, 1, 1], [], []>} : vector<78x16xbf16>, vector<16x32xbf16>, vector<78x32xf32> -> vector<78x32xf32>
    %247 = arith.addf %242, %246 : vector<78x32xf32>
    %c10_203 = arith.constant 10 : index
    %c0_204 = arith.constant 0 : index
    %248 = vector.load %arg15[%c10_203, %c0_204] : memref<100x16xbf16, #tpu.memory_space<vmem>>, vector<78x16xbf16>
    %c3_205 = arith.constant 3 : index
    %c0_206 = arith.constant 0 : index
    %c0_207 = arith.constant 0 : index
    %249 = vector.load %arg4[%c3_205, %c0_206, %c0_207] : memref<9x16x32xbf16, #tpu.memory_space<vmem>>, vector<1x16x32xbf16>
    %250 = vector.shape_cast %249 : vector<1x16x32xbf16> to vector<16x32xbf16>
    %cst_208 = arith.constant dense<0.000000e+00> : vector<78x32xf32>
    %251 = tpu.matmul %248, %250, %cst_208 {dimension_numbers = #tpu.dot_dimension_numbers<[1], [0], [0], [1], [0, 0, 1, 1], [], []>} : vector<78x16xbf16>, vector<16x32xbf16>, vector<78x32xf32> -> vector<78x32xf32>
    %252 = arith.addf %247, %251 : vector<78x32xf32>
    %c11_209 = arith.constant 11 : index
    %c0_210 = arith.constant 0 : index
    %253 = vector.load %arg15[%c11_209, %c0_210] : memref<100x16xbf16, #tpu.memory_space<vmem>>, vector<78x16xbf16>
    %c4_211 = arith.constant 4 : index
    %c0_212 = arith.constant 0 : index
    %c0_213 = arith.constant 0 : index
    %254 = vector.load %arg4[%c4_211, %c0_212, %c0_213] : memref<9x16x32xbf16, #tpu.memory_space<vmem>>, vector<1x16x32xbf16>
    %255 = vector.shape_cast %254 : vector<1x16x32xbf16> to vector<16x32xbf16>
    %cst_214 = arith.constant dense<0.000000e+00> : vector<78x32xf32>
    %256 = tpu.matmul %253, %255, %cst_214 {dimension_numbers = #tpu.dot_dimension_numbers<[1], [0], [0], [1], [0, 0, 1, 1], [], []>} : vector<78x16xbf16>, vector<16x32xbf16>, vector<78x32xf32> -> vector<78x32xf32>
    %257 = arith.addf %252, %256 : vector<78x32xf32>
    %c12_215 = arith.constant 12 : index
    %c0_216 = arith.constant 0 : index
    %258 = vector.load %arg15[%c12_215, %c0_216] : memref<100x16xbf16, #tpu.memory_space<vmem>>, vector<78x16xbf16>
    %c5_217 = arith.constant 5 : index
    %c0_218 = arith.constant 0 : index
    %c0_219 = arith.constant 0 : index
    %259 = vector.load %arg4[%c5_217, %c0_218, %c0_219] : memref<9x16x32xbf16, #tpu.memory_space<vmem>>, vector<1x16x32xbf16>
    %260 = vector.shape_cast %259 : vector<1x16x32xbf16> to vector<16x32xbf16>
    %cst_220 = arith.constant dense<0.000000e+00> : vector<78x32xf32>
    %261 = tpu.matmul %258, %260, %cst_220 {dimension_numbers = #tpu.dot_dimension_numbers<[1], [0], [0], [1], [0, 0, 1, 1], [], []>} : vector<78x16xbf16>, vector<16x32xbf16>, vector<78x32xf32> -> vector<78x32xf32>
    %262 = arith.addf %257, %261 : vector<78x32xf32>
    %c20_221 = arith.constant 20 : index
    %c0_222 = arith.constant 0 : index
    %263 = vector.load %arg15[%c20_221, %c0_222] : memref<100x16xbf16, #tpu.memory_space<vmem>>, vector<78x16xbf16>
    %c6_223 = arith.constant 6 : index
    %c0_224 = arith.constant 0 : index
    %c0_225 = arith.constant 0 : index
    %264 = vector.load %arg4[%c6_223, %c0_224, %c0_225] : memref<9x16x32xbf16, #tpu.memory_space<vmem>>, vector<1x16x32xbf16>
    %265 = vector.shape_cast %264 : vector<1x16x32xbf16> to vector<16x32xbf16>
    %cst_226 = arith.constant dense<0.000000e+00> : vector<78x32xf32>
    %266 = tpu.matmul %263, %265, %cst_226 {dimension_numbers = #tpu.dot_dimension_numbers<[1], [0], [0], [1], [0, 0, 1, 1], [], []>} : vector<78x16xbf16>, vector<16x32xbf16>, vector<78x32xf32> -> vector<78x32xf32>
    %267 = arith.addf %262, %266 : vector<78x32xf32>
    %c21_227 = arith.constant 21 : index
    %c0_228 = arith.constant 0 : index
    %268 = vector.load %arg15[%c21_227, %c0_228] : memref<100x16xbf16, #tpu.memory_space<vmem>>, vector<78x16xbf16>
    %c7_229 = arith.constant 7 : index
    %c0_230 = arith.constant 0 : index
    %c0_231 = arith.constant 0 : index
    %269 = vector.load %arg4[%c7_229, %c0_230, %c0_231] : memref<9x16x32xbf16, #tpu.memory_space<vmem>>, vector<1x16x32xbf16>
    %270 = vector.shape_cast %269 : vector<1x16x32xbf16> to vector<16x32xbf16>
    %cst_232 = arith.constant dense<0.000000e+00> : vector<78x32xf32>
    %271 = tpu.matmul %268, %270, %cst_232 {dimension_numbers = #tpu.dot_dimension_numbers<[1], [0], [0], [1], [0, 0, 1, 1], [], []>} : vector<78x16xbf16>, vector<16x32xbf16>, vector<78x32xf32> -> vector<78x32xf32>
    %272 = arith.addf %267, %271 : vector<78x32xf32>
    %c22_233 = arith.constant 22 : index
    %c0_234 = arith.constant 0 : index
    %273 = vector.load %arg15[%c22_233, %c0_234] : memref<100x16xbf16, #tpu.memory_space<vmem>>, vector<78x16xbf16>
    %c8_235 = arith.constant 8 : index
    %c0_236 = arith.constant 0 : index
    %c0_237 = arith.constant 0 : index
    %274 = vector.load %arg4[%c8_235, %c0_236, %c0_237] : memref<9x16x32xbf16, #tpu.memory_space<vmem>>, vector<1x16x32xbf16>
    %275 = vector.shape_cast %274 : vector<1x16x32xbf16> to vector<16x32xbf16>
    %cst_238 = arith.constant dense<0.000000e+00> : vector<78x32xf32>
    %276 = tpu.matmul %273, %275, %cst_238 {dimension_numbers = #tpu.dot_dimension_numbers<[1], [0], [0], [1], [0, 0, 1, 1], [], []>} : vector<78x16xbf16>, vector<16x32xbf16>, vector<78x32xf32> -> vector<78x32xf32>
    %277 = arith.addf %272, %276 : vector<78x32xf32>
    %c0_239 = arith.constant 0 : index
    %c0_240 = arith.constant 0 : index
    %278 = vector.load %arg5[%c0_239, %c0_240] : memref<3x32xf32, #tpu.memory_space<vmem>>, vector<1x32xf32>
    %c1_241 = arith.constant 1 : index
    %c0_242 = arith.constant 0 : index
    %279 = vector.load %arg5[%c1_241, %c0_242] : memref<3x32xf32, #tpu.memory_space<vmem>>, vector<1x32xf32>
    %c2_243 = arith.constant 2 : index
    %c0_244 = arith.constant 0 : index
    %280 = vector.load %arg5[%c2_243, %c0_244] : memref<3x32xf32, #tpu.memory_space<vmem>>, vector<1x32xf32>
    %281 = vector.broadcast %278 : vector<1x32xf32> to vector<78x32xf32>
    %282 = arith.addf %277, %281 : vector<78x32xf32>
    %cst_245 = arith.constant 0.000000e+00 : f32
    %283 = vector.broadcast %cst_245 : f32 to vector<78x32xf32>
    %284 = arith.maximumf %282, %283 : vector<78x32xf32>
    %285 = vector.broadcast %279 : vector<1x32xf32> to vector<78x32xf32>
    %286 = arith.mulf %284, %285 : vector<78x32xf32>
    %287 = vector.broadcast %280 : vector<1x32xf32> to vector<78x32xf32>
    %288 = arith.addf %286, %287 : vector<78x32xf32>
    %c0_246 = arith.constant 0 : index
    %c0_247 = arith.constant 0 : index
    %289 = vector.load %arg16[%c0_246, %c0_247] : memref<78x32xf32, #tpu.memory_space<vmem>>, vector<78x32xf32>
    tpu.vector_store %arg16[%c0_246, %c0_247], %288 {strides = array<i32>} : memref<78x32xf32, #tpu.memory_space<vmem>>, vector<78x32xf32>,
    %c0_248 = arith.constant 0 : index
    %c0_249 = arith.constant 0 : index
    %290 = tpu.strided_load %arg16[%c0_248, %c0_249] {strides = array<i32: 2, 1>} : memref<78x32xf32, #tpu.memory_space<vmem>>, vector<4x32xf32>
    %c1_250 = arith.constant 1 : index
    %c0_251 = arith.constant 0 : index
    %291 = tpu.strided_load %arg16[%c1_250, %c0_251] {strides = array<i32: 2, 1>} : memref<78x32xf32, #tpu.memory_space<vmem>>, vector<4x32xf32>
    %c10_252 = arith.constant 10 : index
    %c0_253 = arith.constant 0 : index
    %292 = tpu.strided_load %arg16[%c10_252, %c0_253] {strides = array<i32: 2, 1>} : memref<78x32xf32, #tpu.memory_space<vmem>>, vector<4x32xf32>
    %c11_254 = arith.constant 11 : index
    %c0_255 = arith.constant 0 : index
    %293 = tpu.strided_load %arg16[%c11_254, %c0_255] {strides = array<i32: 2, 1>} : memref<78x32xf32, #tpu.memory_space<vmem>>, vector<4x32xf32>
    %294 = arith.maximumf %290, %291 : vector<4x32xf32>
    %295 = arith.maximumf %292, %293 : vector<4x32xf32>
    %296 = arith.maximumf %294, %295 : vector<4x32xf32>
    %297 = arith.truncf %296 : vector<4x32xf32> to vector<4x32xbf16>
    %c0_256 = arith.constant 0 : index
    %c0_257 = arith.constant 0 : index
    %298 = vector.load %arg17[%c0_256, %c0_257] : memref<16x32xbf16, #tpu.memory_space<vmem>>, vector<4x32xbf16>
    tpu.vector_store %arg17[%c0_256, %c0_257], %297 {strides = array<i32>} : memref<16x32xbf16, #tpu.memory_space<vmem>>, vector<4x32xbf16>,
    %c20_258 = arith.constant 20 : index
    %c0_259 = arith.constant 0 : index
    %299 = tpu.strided_load %arg16[%c20_258, %c0_259] {strides = array<i32: 2, 1>} : memref<78x32xf32, #tpu.memory_space<vmem>>, vector<4x32xf32>
    %c21_260 = arith.constant 21 : index
    %c0_261 = arith.constant 0 : index
    %300 = tpu.strided_load %arg16[%c21_260, %c0_261] {strides = array<i32: 2, 1>} : memref<78x32xf32, #tpu.memory_space<vmem>>, vector<4x32xf32>
    %c30_262 = arith.constant 30 : index
    %c0_263 = arith.constant 0 : index
    %301 = tpu.strided_load %arg16[%c30_262, %c0_263] {strides = array<i32: 2, 1>} : memref<78x32xf32, #tpu.memory_space<vmem>>, vector<4x32xf32>
    %c31 = arith.constant 31 : index
    %c0_264 = arith.constant 0 : index
    %302 = tpu.strided_load %arg16[%c31, %c0_264] {strides = array<i32: 2, 1>} : memref<78x32xf32, #tpu.memory_space<vmem>>, vector<4x32xf32>
    %303 = arith.maximumf %299, %300 : vector<4x32xf32>
    %304 = arith.maximumf %301, %302 : vector<4x32xf32>
    %305 = arith.maximumf %303, %304 : vector<4x32xf32>
    %306 = arith.truncf %305 : vector<4x32xf32> to vector<4x32xbf16>
    %c4_265 = arith.constant 4 : index
    %c0_266 = arith.constant 0 : index
    %307 = vector.load %arg17[%c4_265, %c0_266] : memref<16x32xbf16, #tpu.memory_space<vmem>>, vector<4x32xbf16>
    tpu.vector_store %arg17[%c4_265, %c0_266], %306 {strides = array<i32>} : memref<16x32xbf16, #tpu.memory_space<vmem>>, vector<4x32xbf16>,
    %c40_267 = arith.constant 40 : index
    %c0_268 = arith.constant 0 : index
    %308 = tpu.strided_load %arg16[%c40_267, %c0_268] {strides = array<i32: 2, 1>} : memref<78x32xf32, #tpu.memory_space<vmem>>, vector<4x32xf32>
    %c41 = arith.constant 41 : index
    %c0_269 = arith.constant 0 : index
    %309 = tpu.strided_load %arg16[%c41, %c0_269] {strides = array<i32: 2, 1>} : memref<78x32xf32, #tpu.memory_space<vmem>>, vector<4x32xf32>
    %c50_270 = arith.constant 50 : index
    %c0_271 = arith.constant 0 : index
    %310 = tpu.strided_load %arg16[%c50_270, %c0_271] {strides = array<i32: 2, 1>} : memref<78x32xf32, #tpu.memory_space<vmem>>, vector<4x32xf32>
    %c51_272 = arith.constant 51 : index
    %c0_273 = arith.constant 0 : index
    %311 = tpu.strided_load %arg16[%c51_272, %c0_273] {strides = array<i32: 2, 1>} : memref<78x32xf32, #tpu.memory_space<vmem>>, vector<4x32xf32>
    %312 = arith.maximumf %308, %309 : vector<4x32xf32>
    %313 = arith.maximumf %310, %311 : vector<4x32xf32>
    %314 = arith.maximumf %312, %313 : vector<4x32xf32>
    %315 = arith.truncf %314 : vector<4x32xf32> to vector<4x32xbf16>
    %c8_274 = arith.constant 8 : index
    %c0_275 = arith.constant 0 : index
    %316 = vector.load %arg17[%c8_274, %c0_275] : memref<16x32xbf16, #tpu.memory_space<vmem>>, vector<4x32xbf16>
    tpu.vector_store %arg17[%c8_274, %c0_275], %315 {strides = array<i32>} : memref<16x32xbf16, #tpu.memory_space<vmem>>, vector<4x32xbf16>,
    %c60_276 = arith.constant 60 : index
    %c0_277 = arith.constant 0 : index
    %317 = tpu.strided_load %arg16[%c60_276, %c0_277] {strides = array<i32: 2, 1>} : memref<78x32xf32, #tpu.memory_space<vmem>>, vector<4x32xf32>
    %c61 = arith.constant 61 : index
    %c0_278 = arith.constant 0 : index
    %318 = tpu.strided_load %arg16[%c61, %c0_278] {strides = array<i32: 2, 1>} : memref<78x32xf32, #tpu.memory_space<vmem>>, vector<4x32xf32>
    %c70_279 = arith.constant 70 : index
    %c0_280 = arith.constant 0 : index
    %319 = tpu.strided_load %arg16[%c70_279, %c0_280] {strides = array<i32: 2, 1>} : memref<78x32xf32, #tpu.memory_space<vmem>>, vector<4x32xf32>
    %c71 = arith.constant 71 : index
    %c0_281 = arith.constant 0 : index
    %320 = tpu.strided_load %arg16[%c71, %c0_281] {strides = array<i32: 2, 1>} : memref<78x32xf32, #tpu.memory_space<vmem>>, vector<4x32xf32>
    %321 = arith.maximumf %317, %318 : vector<4x32xf32>
    %322 = arith.maximumf %319, %320 : vector<4x32xf32>
    %323 = arith.maximumf %321, %322 : vector<4x32xf32>
    %324 = arith.truncf %323 : vector<4x32xf32> to vector<4x32xbf16>
    %c12_282 = arith.constant 12 : index
    %c0_283 = arith.constant 0 : index
    %325 = vector.load %arg17[%c12_282, %c0_283] : memref<16x32xbf16, #tpu.memory_space<vmem>>, vector<4x32xbf16>
    tpu.vector_store %arg17[%c12_282, %c0_283], %324 {strides = array<i32>} : memref<16x32xbf16, #tpu.memory_space<vmem>>, vector<4x32xbf16>,
    %cst_284 = arith.constant 0.000000e+00 : f32
    %326 = vector.broadcast %cst_284 : f32 to vector<6x64xf32>
    %c0_285 = arith.constant 0 : index
    %c0_286 = arith.constant 0 : index
    %327 = vector.load %arg17[%c0_285, %c0_286] : memref<16x32xbf16, #tpu.memory_space<vmem>>, vector<6x32xbf16>
    %c0_287 = arith.constant 0 : index
    %c0_288 = arith.constant 0 : index
    %c0_289 = arith.constant 0 : index
    %328 = vector.load %arg6[%c0_287, %c0_288, %c0_289] : memref<9x32x64xbf16, #tpu.memory_space<vmem>>, vector<1x32x64xbf16>
    %329 = vector.shape_cast %328 : vector<1x32x64xbf16> to vector<32x64xbf16>
    %cst_290 = arith.constant dense<0.000000e+00> : vector<6x64xf32>
    %330 = tpu.matmul %327, %329, %cst_290 {dimension_numbers = #tpu.dot_dimension_numbers<[1], [0], [0], [1], [0, 0, 1, 1], [], []>} : vector<6x32xbf16>, vector<32x64xbf16>, vector<6x64xf32> -> vector<6x64xf32>
    %331 = arith.addf %326, %330 : vector<6x64xf32>
    %c1_291 = arith.constant 1 : index
    %c0_292 = arith.constant 0 : index
    %332 = vector.load %arg17[%c1_291, %c0_292] : memref<16x32xbf16, #tpu.memory_space<vmem>>, vector<6x32xbf16>
    %c1_293 = arith.constant 1 : index
    %c0_294 = arith.constant 0 : index
    %c0_295 = arith.constant 0 : index
    %333 = vector.load %arg6[%c1_293, %c0_294, %c0_295] : memref<9x32x64xbf16, #tpu.memory_space<vmem>>, vector<1x32x64xbf16>
    %334 = vector.shape_cast %333 : vector<1x32x64xbf16> to vector<32x64xbf16>
    %cst_296 = arith.constant dense<0.000000e+00> : vector<6x64xf32>
    %335 = tpu.matmul %332, %334, %cst_296 {dimension_numbers = #tpu.dot_dimension_numbers<[1], [0], [0], [1], [0, 0, 1, 1], [], []>} : vector<6x32xbf16>, vector<32x64xbf16>, vector<6x64xf32> -> vector<6x64xf32>
    %336 = arith.addf %331, %335 : vector<6x64xf32>
    %c2_297 = arith.constant 2 : index
    %c0_298 = arith.constant 0 : index
    %337 = vector.load %arg17[%c2_297, %c0_298] : memref<16x32xbf16, #tpu.memory_space<vmem>>, vector<6x32xbf16>
    %c2_299 = arith.constant 2 : index
    %c0_300 = arith.constant 0 : index
    %c0_301 = arith.constant 0 : index
    %338 = vector.load %arg6[%c2_299, %c0_300, %c0_301] : memref<9x32x64xbf16, #tpu.memory_space<vmem>>, vector<1x32x64xbf16>
    %339 = vector.shape_cast %338 : vector<1x32x64xbf16> to vector<32x64xbf16>
    %cst_302 = arith.constant dense<0.000000e+00> : vector<6x64xf32>
    %340 = tpu.matmul %337, %339, %cst_302 {dimension_numbers = #tpu.dot_dimension_numbers<[1], [0], [0], [1], [0, 0, 1, 1], [], []>} : vector<6x32xbf16>, vector<32x64xbf16>, vector<6x64xf32> -> vector<6x64xf32>
    %341 = arith.addf %336, %340 : vector<6x64xf32>
    %c4_303 = arith.constant 4 : index
    %c0_304 = arith.constant 0 : index
    %342 = vector.load %arg17[%c4_303, %c0_304] : memref<16x32xbf16, #tpu.memory_space<vmem>>, vector<6x32xbf16>
    %c3_305 = arith.constant 3 : index
    %c0_306 = arith.constant 0 : index
    %c0_307 = arith.constant 0 : index
    %343 = vector.load %arg6[%c3_305, %c0_306, %c0_307] : memref<9x32x64xbf16, #tpu.memory_space<vmem>>, vector<1x32x64xbf16>
    %344 = vector.shape_cast %343 : vector<1x32x64xbf16> to vector<32x64xbf16>
    %cst_308 = arith.constant dense<0.000000e+00> : vector<6x64xf32>
    %345 = tpu.matmul %342, %344, %cst_308 {dimension_numbers = #tpu.dot_dimension_numbers<[1], [0], [0], [1], [0, 0, 1, 1], [], []>} : vector<6x32xbf16>, vector<32x64xbf16>, vector<6x64xf32> -> vector<6x64xf32>
    %346 = arith.addf %341, %345 : vector<6x64xf32>
    %c5_309 = arith.constant 5 : index
    %c0_310 = arith.constant 0 : index
    %347 = vector.load %arg17[%c5_309, %c0_310] : memref<16x32xbf16, #tpu.memory_space<vmem>>, vector<6x32xbf16>
    %c4_311 = arith.constant 4 : index
    %c0_312 = arith.constant 0 : index
    %c0_313 = arith.constant 0 : index
    %348 = vector.load %arg6[%c4_311, %c0_312, %c0_313] : memref<9x32x64xbf16, #tpu.memory_space<vmem>>, vector<1x32x64xbf16>
    %349 = vector.shape_cast %348 : vector<1x32x64xbf16> to vector<32x64xbf16>
    %cst_314 = arith.constant dense<0.000000e+00> : vector<6x64xf32>
    %350 = tpu.matmul %347, %349, %cst_314 {dimension_numbers = #tpu.dot_dimension_numbers<[1], [0], [0], [1], [0, 0, 1, 1], [], []>} : vector<6x32xbf16>, vector<32x64xbf16>, vector<6x64xf32> -> vector<6x64xf32>
    %351 = arith.addf %346, %350 : vector<6x64xf32>
    %c6_315 = arith.constant 6 : index
    %c0_316 = arith.constant 0 : index
    %352 = vector.load %arg17[%c6_315, %c0_316] : memref<16x32xbf16, #tpu.memory_space<vmem>>, vector<6x32xbf16>
    %c5_317 = arith.constant 5 : index
    %c0_318 = arith.constant 0 : index
    %c0_319 = arith.constant 0 : index
    %353 = vector.load %arg6[%c5_317, %c0_318, %c0_319] : memref<9x32x64xbf16, #tpu.memory_space<vmem>>, vector<1x32x64xbf16>
    %354 = vector.shape_cast %353 : vector<1x32x64xbf16> to vector<32x64xbf16>
    %cst_320 = arith.constant dense<0.000000e+00> : vector<6x64xf32>
    %355 = tpu.matmul %352, %354, %cst_320 {dimension_numbers = #tpu.dot_dimension_numbers<[1], [0], [0], [1], [0, 0, 1, 1], [], []>} : vector<6x32xbf16>, vector<32x64xbf16>, vector<6x64xf32> -> vector<6x64xf32>
    %356 = arith.addf %351, %355 : vector<6x64xf32>
    %c8_321 = arith.constant 8 : index
    %c0_322 = arith.constant 0 : index
    %357 = vector.load %arg17[%c8_321, %c0_322] : memref<16x32xbf16, #tpu.memory_space<vmem>>, vector<6x32xbf16>
    %c6_323 = arith.constant 6 : index
    %c0_324 = arith.constant 0 : index
    %c0_325 = arith.constant 0 : index
    %358 = vector.load %arg6[%c6_323, %c0_324, %c0_325] : memref<9x32x64xbf16, #tpu.memory_space<vmem>>, vector<1x32x64xbf16>
    %359 = vector.shape_cast %358 : vector<1x32x64xbf16> to vector<32x64xbf16>
    %cst_326 = arith.constant dense<0.000000e+00> : vector<6x64xf32>
    %360 = tpu.matmul %357, %359, %cst_326 {dimension_numbers = #tpu.dot_dimension_numbers<[1], [0], [0], [1], [0, 0, 1, 1], [], []>} : vector<6x32xbf16>, vector<32x64xbf16>, vector<6x64xf32> -> vector<6x64xf32>
    %361 = arith.addf %356, %360 : vector<6x64xf32>
    %c9_327 = arith.constant 9 : index
    %c0_328 = arith.constant 0 : index
    %362 = vector.load %arg17[%c9_327, %c0_328] : memref<16x32xbf16, #tpu.memory_space<vmem>>, vector<6x32xbf16>
    %c7_329 = arith.constant 7 : index
    %c0_330 = arith.constant 0 : index
    %c0_331 = arith.constant 0 : index
    %363 = vector.load %arg6[%c7_329, %c0_330, %c0_331] : memref<9x32x64xbf16, #tpu.memory_space<vmem>>, vector<1x32x64xbf16>
    %364 = vector.shape_cast %363 : vector<1x32x64xbf16> to vector<32x64xbf16>
    %cst_332 = arith.constant dense<0.000000e+00> : vector<6x64xf32>
    %365 = tpu.matmul %362, %364, %cst_332 {dimension_numbers = #tpu.dot_dimension_numbers<[1], [0], [0], [1], [0, 0, 1, 1], [], []>} : vector<6x32xbf16>, vector<32x64xbf16>, vector<6x64xf32> -> vector<6x64xf32>
    %366 = arith.addf %361, %365 : vector<6x64xf32>
    %c10_333 = arith.constant 10 : index
    %c0_334 = arith.constant 0 : index
    %367 = vector.load %arg17[%c10_333, %c0_334] : memref<16x32xbf16, #tpu.memory_space<vmem>>, vector<6x32xbf16>
    %c8_335 = arith.constant 8 : index
    %c0_336 = arith.constant 0 : index
    %c0_337 = arith.constant 0 : index
    %368 = vector.load %arg6[%c8_335, %c0_336, %c0_337] : memref<9x32x64xbf16, #tpu.memory_space<vmem>>, vector<1x32x64xbf16>
    %369 = vector.shape_cast %368 : vector<1x32x64xbf16> to vector<32x64xbf16>
    %cst_338 = arith.constant dense<0.000000e+00> : vector<6x64xf32>
    %370 = tpu.matmul %367, %369, %cst_338 {dimension_numbers = #tpu.dot_dimension_numbers<[1], [0], [0], [1], [0, 0, 1, 1], [], []>} : vector<6x32xbf16>, vector<32x64xbf16>, vector<6x64xf32> -> vector<6x64xf32>
    %371 = arith.addf %366, %370 : vector<6x64xf32>
    %c0_339 = arith.constant 0 : index
    %c0_340 = arith.constant 0 : index
    %372 = vector.load %arg7[%c0_339, %c0_340] : memref<3x64xf32, #tpu.memory_space<vmem>>, vector<1x64xf32>
    %c1_341 = arith.constant 1 : index
    %c0_342 = arith.constant 0 : index
    %373 = vector.load %arg7[%c1_341, %c0_342] : memref<3x64xf32, #tpu.memory_space<vmem>>, vector<1x64xf32>
    %c2_343 = arith.constant 2 : index
    %c0_344 = arith.constant 0 : index
    %374 = vector.load %arg7[%c2_343, %c0_344] : memref<3x64xf32, #tpu.memory_space<vmem>>, vector<1x64xf32>
    %375 = vector.broadcast %372 : vector<1x64xf32> to vector<6x64xf32>
    %376 = arith.addf %371, %375 : vector<6x64xf32>
    %cst_345 = arith.constant 0.000000e+00 : f32
    %377 = vector.broadcast %cst_345 : f32 to vector<6x64xf32>
    %378 = arith.maximumf %376, %377 : vector<6x64xf32>
    %379 = vector.broadcast %373 : vector<1x64xf32> to vector<6x64xf32>
    %380 = arith.mulf %378, %379 : vector<6x64xf32>
    %381 = vector.broadcast %374 : vector<1x64xf32> to vector<6x64xf32>
    %382 = arith.addf %380, %381 : vector<6x64xf32>
    %c0_346 = arith.constant 0 : index
    %c0_347 = arith.constant 0 : index
    %383 = vector.load %arg18[%c0_346, %c0_347] : memref<6x64xf32, #tpu.memory_space<vmem>>, vector<6x64xf32>
    tpu.vector_store %arg18[%c0_346, %c0_347], %382 {strides = array<i32>} : memref<6x64xf32, #tpu.memory_space<vmem>>, vector<6x64xf32>,
    %c0_348 = arith.constant 0 : index
    %c0_349 = arith.constant 0 : index
    %384 = vector.load %arg18[%c0_348, %c0_349] : memref<6x64xf32, #tpu.memory_space<vmem>>, vector<1x64xf32>
    %c1_350 = arith.constant 1 : index
    %c0_351 = arith.constant 0 : index
    %385 = vector.load %arg18[%c1_350, %c0_351] : memref<6x64xf32, #tpu.memory_space<vmem>>, vector<1x64xf32>
    %386 = arith.maximumf %384, %385 : vector<1x64xf32>
    %c4_352 = arith.constant 4 : index
    %c0_353 = arith.constant 0 : index
    %387 = vector.load %arg18[%c4_352, %c0_353] : memref<6x64xf32, #tpu.memory_space<vmem>>, vector<1x64xf32>
    %c5_354 = arith.constant 5 : index
    %c0_355 = arith.constant 0 : index
    %388 = vector.load %arg18[%c5_354, %c0_355] : memref<6x64xf32, #tpu.memory_space<vmem>>, vector<1x64xf32>
    %389 = arith.maximumf %387, %388 : vector<1x64xf32>
    %390 = arith.maximumf %386, %389 : vector<1x64xf32>
    %c0_356 = arith.constant 0 : index
    %c0_357 = arith.constant 0 : index
    %391 = vector.load %arg8[%c0_356, %c0_357] : memref<64x32xf32, #tpu.memory_space<vmem>>, vector<64x32xf32>
    %cst_358 = arith.constant dense<0.000000e+00> : vector<1x32xf32>
    %392 = tpu.matmul %390, %391, %cst_358 {dimension_numbers = #tpu.dot_dimension_numbers<[1], [0], [0], [1], [0, 0, 1, 1], [], []>} : vector<1x64xf32>, vector<64x32xf32>, vector<1x32xf32> -> vector<1x32xf32>
    %c0_359 = arith.constant 0 : index
    %c0_360 = arith.constant 0 : index
    %393 = vector.load %arg9[%c0_359, %c0_360] : memref<1x32xf32, #tpu.memory_space<vmem>>, vector<1x32xf32>
    %394 = arith.addf %392, %393 : vector<1x32xf32>
    %cst_361 = arith.constant 0.000000e+00 : f32
    %395 = vector.broadcast %cst_361 : f32 to vector<1x32xf32>
    %396 = arith.maximumf %394, %395 : vector<1x32xf32>
    %c0_362 = arith.constant 0 : index
    %c0_363 = arith.constant 0 : index
    %397 = vector.load %arg10[%c0_362, %c0_363] : memref<32x1xf32, #tpu.memory_space<vmem>>, vector<32x1xf32>
    %cst_364 = arith.constant dense<0.000000e+00> : vector<1x1xf32>
    %398 = tpu.matmul %396, %397, %cst_364 {dimension_numbers = #tpu.dot_dimension_numbers<[1], [0], [0], [1], [0, 0, 1, 1], [], []>} : vector<1x32xf32>, vector<32x1xf32>, vector<1x1xf32> -> vector<1x1xf32>
    %c0_365 = arith.constant 0 : index
    %c0_366 = arith.constant 0 : index
    %399 = vector.load %arg11[%c0_365, %c0_366] : memref<1x1xf32, #tpu.memory_space<vmem>>, vector<1x1xf32>
    %400 = arith.addf %398, %399 : vector<1x1xf32>
    %401 = arith.negf %400 : vector<1x1xf32>
    %402 = math.exp %401 : vector<1x1xf32>
    %cst_367 = arith.constant 1.000000e+00 : f32
    %403 = vector.broadcast %cst_367 : f32 to vector<1x1xf32>
    %404 = arith.addf %403, %402 : vector<1x1xf32>
    %405 = arith.divf %403, %404 : vector<1x1xf32>
    %406 = vector.shape_cast %405 : vector<1x1xf32> to vector<1x1xf32>
    %407 = vector.broadcast %406 : vector<1x1xf32> to vector<1x128xf32>
    %c0_368 = arith.constant 0 : index
    %c0_369 = arith.constant 0 : index
    %c0_370 = arith.constant 0 : index
    %408 = vector.load %arg12[%c0_368, %c0_369, %c0_370] : memref<1x1x128xf32, #tpu.memory_space<vmem>>, vector<1x1x128xf32>
    %409 = vector.shape_cast %408 : vector<1x1x128xf32> to vector<1x128xf32>
    %410 = vector.shape_cast %407 : vector<1x128xf32> to vector<1x1x128xf32>
    tpu.vector_store %arg12[%c0_368, %c0_369, %c0_370], %410 {strides = array<i32>} : memref<1x1x128xf32, #tpu.memory_space<vmem>>, vector<1x1x128xf32>,
    return
  }
  func.func @transform_0(%arg0: i32) -> (i32, i32, i32) {
    %c0_i32 = arith.constant 0 : i32
    %c0_i32_0 = arith.constant 0 : i32
    %c0_i32_1 = arith.constant 0 : i32
    return %arg0, %c0_i32, %c0_i32_0 : i32, i32, i32
  }
  func.func @transform_1(%arg0: i32) -> (i32, i32, i32) {
    %c0_i32 = arith.constant 0 : i32
    %c0_i32_0 = arith.constant 0 : i32
    %c0_i32_1 = arith.constant 0 : i32
    %c0_i32_2 = arith.constant 0 : i32
    return %c0_i32, %c0_i32_0, %c0_i32_1 : i32, i32, i32
  }
  func.func @transform_2(%arg0: i32) -> (i32, i32) {
    %c0_i32 = arith.constant 0 : i32
    %c0_i32_0 = arith.constant 0 : i32
    %c0_i32_1 = arith.constant 0 : i32
    return %c0_i32, %c0_i32_0 : i32, i32
  }
  func.func @transform_3(%arg0: i32) -> (i32, i32, i32) {
    %c0_i32 = arith.constant 0 : i32
    %c0_i32_0 = arith.constant 0 : i32
    %c0_i32_1 = arith.constant 0 : i32
    %c0_i32_2 = arith.constant 0 : i32
    return %c0_i32, %c0_i32_0, %c0_i32_1 : i32, i32, i32
  }
  func.func @transform_4(%arg0: i32) -> (i32, i32) {
    %c0_i32 = arith.constant 0 : i32
    %c0_i32_0 = arith.constant 0 : i32
    %c0_i32_1 = arith.constant 0 : i32
    return %c0_i32, %c0_i32_0 : i32, i32
  }
  func.func @transform_5(%arg0: i32) -> (i32, i32, i32) {
    %c0_i32 = arith.constant 0 : i32
    %c0_i32_0 = arith.constant 0 : i32
    %c0_i32_1 = arith.constant 0 : i32
    %c0_i32_2 = arith.constant 0 : i32
    return %c0_i32, %c0_i32_0, %c0_i32_1 : i32, i32, i32
  }
  func.func @transform_6(%arg0: i32) -> (i32, i32) {
    %c0_i32 = arith.constant 0 : i32
    %c0_i32_0 = arith.constant 0 : i32
    %c0_i32_1 = arith.constant 0 : i32
    return %c0_i32, %c0_i32_0 : i32, i32
  }
  func.func @transform_7(%arg0: i32) -> (i32, i32) {
    %c0_i32 = arith.constant 0 : i32
    %c0_i32_0 = arith.constant 0 : i32
    %c0_i32_1 = arith.constant 0 : i32
    return %c0_i32, %c0_i32_0 : i32, i32
  }
  func.func @transform_8(%arg0: i32) -> (i32, i32) {
    %c0_i32 = arith.constant 0 : i32
    %c0_i32_0 = arith.constant 0 : i32
    %c0_i32_1 = arith.constant 0 : i32
    return %c0_i32, %c0_i32_0 : i32, i32
  }
  func.func @transform_9(%arg0: i32) -> (i32, i32) {
    %c0_i32 = arith.constant 0 : i32
    %c0_i32_0 = arith.constant 0 : i32
    %c0_i32_1 = arith.constant 0 : i32
    return %c0_i32, %c0_i32_0 : i32, i32
  }
  func.func @transform_10(%arg0: i32) -> (i32, i32) {
    %c0_i32 = arith.constant 0 : i32
    %c0_i32_0 = arith.constant 0 : i32
    %c0_i32_1 = arith.constant 0 : i32
    return %c0_i32, %c0_i32_0 : i32, i32
  }
  func.func @transform_11(%arg0: i32) -> (i32, i32, i32) {
    %c0_i32 = arith.constant 0 : i32
    %c0_i32_0 = arith.constant 0 : i32
    %c0_i32_1 = arith.constant 0 : i32
    return %arg0, %c0_i32, %c0_i32_0 : i32, i32, i32
  }
}

</mosaic_0001>

<bundles_post_ra>
// kernel: convnet_forward.1
= control target key start
LH: loop header
LB: loop body
LE: loop exit
PB: predicated region body
PF: predicated region fallthrough
CT: control target
= control target key end

     0   :  { %s22394_s19 = smov 0   ;;  %s27282_s0 = inlined_call_operand.vmem [shape: f32[2,576,3], index: 0, kind: input, shape index: {}]   ;;  %s27283_s1 = inlined_call_operand.vmem [shape: bf16[25,3,16], index: 1, kind: input, shape index: {}]   ;;  %s27284_s2 = inlined_call_operand.vmem [shape: f32[3,16], index: 2, kind: input, shape index: {}]   ;;  %s27285_s3 = inlined_call_operand.vmem [shape: bf16[9,16,32], index: 3, kind: input, shape index: {}]   ;;  %s27286_s4 = inlined_call_operand.vmem [shape: f32[3,32], index: 4, kind: input, shape index: {}]   ;;  %s27287_s5 = inlined_call_operand.vmem [shape: bf16[9,32,64], index: 5, kind: input, shape index: {}]   ;;  %s27288_s6 = inlined_call_operand.vmem [shape: f32[3,64], index: 6, kind: input, shape index: {}]   ;;  %s27289_s7 = inlined_call_operand.vmem [shape: f32[64,32], index: 7, kind: input, shape index: {}]   ;;  %s27290_s8 = inlined_call_operand.vmem [shape: f32[1,32], index: 8, kind: input, shape index: {}]   ;;  %s27291_s9 = inlined_call_operand.vmem [shape: f32[32,1], index: 9, kind: input, shape index: {}]   ;;  %s27292_s10 = inlined_call_operand.<no memory space> [shape: f32[1,1], index: 10, kind: input, shape index: {}]   ;;  %s27293_s11 = inlined_call_operand.vmem [shape: f32[2,1,128], index: 11, kind: output, shape index: {}]  }
   0x1   :  { %v16_v0 = vstv %s27292_s10 }
   0x2   :  { %17 = vst [vmem:[#allocation8] sm:$0x1] %v16_v0 }
   0x3 LB: > { %s16965_s20 = sadd.s32 4294967295, %s22324_s19   ;;  %p16969_p0 = scmp.ge.s32.totalorder %s22324_s19, 1  ;;  %s22324_s19 = sphi %s22394_s19, %s23_s19  }
   0x4   : > { %p339_p1 = scmp.lt.s32.totalorder %s22324_s19, 3 }
   0x6   : > { %p340_p2 = pnand %p16969_p0, %p339_p1 }
   0x8   : > { %343 = sbr.rel (%p340_p2) target bundleno = 3440 (0xd70), region = 64 }
   0xf   : > { %vm895_vm0 = vcmask 1040384   ;;  %vm896_vm1 = vcmask 1041408   ;;  %v17280_v1 = vld [vmem:[%s27283_s1 + $0x14] sm:$0x3]  ;;  %p377_p3 = scmp.lt.s32.totalorder %s16965_s20, 1  ;;  %v22326_v2 = vmov 65535  }
  0x10   : > { %v897_v3 = vsel %vm895_vm0, 4294967295, %v22326_v2  ;;  %v17311_v4 = vld [vmem:[%s27283_s1 + $0x16] sm:$0x3]  ;;  %v16971_v5 = vld [vmem:[%s27283_s1 + $0x2] sm:$0x3]  ;;  %vm494_vm2 = vcmask 23552  }
  0x11   : > { %v22413_v6 = vsel %vm896_vm1, %v897_v3, 0  ;;  %s27875_s20 = smov (!%p377_p3, %s16965_s20), 1  ;;  %v17342_v35 = vld [vmem:[%s27283_s1 + $0x18] sm:$0x3]  ;;  %vm565_vm3 = vsmask.f32 7424 }
  0x12   : > { %v22418_v7 = vand.u32 %v17280_v1, %v22413_v6  ;;  %v22421_v8 = vand.u32 %v17311_v4, %v22413_v6  ;;  %v900_v9 = vand.u32 %v16971_v5, %v22413_v6  ;;  %s22135_s26 = smul.u32 576, %s27875_s20  ;;  %v22481_v57 = vand.u32 %v17342_v35, %v22413_v6  ;;  %s384_s18 = scalar_lea.vmem %s27293_s11, %s27875_s20 }
  0x13   : > { %vm1545_vm4 = vcmask 1046528   ;;  %vm27521_vm5 = vsmask.f32 6400  ;;  %vm27520_vm6 = vcmask 1045504   ;;  %vm3145_vm7 = vcmask 1043456  }
  0x14   : > { %27522 = vst [vmem:[#allocation9_spill] sm:$0xff] %v22418_v7  ;;  %19445 = vmatprep.subr.bf16.mxu0 %v22418_v7  ;;  %18825 = vmatprep.subr.bf16.mxu1 %v900_v9  ;;  %s22430_s29 = scalar_lea.vmem %s27282_s0, %s22135_s26  ;;  %vm3636_vm8 = vsmask.f32 3328  ;;  %vm4346_vm9 = vcmask 1042432   ;;  %vm4837_vm10 = vsmask.f32 2304 }
  0x15   : > { %19446 = vmatpush3.bf16.msra.mxu0 %v22418_v7  ;;  %18826 = vmatpush3.bf16.msra.mxu1 %v900_v9  ;;  %v392_v10 = vld [vmem:[%s22430_s29 + $0x30] sm:$0xff]  ;;  %v393_v11 = vld [vmem:[%s22430_s29 + $0x38] sm:$0xff]  ;;  %v394_v12 = vld [vmem:[%s22430_s29 + $0x40] sm:$0xff]  ;;  %vm22328_vm11 = vmmov 0   ;;  %vm14275_vm12 = vcmask 130048   ;;  %vm14335_vm13 = vcmask 125952  }
  0x16   : > { %19507 = vmatprep.subr.bf16.mxu0 %v22421_v8  ;;  %v461_v13 = vpack.c.bf16 %v393_v11, %v392_v10  ;;  %v395_v14 = vld [vmem:[%s22430_s29 + $0x48] sm:$0xff]  ;;  %v386_v15 = vld [vmem:[%s22430_s29] sm:$0xff]  ;;  %v388_v18 = vld [vmem:[%s22430_s29 + $0x10] sm:$0xff]  ;;  %vm14367_vm14 = vcmask 122880   ;;  %vm14398_vm15 = vcmask 1044484  }
  0x17   : > { %v387_v16 = vld [vmem:[%s22430_s29 + $0x8] sm:$0xff]  ;;  %v462_v17 = vpack.c.bf16 %v395_v14, %v394_v12  ;;  %v389_v19 = vld [vmem:[%s22430_s29 + $0x18] sm:$0xff]  ;;  %v390_v21 = vld [vmem:[%s22430_s29 + $0x20] sm:$0xff] }
  0x18   : > { %v458_v20 = vpack.c.bf16 %v387_v16, %v386_v15  ;;  %498 = vst.msk [vmem:[#allocation2 + $0x18] sm:$0xff] %vm494_vm2, %v461_v13  ;;  %v459_v22 = vpack.c.bf16 %v389_v19, %v388_v18  ;;  %v391_v23 = vld [vmem:[%s22430_s29 + $0x28] sm:$0xff]  ;;  %v396_v24 = vld [vmem:[%s22430_s29 + $0x50] sm:$0xff]  ;;  %v397_v25 = vld [vmem:[%s22430_s29 + $0x58] sm:$0xff] }
  0x19   : > { %499 = vst.msk [vmem:[#allocation2 + $0x20] sm:$0xff] %vm494_vm2, %v462_v17  ;;  %v460_v26 = vpack.c.bf16 %v391_v23, %v390_v21  ;;  %v463_v27 = vpack.c.bf16 %v397_v25, %v396_v24  ;;  %v398_v28 = vld [vmem:[%s22430_s29 + $0x60] sm:$0xff]  ;;  %v399_v29 = vld [vmem:[%s22430_s29 + $0x68] sm:$0xff]  ;;  %v400_v30 = vld [vmem:[%s22430_s29 + $0x70] sm:$0xff] }
  0x1a   : > { %495 = vst.msk [vmem:[#allocation2] sm:$0xff] %vm494_vm2, %v458_v20  ;;  %496 = vst.msk [vmem:[#allocation2 + $0x8] sm:$0xff] %vm494_vm2, %v459_v22  ;;  %v464_v31 = vpack.c.bf16 %v399_v29, %v398_v28  ;;  %v401_v32 = vld [vmem:[%s22430_s29 + $0x78] sm:$0xff]  ;;  %v402_v33 = vld [vmem:[%s22430_s29 + $0x80] sm:$0xff] }
  0x1b   : > { %v403_v34 = vld [vmem:[%s22430_s29 + $0x88] sm:$0xff]  ;;  %497 = vst.msk [vmem:[#allocation2 + $0x10] sm:$0xff] %vm494_vm2, %v460_v26  ;;  %500 = vst.msk [vmem:[#allocation2 + $0x28] sm:$0xff] %vm494_vm2, %v463_v27  ;;  %v465_v36 = vpack.c.bf16 %v401_v32, %v400_v30  ;;  %v404_v38 = vld [vmem:[%s22430_s29 + $0x90] sm:$0xff] }
  0x1c   : > { %v466_v37 = vpack.c.bf16 %v403_v34, %v402_v33  ;;  %v405_v39 = vld [vmem:[%s22430_s29 + $0x98] sm:$0xff]  ;;  %v406_v40 = vld [vmem:[%s22430_s29 + $0xa0] sm:$0xff]  ;;  %501 = vst.msk [vmem:[#allocation2 + $0x30] sm:$0xff] %vm494_vm2, %v464_v31  ;;  %v407_v42 = vld [vmem:[%s22430_s29 + $0xa8] sm:$0xff] }
  0x1d   : > { %v467_v41 = vpack.c.bf16 %v405_v39, %v404_v38  ;;  %v408_v43 = vld [vmem:[%s22430_s29 + $0xb0] sm:$0xff]  ;;  %v409_v44 = vld [vmem:[%s22430_s29 + $0xb8] sm:$0xff]  ;;  %502 = vst.msk [vmem:[#allocation2 + $0x38] sm:$0xff] %vm494_vm2, %v465_v36  ;;  %v468_v45 = vpack.c.bf16 %v407_v42, %v406_v40  ;;  %v410_v47 = vld [vmem:[%s22430_s29 + $0xc0] sm:$0xff] }
  0x1e   : > { %503 = vst.msk [vmem:[#allocation2 + $0x40] sm:$0xff] %vm494_vm2, %v466_v37  ;;  %v469_v46 = vpack.c.bf16 %v409_v44, %v408_v43  ;;  %v411_v48 = vld [vmem:[%s22430_s29 + $0xc8] sm:$0xff]  ;;  %v412_v49 = vld [vmem:[%s22430_s29 + $0xd0] sm:$0xff]  ;;  %v413_v51 = vld [vmem:[%s22430_s29 + $0xd8] sm:$0xff] }
  0x1f   : > { %504 = vst.msk [vmem:[#allocation2 + $0x48] sm:$0xff] %vm494_vm2, %v467_v41  ;;  %v470_v50 = vpack.c.bf16 %v411_v48, %v410_v47  ;;  %v414_v52 = vld [vmem:[%s22430_s29 + $0xe0] sm:$0xff]  ;;  %v415_v53 = vld [vmem:[%s22430_s29 + $0xe8] sm:$0xff]  ;;  %v22476_v54 = vld [vmem:[#allocation2 + $0x18] sm:$0xff]  ;;  %v471_v55 = vpack.c.bf16 %v413_v51, %v412_v49 }
  0x20   : > { %27523 = vst [vmem:[#allocation10_spill] sm:$0xff] %v22476_v54  ;;  %505 = vst.msk [vmem:[#allocation2 + $0x50] sm:$0xff] %vm494_vm2, %v468_v45  ;;  %v472_v56 = vpack.c.bf16 %v415_v53, %v414_v52  ;;  %v416_v58 = vld [vmem:[%s22430_s29 + $0xf0] sm:$0xff]  ;;  %v417_v59 = vld [vmem:[%s22430_s29 + $0xf8] sm:$0xff]  ;;  %19447 = vmatprep.mubr.msk.bf16.mxu0 %vm494_vm2, %v22476_v54  ;;  %v27294_v4 = vshll.u32 %v22476_v54, 16  ;;  %v27295_v18 = vshrl.u32 %v22476_v54, 16 }
  0x21   : > { %506 = vst.msk [vmem:[#allocation2 + $0x58] sm:$0xff] %vm494_vm2, %v469_v46  ;;  %v22487_v60 = vld [vmem:[#allocation2 + $0x20] sm:$0xff]  ;;  %507 = vst.msk [vmem:[#allocation2 + $0x60] sm:$0xff] %vm494_vm2, %v470_v50  ;;  %v473_v62 = vpack.c.bf16 %v417_v59, %v416_v58  ;;  %v22495_v0 = vld [vmem:[#allocation2 + $0x8] sm:$0xff] }
  0x22   : > { %v22489_v61 = vld [vmem:[#allocation2] sm:$0xff]  ;;  %19448 = vmatmul.mubr.msk.bf16.vlgmr.msra.gmra.mrb[0].mxu0 %vm494_vm2, %v22487_v60  ;;  %508 = vst.msk [vmem:[#allocation2 + $0x68] sm:$0xff] %vm494_vm2, %v471_v55  ;;  %509 = vst.msk [vmem:[#allocation2 + $0x70] sm:$0xff] %vm494_vm2, %v472_v56  ;;  %v419_v3 = vld [vmem:[%s22430_s29 + $0x108] sm:$0xff]  ;;  %v27306_v5 = vshll.u32 %v22495_v0, 16  ;;  %v27305_v9 = vshrl.u32 %v22495_v0, 16 }
  0x23   : > { %v418_v63 = vld [vmem:[%s22430_s29 + $0x100] sm:$0xff]  ;;  %v567_v1 = vshrl.u32 %v22489_v61, 16  ;;  %v569_v2 = vshll.u32 %v22489_v61, 16  ;;  %19508 = vmatpush3.bf16.msra.mxu0 %v22421_v8  ;;  %v22506_v10 = vld [vmem:[#allocation2 + $0x10] sm:$0xff]  ;;  %v22508_v11 = vld [vmem:[#allocation2 + $0x28] sm:$0xff]  ;;  %510 = vst.msk [vmem:[#allocation2 + $0x78] sm:$0xff] %vm494_vm2, %v473_v62 }
  0x24   : > { %v474_v12 = vpack.c.bf16 %v419_v3, %v418_v63  ;;  %v582_v14 = vshll.u32 %v22506_v10, 16  ;;  %19451 = vmatprep.mubr.msk.bf16.mxu0 %vm494_vm2, %v22508_v11  ;;  %19569 = vmatprep.subr.bf16.mxu0 %v22481_v57  ;;  %v576_v8 = vrot.slane %v27306_v5, 1  ;;  %v27303_v17 = vshll.u32 %v22487_v60, 16  ;;  %v22526_v21 = vld [vmem:[#allocation2 + $0x30] sm:$0xff]  ;;  %v22531_v25 = vld [vmem:[#allocation2 + $0x38] sm:$0xff]  ;;  %v422_v51 = vld [vmem:[%s22430_s29 + $0x120] sm:$0xff] }
  0x25   : > { %v571_v13 = vrot.slane %v569_v2, 1  ;;  %v6355_v19 = vrot.slane %v27294_v4, 1  ;;  %v586_v22 = vshrl.u32 %v22506_v10, 16  ;;  %v27302_v24 = vshll.u32 %v22508_v11, 16  ;;  %v22557_v36 = vld [vmem:[#allocation2 + $0x40] sm:$0xff]  ;;  %v420_v44 = vld [vmem:[%s22430_s29 + $0x110] sm:$0xff] }
  0x26   : > { %511 = vst.msk [vmem:[#allocation2 + $0x80] sm:$0xff] %vm494_vm2, %v474_v12  ;;  %v584_v16 = vrot.slane %v582_v14, 1  ;;  %v580_v20 = vor.u32 %v27305_v9, %v576_v8  ;;  %v27304_v26 = vshrl.u32 %v22487_v60, 16  ;;  %v600_v29 = vrot.slane %v27303_v17, 1  ;;  %v22563_v39 = vld [vmem:[#allocation2 + $0x48] sm:$0xff]  ;;  %v421_v47 = vld [vmem:[%s22430_s29 + $0x118] sm:$0xff] }
  0x27   : > { %v572_v15 = vor.u32 %v571_v13, %v567_v1  ;;  %v596_v31 = vor.u32 %v6355_v19, %v27295_v18  ;;  %v608_v33 = vrot.slane %v27302_v24, 1  ;;  %v27298_v34 = vshll.u32 %v22526_v21, 16  ;;  %v22581_v46 = vld [vmem:[#allocation2 + $0x50] sm:$0xff]  ;;  %v423_v52 = vld [vmem:[%s22430_s29 + $0x128] sm:$0xff]  ;;  %v425_v55 = vld [vmem:[%s22430_s29 + $0x138] sm:$0xff] }
  0x28   : > { %v585_v27 = vsel %vm565_vm3, %v580_v20, %v584_v16  ;;  %v588_v28 = vor.u32 %v586_v22, %v584_v16  ;;  %v604_v32 = vor.u32 %v27304_v26, %v600_v29  ;;  %v27300_v37 = vshrl.u32 %v22508_v11, 16  ;;  %v424_v53 = vld [vmem:[%s22430_s29 + $0x130] sm:$0xff]  ;;  %v426_v58 = vld [vmem:[%s22430_s29 + $0x140] sm:$0xff]  ;;  %v427_v59 = vld [vmem:[%s22430_s29 + $0x148] sm:$0xff] }
  0x29   : > { %v577_v23 = vsel %vm565_vm3, %v572_v15, %v576_v8  ;;  %v22555_v35 = vsel %vm565_vm3, %v596_v31, %v600_v29  ;;  %v27299_v40 = vshrl.u32 %v22526_v21, 16  ;;  %v27297_v41 = vshll.u32 %v22531_v25, 16  ;;  %v22600_v63 = vld [vmem:[#allocation2 + $0x58] sm:$0xff]  ;;  %v428_v12 = vld [vmem:[%s22430_s29 + $0x150] sm:$0xff]  ;;  %v430_v8 = vld [vmem:[%s22430_s29 + $0x160] sm:$0xff] }
  0x2a   : > { %18827 = vmatprep.mubr.msk.bf16.mxu1 %vm494_vm2, %v577_v23  ;;  %19452 = vmatmul.mubr.msk.bf16.gmra.mrb[4].mxu0 %vm494_vm2, %v22526_v21  ;;  %v593_v30 = vsel %vm565_vm3, %v588_v28, %v6355_v19  ;;  %v22561_v38 = vsel %vm565_vm3, %v604_v32, %v608_v33  ;;  %v616_v42 = vrot.slane %v27298_v34, 1  ;;  %v27296_v43 = vshll.u32 %v22557_v36, 16  ;;  %v429_v13 = vld [vmem:[%s22430_s29 + $0x158] sm:$0xff]  ;;  %v431_v15 = vld [vmem:[%s22430_s29 + $0x168] sm:$0xff]  ;;  %v432_v16 = vld [vmem:[%s22430_s29 + $0x170] sm:$0xff] }
  0x2b   : > { %18828 = vmatmul.mubr.msk.bf16.vlgmr.msra.gmra.mrb[0].mxu1 %vm494_vm2, %v585_v27  ;;  %19455 = vmatprep.mubr.msk.bf16.mxu0 %vm494_vm2, %v22531_v25  ;;  %v612_v45 = vor.u32 %v27300_v37, %v608_v33  ;;  %v624_v49 = vrot.slane %v27297_v41, 1  ;;  %v27301_v50 = vshll.u32 %v22563_v39, 16  ;;  %v27353_v56 = vshrl.u32 %v22531_v25, 16  ;;  %v433_v19 = vld [vmem:[%s22430_s29 + $0x178] sm:$0xff]  ;;  %v434_v27 = vld [vmem:[%s22430_s29 + $0x180] sm:$0xff]  ;;  %v435_v28 = vld [vmem:[%s22430_s29 + $0x188] sm:$0xff] }
  0x2c   : > { %18831 = vmatprep.mubr.msk.bf16.mxu1 %vm494_vm2, %v593_v30  ;;  %v620_v48 = vor.u32 %v27299_v40, %v616_v42  ;;  %v22598_v62 = vrot.slane %v27296_v43, 1  ;;  %v27352_v1 = vshrl.u32 %v22557_v36, 16  ;;  %v27351_v2 = vshrl.u32 %v22563_v39, 16  ;;  %v436_v29 = vld [vmem:[%s22430_s29 + $0x190] sm:$0xff]  ;;  %v437_v30 = vld [vmem:[%s22430_s29 + $0x198] sm:$0xff]  ;;  %v438_v31 = vld [vmem:[%s22430_s29 + $0x1a0] sm:$0xff] }
  0x2d   : > { %v27349_v3 = vshll.u32 %v22581_v46, 16  ;;  %v22612_v20 = vsel %vm565_vm3, %v612_v45, %v616_v42  ;;  %v475_v23 = vpack.c.bf16 %v421_v47, %v420_v44  ;;  %v439_v32 = vld [vmem:[%s22430_s29 + $0x1a8] sm:$0xff]  ;;  %v22625_v4 = vrot.slane %v27301_v50, 1  ;;  %v440_v42 = vld [vmem:[%s22430_s29 + $0x1b0] sm:$0xff]  ;;  %v441_v44 = vld [vmem:[%s22430_s29 + $0x1b8] sm:$0xff] }
  0x2e   : > { %v22621_v33 = vsel %vm565_vm3, %v620_v48, %v624_v49  ;;  %v442_v45 = vld [vmem:[%s22430_s29 + $0x1c0] sm:$0xff]  ;;  %v443_v47 = vld [vmem:[%s22430_s29 + $0x1c8] sm:$0xff]  ;;  %v444_v18 = vld [vmem:[%s22430_s29 + $0x1d0] sm:$0xff]  ;;  %v476_v48 = vpack.c.bf16 %v423_v52, %v422_v51  ;;  %v477_v34 = vpack.c.bf16 %v425_v55, %v424_v53  ;;  %v478_v40 = vpack.c.bf16 %v427_v59, %v426_v58 }
  0x2f   : > { %v445_v43 = vld [vmem:[%s22430_s29 + $0x1d8] sm:$0xff]  ;;  %v561_v41 = vld [vmem:[%s27283_s1] sm:$0x3]  ;;  %512 = vst.msk [vmem:[#allocation2 + $0x88] sm:$0xff] %vm494_vm2, %v475_v23  ;;  %v447_v50 = vld [vmem:[%s22430_s29 + $0x1e8] sm:$0xff]  ;;  %v628_v5 = vor.u32 %v27353_v56, %v624_v49  ;;  %v479_v51 = vpack.c.bf16 %v429_v13, %v428_v12  ;;  %v480_v52 = vpack.c.bf16 %v431_v15, %v430_v8  ;;  %v481_v53 = vpack.c.bf16 %v433_v19, %v432_v16 }
  0x30   : > { %v446_v37 = vld [vmem:[%s22430_s29 + $0x1e0] sm:$0xff]  ;;  %v448_v24 = vld [vmem:[%s22430_s29 + $0x1f0] sm:$0xff]  ;;  %v449_v17 = vld [vmem:[%s22430_s29 + $0x1f8] sm:$0xff]  ;;  %513 = vst.msk [vmem:[#allocation2 + $0x90] sm:$0xff] %vm494_vm2, %v476_v48  ;;  %v636_v55 = vor.u32 %v27352_v1, %v22598_v62  ;;  %v482_v49 = vpack.c.bf16 %v435_v28, %v434_v27  ;;  %v483_v58 = vpack.c.bf16 %v437_v30, %v436_v29  ;;  %v484_v59 = vpack.c.bf16 %v439_v32, %v438_v31 }
  0x31   : > { %v450_v26 = vld [vmem:[%s22430_s29 + $0x200] sm:$0xff]  ;;  %v451_v9 = vld [vmem:[%s22430_s29 + $0x208] sm:$0xff]  ;;  %514 = vst.msk [vmem:[#allocation2 + $0x98] sm:$0xff] %vm494_vm2, %v477_v34  ;;  %515 = vst.msk [vmem:[#allocation2 + $0xa0] sm:$0xff] %vm494_vm2, %v478_v40  ;;  %v485_v34 = vpack.c.bf16 %v441_v44, %v440_v42  ;;  %v486_v40 = vpack.c.bf16 %v443_v47, %v442_v45  ;;  %v487_v12 = vpack.c.bf16 %v445_v43, %v444_v18 }
  0x32   : > { %19456 = vmatmul.mubr.msk.bf16.gmra.mrb[8].mxu0 %vm494_vm2, %v22557_v36  ;;  %v22659_v23 = vld [vmem:[#allocation2 + $0x60] sm:$0xff]  ;;  %516 = vst.msk [vmem:[#allocation2 + $0xa8] sm:$0xff] %vm494_vm2, %v479_v51  ;;  %517 = vst.msk [vmem:[#allocation2 + $0xb0] sm:$0xff] %vm494_vm2, %v480_v52  ;;  %v1237_v13 = vand.u32 %v22413_v6, %v561_v41  ;;  %v22665_v8 = vld [vmem:[#allocation2 + $0x68] sm:$0xff]  ;;  %v488_v15 = vpack.c.bf16 %v447_v50, %v446_v37  ;;  %v489_v16 = vpack.c.bf16 %v449_v17, %v448_v24 }
  0x33   : > { %18832 = vmatmul.mubr.msk.bf16.gmra.mrb[4].mxu1 %vm494_vm2, %v22555_v35  ;;  %19459 = vmatprep.mubr.msk.bf16.mxu0 %vm494_vm2, %v22563_v39  ;;  %518 = vst.msk [vmem:[#allocation2 + $0xb8] sm:$0xff] %vm494_vm2, %v481_v53  ;;  %519 = vst.msk [vmem:[#allocation2 + $0xc0] sm:$0xff] %vm494_vm2, %v482_v49  ;;  %v490_v19 = vpack.c.bf16 %v451_v9, %v450_v26  ;;  %v22672_v27 = vsel %vm565_vm3, %v628_v5, %v22598_v62  ;;  %v27350_v41 = vshrl.u32 %v22581_v46, 16  ;;  %v22705_v50 = vld [vmem:[#allocation2 + $0x70] sm:$0xff]  ;;  %v22728_v44 = vld [vmem:[#allocation2 + $0x78] sm:$0xff] }
  0x34   : > { %18835 = vmatprep.mubr.msk.bf16.mxu1 %vm494_vm2, %v22561_v38  ;;  %520 = vst.msk [vmem:[#allocation2 + $0xc8] sm:$0xff] %vm494_vm2, %v483_v58  ;;  %521 = vst.msk [vmem:[#allocation2 + $0xd0] sm:$0xff] %vm494_vm2, %v484_v59  ;;  %18887 = vmatprep.subr.bf16.mxu1 %v1237_v13  ;;  %v22679_v18 = vsel %vm565_vm3, %v636_v55, %v22625_v4  ;;  %v27347_v17 = vshll.u32 %v22600_v63, 16  ;;  %v648_v5 = vrot.slane %v27349_v3, 1  ;;  %v27345_v37 = vshll.u32 %v22659_v23, 16  ;;  %v22748_v49 = vld [vmem:[#allocation2 + $0x80] sm:$0xff] }
  0x35   : > { %522 = vst.msk [vmem:[#allocation2 + $0xd8] sm:$0xff] %vm494_vm2, %v485_v34  ;;  %523 = vst.msk [vmem:[#allocation2 + $0xe0] sm:$0xff] %vm494_vm2, %v486_v40  ;;  %18888 = vmatpush3.bf16.msra.mxu1 %v1237_v13  ;;  %v644_v9 = vor.u32 %v27351_v2, %v22625_v4  ;;  %v27348_v62 = vshrl.u32 %v22600_v63, 16  ;;  %v27346_v4 = vshrl.u32 %v22659_v23, 16  ;;  %v27331_v29 = vshll.u32 %v22665_v8, 16 }
  0x36   : > { %524 = vst.msk [vmem:[#allocation2 + $0xe8] sm:$0xff] %vm494_vm2, %v487_v12  ;;  %525 = vst.msk [vmem:[#allocation2 + $0xf0] sm:$0xff] %vm494_vm2, %v488_v15  ;;  %v652_v24 = vor.u32 %v27350_v41, %v648_v5  ;;  %v656_v26 = vrot.slane %v27347_v17, 1  ;;  %v664_v30 = vrot.slane %v27345_v37, 1  ;;  %v27325_v45 = vshll.u32 %v22705_v50, 16  ;;  %v22756_v59 = vld [vmem:[#allocation2 + $0x88] sm:$0xff] }
  0x37   : > { %526 = vst.msk [vmem:[#allocation2 + $0xf8] sm:$0xff] %vm494_vm2, %v489_v16  ;;  %527 = vst.msk [vmem:[#allocation2 + $0x100] sm:$0xff] %vm494_vm2, %v490_v19  ;;  %v649_v43 = vsel %vm565_vm3, %v644_v9, %v648_v5  ;;  %v672_v42 = vrot.slane %v27331_v29, 1  ;;  %v27335_v48 = vshrl.u32 %v22665_v8, 16  ;;  %v27329_v52 = vshrl.u32 %v22705_v50, 16  ;;  %v22783_v9 = vld [vmem:[#allocation2 + $0x90] sm:$0xff] }
  0x38   : > { %v22709_v28 = vsel %vm565_vm3, %v652_v24, %v656_v26  ;;  %v660_v31 = vor.u32 %v27348_v62, %v656_v26  ;;  %v668_v32 = vor.u32 %v27346_v4, %v664_v30  ;;  %v680_v53 = vrot.slane %v27325_v45, 1  ;;  %v22790_v26 = vld [vmem:[#allocation2 + $0x98] sm:$0xff]  ;;  %v23165_v7 = vld [vmem:[#allocation2] sm:$0xfe] }
  0x39   : > { %v676_v55 = vor.u32 %v27335_v48, %v672_v42  ;;  %v27313_v34 = vshll.u32 %v22748_v49, 16  ;;  %v27323_v12 = vshrl.u32 %v22728_v44, 16  ;;  %v27317_v13 = vshrl.u32 %v22748_v49, 16 }
  0x3a   : > { %19460 = vmatmul.mubr.msk.bf16.gmra.mrb[12].mxu0 %vm494_vm2, %v22581_v46  ;;  %v665_v47 = vsel %vm565_vm3, %v660_v31, %v664_v30  ;;  %v22734_v51 = vsel %vm565_vm3, %v668_v32, %v672_v42  ;;  %v684_v58 = vor.u32 %v27329_v52, %v680_v53  ;;  %v27308_v15 = vshll.u32 %v22756_v59, 16 }
  0x3b   : > { %18836 = vmatmul.mubr.msk.bf16.gmra.mrb[8].mxu1 %vm494_vm2, %v22612_v20  ;;  %19463 = vmatprep.mubr.msk.bf16.mxu0 %vm494_vm2, %v22600_v63  ;;  %v681_v40 = vsel %vm565_vm3, %v676_v55, %v680_v53  ;;  %v696_v19 = vrot.slane %v27313_v34, 1  ;;  %v27307_v30 = vshll.u32 %v22783_v9, 16  ;;  %v27312_v32 = vshrl.u32 %v22756_v59, 16 }
  0x3c   : > { %18839 = vmatprep.mubr.msk.bf16.mxu1 %vm494_vm2, %v22621_v33  ;;  %v27310_v42 = vshrl.u32 %v22783_v9, 16  ;;  %v27309_v53 = vshll.u32 %v22790_v26, 16  ;;  %v7051_v4 = vrot.slane %v22790_v26, 1  ;;  %v2047_v3 = vrot.slane %v586_v22, 1 }
  0x3d   : > { %v700_v24 = vor.u32 %v27317_v13, %v696_v19  ;;  %v712_v55 = vrot.slane %v27307_v30, 1  ;;  %v27314_v30 = vshrl.u32 %v22790_v26, 16  ;;  %v22865_v13 = vld [vmem:[#allocation2 + $0xc8] sm:$0xff]  ;;  %v27531_v2 = vshll.u32 %v22495_v0, 16 }
  0x3e   : > { %v27332_v45 = vshrl.u32 %v22865_v13, 16  ;;  %v22911_v52 = vld [vmem:[#allocation2 + $0xe8] sm:$0x7f]  ;;  %v27532_v22 = vshrl.u32 %v22495_v0, 16 }
  0x3f   : > { %27528 = vst [vmem:[#allocation15_spill] sm:$0xff] %v22911_v52  ;;  %v2044_v1 = vrot.slane %v27531_v2, 2 }
  0x42   : > { %19464 = vmatmul.mubr.msk.bf16.gmra.mrb[16].mxu0 %vm494_vm2, %v22659_v23 }
  0x43   : > { %18840 = vmatmul.mubr.msk.bf16.gmra.mrb[12].mxu1 %vm494_vm2, %v22672_v27  ;;  %19467 = vmatprep.mubr.msk.bf16.mxu0 %vm494_vm2, %v22665_v8 }
  0x44   : > { %18843 = vmatprep.mubr.msk.bf16.mxu1 %vm494_vm2, %v22679_v18 }
  0x4a   : > { %19468 = vmatmul.mubr.msk.bf16.gmra.mrb[20].mxu0 %vm494_vm2, %v22705_v50 }
  0x4b   : > { %18844 = vmatmul.mubr.msk.bf16.gmra.mrb[16].mxu1 %vm494_vm2, %v649_v43  ;;  %19509 = vmatprep.mubr.msk.bf16.mxu0 %vm494_vm2, %v22555_v35  ;;  %v27319_v35 = vshll.u32 %v22728_v44, 16 }
  0x4c   : > { %18847 = vmatprep.mubr.msk.bf16.mxu1 %vm494_vm2, %v22709_v28 }
  0x52   : > { %19510 = vmatmul.mubr.msk.bf16.vlgmr.msra.gmra.mrb[0].mxu0 %vm494_vm2, %v22561_v38  ;;  %v688_v38 = vrot.slane %v27319_v35, 1 }
  0x53   : > { %18848 = vmatmul.mubr.msk.bf16.gmra.mrb[20].mxu1 %vm494_vm2, %v665_v47  ;;  %19570 = vmatpush3.bf16.msra.mxu0 %v22481_v57  ;;  %v17373_v57 = vld [vmem:[%s27283_s1 + $0x1a] sm:$0x3] }
  0x54   : > { %18851 = vmatprep.mubr.msk.bf16.mxu1 %vm494_vm2, %v22734_v51  ;;  %19513 = vmatprep.mubr.msk.bf16.mxu0 %vm494_vm2, %v22612_v20  ;;  %v22765_v20 = vsel %vm565_vm3, %v684_v58, %v688_v38  ;;  %v22770_v16 = vand.u32 %v17373_v57, %v22413_v6  ;;  %v692_v5 = vor.u32 %v27323_v12, %v688_v38  ;;  %v22810_v38 = vld [vmem:[#allocation2 + $0xa0] sm:$0xff]  ;;  %v22888_v12 = vld [vmem:[#allocation2 + $0xd8] sm:$0xff] }
  0x55   : > { %27524 = vst [vmem:[#allocation11_spill] sm:$0xff] %v22810_v38  ;;  %v716_v57 = vor.u32 %v27310_v42, %v712_v55  ;;  %v27344_v29 = vshrl.u32 %v22888_v12, 16 }
  0x56   : > { %19631 = vmatprep.subr.bf16.mxu0 %v22770_v16  ;;  %v697_v31 = vsel %vm565_vm3, %v692_v5, %v696_v19  ;;  %v720_v19 = vrot.slane %v27309_v53, 1  ;;  %v27311_v5 = vshll.u32 %v22810_v38, 16 }
  0x58   : > { %v728_v53 = vrot.slane %v27311_v5, 1 }
  0x5a   : > { %19514 = vmatmul.mubr.msk.bf16.gmra.mrb[4].mxu0 %vm494_vm2, %v22621_v33  ;;  %v704_v33 = vrot.slane %v27308_v15, 1 }
  0x5b   : > { %18852 = vmatmul.mubr.msk.bf16.gmra.mrb[24].mxu1 %vm494_vm2, %v681_v40  ;;  %19517 = vmatprep.mubr.msk.bf16.mxu0 %vm494_vm2, %v22672_v27 }
  0x5c   : > { %18855 = vmatprep.mubr.msk.bf16.mxu1 %vm494_vm2, %v22765_v20  ;;  %v22796_v27 = vsel %vm565_vm3, %v700_v24, %v704_v33  ;;  %v708_v58 = vor.u32 %v27312_v32, %v704_v33  ;;  %v22822_v33 = vsel %vm565_vm3, %v716_v57, %v720_v19 }
  0x5e   : > { %v713_v24 = vsel %vm565_vm3, %v708_v58, %v712_v55  ;;  %v724_v55 = vor.u32 %v27314_v30, %v720_v19  ;;  %v22836_v58 = vld [vmem:[#allocation2 + $0xb0] sm:$0xff] }
  0x5f   : > { %27526 = vst [vmem:[#allocation13_spill] sm:$0xff] %v22836_v58  ;;  %v27318_v5 = vshll.u32 %v22836_v58, 16 }
  0x60   : > { %v729_v32 = vsel %vm565_vm3, %v724_v55, %v728_v53  ;;  %v22859_v55 = vld [vmem:[#allocation2 + $0xc0] sm:$0xff] }
  0x62   : > { %19518 = vmatmul.mubr.msk.bf16.gmra.mrb[8].mxu0 %vm494_vm2, %v22679_v18  ;;  %v22816_v18 = vld [vmem:[#allocation2 + $0xa8] sm:$0xff] }
  0x63   : > { %18856 = vmatmul.mubr.msk.bf16.gmra.mrb[28].mxu1 %vm494_vm2, %v697_v31  ;;  %19521 = vmatprep.mubr.msk.bf16.mxu0 %vm494_vm2, %v649_v43  ;;  %27525 = vst [vmem:[#allocation12_spill] sm:$0xff] %v22816_v18  ;;  %v27316_v43 = vshrl.u32 %v22810_v38, 16  ;;  %v27315_v15 = vshll.u32 %v22816_v18, 16  ;;  %v27320_v34 = vshrl.u32 %v22816_v18, 16  ;;  %v7055_v62 = vrot.slane %v22816_v18, 1 }
  0x64   : > { %18859 = vmatprep.mubr.msk.bf16.mxu1 %vm494_vm2, %v22796_v27 }
  0x65   : > { %v732_v57 = vor.u32 %v27316_v43, %v728_v53  ;;  %v736_v42 = vrot.slane %v27315_v15, 1  ;;  %v744_v15 = vrot.slane %v27318_v5, 1 }
  0x67   : > { %v737_v19 = vsel %vm565_vm3, %v732_v57, %v736_v42  ;;  %v740_v53 = vor.u32 %v27320_v34, %v736_v42  ;;  %v27327_v34 = vshll.u32 %v22865_v13, 16 }
  0x69   : > { %v745_v5 = vsel %vm565_vm3, %v740_v53, %v744_v15  ;;  %v22882_v53 = vld [vmem:[#allocation2 + $0xd0] sm:$0xff] }
  0x6a   : > { %19522 = vmatmul.mubr.msk.bf16.gmra.mrb[12].mxu0 %vm494_vm2, %v22709_v28  ;;  %v22842_v28 = vld [vmem:[#allocation2 + $0xb8] sm:$0xff] }
  0x6b   : > { %18860 = vmatmul.mubr.msk.bf16.gmra.mrb[32].mxu1 %vm494_vm2, %v713_v24  ;;  %19525 = vmatprep.mubr.msk.bf16.mxu0 %vm494_vm2, %v665_v47  ;;  %27527 = vst [vmem:[#allocation14_spill] sm:$0xff] %v22842_v28  ;;  %v27322_v47 = vshrl.u32 %v22836_v58, 16  ;;  %v27321_v30 = vshll.u32 %v22842_v28, 16  ;;  %v27326_v35 = vshrl.u32 %v22842_v28, 16  ;;  %v7059_v2 = vrot.slane %v22842_v28, 1 }
  0x6c   : > { %18863 = vmatprep.mubr.msk.bf16.mxu1 %vm494_vm2, %v22822_v33 }
  0x6d   : > { %v748_v57 = vor.u32 %v27322_v47, %v744_v15  ;;  %v752_v43 = vrot.slane %v27321_v30, 1  ;;  %v768_v47 = vrot.slane %v27327_v34, 1 }
  0x6f   : > { %v753_v42 = vsel %vm565_vm3, %v748_v57, %v752_v43  ;;  %v756_v15 = vor.u32 %v27326_v35, %v752_v43  ;;  %v27333_v35 = vshll.u32 %v22888_v12, 16 }
  0x72   : > { %19526 = vmatmul.mubr.msk.bf16.gmra.mrb[16].mxu0 %vm494_vm2, %v22734_v51  ;;  %v27324_v51 = vshll.u32 %v22859_v55, 16 }
  0x73   : > { %18864 = vmatmul.mubr.msk.bf16.gmra.mrb[36].mxu1 %vm494_vm2, %v729_v32  ;;  %19529 = vmatprep.mubr.msk.bf16.mxu0 %vm494_vm2, %v681_v40  ;;  %v27328_v40 = vshrl.u32 %v22859_v55, 16 }
  0x74   : > { %18867 = vmatprep.mubr.msk.bf16.mxu1 %vm494_vm2, %v737_v19  ;;  %v760_v30 = vrot.slane %v27324_v51, 1 }
  0x76   : > { %v764_v57 = vor.u32 %v27328_v40, %v760_v30  ;;  %v761_v51 = vsel %vm565_vm3, %v756_v15, %v760_v30  ;;  %v772_v30 = vor.u32 %v27332_v45, %v768_v47  ;;  %v22905_v15 = vld [vmem:[#allocation2 + $0xe0] sm:$0xff]  ;;  %v784_v40 = vrot.slane %v27333_v35, 1 }
  0x77   : > { %v798_v45 = vshll.u32 %v22911_v52, 16 }
  0x78   : > { %v769_v43 = vsel %vm565_vm3, %v764_v57, %v768_v47 }
  0x7a   : > { %19530 = vmatmul.mubr.msk.bf16.gmra.mrb[20].mxu0 %vm494_vm2, %v22765_v20  ;;  %v27330_v20 = vshll.u32 %v22882_v53, 16 }
  0x7b   : > { %18868 = vmatmul.mubr.msk.bf16.gmra.mrb[40].mxu1 %vm494_vm2, %v745_v5  ;;  %19533 = vmatprep.mubr.msk.bf16.mxu0 %vm494_vm2, %v697_v31  ;;  %v27334_v31 = vshrl.u32 %v22882_v53, 16 }
  0x7c   : > { %18871 = vmatprep.mubr.msk.bf16.mxu1 %vm494_vm2, %v753_v42  ;;  %v776_v34 = vrot.slane %v27330_v20, 1 }
  0x7e   : > { %v780_v57 = vor.u32 %v27334_v31, %v776_v34  ;;  %v777_v20 = vsel %vm565_vm3, %v772_v30, %v776_v34  ;;  %v788_v34 = vor.u32 %v27344_v29, %v784_v40  ;;  %v7047_v29 = vrot.slane %v22756_v59, 1 }
  0x80   : > { %v785_v47 = vsel %vm565_vm3, %v780_v57, %v784_v40  ;;  %v800_v57 = vrot.slane %v798_v45, 1  ;;  %v17032_v40 = vld [vmem:[%s27283_s1 + $0x4] sm:$0x3] }
  0x81   : > { %v1696_v45 = vand.u32 %v17032_v40, %v22413_v6 }
  0x82   : > { %19534 = vmatmul.mubr.msk.bf16.gmra.mrb[24].mxu0 %vm494_vm2, %v22796_v27  ;;  %v27342_v27 = vshll.u32 %v22905_v15, 16 }
  0x83   : > { %18872 = vmatmul.mubr.msk.bf16.gmra.mrb[44].mxu1 %vm494_vm2, %v761_v51  ;;  %19537 = vmatprep.mubr.msk.bf16.mxu0 %vm494_vm2, %v713_v24  ;;  %v27343_v24 = vshrl.u32 %v22905_v15, 16 }
  0x84   : > { %18875 = vmatprep.mubr.msk.bf16.mxu1 %vm494_vm2, %v769_v43  ;;  %v792_v35 = vrot.slane %v27342_v27, 1  ;;  %18949 = vmatprep.subr.bf16.mxu1 %v1696_v45  ;;  %v7043_v27 = vrot.slane %v22728_v44, 1 }
  0x86   : > { %v796_v30 = vor.u32 %v27343_v24, %v792_v35  ;;  %v793_v31 = vsel %vm565_vm3, %v788_v34, %v792_v35  ;;  %v22973_v34 = vld [vmem:[#allocation2 + $0x100] sm:$0x7f] }
  0x88   : > { %v801_v48 = vsel %vm565_vm3, %v796_v30, %v800_v57 }
  0x8a   : > { %19538 = vmatmul.mubr.msk.bf16.gmra.mrb[28].mxu0 %vm494_vm2, %v22822_v33  ;;  %v802_v33 = vshrl.u32 %v22911_v52, 16  ;;  %v1546_v52 = vrot.slane %v23165_v7, 1 }
  0x8b   : > { %18876 = vmatmul.mubr.msk.bf16.gmra.mrb[48].mxu1 %vm494_vm2, %v777_v20  ;;  %19541 = vmatprep.mubr.msk.bf16.mxu0 %vm494_vm2, %v729_v32  ;;  %v22954_v32 = vld [vmem:[#allocation2 + $0xf0] sm:$0xff] }
  0x8c   : > { %18879 = vmatprep.mubr.msk.bf16.mxu1 %vm494_vm2, %v785_v47  ;;  %v804_v35 = vor.u32 %v802_v33, %v800_v57  ;;  %27530 = vst [vmem:[#allocation17_spill] sm:$0xff] %v22954_v32  ;;  %v27340_v33 = vshrl.u32 %v22954_v32, 16 }
  0x92   : > { %19542 = vmatmul.mubr.msk.bf16.gmra.mrb[32].mxu0 %vm494_vm2, %v737_v19  ;;  %v27336_v19 = vshll.u32 %v22954_v32, 16 }
  0x93   : > { %18880 = vmatmul.mubr.msk.bf16.gmra.mrb[52].mxu1 %vm494_vm2, %v793_v31  ;;  %19545 = vmatprep.mubr.msk.bf16.mxu0 %vm494_vm2, %v745_v5 }
  0x94   : > { %18883 = vmatprep.mubr.msk.bf16.mxu1 %vm494_vm2, %v801_v48  ;;  %v22952_v48 = vld [vmem:[#allocation2 + $0xe8] sm:$0xff] }
  0x95   : > { %27529 = vst [vmem:[#allocation16_spill] sm:$0xff] %v22952_v48  ;;  %v27337_v5 = vshll.u32 %v22952_v48, 16 }
  0x9a   : > { %19546 = vmatmul.mubr.msk.bf16.gmra.mrb[36].mxu0 %vm494_vm2, %v753_v42  ;;  %v22967_v42 = vld [vmem:[#allocation2 + $0xf8] sm:$0xff] }
  0x9b   : > { %18884 = vmatmul.mubr.msk.bf16.gmra.mrb[56].mxu1 %vm494_vm2, %v804_v35  ;;  %19549 = vmatprep.mubr.msk.bf16.mxu0 %vm494_vm2, %v761_v51  ;;  %v6534_v51 = vrot.slane %v27337_v5, 1 }
  0x9c   : > { %18889 = vmatprep.mubr.msk.bf16.mxu1 %vm494_vm2, %v22489_v61  ;;  %v27341_v61 = vshrl.u32 %v22952_v48, 16 }
  0x9d   : > { %v6535_v57 = vsel %vm565_vm3, %v796_v30, %v6534_v51 }
  0xa2   : > { %19550 = vmatmul.mubr.msk.bf16.gmra.mrb[40].mxu0 %vm494_vm2, %v769_v43  ;;  %v6541_v43 = vrot.slane %v27336_v19, 1 }
  0xa3   : > { %18890 = vmatmul.mubr.msk.bf16.vlgmr.msra.gmra.mrb[0].mxu1 %vm494_vm2, %v22495_v0  ;;  %19553 = vmatprep.mubr.msk.bf16.mxu0 %vm494_vm2, %v777_v20  ;;  %v6538_v20 = vor.u32 %v27341_v61, %v6534_v51 }
  0xa4   : > { %18893 = vmatprep.mubr.msk.bf16.mxu1 %vm494_vm2, %v22506_v10  ;;  %18950 = vmatpush3.bf16.msra.mxu1 %v1696_v45  ;;  %v6554_v45 = vshll.u32 %v22973_v34, 16  ;;  %v6545_v30 = vor.u32 %v27340_v33, %v6541_v43  ;;  %v7039_v33 = vrot.slane %v22665_v8, 1 }
  0xa5   : > { %v6542_v40 = vsel %vm565_vm3, %v6538_v20, %v6541_v43 }
  0xa6   : > { %v6556_v20 = vrot.slane %v6554_v45, 1  ;;  %v23006_v45 = vrot.slane %v22487_v60, 1 }
  0xaa   : > { %19554 = vmatmul.mubr.msk.bf16.gmra.mrb[44].mxu0 %vm494_vm2, %v785_v47  ;;  %v27338_v47 = vshll.u32 %v22967_v42, 16 }
  0xab   : > { %18894 = vmatmul.mubr.msk.bf16.gmra.mrb[4].mxu1 %vm494_vm2, %v22476_v54  ;;  %19557 = vmatprep.mubr.msk.bf16.mxu0 %vm494_vm2, %v793_v31  ;;  %v27339_v31 = vshrl.u32 %v22967_v42, 16 }
  0xac   : > { %18897 = vmatprep.mubr.msk.bf16.mxu1 %vm494_vm2, %v22487_v60  ;;  %v6548_v35 = vrot.slane %v27338_v47, 1  ;;  %v7035_v47 = vrot.slane %v22600_v63, 1 }
  0xae   : > { %v6552_v51 = vor.u32 %v27339_v31, %v6548_v35  ;;  %v6549_v19 = vsel %vm565_vm3, %v6545_v30, %v6548_v35 }
  0xb0   : > { %v6557_v5 = vsel %vm565_vm3, %v6552_v51, %v6556_v20  ;;  %v17404_v51 = vld [vmem:[%s27283_s1 + $0x1c] sm:$0x3] }
  0xb2   : > { %19558 = vmatmul.mubr.msk.bf16.gmra.mrb[48].mxu0 %vm494_vm2, %v6535_v57  ;;  %v22995_v57 = vld [vmem:[#allocation2 + $0x18] sm:$0xfe] }
  0xb3   : > { %18898 = vmatmul.mubr.msk.bf16.gmra.mrb[8].mxu1 %vm494_vm2, %v22508_v11  ;;  %19561 = vmatprep.mubr.msk.bf16.mxu0 %vm494_vm2, %v6542_v40  ;;  %v6558_v40 = vshrl.u32 %v22973_v34, 16  ;;  %v7020_v43 = vrot.slane %v22995_v57, 1 }
  0xb4   : > { %18901 = vmatprep.mubr.msk.bf16.mxu1 %vm494_vm2, %v22526_v21 }
  0xb5   : > { %v6560_v35 = vor.u32 %v6558_v40, %v6556_v20  ;;  %v7022_v30 = vsel %vm1545_vm4, %v7020_v43, %v23006_v45  ;;  %v23026_v40 = vand.u32 %v17404_v51, %v22413_v6 }
  0xba   : > { %19562 = vmatmul.mubr.msk.bf16.gmra.mrb[52].mxu0 %vm494_vm2, %v6549_v19  ;;  %v7023_v19 = vrot.slane %v22508_v11, 1 }
  0xbb   : > { %18902 = vmatmul.mubr.msk.bf16.gmra.mrb[12].mxu1 %vm494_vm2, %v22531_v25  ;;  %19565 = vmatprep.mubr.msk.bf16.mxu0 %vm494_vm2, %v6557_v5  ;;  %v23018_v5 = vrot.slane %v22526_v21, 1 }
  0xbc   : > { %18905 = vmatprep.mubr.msk.bf16.mxu1 %vm494_vm2, %v22557_v36  ;;  %v7024_v20 = vsel %vm1545_vm4, %v23006_v45, %v7023_v19 }
  0xbd   : > { %v7026_v43 = vsel %vm1545_vm4, %v7023_v19, %v23018_v5 }
  0xc2   : > { %19566 = vmatmul.mubr.msk.bf16.gmra.mrb[56].mxu0 %vm494_vm2, %v6560_v35  ;;  %v7027_v35 = vrot.slane %v22531_v25, 1 }
  0xc3   : > { %18906 = vmatmul.mubr.msk.bf16.gmra.mrb[16].mxu1 %vm494_vm2, %v22563_v39  ;;  %19571 = vmatprep.mubr.msk.bf16.mxu0 %vm494_vm2, %v7022_v30  ;;  %v7029_v30 = vrot.slane %v22557_v36, 1 }
  0xc4   : > { %18909 = vmatprep.mubr.msk.bf16.mxu1 %vm494_vm2, %v22581_v46  ;;  %v23042_v19 = vsel %vm1545_vm4, %v23018_v5, %v7027_v35 }
  0xc5   : > { %v23045_v51 = vsel %vm1545_vm4, %v7027_v35, %v7029_v30 }
  0xca   : > { %19572 = vmatmul.mubr.msk.bf16.vlgmr.msra.gmra.mrb[0].mxu0 %vm494_vm2, %v7024_v20  ;;  %v7033_v20 = vrot.slane %v22581_v46, 1 }
  0xcb   : > { %18910 = vmatmul.mubr.msk.bf16.gmra.mrb[20].mxu1 %vm494_vm2, %v22600_v63  ;;  %19632 = vmatpush3.bf16.msra.mxu0 %v22770_v16  ;;  %v7031_v16 = vrot.slane %v22563_v39, 1 }
  0xcc   : > { %18913 = vmatprep.mubr.msk.bf16.mxu1 %vm494_vm2, %v22659_v23  ;;  %19575 = vmatprep.mubr.msk.bf16.mxu0 %vm494_vm2, %v7026_v43  ;;  %v23074_v31 = vsel %vm1545_vm4, %v7033_v20, %v7035_v47 }
  0xcd   : > { %19693 = vmatprep.subr.bf16.mxu0 %v23026_v40  ;;  %v23058_v43 = vsel %vm1545_vm4, %v7029_v30, %v7031_v16  ;;  %v23061_v35 = vsel %vm1545_vm4, %v7031_v16, %v7033_v20  ;;  %v7037_v30 = vrot.slane %v22659_v23, 1  ;;  %v7041_v20 = vrot.slane %v22705_v50, 1 }
  0xcf   : > { %v23077_v16 = vsel %vm1545_vm4, %v7035_v47, %v7037_v30  ;;  %v23090_v61 = vsel %vm1545_vm4, %v7037_v30, %v7039_v33  ;;  %v23093_v47 = vsel %vm1545_vm4, %v7039_v33, %v7041_v20  ;;  %v7045_v30 = vrot.slane %v22748_v49, 1 }
  0xd0   : > { %v23106_v24 = vsel %vm1545_vm4, %v7041_v20, %v7043_v27  ;;  %v7049_v20 = vrot.slane %v22783_v9, 1 }
  0xd1   : > { %v23109_v33 = vsel %vm1545_vm4, %v7043_v27, %v7045_v30  ;;  %v23122_v37 = vsel %vm1545_vm4, %v7045_v30, %v7047_v29  ;;  %v7053_v30 = vrot.slane %v22810_v38, 1 }
  0xd2   : > { %19576 = vmatmul.mubr.msk.bf16.gmra.mrb[4].mxu0 %vm494_vm2, %v23042_v19  ;;  %v23125_v27 = vsel %vm1545_vm4, %v7047_v29, %v7049_v20  ;;  %v23138_v17 = vsel %vm1545_vm4, %v7049_v20, %v7051_v4  ;;  %v7057_v20 = vrot.slane %v22836_v58, 1 }
  0xd3   : > { %18914 = vmatmul.mubr.msk.bf16.gmra.mrb[24].mxu1 %vm494_vm2, %v22665_v8  ;;  %19579 = vmatprep.mubr.msk.bf16.mxu0 %vm494_vm2, %v23045_v51  ;;  %v23141_v29 = vsel %vm1545_vm4, %v7051_v4, %v7053_v30  ;;  %v2048_v4 = vrot.slane %v582_v14, 2  ;;  %v23158_v41 = vsel %vm1545_vm4, %v7053_v30, %v7055_v62  ;;  %v17063_v14 = vld [vmem:[%s27283_s1 + $0x6] sm:$0x3]  ;;  %v2043_v30 = vrot.slane %v27532_v22, 1 }
  0xd4   : > { %18917 = vmatprep.mubr.msk.bf16.mxu1 %vm494_vm2, %v22705_v50  ;;  %v23163_v56 = vsel %vm1545_vm4, %v7055_v62, %v7057_v20  ;;  %v2255_v62 = vand.u32 %v17063_v14, %v22413_v6  ;;  %v23195_v14 = vsel %vm1545_vm4, %v7057_v20, %v7059_v2  ;;  %v23209_v20 = vld [vmem:[#allocation2 + $0x18] sm:$0xff] }
  0xd5   : > { %v23182_v54 = vor.u32 %v2048_v4, %v2047_v3  ;;  %27534 = vst [vmem:[#allocation19_spill] sm:$0xff] %v23209_v20 }
  0xd6   : > { %19011 = vmatprep.subr.bf16.mxu1 %v2255_v62 }
  0xda   : > { %19580 = vmatmul.mubr.msk.bf16.gmra.mrb[8].mxu0 %vm494_vm2, %v23058_v43 }
  0xdb   : > { %18918 = vmatmul.mubr.msk.bf16.gmra.mrb[28].mxu1 %vm494_vm2, %v22728_v44  ;;  %19583 = vmatprep.mubr.msk.bf16.mxu0 %vm494_vm2, %v23061_v35 }
  0xdc   : > { %18921 = vmatprep.mubr.msk.bf16.mxu1 %vm494_vm2, %v22748_v49 }
  0xe2   : > { %19584 = vmatmul.mubr.msk.bf16.gmra.mrb[12].mxu0 %vm494_vm2, %v23074_v31 }
  0xe3   : > { %18922 = vmatmul.mubr.msk.bf16.gmra.mrb[32].mxu1 %vm494_vm2, %v22756_v59  ;;  %19587 = vmatprep.mubr.msk.bf16.mxu0 %vm494_vm2, %v23077_v16 }
  0xe4   : > { %18925 = vmatprep.mubr.msk.bf16.mxu1 %vm494_vm2, %v22783_v9 }
  0xea   : > { %19588 = vmatmul.mubr.msk.bf16.gmra.mrb[16].mxu0 %vm494_vm2, %v23090_v61 }
  0xeb   : > { %18926 = vmatmul.mubr.msk.bf16.gmra.mrb[36].mxu1 %vm494_vm2, %v22790_v26  ;;  %19591 = vmatprep.mubr.msk.bf16.mxu0 %vm494_vm2, %v23093_v47 }
  0xec   : > { %18929 = vmatprep.mubr.msk.bf16.mxu1 %vm494_vm2, %v22810_v38  ;;  %v23187_v38 = vor.u32 %v2044_v1, %v2043_v30  ;;  %v7063_v1 = vrot.slane %v22865_v13, 1  ;;  %v7065_v30 = vrot.slane %v22882_v53, 1 }
  0xee   : > { %v23192_v22 = vsel %vm27521_vm5, %v23187_v38, %v23182_v54 }
  0xef   : > { %27533 = vst [vmem:[#allocation18_spill] sm:$0xff] %v23192_v22 }
  0xf2   : > { %19592 = vmatmul.mubr.msk.bf16.gmra.mrb[20].mxu0 %vm494_vm2, %v23106_v24 }
  0xf3   : > { %18930 = vmatmul.mubr.msk.bf16.gmra.mrb[40].mxu1 %vm494_vm2, %v22816_v18  ;;  %19595 = vmatprep.mubr.msk.bf16.mxu0 %vm494_vm2, %v23109_v33  ;;  %v7061_v18 = vrot.slane %v22859_v55, 1 }
  0xf4   : > { %18933 = vmatprep.mubr.msk.bf16.mxu1 %vm494_vm2, %v22836_v58  ;;  %v1547_v58 = vrot.slane %v22495_v0, 1  ;;  %v1549_v0 = vrot.slane %v22506_v10, 1  ;;  %v23219_v10 = vsel %vm1545_vm4, %v7063_v1, %v7065_v30 }
  0xf5   : > { %v23199_v4 = vsel %vm1545_vm4, %v7059_v2, %v7061_v18  ;;  %v23215_v2 = vsel %vm1545_vm4, %v7061_v18, %v7063_v1 }
  0xf6   : > { %v1548_v3 = vsel %vm1545_vm4, %v1546_v52, %v1547_v58  ;;  %v1551_v52 = vrot.slane %v23209_v20, 1  ;;  %v23228_v20 = vld [vmem:[#allocation2 + $0x28] sm:$0xff] }
  0xf7   : > { %27535 = vst [vmem:[#allocation20_spill] sm:$0xff] %v23228_v20  ;;  %v1555_v18 = vrot.slane %v23228_v20, 1 }
  0xf8   : > { %v1554_v1 = vsel %vm1545_vm4, %v1551_v52, %v23006_v45 }
  0xfa   : > { %19596 = vmatmul.mubr.msk.bf16.gmra.mrb[24].mxu0 %vm494_vm2, %v23122_v37 }
  0xfb   : > { %18934 = vmatmul.mubr.msk.bf16.gmra.mrb[44].mxu1 %vm494_vm2, %v22842_v28  ;;  %19599 = vmatprep.mubr.msk.bf16.mxu0 %vm494_vm2, %v23125_v27  ;;  %v560_v28 = vld [vmem:[#allocation2 + $0xe8] sm:$0x3f] }
  0xfc   : > { %18937 = vmatprep.mubr.msk.bf16.mxu1 %vm494_vm2, %v22859_v55 }
 0x102   : > { %19600 = vmatmul.mubr.msk.bf16.gmra.mrb[28].mxu0 %vm494_vm2, %v23138_v17 }
 0x103   : > { %18938 = vmatmul.mubr.msk.bf16.gmra.mrb[48].mxu1 %vm494_vm2, %v22865_v13  ;;  %19603 = vmatprep.mubr.msk.bf16.mxu0 %vm494_vm2, %v23141_v29 }
 0x104   : > { %18941 = vmatprep.mubr.msk.bf16.mxu1 %vm494_vm2, %v22882_v53 }
 0x10a   : > { %19604 = vmatmul.mubr.msk.bf16.gmra.mrb[32].mxu0 %vm494_vm2, %v23158_v41 }
 0x10b   : > { %18942 = vmatmul.mubr.msk.bf16.gmra.mrb[52].mxu1 %vm494_vm2, %v22888_v12  ;;  %19607 = vmatprep.mubr.msk.bf16.mxu0 %vm494_vm2, %v23163_v56 }
 0x10c   : > { %18945 = vmatprep.mubr.msk.bf16.mxu1 %vm494_vm2, %v22905_v15 }
 0x112   : > { %19608 = vmatmul.mubr.msk.bf16.gmra.mrb[36].mxu0 %vm494_vm2, %v23195_v14 }
 0x113   : > { %18946 = vmatmul.mubr.msk.bf16.gmra.mrb[56].mxu1 %vm494_vm2, %v560_v28  ;;  %19611 = vmatprep.mubr.msk.bf16.mxu0 %vm494_vm2, %v23199_v4  ;;  %v1550_v28 = vsel %vm1545_vm4, %v1547_v58, %v1549_v0  ;;  %v7067_v58 = vrot.slane %v22888_v12, 1 }
 0x114   : > { %18951 = vmatprep.mubr.msk.bf16.mxu1 %vm494_vm2, %v1548_v3  ;;  %v1552_v3 = vsel %vm1545_vm4, %v1549_v0, %v1551_v52  ;;  %v23232_v0 = vrot.slane %v22905_v15, 1  ;;  %v7073_v52 = vrot.slane %v22954_v32, 1 }
 0x116   : > { %v23243_v22 = vsel %vm1545_vm4, %v7067_v58, %v23232_v0 }
 0x11a   : > { %19612 = vmatmul.mubr.msk.bf16.gmra.mrb[40].mxu0 %vm494_vm2, %v23215_v2 }
 0x11b   : > { %18952 = vmatmul.mubr.msk.bf16.vlgmr.msra.gmra.mrb[0].mxu1 %vm494_vm2, %v1550_v28  ;;  %19615 = vmatprep.mubr.msk.bf16.mxu0 %vm494_vm2, %v23219_v10  ;;  %v23237_v28 = vsel %vm1545_vm4, %v7065_v30, %v7067_v58 }
 0x11c   : > { %18955 = vmatprep.mubr.msk.bf16.mxu1 %vm494_vm2, %v1552_v3  ;;  %19012 = vmatpush3.bf16.msra.mxu1 %v2255_v62  ;;  %v1556_v3 = vsel %vm1545_vm4, %v23006_v45, %v1555_v18  ;;  %v7071_v62 = vrot.slane %v22952_v48, 1  ;;  %v1558_v45 = vsel %vm1545_vm4, %v1555_v18, %v23018_v5  ;;  %v7509_v5 = vshrl.u32 %v22995_v57, 16 }
 0x11d   : > { %v7512_v18 = vshll.u32 %v22995_v57, 16 }
 0x11e   : > { %v7072_v30 = vsel %vm1545_vm4, %v23232_v0, %v7071_v62  ;;  %v7074_v58 = vsel %vm1545_vm4, %v7071_v62, %v7073_v52 }
 0x11f   : > { %v7514_v32 = vrot.slane %v7512_v18, 2 }
 0x122   : > { %19616 = vmatmul.mubr.msk.bf16.gmra.mrb[44].mxu0 %vm494_vm2, %v23237_v28 }
 0x123   : > { %18956 = vmatmul.mubr.msk.bf16.gmra.mrb[4].mxu1 %vm494_vm2, %v1554_v1  ;;  %19619 = vmatprep.mubr.msk.bf16.mxu0 %vm494_vm2, %v23243_v22  ;;  %v7075_v1 = vrot.slane %v22967_v42, 1 }
 0x124   : > { %18959 = vmatprep.mubr.msk.bf16.mxu1 %vm494_vm2, %v1556_v3  ;;  %v7077_v3 = vrot.slane %v22973_v34, 1 }
 0x125   : > { %v7076_v20 = vsel %vm1545_vm4, %v7073_v52, %v7075_v1  ;;  %v27538_v52 = vshll.u32 %v22508_v11, 16 }
 0x126   : > { %v7078_v62 = vsel %vm1545_vm4, %v7075_v1, %v7077_v3 }
 0x127   : > { %v7521_v1 = vrot.slane %v27538_v52, 2 }
 0x12a   : > { %19620 = vmatmul.mubr.msk.bf16.gmra.mrb[48].mxu0 %vm494_vm2, %v7072_v30  ;;  %v27536_v30 = vshrl.u32 %v22487_v60, 16 }
 0x12b   : > { %18960 = vmatmul.mubr.msk.bf16.gmra.mrb[8].mxu1 %vm494_vm2, %v1558_v45  ;;  %19623 = vmatprep.mubr.msk.bf16.mxu0 %vm494_vm2, %v7074_v58  ;;  %v7511_v45 = vrot.slane %v7509_v5, 1  ;;  %v27539_v5 = vshrl.u32 %v22508_v11, 16 }
 0x12c   : > { %18963 = vmatprep.mubr.msk.bf16.mxu1 %vm494_vm2, %v23042_v19  ;;  %v7516_v48 = vrot.slane %v27536_v30, 1  ;;  %v27537_v19 = vshll.u32 %v22487_v60, 16  ;;  %v27541_v30 = vshll.u32 %v22526_v21, 16 }
 0x12d   : > { %v7515_v34 = vor.u32 %v7514_v32, %v7511_v45  ;;  %v7520_v60 = vrot.slane %v27539_v5, 1  ;;  %v17435_v32 = vld [vmem:[%s27283_s1 + $0x1e] sm:$0x3] }
 0x12e   : > { %v7517_v58 = vrot.slane %v27537_v19, 2  ;;  %v23313_v52 = vand.u32 %v17435_v32, %v22413_v6 }
 0x12f   : > { %v7522_v11 = vor.u32 %v7521_v1, %v7520_v60 }
 0x130   : > { %v23279_v57 = vor.u32 %v7517_v58, %v7516_v48  ;;  %v27545_v58 = vshll.u32 %v22557_v36, 16 }
 0x132   : > { %19624 = vmatmul.mubr.msk.bf16.gmra.mrb[52].mxu0 %vm494_vm2, %v7076_v20  ;;  %v7519_v18 = vsel %vm27521_vm5, %v7515_v34, %v23279_v57  ;;  %v7533_v34 = vrot.slane %v27545_v58, 2 }
 0x133   : > { %18964 = vmatmul.mubr.msk.bf16.gmra.mrb[12].mxu1 %vm494_vm2, %v23045_v51  ;;  %19627 = vmatprep.mubr.msk.bf16.mxu0 %vm494_vm2, %v7078_v62  ;;  %v27540_v51 = vshrl.u32 %v22526_v21, 16  ;;  %v23302_v21 = vsel %vm27521_vm5, %v23279_v57, %v7522_v11  ;;  %v27542_v62 = vshrl.u32 %v22531_v25, 16 }
 0x134   : > { %18967 = vmatprep.mubr.msk.bf16.mxu1 %vm494_vm2, %v23058_v43  ;;  %v7525_v43 = vrot.slane %v27541_v30, 2  ;;  %v27549_v30 = vshll.u32 %v22581_v46, 16 }
 0x135   : > { %v7524_v20 = vrot.slane %v27540_v51, 1 }
 0x137   : > { %v7526_v48 = vor.u32 %v7525_v43, %v7524_v20  ;;  %v7541_v43 = vrot.slane %v27549_v30, 2  ;;  %v27559_v30 = vshll.u32 %v22728_v44, 16 }
 0x139   : > { %v23316_v1 = vsel %vm27521_vm5, %v7522_v11, %v7526_v48 }
 0x13a   : > { %19628 = vmatmul.mubr.msk.bf16.gmra.mrb[56].mxu0 %vm494_vm2, %v7077_v3  ;;  %v27543_v3 = vshll.u32 %v22531_v25, 16 }
 0x13b   : > { %18968 = vmatmul.mubr.msk.bf16.gmra.mrb[16].mxu1 %vm494_vm2, %v23061_v35  ;;  %19633 = vmatprep.mubr.msk.bf16.mxu0 %vm494_vm2, %v7519_v18  ;;  %v7528_v35 = vrot.slane %v27542_v62, 1  ;;  %v27547_v18 = vshll.u32 %v22563_v39, 16  ;;  %v27551_v62 = vshll.u32 %v22600_v63, 16 }
 0x13c   : > { %18971 = vmatprep.mubr.msk.bf16.mxu1 %vm494_vm2, %v23074_v31  ;;  %v7529_v45 = vrot.slane %v27543_v3, 2  ;;  %v27544_v31 = vshrl.u32 %v22557_v36, 16  ;;  %v27552_v3 = vshrl.u32 %v22659_v23, 16 }
 0x13d   : > { %v7537_v51 = vrot.slane %v27547_v18, 2 }
 0x13e   : > { %v7532_v19 = vrot.slane %v27544_v31, 1  ;;  %v7530_v25 = vor.u32 %v7529_v45, %v7528_v35  ;;  %v27553_v45 = vshll.u32 %v22659_v23, 16  ;;  %v27554_v23 = vshrl.u32 %v22665_v8, 16 }
 0x140   : > { %v7534_v36 = vor.u32 %v7533_v34, %v7532_v19  ;;  %v23329_v5 = vsel %vm27521_vm5, %v7526_v48, %v7530_v25  ;;  %v7549_v31 = vrot.slane %v27553_v45, 2  ;;  %v7552_v34 = vrot.slane %v27554_v23, 1 }
 0x141   : > { %v27564_v45 = vshrl.u32 %v22783_v9, 16  ;;  %v27566_v23 = vshrl.u32 %v22790_v26, 16 }
 0x142   : > { %19634 = vmatmul.mubr.msk.bf16.vlgmr.msra.gmra.mrb[0].mxu0 %vm494_vm2, %v23302_v21 }
 0x143   : > { %18972 = vmatmul.mubr.msk.bf16.gmra.mrb[20].mxu1 %vm494_vm2, %v23077_v16  ;;  %19694 = vmatpush3.bf16.msra.mxu0 %v23026_v40  ;;  %v27546_v16 = vshrl.u32 %v22563_v39, 16  ;;  %v23336_v40 = vsel %vm27521_vm5, %v7530_v25, %v7534_v36  ;;  %v27555_v25 = vshll.u32 %v22665_v8, 16 }
 0x144   : > { %18975 = vmatprep.mubr.msk.bf16.mxu1 %vm494_vm2, %v23090_v61  ;;  %19637 = vmatprep.mubr.msk.bf16.mxu0 %vm494_vm2, %v23316_v1  ;;  %v27548_v61 = vshrl.u32 %v22581_v46, 16  ;;  %v27550_v46 = vshrl.u32 %v22600_v63, 16 }
 0x145   : > { %19755 = vmatprep.subr.bf16.mxu0 %v23313_v52  ;;  %v7536_v60 = vrot.slane %v27546_v16, 1  ;;  %v27556_v16 = vshrl.u32 %v22705_v50, 16 }
 0x146   : > { %v7540_v20 = vrot.slane %v27548_v61, 1  ;;  %v7544_v32 = vrot.slane %v27550_v46, 1 }
 0x147   : > { %v7538_v39 = vor.u32 %v7537_v51, %v7536_v60  ;;  %v27557_v60 = vshll.u32 %v22705_v50, 16  ;;  %v27558_v50 = vshrl.u32 %v22728_v44, 16 }
 0x148   : > { %v7542_v11 = vor.u32 %v7541_v43, %v7540_v20 }
 0x149   : > { %v23351_v48 = vsel %vm27521_vm5, %v7534_v36, %v7538_v39  ;;  %v7557_v18 = vrot.slane %v27557_v60, 2  ;;  %v7560_v20 = vrot.slane %v27558_v50, 1  ;;  %v27571_v50 = vld [vmem:[#allocation12_spill] sm:$0xff] }
 0x14a   : > { %19638 = vmatmul.mubr.msk.bf16.gmra.mrb[4].mxu0 %vm494_vm2, %v23329_v5  ;;  %v23358_v35 = vsel %vm27521_vm5, %v7538_v39, %v7542_v11  ;;  %v27560_v39 = vshrl.u32 %v22748_v49, 16 }
 0x14b   : > { %18976 = vmatmul.mubr.msk.bf16.gmra.mrb[24].mxu1 %vm494_vm2, %v23093_v47  ;;  %19641 = vmatprep.mubr.msk.bf16.mxu0 %vm494_vm2, %v23336_v40  ;;  %v7545_v47 = vrot.slane %v27551_v62, 2 }
 0x14c   : > { %18979 = vmatprep.mubr.msk.bf16.mxu1 %vm494_vm2, %v23106_v24  ;;  %v7548_v24 = vrot.slane %v27552_v3, 1  ;;  %v27563_v3 = vshll.u32 %v22756_v59, 16 }
 0x14d   : > { %v7546_v63 = vor.u32 %v7545_v47, %v7544_v32 }
 0x14e   : > { %v7550_v19 = vor.u32 %v7549_v31, %v7548_v24  ;;  %v27565_v31 = vshll.u32 %v22783_v9, 16  ;;  %v27567_v9 = vshll.u32 %v22790_v26, 16 }
 0x14f   : > { %v23373_v58 = vsel %vm27521_vm5, %v7542_v11, %v7546_v63  ;;  %v27561_v11 = vshll.u32 %v22748_v49, 16  ;;  %v27562_v49 = vshrl.u32 %v22756_v59, 16 }
 0x150   : > { %v23380_v36 = vsel %vm27521_vm5, %v7546_v63, %v7550_v19  ;;  %v7573_v63 = vrot.slane %v27565_v31, 2 }
 0x151   : > { %v7565_v46 = vrot.slane %v27561_v11, 2  ;;  %v7568_v47 = vrot.slane %v27562_v49, 1  ;;  %v27577_v49 = vld [vmem:[#allocation15_spill] sm:$0xff] }
 0x152   : > { %19642 = vmatmul.mubr.msk.bf16.gmra.mrb[8].mxu0 %vm494_vm2, %v23351_v48 }
 0x153   : > { %18980 = vmatmul.mubr.msk.bf16.gmra.mrb[28].mxu1 %vm494_vm2, %v23109_v33  ;;  %19645 = vmatprep.mubr.msk.bf16.mxu0 %vm494_vm2, %v23358_v35  ;;  %v7553_v33 = vrot.slane %v27555_v25, 2  ;;  %v7577_v25 = vrot.slane %v27567_v9, 2 }
 0x154   : > { %18983 = vmatprep.mubr.msk.bf16.mxu1 %vm494_vm2, %v23122_v37  ;;  %v7556_v37 = vrot.slane %v27556_v16, 1  ;;  %v27568_v16 = vld [vmem:[#allocation11_spill] sm:$0xff] }
 0x155   : > { %v7554_v8 = vor.u32 %v7553_v33, %v7552_v34  ;;  %v7576_v34 = vrot.slane %v27566_v23, 1  ;;  %v27570_v60 = vshll.u32 %v27568_v16, 16 }
 0x156   : > { %v7558_v51 = vor.u32 %v7557_v18, %v7556_v37  ;;  %v27569_v37 = vshrl.u32 %v27568_v16, 16  ;;  %v27582_v16 = vshll.u32 %v22859_v55, 16 }
 0x157   : > { %v23395_v61 = vsel %vm27521_vm5, %v7550_v19, %v7554_v8  ;;  %v7581_v18 = vrot.slane %v27570_v60, 2  ;;  %v7578_v26 = vor.u32 %v7577_v25, %v7576_v34  ;;  %v27581_v25 = vshrl.u32 %v22859_v55, 16 }
 0x158   : > { %v23402_v43 = vsel %vm27521_vm5, %v7554_v8, %v7558_v51 }
 0x15a   : > { %19646 = vmatmul.mubr.msk.bf16.gmra.mrb[12].mxu0 %vm494_vm2, %v23373_v58 }
 0x15b   : > { %18984 = vmatmul.mubr.msk.bf16.gmra.mrb[32].mxu1 %vm494_vm2, %v23125_v27  ;;  %19649 = vmatprep.mubr.msk.bf16.mxu0 %vm494_vm2, %v23380_v36  ;;  %v7561_v27 = vrot.slane %v27559_v30, 2 }
 0x15c   : > { %18987 = vmatprep.mubr.msk.bf16.mxu1 %vm494_vm2, %v23138_v17  ;;  %v7564_v17 = vrot.slane %v27560_v39, 1  ;;  %v27574_v39 = vld [vmem:[#allocation13_spill] sm:$0xff] }
 0x15d   : > { %v7562_v44 = vor.u32 %v7561_v27, %v7560_v20  ;;  %v27572_v20 = vshrl.u32 %v27571_v50, 16  ;;  %v27573_v27 = vshll.u32 %v27571_v50, 16  ;;  %v27584_v50 = vshll.u32 %v22865_v13, 16 }
 0x15e   : > { %v7566_v32 = vor.u32 %v7565_v46, %v7564_v17  ;;  %v27575_v17 = vshrl.u32 %v27574_v39, 16  ;;  %v27576_v46 = vshll.u32 %v27574_v39, 16 }
 0x15f   : > { %v23417_v62 = vsel %vm27521_vm5, %v7558_v51, %v7562_v44  ;;  %v7584_v30 = vrot.slane %v27572_v20, 1  ;;  %v7601_v20 = vrot.slane %v27584_v50, 2 }
 0x160   : > { %v23424_v24 = vsel %vm27521_vm5, %v7562_v44, %v7566_v32  ;;  %v7588_v11 = vrot.slane %v27575_v17, 1  ;;  %v7589_v44 = vrot.slane %v27576_v46, 2 }
 0x162   : > { %19650 = vmatmul.mubr.msk.bf16.gmra.mrb[16].mxu0 %vm494_vm2, %v23395_v61 }
 0x163   : > { %18988 = vmatmul.mubr.msk.bf16.gmra.mrb[36].mxu1 %vm494_vm2, %v23141_v29  ;;  %19653 = vmatprep.mubr.msk.bf16.mxu0 %vm494_vm2, %v23402_v43  ;;  %v7569_v29 = vrot.slane %v27563_v3, 2  ;;  %v7590_v3 = vor.u32 %v7589_v44, %v7588_v11  ;;  %v27588_v11 = vshrl.u32 %v22882_v53, 16  ;;  %v27589_v44 = vshll.u32 %v22882_v53, 16 }
 0x164   : > { %18991 = vmatprep.mubr.msk.bf16.mxu1 %vm494_vm2, %v23158_v41  ;;  %v7572_v41 = vrot.slane %v27564_v45, 1  ;;  %v2039_v45 = vshll.u32 %v23165_v7, 16 }
 0x165   : > { %v7570_v59 = vor.u32 %v7569_v29, %v7568_v47  ;;  %v1603_v47 = vrot.slane %v27577_v49, 1  ;;  %v2036_v29 = vshrl.u32 %v23165_v7, 16  ;;  %v7596_v7 = vrot.slane %v27581_v25, 1 }
 0x166   : > { %v7574_v19 = vor.u32 %v7573_v63, %v7572_v41  ;;  %v27578_v41 = vld [vmem:[#allocation14_spill] sm:$0xff]  ;;  %v2041_v9 = vrot.slane %v2039_v45, 2  ;;  %v7604_v46 = vrot.slane %v27588_v11, 1  ;;  %v27590_v45 = vshrl.u32 %v22888_v12, 16 }
 0x167   : > { %v23443_v33 = vsel %vm27521_vm5, %v7566_v32, %v7570_v59  ;;  %v27579_v31 = vshrl.u32 %v27578_v41, 16  ;;  %v27580_v63 = vshll.u32 %v27578_v41, 16  ;;  %v2038_v34 = vrot.slane %v2036_v29, 1 }
 0x168   : > { %v23461_v51 = vsel %vm27521_vm5, %v7574_v19, %v7578_v26  ;;  %v7608_v41 = vrot.slane %v27590_v45, 1 }
 0x169   : > { %v2042_v55 = vor.u32 %v2041_v9, %v2038_v34  ;;  %v27593_v34 = vshll.u32 %v22905_v15, 16 }
 0x16a   : > { %19654 = vmatmul.mubr.msk.bf16.gmra.mrb[20].mxu0 %vm494_vm2, %v23417_v62 }
 0x16b   : > { %18992 = vmatmul.mubr.msk.bf16.gmra.mrb[40].mxu1 %vm494_vm2, %v23163_v56  ;;  %19657 = vmatprep.mubr.msk.bf16.mxu0 %vm494_vm2, %v23424_v24  ;;  %v23446_v56 = vsel %vm27521_vm5, %v7570_v59, %v7574_v19  ;;  %v7593_v59 = vrot.slane %v27580_v63, 2  ;;  %v2046_v49 = vsel %vm27521_vm5, %v2042_v55, %v23187_v38  ;;  %v27591_v38 = vshll.u32 %v22888_v12, 16 }
 0x16c   : > { %18995 = vmatprep.mubr.msk.bf16.mxu1 %vm494_vm2, %v23195_v14  ;;  %v7580_v14 = vrot.slane %v27569_v37, 1  ;;  %v7597_v37 = vrot.slane %v27582_v16, 2  ;;  %v7613_v9 = vrot.slane %v27593_v34, 2  ;;  %v27595_v16 = vld [vmem:[#allocation16_spill] sm:$0xff] }
 0x16e   : > { %v7582_v8 = vor.u32 %v7581_v18, %v7580_v14  ;;  %v7598_v18 = vor.u32 %v7597_v37, %v7596_v7  ;;  %v27594_v7 = vld [vmem:[#allocation18_spill] sm:$0xff]  ;;  %v27596_v37 = vshrl.u32 %v27595_v16, 16 }
 0x172   : > { %19658 = vmatmul.mubr.msk.bf16.gmra.mrb[24].mxu0 %vm494_vm2, %v23443_v33 }
 0x173   : > { %18996 = vmatmul.mubr.msk.bf16.gmra.mrb[44].mxu1 %vm494_vm2, %v23199_v4  ;;  %19661 = vmatprep.mubr.msk.bf16.mxu0 %vm494_vm2, %v23446_v56  ;;  %v7585_v4 = vrot.slane %v27573_v27, 2 }
 0x174   : > { %18999 = vmatprep.mubr.msk.bf16.mxu1 %vm494_vm2, %v23215_v2  ;;  %v23472_v2 = vsel %vm27521_vm5, %v7578_v26, %v7582_v8  ;;  %v27583_v26 = vshrl.u32 %v22865_v13, 16 }
 0x175   : > { %v7586_v32 = vor.u32 %v7585_v4, %v7584_v30  ;;  %v27585_v30 = vld [vmem:[#allocation10_spill] sm:$0xff] }
 0x176   : > { %v27586_v27 = vshrl.u32 %v27585_v30, 16  ;;  %v27587_v39 = vshll.u32 %v27585_v30, 16 }
 0x177   : > { %v23490_v19 = vsel %vm27521_vm5, %v7582_v8, %v7586_v32  ;;  %v23495_v23 = vsel %vm27521_vm5, %v7586_v32, %v7590_v3  ;;  %v7600_v8 = vrot.slane %v27583_v26, 1  ;;  %v7605_v32 = vrot.slane %v27589_v44, 2 }
 0x178   : > { %v2051_v4 = vrot.slane %v27586_v27, 1  ;;  %v2052_v17 = vrot.slane %v27587_v39, 2 }
 0x179   : > { %v7602_v13 = vor.u32 %v7601_v20, %v7600_v8  ;;  %v7606_v53 = vor.u32 %v7605_v32, %v7604_v46  ;;  %v27601_v46 = vshrl.u32 %v22967_v42, 16  ;;  %v27602_v32 = vshll.u32 %v22967_v42, 16  ;;  %v8063_v42 = vld [vmem:[#allocation2 + $0x18] sm:$0xfc] }
 0x17a   : > { %19662 = vmatmul.mubr.msk.bf16.gmra.mrb[28].mxu0 %vm494_vm2, %v23461_v51  ;;  %v2053_v29 = vor.u32 %v2052_v17, %v2051_v4 }
 0x17b   : > { %19000 = vmatmul.mubr.msk.bf16.gmra.mrb[48].mxu1 %vm494_vm2, %v23219_v10  ;;  %19665 = vmatprep.mubr.msk.bf16.mxu0 %vm494_vm2, %v23472_v2  ;;  %v7592_v10 = vrot.slane %v27579_v31, 1  ;;  %v7609_v31 = vrot.slane %v27591_v38, 2  ;;  %v23548_v63 = vsel %vm27521_vm5, %v7602_v13, %v7606_v53  ;;  %v7624_v44 = vrot.slane %v27601_v46, 1 }
 0x17c   : > { %19003 = vmatprep.mubr.msk.bf16.mxu1 %vm494_vm2, %v23237_v28  ;;  %v1604_v28 = vsel %vm1545_vm4, %v23232_v0, %v1603_v47  ;;  %v17094_v0 = vld [vmem:[%s27283_s1 + $0x8] sm:$0x3]  ;;  %v2058_v12 = vsel %vm27521_vm5, %v2053_v29, %v23279_v57  ;;  %v23580_v57 = vld [vmem:[#allocation2 + $0x100] sm:$0xff] }
 0x17d   : > { %v7594_v14 = vor.u32 %v7593_v59, %v7592_v10  ;;  %v2746_v60 = vand.u32 %v17094_v0, %v22413_v6  ;;  %v23543_v10 = vsel %vm27521_vm5, %v7598_v18, %v7602_v13  ;;  %v27592_v59 = vshrl.u32 %v22905_v15, 16 }
 0x17e   : > { %v7610_v25 = vor.u32 %v7609_v31, %v7608_v41  ;;  %v27597_v0 = vshll.u32 %v27595_v16, 16  ;;  %v7629_v4 = vshrl.u32 %v23580_v57, 16  ;;  %v7632_v39 = vshll.u32 %v23580_v57, 16 }
 0x17f   : > { %19073 = vmatprep.subr.bf16.mxu1 %v2746_v60 }
 0x180   : > { %v23566_v15 = vsel %vm27521_vm5, %v7606_v53, %v7610_v25  ;;  %v7617_v55 = vrot.slane %v27597_v0, 2  ;;  %v7634_v13 = vrot.slane %v7632_v39, 2  ;;  %v22219_v39 = vld [vmem:[#allocation2 + $0x80] sm:$0xff] }
 0x182   : > { %19666 = vmatmul.mubr.msk.bf16.gmra.mrb[32].mxu0 %vm494_vm2, %v23490_v19 }
 0x183   : > { %19004 = vmatmul.mubr.msk.bf16.gmra.mrb[52].mxu1 %vm494_vm2, %v23243_v22  ;;  %19669 = vmatprep.mubr.msk.bf16.mxu0 %vm494_vm2, %v23495_v23  ;;  %v23513_v22 = vsel %vm27521_vm5, %v7590_v3, %v7594_v14  ;;  %v23530_v3 = vsel %vm27521_vm5, %v7594_v14, %v7598_v18  ;;  %v7616_v14 = vrot.slane %v27596_v37, 1  ;;  %v27598_v18 = vld [vmem:[#allocation17_spill] sm:$0xff] }
 0x184   : > { %19007 = vmatprep.mubr.msk.bf16.mxu1 %vm494_vm2, %v1604_v28  ;;  %v7612_v28 = vrot.slane %v27592_v59, 1  ;;  %v27599_v26 = vshrl.u32 %v27598_v18, 16  ;;  %v27600_v50 = vshll.u32 %v27598_v18, 16  ;;  %v22213_v37 = vld [vmem:[#allocation2 + $0x50] sm:$0xff]  ;;  %v22215_v18 = vld [vmem:[#allocation2 + $0x60] sm:$0xff] }
 0x185   : > { %v7618_v30 = vor.u32 %v7617_v55, %v7616_v14  ;;  %v8081_v14 = vrot.slane %v22213_v37, 2 }
 0x186   : > { %v7620_v8 = vrot.slane %v27599_v26, 1  ;;  %v7621_v20 = vrot.slane %v27600_v50, 2  ;;  %v8085_v26 = vrot.slane %v22215_v18, 2  ;;  %v22229_v18 = vld [vmem:[#allocation2 + $0x10] sm:$0xff] }
 0x188   : > { %v7622_v27 = vor.u32 %v7621_v20, %v7620_v8  ;;  %v22217_v20 = vld [vmem:[#allocation2 + $0x70] sm:$0xff] }
 0x18a   : > { %19670 = vmatmul.mubr.msk.bf16.gmra.mrb[36].mxu0 %vm494_vm2, %v23513_v22  ;;  %v7623_v11 = vsel %vm27521_vm5, %v7618_v30, %v7622_v27 }
 0x18b   : > { %19008 = vmatmul.mubr.msk.bf16.gmra.mrb[56].mxu1 %vm494_vm2, %v1603_v47  ;;  %19673 = vmatprep.mubr.msk.bf16.mxu0 %vm494_vm2, %v23530_v3  ;;  %v2054_v47 = vsel %vm27521_vm5, %v23182_v54, %v2053_v29  ;;  %v23561_v54 = vor.u32 %v7613_v9, %v7612_v28  ;;  %v17466_v28 = vld [vmem:[%s27283_s1 + $0x20] sm:$0x3] }
 0x18c   : > { %19013 = vmatprep.mubr.msk.bf16.mxu1 %vm494_vm2, %v2046_v49  ;;  %v7625_v49 = vrot.slane %v27602_v32, 2 }
 0x18d   : > { %v7619_v17 = vsel %vm27521_vm5, %v23561_v54, %v7618_v30  ;;  %v8089_v30 = vrot.slane %v22217_v20, 2  ;;  %v27606_v20 = vld [vmem:[#allocation19_spill] sm:$0xff] }
 0x18e   : > { %v7626_v29 = vor.u32 %v7625_v49, %v7624_v44  ;;  %v22221_v44 = vld [vmem:[#allocation2 + $0x90] sm:$0xff] }
 0x18f   : > { %v8097_v32 = vrot.slane %v22221_v44, 2  ;;  %v22232_v44 = vld [vmem:[#allocation2 + $0xd8] sm:$0xff] }
 0x190   : > { %v7627_v45 = vsel %vm27521_vm5, %v7622_v27, %v7626_v29 }
 0x192   : > { %19674 = vmatmul.mubr.msk.bf16.gmra.mrb[40].mxu0 %vm494_vm2, %v23543_v10 }
 0x193   : > { %19014 = vmatmul.mubr.msk.bf16.vlgmr.msra.gmra.mrb[0].mxu1 %vm494_vm2, %v27594_v7  ;;  %19677 = vmatprep.mubr.msk.bf16.mxu0 %vm494_vm2, %v23548_v63  ;;  %v22211_v7 = vld [vmem:[#allocation2 + $0x40] sm:$0xff] }
 0x194   : > { %19017 = vmatprep.mubr.msk.bf16.mxu1 %vm494_vm2, %v2054_v47  ;;  %19074 = vmatpush3.bf16.msra.mxu1 %v2746_v60  ;;  %v23578_v60 = vsel %vm27521_vm5, %v7610_v25, %v23561_v54 }
 0x19a   : > { %19678 = vmatmul.mubr.msk.bf16.gmra.mrb[44].mxu0 %vm494_vm2, %v23566_v15 }
 0x19b   : > { %19018 = vmatmul.mubr.msk.bf16.gmra.mrb[4].mxu1 %vm494_vm2, %v2058_v12  ;;  %19681 = vmatprep.mubr.msk.bf16.mxu0 %vm494_vm2, %v23578_v60  ;;  %v8077_v12 = vrot.slane %v22211_v7, 2 }
 0x19c   : > { %19021 = vmatprep.mubr.msk.bf16.mxu1 %vm494_vm2, %v23302_v21  ;;  %v7631_v21 = vrot.slane %v7629_v4, 1 }
 0x19e   : > { %v7635_v53 = vor.u32 %v7634_v13, %v7631_v21 }
 0x1a0   : > { %v7636_v41 = vsel %vm27521_vm5, %v7626_v29, %v7635_v53  ;;  %v22223_v29 = vld [vmem:[#allocation2 + $0xa0] sm:$0xff] }
 0x1a2   : > { %19682 = vmatmul.mubr.msk.bf16.gmra.mrb[48].mxu0 %vm494_vm2, %v7619_v17  ;;  %v8093_v17 = vrot.slane %v22219_v39, 2 }
 0x1a3   : > { %19022 = vmatmul.mubr.msk.bf16.gmra.mrb[8].mxu1 %vm494_vm2, %v23316_v1  ;;  %19685 = vmatprep.mubr.msk.bf16.mxu0 %vm494_vm2, %v7623_v11  ;;  %v8068_v1 = vrot.slane %v8063_v42, 2 }
 0x1a4   : > { %19025 = vmatprep.mubr.msk.bf16.mxu1 %vm494_vm2, %v23329_v5  ;;  %v22208_v5 = vld [vmem:[#allocation2 + $0x20] sm:$0xff] }
 0x1a5   : > { %v23612_v38 = vrot.slane %v22208_v5, 2  ;;  %v22224_v5 = vld [vmem:[#allocation2 + $0xa8] sm:$0xff] }
 0x1a7   : > { %v8070_v31 = vsel %vm27520_vm6, %v8068_v1, %v23612_v38 }
 0x1aa   : > { %19686 = vmatmul.mubr.msk.bf16.gmra.mrb[52].mxu0 %vm494_vm2, %v7627_v45 }
 0x1ab   : > { %19026 = vmatmul.mubr.msk.bf16.gmra.mrb[12].mxu1 %vm494_vm2, %v23336_v40  ;;  %19689 = vmatprep.mubr.msk.bf16.mxu0 %vm494_vm2, %v7636_v41  ;;  %v27603_v40 = vld [vmem:[#allocation20_spill] sm:$0xff] }
 0x1ac   : > { %19029 = vmatprep.mubr.msk.bf16.mxu1 %vm494_vm2, %v23351_v48  ;;  %v8071_v47 = vrot.slane %v27603_v40, 2  ;;  %v22209_v48 = vld [vmem:[#allocation2 + $0x30] sm:$0xff] }
 0x1ad   : > { %v8073_v59 = vrot.slane %v22209_v48, 2 }
 0x1ae   : > { %v23628_v34 = vsel %vm27520_vm6, %v23612_v38, %v8071_v47 }
 0x1af   : > { %v23634_v9 = vsel %vm27520_vm6, %v8071_v47, %v8073_v59  ;;  %v22225_v47 = vld [vmem:[#allocation2 + $0xb0] sm:$0xff] }
 0x1b0   : > { %v8105_v48 = vrot.slane %v22225_v47, 2  ;;  %v453_v47 = vld [vmem:[%s22430_s29 + $0x218] sm:$0xff] }
 0x1b2   : > { %19690 = vmatmul.mubr.msk.bf16.gmra.mrb[56].mxu0 %vm494_vm2, %v7635_v53  ;;  %v8101_v53 = vrot.slane %v22223_v29, 2 }
 0x1b3   : > { %19030 = vmatmul.mubr.msk.bf16.gmra.mrb[16].mxu1 %vm494_vm2, %v23358_v35  ;;  %19695 = vmatprep.mubr.msk.bf16.mxu0 %vm494_vm2, %v8070_v31  ;;  %v23631_v35 = vand.u32 %v17466_v28, %v22413_v6  ;;  %v8103_v31 = vrot.slane %v22224_v5, 2  ;;  %v22235_v5 = vld [vmem:[#allocation2 + $0xf0] sm:$0xff] }
 0x1b4   : > { %19033 = vmatprep.mubr.msk.bf16.mxu1 %vm494_vm2, %v23373_v58  ;;  %v22210_v58 = vld [vmem:[#allocation2 + $0x38] sm:$0xff] }
 0x1b5   : > { %v8075_v25 = vrot.slane %v22210_v58, 2  ;;  %v23760_v28 = vsel %vm27520_vm6, %v8103_v31, %v8105_v48  ;;  %v2590_v58 = vld [vmem:[#allocation2] sm:$0xfc] }
 0x1b7   : > { %v23647_v16 = vsel %vm27520_vm6, %v8073_v59, %v8075_v25  ;;  %v23755_v59 = vsel %vm27520_vm6, %v8101_v53, %v8103_v31  ;;  %v8121_v31 = vrot.slane %v22235_v5, 2 }
 0x1ba   : > { %19696 = vmatmul.mubr.msk.bf16.vlgmr.msra.gmra.mrb[0].mxu0 %vm494_vm2, %v23628_v34 }
 0x1bb   : > { %19034 = vmatmul.mubr.msk.bf16.gmra.mrb[20].mxu1 %vm494_vm2, %v23380_v36  ;;  %19756 = vmatpush3.bf16.msra.mxu0 %v23313_v52  ;;  %v23650_v36 = vsel %vm27520_vm6, %v8075_v25, %v8077_v12  ;;  %v22212_v52 = vld [vmem:[#allocation2 + $0x48] sm:$0xff] }
 0x1bc   : > { %19037 = vmatprep.mubr.msk.bf16.mxu1 %vm494_vm2, %v23395_v61  ;;  %19699 = vmatprep.mubr.msk.bf16.mxu0 %vm494_vm2, %v23634_v9  ;;  %v8079_v61 = vrot.slane %v22212_v52, 2  ;;  %v22227_v52 = vld [vmem:[#allocation2 + $0x8] sm:$0xff] }
 0x1bd   : > { %19817 = vmatprep.subr.bf16.mxu0 %v23631_v35 }
 0x1be   : > { %v23661_v0 = vsel %vm27520_vm6, %v8077_v12, %v8079_v61  ;;  %v23664_v55 = vsel %vm27520_vm6, %v8079_v61, %v8081_v14  ;;  %v2596_v12 = vrot.slane %v2590_v58, 2  ;;  %v2597_v61 = vrot.slane %v22227_v52, 2  ;;  %v455_v58 = vld [vmem:[%s22430_s29 + $0x228] sm:$0xff] }
 0x1c2   : > { %19700 = vmatmul.mubr.msk.bf16.gmra.mrb[4].mxu0 %vm494_vm2, %v23647_v16 }
 0x1c3   : > { %19038 = vmatmul.mubr.msk.bf16.gmra.mrb[24].mxu1 %vm494_vm2, %v23402_v43  ;;  %19703 = vmatprep.mubr.msk.bf16.mxu0 %vm494_vm2, %v23650_v36  ;;  %v22214_v43 = vld [vmem:[#allocation2 + $0x58] sm:$0xff] }
 0x1c4   : > { %19041 = vmatprep.mubr.msk.bf16.mxu1 %vm494_vm2, %v23417_v62  ;;  %v8083_v62 = vrot.slane %v22214_v43, 2  ;;  %v2598_v43 = vsel %vm27520_vm6, %v2596_v12, %v2597_v61  ;;  %v8125_v12 = vrot.slane %v23580_v57, 2 }
 0x1c6   : > { %v23675_v8 = vsel %vm27520_vm6, %v8081_v14, %v8083_v62  ;;  %v23678_v50 = vsel %vm27520_vm6, %v8083_v62, %v8085_v26 }
 0x1ca   : > { %19704 = vmatmul.mubr.msk.bf16.gmra.mrb[8].mxu0 %vm494_vm2, %v23661_v0 }
 0x1cb   : > { %19042 = vmatmul.mubr.msk.bf16.gmra.mrb[28].mxu1 %vm494_vm2, %v23424_v24  ;;  %19707 = vmatprep.mubr.msk.bf16.mxu0 %vm494_vm2, %v23664_v55  ;;  %v22216_v24 = vld [vmem:[#allocation2 + $0x68] sm:$0xff] }
 0x1cc   : > { %19045 = vmatprep.mubr.msk.bf16.mxu1 %vm494_vm2, %v23443_v33  ;;  %v8087_v33 = vrot.slane %v22216_v24, 2  ;;  %v22230_v24 = vld [vmem:[#allocation2 + $0xc8] sm:$0xff] }
 0x1ce   : > { %v23689_v27 = vsel %vm27520_vm6, %v8085_v26, %v8087_v33  ;;  %v23692_v4 = vsel %vm27520_vm6, %v8087_v33, %v8089_v30  ;;  %v2599_v26 = vrot.slane %v22229_v18, 2  ;;  %v8111_v33 = vrot.slane %v22230_v24, 2  ;;  %v23853_v18 = vld [vmem:[#allocation2 + $0x30] sm:$0xff]  ;;  %v17497_v24 = vld [vmem:[%s27283_s1 + $0x22] sm:$0x3] }
 0x1d0   : > { %v2600_v39 = vsel %vm27520_vm6, %v2597_v61, %v2599_v26 }
 0x1d2   : > { %19708 = vmatmul.mubr.msk.bf16.gmra.mrb[12].mxu0 %vm494_vm2, %v23675_v8 }
 0x1d3   : > { %19046 = vmatmul.mubr.msk.bf16.gmra.mrb[32].mxu1 %vm494_vm2, %v23446_v56  ;;  %19711 = vmatprep.mubr.msk.bf16.mxu0 %vm494_vm2, %v23678_v50  ;;  %v22218_v56 = vld [vmem:[#allocation2 + $0x78] sm:$0xff] }
 0x1d4   : > { %19049 = vmatprep.mubr.msk.bf16.mxu1 %vm494_vm2, %v23461_v51  ;;  %v8091_v51 = vrot.slane %v22218_v56, 2  ;;  %v22231_v56 = vld [vmem:[#allocation2 + $0xd0] sm:$0xff] }
 0x1d6   : > { %v23703_v11 = vsel %vm27520_vm6, %v8089_v30, %v8091_v51  ;;  %v23706_v46 = vsel %vm27520_vm6, %v8091_v51, %v8093_v17  ;;  %v2601_v30 = vrot.slane %v27606_v20, 2  ;;  %v8113_v51 = vrot.slane %v22231_v56, 2 }
 0x1d7   : > { %v23875_v20 = vand.u32 %v17497_v24, %v22413_v6 }
 0x1d8   : > { %v2604_v29 = vsel %vm27520_vm6, %v2601_v30, %v23612_v38 }
 0x1da   : > { %19712 = vmatmul.mubr.msk.bf16.gmra.mrb[16].mxu0 %vm494_vm2, %v23689_v27 }
 0x1db   : > { %19050 = vmatmul.mubr.msk.bf16.gmra.mrb[36].mxu1 %vm494_vm2, %v23472_v2  ;;  %19715 = vmatprep.mubr.msk.bf16.mxu0 %vm494_vm2, %v23692_v4  ;;  %v22220_v2 = vld [vmem:[#allocation2 + $0x88] sm:$0xff] }
 0x1dc   : > { %19053 = vmatprep.mubr.msk.bf16.mxu1 %vm494_vm2, %v23490_v19  ;;  %v8095_v19 = vrot.slane %v22220_v2, 2  ;;  %v2602_v2 = vsel %vm27520_vm6, %v2599_v26, %v2601_v30  ;;  %v23880_v30 = vld [vmem:[#allocation2 + $0x48] sm:$0xff] }
 0x1de   : > { %v23717_v49 = vsel %vm27520_vm6, %v8093_v17, %v8095_v19  ;;  %v23720_v21 = vsel %vm27520_vm6, %v8095_v19, %v8097_v32  ;;  %v23793_v19 = vsel %vm27520_vm6, %v8111_v33, %v8113_v51 }
 0x1e2   : > { %19716 = vmatmul.mubr.msk.bf16.gmra.mrb[20].mxu0 %vm494_vm2, %v23703_v11 }
 0x1e3   : > { %19054 = vmatmul.mubr.msk.bf16.gmra.mrb[40].mxu1 %vm494_vm2, %v23495_v23  ;;  %19719 = vmatprep.mubr.msk.bf16.mxu0 %vm494_vm2, %v23706_v46  ;;  %v23722_v23 = vld [vmem:[#allocation2 + $0xe8] sm:$0xff] }
 0x1e4   : > { %19057 = vmatprep.mubr.msk.bf16.mxu1 %vm494_vm2, %v23513_v22  ;;  %v22222_v22 = vld [vmem:[#allocation2 + $0x98] sm:$0xff]  ;;  %v23733_v45 = vshrl.u32 %v23722_v23, 16  ;;  %v23736_v41 = vshll.u32 %v23722_v23, 16 }
 0x1e5   : > { %v8099_v13 = vrot.slane %v22222_v22, 2  ;;  %v22233_v22 = vld [vmem:[#allocation2 + $0xe0] sm:$0xff] }
 0x1e6   : > { %27604 = vst [vmem:[#allocation11_spill] sm:$0xff] %v23733_v45  ;;  %27605 = vst [vmem:[#allocation12_spill] sm:$0xff] %v23736_v41  ;;  %v2161_v1 = vrot.slane %v23736_v41, 2 }
 0x1e7   : > { %v23742_v42 = vsel %vm27520_vm6, %v8099_v13, %v8101_v53 }
 0x1ea   : > { %19720 = vmatmul.mubr.msk.bf16.gmra.mrb[24].mxu0 %vm494_vm2, %v23717_v49 }
 0x1eb   : > { %19058 = vmatmul.mubr.msk.bf16.gmra.mrb[44].mxu1 %vm494_vm2, %v23530_v3  ;;  %19723 = vmatprep.mubr.msk.bf16.mxu0 %vm494_vm2, %v23720_v21  ;;  %v23739_v3 = vsel %vm27520_vm6, %v8097_v32, %v8099_v13  ;;  %v8115_v32 = vrot.slane %v22232_v44, 2  ;;  %v23801_v13 = vrot.slane %v22233_v22, 2 }
 0x1ec   : > { %19061 = vmatprep.mubr.msk.bf16.mxu1 %vm494_vm2, %v23543_v10  ;;  %v2158_v10 = vrot.slane %v23733_v45, 1 }
 0x1ed   : > { %v23806_v53 = vsel %vm27520_vm6, %v8113_v51, %v8115_v32  ;;  %v8626_v51 = vrot.slane %v23880_v30, 4 }
 0x1ee   : > { %v2162_v40 = vor.u32 %v2161_v1, %v2158_v10  ;;  %v23810_v10 = vsel %vm27520_vm6, %v8115_v32, %v23801_v13  ;;  %v22234_v1 = vld [vmem:[#allocation2 + $0xe8] sm:$0xff] }
 0x1ef   : > { %v8119_v38 = vrot.slane %v22234_v1, 2 }
 0x1f2   : > { %19724 = vmatmul.mubr.msk.bf16.gmra.mrb[28].mxu0 %vm494_vm2, %v23739_v3 }
 0x1f3   : > { %19062 = vmatmul.mubr.msk.bf16.gmra.mrb[48].mxu1 %vm494_vm2, %v23548_v63  ;;  %19727 = vmatprep.mubr.msk.bf16.mxu0 %vm494_vm2, %v23742_v42  ;;  %v2163_v63 = vsel %vm27521_vm5, %v23561_v54, %v2162_v40  ;;  %v22226_v54 = vld [vmem:[#allocation2 + $0xb8] sm:$0xff] }
 0x1f4   : > { %19065 = vmatprep.mubr.msk.bf16.mxu1 %vm494_vm2, %v23566_v15  ;;  %v17125_v15 = vld [vmem:[%s27283_s1 + $0xa] sm:$0x3]  ;;  %v8107_v25 = vrot.slane %v22226_v54, 2  ;;  %v8120_v54 = vsel %vm27520_vm6, %v23801_v13, %v8119_v38 }
 0x1f5   : > { %v3298_v7 = vand.u32 %v17125_v15, %v22413_v6 }
 0x1f6   : > { %v23774_v14 = vsel %vm27520_vm6, %v8105_v48, %v8107_v25 }
 0x1f7   : > { %19135 = vmatprep.subr.bf16.mxu1 %v3298_v7 }
 0x1fa   : > { %19728 = vmatmul.mubr.msk.bf16.gmra.mrb[32].mxu0 %vm494_vm2, %v23755_v59 }
 0x1fb   : > { %19066 = vmatmul.mubr.msk.bf16.gmra.mrb[52].mxu1 %vm494_vm2, %v23578_v60  ;;  %19731 = vmatprep.mubr.msk.bf16.mxu0 %vm494_vm2, %v23760_v28  ;;  %v22228_v60 = vld [vmem:[#allocation2 + $0xc0] sm:$0xff] }
 0x1fc   : > { %19069 = vmatprep.mubr.msk.bf16.mxu1 %vm494_vm2, %v2163_v63  ;;  %v8109_v37 = vrot.slane %v22228_v60, 2  ;;  %v454_v63 = vld [vmem:[%s22430_s29 + $0x220] sm:$0xff] }
 0x1fd   : > { %v492_v15 = vpack.c.bf16 %v455_v58, %v454_v63  ;;  %v23837_v60 = vld [vmem:[#allocation2 + $0x20] sm:$0xf0]  ;;  %v23962_v63 = vld [vmem:[#allocation2 + $0x88] sm:$0xff] }
 0x1fe   : > { %v23778_v62 = vsel %vm27520_vm6, %v8107_v25, %v8109_v37  ;;  %v23789_v17 = vsel %vm27520_vm6, %v8109_v37, %v8111_v33  ;;  %v22236_v25 = vld [vmem:[#allocation2 + $0xf8] sm:$0xff]  ;;  %v23839_v37 = vld [vmem:[#allocation2 + $0x28] sm:$0xff]  ;;  %v23872_v33 = vld [vmem:[#allocation2 + $0x40] sm:$0xff]  ;;  %v8642_v58 = vrot.slane %v23962_v63, 4 }
 0x1ff   : > { %529 = vst.msk [vmem:[#allocation2 + $0x110] sm:$0xff] %vm494_vm2, %v492_v15  ;;  %v8624_v56 = vrot.slane %v23872_v33, 4 }
 0x202   : > { %19732 = vmatmul.mubr.msk.bf16.gmra.mrb[36].mxu0 %vm494_vm2, %v23774_v14 }
 0x203   : > { %19070 = vmatmul.mubr.msk.bf16.gmra.mrb[56].mxu1 %vm494_vm2, %v2162_v40  ;;  %19735 = vmatprep.mubr.msk.bf16.mxu0 %vm494_vm2, %v23778_v62  ;;  %v452_v40 = vld [vmem:[%s22430_s29 + $0x210] sm:$0xff] }
 0x204   : > { %19075 = vmatprep.mubr.msk.bf16.mxu1 %vm494_vm2, %v2598_v43  ;;  %v491_v48 = vpack.c.bf16 %v453_v47, %v452_v40 }
 0x206   : > { %528 = vst.msk [vmem:[#allocation2 + $0x108] sm:$0xff] %vm494_vm2, %v491_v48 }
 0x20a   : > { %19736 = vmatmul.mubr.msk.bf16.gmra.mrb[40].mxu0 %vm494_vm2, %v23789_v17 }
 0x20b   : > { %19076 = vmatmul.mubr.msk.bf16.vlgmr.msra.gmra.mrb[0].mxu1 %vm494_vm2, %v2600_v39  ;;  %19739 = vmatprep.mubr.msk.bf16.mxu0 %vm494_vm2, %v23793_v19 }
 0x20c   : > { %19079 = vmatprep.mubr.msk.bf16.mxu1 %vm494_vm2, %v2602_v2  ;;  %19136 = vmatpush3.bf16.msra.mxu1 %v3298_v7  ;;  %v8123_v7 = vrot.slane %v22236_v25, 2  ;;  %v23900_v2 = vld [vmem:[#allocation2 + $0x50] sm:$0xff] }
 0x20e   : > { %v8124_v52 = vsel %vm27520_vm6, %v8121_v31, %v8123_v7  ;;  %v8126_v61 = vsel %vm27520_vm6, %v8123_v7, %v8125_v12 }
 0x212   : > { %19740 = vmatmul.mubr.msk.bf16.gmra.mrb[44].mxu0 %vm494_vm2, %v23806_v53 }
 0x213   : > { %19080 = vmatmul.mubr.msk.bf16.gmra.mrb[4].mxu1 %vm494_vm2, %v2604_v29  ;;  %19743 = vmatprep.mubr.msk.bf16.mxu0 %vm494_vm2, %v23810_v10  ;;  %v23922_v29 = vld [vmem:[#allocation2 + $0x68] sm:$0xff] }
 0x214   : > { %19083 = vmatprep.mubr.msk.bf16.mxu1 %vm494_vm2, %v23628_v34  ;;  %v8122_v34 = vsel %vm27520_vm6, %v8119_v38, %v8121_v31  ;;  %v8634_v1 = vrot.slane %v23922_v29, 4  ;;  %v23942_v31 = vld [vmem:[#allocation2 + $0x78] sm:$0xff] }
 0x215   : > { %v8638_v40 = vrot.slane %v23942_v31, 4 }
 0x21a   : > { %19744 = vmatmul.mubr.msk.bf16.gmra.mrb[48].mxu0 %vm494_vm2, %v8120_v54 }
 0x21b   : > { %19084 = vmatmul.mubr.msk.bf16.gmra.mrb[8].mxu1 %vm494_vm2, %v23634_v9  ;;  %19747 = vmatprep.mubr.msk.bf16.mxu0 %vm494_vm2, %v8122_v34  ;;  %v8617_v9 = vrot.slane %v23837_v60, 4  ;;  %v23982_v34 = vld [vmem:[#allocation2 + $0x98] sm:$0xff] }
 0x21c   : > { %19087 = vmatprep.mubr.msk.bf16.mxu1 %vm494_vm2, %v23647_v16  ;;  %v23849_v16 = vrot.slane %v23839_v37, 4  ;;  %v8646_v25 = vrot.slane %v23982_v34, 4 }
 0x21e   : > { %v8619_v43 = vsel %vm3145_vm7, %v8617_v9, %v23849_v16 }
 0x222   : > { %19748 = vmatmul.mubr.msk.bf16.gmra.mrb[52].mxu0 %vm494_vm2, %v8124_v52  ;;  %v24002_v52 = vld [vmem:[#allocation2 + $0xa8] sm:$0xff] }
 0x223   : > { %19088 = vmatmul.mubr.msk.bf16.gmra.mrb[12].mxu1 %vm494_vm2, %v23650_v36  ;;  %19751 = vmatprep.mubr.msk.bf16.mxu0 %vm494_vm2, %v8126_v61  ;;  %v23858_v36 = vld [vmem:[#allocation2 + $0x38] sm:$0xff]  ;;  %v8650_v61 = vrot.slane %v24002_v52, 4 }
 0x224   : > { %19091 = vmatprep.mubr.msk.bf16.mxu1 %vm494_vm2, %v23661_v0  ;;  %v8620_v0 = vrot.slane %v23853_v18, 4  ;;  %v8622_v26 = vrot.slane %v23858_v36, 4 }
 0x226   : > { %v23895_v39 = vsel %vm3145_vm7, %v8622_v26, %v8624_v56 }
 0x22a   : > { %19752 = vmatmul.mubr.msk.bf16.gmra.mrb[56].mxu0 %vm494_vm2, %v8125_v12 }
 0x22b   : > { %19092 = vmatmul.mubr.msk.bf16.gmra.mrb[16].mxu1 %vm494_vm2, %v23664_v55  ;;  %19757 = vmatprep.mubr.msk.bf16.mxu0 %vm494_vm2, %v8619_v43  ;;  %v23870_v55 = vsel %vm3145_vm7, %v23849_v16, %v8620_v0 }
 0x22c   : > { %19095 = vmatprep.mubr.msk.bf16.mxu1 %vm494_vm2, %v23675_v8  ;;  %v23878_v8 = vsel %vm3145_vm7, %v8620_v0, %v8622_v26  ;;  %v24022_v0 = vld [vmem:[#allocation2 + $0xb8] sm:$0xff]  ;;  %v2653_v26 = vrot.slane %v23722_v23, 2 }
 0x22d   : > { %27608 = vst [vmem:[#allocation15_spill] sm:$0xff] %v24022_v0  ;;  %v8654_v24 = vrot.slane %v24022_v0, 4 }
 0x232   : > { %19758 = vmatmul.mubr.msk.bf16.vlgmr.msra.gmra.mrb[0].mxu0 %vm494_vm2, %v23870_v55 }
 0x233   : > { %19096 = vmatmul.mubr.msk.bf16.gmra.mrb[20].mxu1 %vm494_vm2, %v23678_v50  ;;  %19818 = vmatpush3.bf16.msra.mxu0 %v23631_v35  ;;  %v23898_v50 = vsel %vm3145_vm7, %v8624_v56, %v8626_v51  ;;  %v23902_v35 = vld [vmem:[#allocation2 + $0x58] sm:$0xff] }
 0x234   : > { %19099 = vmatprep.mubr.msk.bf16.mxu1 %vm494_vm2, %v23689_v27  ;;  %19761 = vmatprep.mubr.msk.bf16.mxu0 %vm494_vm2, %v23878_v8  ;;  %v8628_v27 = vrot.slane %v23900_v2, 4  ;;  %v8630_v44 = vrot.slane %v23902_v35, 4 }
 0x235   : > { %19879 = vmatprep.subr.bf16.mxu0 %v23875_v20 }
 0x236   : > { %v23915_v32 = vsel %vm3145_vm7, %v8626_v51, %v8628_v27  ;;  %v23918_v22 = vsel %vm3145_vm7, %v8628_v27, %v8630_v44  ;;  %v24043_v27 = vld [vmem:[#allocation2 + $0xc0] sm:$0xff] }
 0x237   : > { %27609 = vst [vmem:[#allocation14_spill] sm:$0xff] %v24043_v27 }
 0x23a   : > { %19762 = vmatmul.mubr.msk.bf16.gmra.mrb[4].mxu0 %vm494_vm2, %v23895_v39 }
 0x23b   : > { %19100 = vmatmul.mubr.msk.bf16.gmra.mrb[24].mxu1 %vm494_vm2, %v23692_v4  ;;  %19765 = vmatprep.mubr.msk.bf16.mxu0 %vm494_vm2, %v23898_v50  ;;  %v23920_v4 = vld [vmem:[#allocation2 + $0x60] sm:$0xff] }
 0x23c   : > { %19103 = vmatprep.mubr.msk.bf16.mxu1 %vm494_vm2, %v23703_v11  ;;  %v8632_v11 = vrot.slane %v23920_v4, 4 }
 0x23e   : > { %v23935_v38 = vsel %vm3145_vm7, %v8630_v44, %v8632_v11  ;;  %v23938_v5 = vsel %vm3145_vm7, %v8632_v11, %v8634_v1  ;;  %v24047_v44 = vld [vmem:[#allocation2 + $0x10] sm:$0xff]  ;;  %v24049_v11 = vld [vmem:[#allocation2 + $0xc8] sm:$0xff] }
 0x23f   : > { %27610 = vst [vmem:[#allocation10_spill] sm:$0xff] %v24047_v44  ;;  %27611 = vst [vmem:[#allocation18_spill] sm:$0xff] %v24049_v11 }
 0x242   : > { %19766 = vmatmul.mubr.msk.bf16.gmra.mrb[8].mxu0 %vm494_vm2, %v23915_v32 }
 0x243   : > { %19104 = vmatmul.mubr.msk.bf16.gmra.mrb[28].mxu1 %vm494_vm2, %v23706_v46  ;;  %19769 = vmatprep.mubr.msk.bf16.mxu0 %vm494_vm2, %v23918_v22  ;;  %v23940_v46 = vld [vmem:[#allocation2 + $0x70] sm:$0xff] }
 0x244   : > { %19107 = vmatprep.mubr.msk.bf16.mxu1 %vm494_vm2, %v23717_v49  ;;  %v8636_v49 = vrot.slane %v23940_v46, 4 }
 0x246   : > { %v23955_v47 = vsel %vm3145_vm7, %v8634_v1, %v8636_v49  ;;  %v23958_v48 = vsel %vm3145_vm7, %v8636_v49, %v8638_v40  ;;  %v8656_v1 = vrot.slane %v24043_v27, 4 }
 0x24a   : > { %19770 = vmatmul.mubr.msk.bf16.gmra.mrb[12].mxu0 %vm494_vm2, %v23935_v38 }
 0x24b   : > { %19108 = vmatmul.mubr.msk.bf16.gmra.mrb[32].mxu1 %vm494_vm2, %v23720_v21  ;;  %19773 = vmatprep.mubr.msk.bf16.mxu0 %vm494_vm2, %v23938_v5  ;;  %v23960_v21 = vld [vmem:[#allocation2 + $0x80] sm:$0xff] }
 0x24c   : > { %19111 = vmatprep.mubr.msk.bf16.mxu1 %vm494_vm2, %v23739_v3  ;;  %v8640_v3 = vrot.slane %v23960_v21, 4 }
 0x24e   : > { %v23975_v15 = vsel %vm3145_vm7, %v8638_v40, %v8640_v3  ;;  %v23978_v54 = vsel %vm3145_vm7, %v8640_v3, %v8642_v58  ;;  %v8658_v3 = vrot.slane %v24049_v11, 4 }
 0x252   : > { %19774 = vmatmul.mubr.msk.bf16.gmra.mrb[16].mxu0 %vm494_vm2, %v23955_v47 }
 0x253   : > { %19112 = vmatmul.mubr.msk.bf16.gmra.mrb[36].mxu1 %vm494_vm2, %v23742_v42  ;;  %19777 = vmatprep.mubr.msk.bf16.mxu0 %vm494_vm2, %v23958_v48  ;;  %v23980_v42 = vld [vmem:[#allocation2 + $0x90] sm:$0xff] }
 0x254   : > { %19115 = vmatprep.mubr.msk.bf16.mxu1 %vm494_vm2, %v23755_v59  ;;  %v8644_v59 = vrot.slane %v23980_v42, 4 }
 0x256   : > { %v23995_v7 = vsel %vm3145_vm7, %v8642_v58, %v8644_v59  ;;  %v23998_v12 = vsel %vm3145_vm7, %v8644_v59, %v8646_v25  ;;  %v24067_v58 = vsel %vm3145_vm7, %v8654_v24, %v8656_v1 }
 0x25a   : > { %19778 = vmatmul.mubr.msk.bf16.gmra.mrb[20].mxu0 %vm494_vm2, %v23975_v15 }
 0x25b   : > { %19116 = vmatmul.mubr.msk.bf16.gmra.mrb[40].mxu1 %vm494_vm2, %v23760_v28  ;;  %19781 = vmatprep.mubr.msk.bf16.mxu0 %vm494_vm2, %v23978_v54  ;;  %v24000_v28 = vld [vmem:[#allocation2 + $0xa0] sm:$0xff] }
 0x25c   : > { %19119 = vmatprep.mubr.msk.bf16.mxu1 %vm494_vm2, %v23774_v14  ;;  %v8648_v14 = vrot.slane %v24000_v28, 4 }
 0x25e   : > { %v24015_v9 = vsel %vm3145_vm7, %v8646_v25, %v8648_v14  ;;  %v24018_v43 = vsel %vm3145_vm7, %v8648_v14, %v8650_v61  ;;  %v24070_v25 = vld [vmem:[#allocation2 + $0x18] sm:$0xff]  ;;  %v24073_v14 = vsel %vm3145_vm7, %v8656_v1, %v8658_v3 }
 0x25f   : > { %27612 = vst [vmem:[#allocation16_spill] sm:$0xff] %v24070_v25 }
 0x262   : > { %19782 = vmatmul.mubr.msk.bf16.gmra.mrb[24].mxu0 %vm494_vm2, %v23995_v7 }
 0x263   : > { %19120 = vmatmul.mubr.msk.bf16.gmra.mrb[44].mxu1 %vm494_vm2, %v23778_v62  ;;  %19785 = vmatprep.mubr.msk.bf16.mxu0 %vm494_vm2, %v23998_v12  ;;  %v24020_v62 = vld [vmem:[#allocation2 + $0xb0] sm:$0xff] }
 0x264   : > { %19123 = vmatprep.mubr.msk.bf16.mxu1 %vm494_vm2, %v23789_v17  ;;  %27607 = vst [vmem:[#allocation13_spill] sm:$0xff] %v24020_v62  ;;  %v8652_v17 = vrot.slane %v24020_v62, 4 }
 0x266   : > { %v24036_v56 = vsel %vm3145_vm7, %v8650_v61, %v8652_v17  ;;  %v24041_v51 = vsel %vm3145_vm7, %v8652_v17, %v8654_v24  ;;  %v24075_v61 = vld [vmem:[#allocation2 + $0xd0] sm:$0xff]  ;;  %v24077_v17 = vld [vmem:[#allocation2 + $0x20] sm:$0xff]  ;;  %v3149_v24 = vrot.slane %v24070_v25, 4 }
 0x267   : > { %27613 = vst [vmem:[#allocation17_spill] sm:$0xff] %v24077_v17  ;;  %v3151_v1 = vrot.slane %v24077_v17, 4  ;;  %v24099_v25 = vld [vmem:[#allocation2 + $0xe0] sm:$0xff] }
 0x268   : > { %27615 = vst [vmem:[#allocation19_spill] sm:$0xff] %v24099_v25 }
 0x269   : > { %v3152_v45 = vsel %vm3145_vm7, %v3149_v24, %v3151_v1 }
 0x26a   : > { %19786 = vmatmul.mubr.msk.bf16.gmra.mrb[28].mxu0 %vm494_vm2, %v24015_v9 }
 0x26b   : > { %19124 = vmatmul.mubr.msk.bf16.gmra.mrb[48].mxu1 %vm494_vm2, %v23793_v19  ;;  %19789 = vmatprep.mubr.msk.bf16.mxu0 %vm494_vm2, %v24018_v43  ;;  %v2654_v19 = vsel %vm27520_vm6, %v23801_v13, %v2653_v26  ;;  %v17156_v13 = vld [vmem:[%s27283_s1 + $0xc] sm:$0x3] }
 0x26c   : > { %19127 = vmatprep.mubr.msk.bf16.mxu1 %vm494_vm2, %v23806_v53  ;;  %v24045_v53 = vld [vmem:[#allocation2 + $0x8] sm:$0xf0]  ;;  %v4006_v49 = vand.u32 %v17156_v13, %v22413_v6  ;;  %v8660_v13 = vrot.slane %v24075_v61, 4 }
 0x26d   : > { %v3146_v40 = vrot.slane %v24045_v53, 4 }
 0x26e   : > { %19197 = vmatprep.subr.bf16.mxu1 %v4006_v49 }
 0x272   : > { %19790 = vmatmul.mubr.msk.bf16.gmra.mrb[32].mxu0 %vm494_vm2, %v24036_v56 }
 0x273   : > { %19128 = vmatmul.mubr.msk.bf16.gmra.mrb[52].mxu1 %vm494_vm2, %v23810_v10  ;;  %19793 = vmatprep.mubr.msk.bf16.mxu0 %vm494_vm2, %v24041_v51  ;;  %v3147_v10 = vrot.slane %v24047_v44, 4 }
 0x274   : > { %19131 = vmatprep.mubr.msk.bf16.mxu1 %vm494_vm2, %v2654_v19  ;;  %v24079_v19 = vld [vmem:[#allocation2 + $0xd8] sm:$0xff] }
 0x275   : > { %v3148_v59 = vsel %vm3145_vm7, %v3146_v40, %v3147_v10  ;;  %27614 = vst [vmem:[#allocation20_spill] sm:$0xff] %v24079_v19  ;;  %v8662_v40 = vrot.slane %v24079_v19, 4  ;;  %v3150_v41 = vsel %vm3145_vm7, %v3147_v10, %v3149_v24  ;;  %v8664_v10 = vrot.slane %v24099_v25, 4  ;;  %v24117_v19 = vld [vmem:[#allocation2 + $0xf0] sm:$0xff] }
 0x276   : > { %v3154_v24 = vsel %vm3145_vm7, %v3151_v1, %v23849_v16  ;;  %27616 = vst [vmem:[#allocation21_spill] sm:$0xff] %v24117_v19 }
 0x27a   : > { %19794 = vmatmul.mubr.msk.bf16.gmra.mrb[36].mxu0 %vm494_vm2, %v24067_v58 }
 0x27b   : > { %19132 = vmatmul.mubr.msk.bf16.gmra.mrb[56].mxu1 %vm494_vm2, %v2653_v26  ;;  %19797 = vmatprep.mubr.msk.bf16.mxu0 %vm494_vm2, %v24073_v14  ;;  %v24093_v26 = vsel %vm3145_vm7, %v8658_v3, %v8660_v13  ;;  %v8666_v3 = vrot.slane %v23722_v23, 4  ;;  %v24129_v23 = vrot.slane %v24117_v19, 4 }
 0x27c   : > { %19137 = vmatprep.mubr.msk.bf16.mxu1 %vm494_vm2, %v3148_v59  ;;  %v24097_v59 = vsel %vm3145_vm7, %v8660_v13, %v8662_v40  ;;  %v24112_v13 = vsel %vm3145_vm7, %v8662_v40, %v8664_v10  ;;  %v24138_v40 = vld [vmem:[#allocation2 + $0x108] sm:$0xff] }
 0x27d   : > { %27618 = vst [vmem:[#allocation23_spill] sm:$0xff] %v24129_v23  ;;  %27619 = vst [vmem:[#allocation24_spill] sm:$0xff] %v24138_v40 }
 0x282   : > { %19798 = vmatmul.mubr.msk.bf16.gmra.mrb[40].mxu0 %vm494_vm2, %v24093_v26 }
 0x283   : > { %19138 = vmatmul.mubr.msk.bf16.vlgmr.msra.gmra.mrb[0].mxu1 %vm494_vm2, %v3150_v41  ;;  %19801 = vmatprep.mubr.msk.bf16.mxu0 %vm494_vm2, %v24097_v59  ;;  %v24115_v41 = vsel %vm3145_vm7, %v8664_v10, %v8666_v3  ;;  %v8674_v10 = vrot.slane %v24138_v40, 4 }
 0x284   : > { %19141 = vmatprep.mubr.msk.bf16.mxu1 %vm494_vm2, %v3152_v45  ;;  %19198 = vmatpush3.bf16.msra.mxu1 %v4006_v49  ;;  %v24119_v45 = vld [vmem:[#allocation2 + $0xf8] sm:$0xff]  ;;  %v24134_v49 = vsel %vm3145_vm7, %v8666_v3, %v24129_v23  ;;  %v9108_v3 = vshrl.u32 %v23837_v60, 16 }
 0x285   : > { %27617 = vst [vmem:[#allocation22_spill] sm:$0xff] %v24119_v45  ;;  %v8670_v16 = vrot.slane %v24119_v45, 4  ;;  %v27427_v45 = vshrl.u32 %v23839_v37, 16 }
 0x287   : > { %v8671_v1 = vsel %vm3145_vm7, %v24129_v23, %v8670_v16  ;;  %v8583_v23 = vld [vmem:[#allocation2 + $0x110] sm:$0x3] }
 0x28a   : > { %19802 = vmatmul.mubr.msk.bf16.gmra.mrb[44].mxu0 %vm494_vm2, %v24112_v13 }
 0x28b   : > { %19142 = vmatmul.mubr.msk.bf16.gmra.mrb[4].mxu1 %vm494_vm2, %v3154_v24  ;;  %19805 = vmatprep.mubr.msk.bf16.mxu0 %vm494_vm2, %v24115_v41  ;;  %v9111_v24 = vshll.u32 %v23837_v60, 16  ;;  %v8676_v60 = vrot.slane %v8583_v23, 4 }
 0x28c   : > { %19145 = vmatprep.mubr.msk.bf16.mxu1 %vm494_vm2, %v23870_v55  ;;  %v8672_v55 = vrot.slane %v23580_v57, 4  ;;  %v9118_v57 = vrot.slane %v27427_v45, 4 }
 0x28d   : > { %v9113_v17 = vrot.slane %v9111_v24, 5 }
 0x28e   : > { %v8673_v19 = vsel %vm3145_vm7, %v8670_v16, %v8672_v55  ;;  %v8675_v25 = vsel %vm3145_vm7, %v8672_v55, %v8674_v10  ;;  %v27426_v16 = vshrl.u32 %v23853_v18, 16  ;;  %v27425_v55 = vshll.u32 %v23853_v18, 16 }
 0x292   : > { %19806 = vmatmul.mubr.msk.bf16.gmra.mrb[48].mxu0 %vm494_vm2, %v24134_v49 }
 0x293   : > { %19146 = vmatmul.mubr.msk.bf16.gmra.mrb[8].mxu1 %vm494_vm2, %v23878_v8  ;;  %19809 = vmatprep.mubr.msk.bf16.mxu0 %vm494_vm2, %v8671_v1  ;;  %v27390_v8 = vshll.u32 %v23839_v37, 16 }
 0x294   : > { %19149 = vmatprep.mubr.msk.bf16.mxu1 %vm494_vm2, %v23895_v39  ;;  %v9110_v39 = vrot.slane %v9108_v3, 4 }
 0x295   : > { %v9121_v1 = vrot.slane %v27390_v8, 5  ;;  %v27420_v8 = vshrl.u32 %v23858_v36, 16 }
 0x296   : > { %v9114_v3 = vor.u32 %v9113_v17, %v9110_v39 }
 0x297   : > { %v24167_v24 = vor.u32 %v9121_v1, %v9118_v57  ;;  %v9136_v17 = vrot.slane %v27420_v8, 4  ;;  %v27399_v57 = vshrl.u32 %v23872_v33, 16  ;;  %v27394_v1 = vshll.u32 %v23872_v33, 16 }
 0x299   : > { %v9123_v23 = vsel %vm3636_vm8, %v9114_v3, %v24167_v24  ;;  %v27393_v3 = vshll.u32 %v23880_v30, 16 }
 0x29a   : > { %19810 = vmatmul.mubr.msk.bf16.gmra.mrb[52].mxu0 %vm494_vm2, %v8673_v19  ;;  %v8677_v19 = vsel %vm3145_vm7, %v8674_v10, %v8676_v60  ;;  %v27392_v60 = vshrl.u32 %v23880_v30, 16 }
 0x29b   : > { %19150 = vmatmul.mubr.msk.bf16.gmra.mrb[12].mxu1 %vm494_vm2, %v23898_v50  ;;  %19813 = vmatprep.mubr.msk.bf16.mxu0 %vm494_vm2, %v8675_v25  ;;  %v27391_v50 = vshll.u32 %v23858_v36, 16  ;;  %v9130_v25 = vrot.slane %v27425_v55, 5 }
 0x29c   : > { %19153 = vmatprep.mubr.msk.bf16.mxu1 %vm494_vm2, %v23915_v32  ;;  %v9127_v32 = vrot.slane %v27426_v16, 4 }
 0x29d   : > { %v9139_v39 = vrot.slane %v27391_v50, 5 }
 0x29e   : > { %v9131_v10 = vor.u32 %v9130_v25, %v9127_v32  ;;  %v9148_v32 = vrot.slane %v27394_v1, 5  ;;  %v9154_v25 = vrot.slane %v27392_v60, 4  ;;  %v27395_v1 = vshrl.u32 %v23902_v35, 16 }
 0x29f   : > { %v9140_v50 = vor.u32 %v9139_v39, %v9136_v17 }
 0x2a1   : > { %v24211_v39 = vsel %vm3636_vm8, %v9131_v10, %v9140_v50 }
 0x2a2   : > { %19814 = vmatmul.mubr.msk.bf16.gmra.mrb[56].mxu0 %vm494_vm2, %v8677_v19  ;;  %v24197_v19 = vsel %vm3636_vm8, %v24167_v24, %v9131_v10 }
 0x2a3   : > { %19154 = vmatmul.mubr.msk.bf16.gmra.mrb[16].mxu1 %vm494_vm2, %v23918_v22  ;;  %19819 = vmatprep.mubr.msk.bf16.mxu0 %vm494_vm2, %v9123_v23  ;;  %v17528_v22 = vld [vmem:[%s27283_s1 + $0x24] sm:$0x3]  ;;  %v9157_v23 = vrot.slane %v27393_v3, 5  ;;  %v27398_v3 = vshrl.u32 %v23900_v2, 16 }
 0x2a4   : > { %19157 = vmatprep.mubr.msk.bf16.mxu1 %vm494_vm2, %v23935_v38  ;;  %v9145_v38 = vrot.slane %v27399_v57, 4  ;;  %v24208_v17 = vand.u32 %v17528_v22, %v22413_v6  ;;  %v27396_v22 = vshll.u32 %v23900_v2, 16 }
 0x2a5   : > { %v9158_v10 = vor.u32 %v9157_v23, %v9154_v25  ;;  %v9172_v25 = vrot.slane %v27395_v1, 4  ;;  %v27402_v1 = vshll.u32 %v23920_v4, 16 }
 0x2a6   : > { %v9149_v60 = vor.u32 %v9148_v32, %v9145_v38  ;;  %v9166_v38 = vrot.slane %v27396_v22, 5 }
 0x2a8   : > { %v24235_v32 = vsel %vm3636_vm8, %v9149_v60, %v9158_v10 }
 0x2aa   : > { %19820 = vmatmul.mubr.msk.bf16.vlgmr.msra.gmra.mrb[0].mxu0 %vm494_vm2, %v24197_v19 }
 0x2ab   : > { %19158 = vmatmul.mubr.msk.bf16.gmra.mrb[20].mxu1 %vm494_vm2, %v23938_v5  ;;  %19880 = vmatpush3.bf16.msra.mxu0 %v23875_v20  ;;  %v27397_v5 = vshll.u32 %v23902_v35, 16  ;;  %v24228_v20 = vsel %vm3636_vm8, %v9140_v50, %v9149_v60  ;;  %v27403_v60 = vshrl.u32 %v23920_v4, 16 }
 0x2ac   : > { %19161 = vmatprep.mubr.msk.bf16.mxu1 %vm494_vm2, %v23955_v47  ;;  %19823 = vmatprep.mubr.msk.bf16.mxu0 %vm494_vm2, %v24211_v39  ;;  %v9163_v47 = vrot.slane %v27398_v3, 4  ;;  %v27401_v3 = vshll.u32 %v23922_v29, 16 }
 0x2ad   : > { %19941 = vmatprep.subr.bf16.mxu0 %v24208_v17  ;;  %v9175_v23 = vrot.slane %v27397_v5, 5  ;;  %v27400_v5 = vshrl.u32 %v23922_v29, 16  ;;  %v9181_v57 = vrot.slane %v27403_v60, 4 }
 0x2ae   : > { %v9167_v50 = vor.u32 %v9166_v38, %v9163_v47 }
 0x2af   : > { %v9176_v22 = vor.u32 %v9175_v23, %v9172_v25  ;;  %v9190_v38 = vrot.slane %v27400_v5, 4  ;;  %v9193_v25 = vrot.slane %v27401_v3, 5  ;;  %v27407_v23 = vshrl.u32 %v23940_v46, 16 }
 0x2b0   : > { %v27404_v3 = vshrl.u32 %v23942_v31, 16 }
 0x2b1   : > { %v24261_v47 = vsel %vm3636_vm8, %v9167_v50, %v9176_v22  ;;  %v9194_v5 = vor.u32 %v9193_v25, %v9190_v38  ;;  %v9199_v60 = vrot.slane %v27407_v23, 4  ;;  %v27411_v25 = vshrl.u32 %v23960_v21, 16 }
 0x2b2   : > { %19824 = vmatmul.mubr.msk.bf16.gmra.mrb[4].mxu0 %vm494_vm2, %v24228_v20 }
 0x2b3   : > { %19162 = vmatmul.mubr.msk.bf16.gmra.mrb[24].mxu1 %vm494_vm2, %v23958_v48  ;;  %19827 = vmatprep.mubr.msk.bf16.mxu0 %vm494_vm2, %v24235_v32  ;;  %v24254_v48 = vsel %vm3636_vm8, %v9158_v10, %v9167_v50  ;;  %v27406_v50 = vshll.u32 %v23940_v46, 16  ;;  %v9217_v23 = vrot.slane %v27411_v25, 4 }
 0x2b4   : > { %19165 = vmatprep.mubr.msk.bf16.mxu1 %vm494_vm2, %v23975_v15  ;;  %v9184_v15 = vrot.slane %v27402_v1, 5  ;;  %v27405_v1 = vshll.u32 %v23942_v31, 16 }
 0x2b6   : > { %v9185_v10 = vor.u32 %v9184_v15, %v9181_v57  ;;  %v9208_v15 = vrot.slane %v27404_v3, 4  ;;  %v9211_v38 = vrot.slane %v27405_v1, 5  ;;  %v27408_v1 = vshrl.u32 %v23962_v63, 16 }
 0x2b8   : > { %v24287_v57 = vsel %vm3636_vm8, %v9185_v10, %v9194_v5  ;;  %v9212_v3 = vor.u32 %v9211_v38, %v9208_v15  ;;  %v27415_v38 = vshrl.u32 %v23980_v42, 16 }
 0x2ba   : > { %19828 = vmatmul.mubr.msk.bf16.gmra.mrb[8].mxu0 %vm494_vm2, %v24254_v48  ;;  %v9235_v25 = vrot.slane %v27415_v38, 4 }
 0x2bb   : > { %19166 = vmatmul.mubr.msk.bf16.gmra.mrb[28].mxu1 %vm494_vm2, %v23978_v54  ;;  %19831 = vmatprep.mubr.msk.bf16.mxu0 %vm494_vm2, %v24261_v47  ;;  %v24280_v54 = vsel %vm3636_vm8, %v9176_v22, %v9185_v10  ;;  %v27410_v10 = vshll.u32 %v23960_v21, 16 }
 0x2bc   : > { %19169 = vmatprep.mubr.msk.bf16.mxu1 %vm494_vm2, %v23995_v7  ;;  %v9202_v7 = vrot.slane %v27406_v50, 5  ;;  %v27409_v50 = vshll.u32 %v23962_v63, 16 }
 0x2be   : > { %v9203_v22 = vor.u32 %v9202_v7, %v9199_v60  ;;  %v9226_v7 = vrot.slane %v27408_v1, 4  ;;  %v9229_v15 = vrot.slane %v27409_v50, 5  ;;  %v27412_v50 = vshrl.u32 %v23982_v34, 16 }
 0x2c0   : > { %v24313_v60 = vsel %vm3636_vm8, %v9203_v22, %v9212_v3  ;;  %v9230_v1 = vor.u32 %v9229_v15, %v9226_v7  ;;  %v27419_v15 = vshrl.u32 %v24000_v28, 16 }
 0x2c2   : > { %19832 = vmatmul.mubr.msk.bf16.gmra.mrb[12].mxu0 %vm494_vm2, %v24280_v54  ;;  %v9253_v38 = vrot.slane %v27419_v15, 4 }
 0x2c3   : > { %19170 = vmatmul.mubr.msk.bf16.gmra.mrb[32].mxu1 %vm494_vm2, %v23998_v12  ;;  %19835 = vmatprep.mubr.msk.bf16.mxu0 %vm494_vm2, %v24287_v57  ;;  %v24306_v12 = vsel %vm3636_vm8, %v9194_v5, %v9203_v22  ;;  %v27414_v22 = vshll.u32 %v23980_v42, 16 }
 0x2c4   : > { %19173 = vmatprep.mubr.msk.bf16.mxu1 %vm494_vm2, %v24015_v9  ;;  %v9220_v9 = vrot.slane %v27410_v10, 5  ;;  %v27413_v10 = vshll.u32 %v23982_v34, 16 }
 0x2c6   : > { %v9221_v5 = vor.u32 %v9220_v9, %v9217_v23  ;;  %v9244_v9 = vrot.slane %v27412_v50, 4  ;;  %v9247_v7 = vrot.slane %v27413_v10, 5  ;;  %v27416_v10 = vshrl.u32 %v24002_v52, 16 }
 0x2c8   : > { %v24339_v23 = vsel %vm3636_vm8, %v9221_v5, %v9230_v1  ;;  %v9248_v50 = vor.u32 %v9247_v7, %v9244_v9  ;;  %v27421_v7 = vshll.u32 %v24020_v62, 16 }
 0x2ca   : > { %19836 = vmatmul.mubr.msk.bf16.gmra.mrb[16].mxu0 %vm494_vm2, %v24306_v12  ;;  %v9274_v15 = vrot.slane %v27421_v7, 5  ;;  %v3641_v7 = vshll.u32 %v24045_v53, 16 }
 0x2cb   : > { %19174 = vmatmul.mubr.msk.bf16.gmra.mrb[36].mxu1 %vm494_vm2, %v24018_v43  ;;  %19839 = vmatprep.mubr.msk.bf16.mxu0 %vm494_vm2, %v24313_v60  ;;  %v24332_v43 = vsel %vm3636_vm8, %v9212_v3, %v9221_v5  ;;  %v27418_v5 = vshll.u32 %v24000_v28, 16 }
 0x2cc   : > { %19177 = vmatprep.mubr.msk.bf16.mxu1 %vm494_vm2, %v24036_v56  ;;  %v9238_v56 = vrot.slane %v27414_v22, 5  ;;  %v27417_v22 = vshll.u32 %v24002_v52, 16  ;;  %v3643_v45 = vrot.slane %v3641_v7, 5 }
 0x2ce   : > { %v9239_v3 = vor.u32 %v9238_v56, %v9235_v25  ;;  %v9262_v56 = vrot.slane %v27416_v10, 4  ;;  %v9265_v9 = vrot.slane %v27417_v22, 5  ;;  %v27423_v22 = vshrl.u32 %v24022_v0, 16 }
 0x2d0   : > { %v24365_v25 = vsel %vm3636_vm8, %v9239_v3, %v9248_v50  ;;  %v9266_v10 = vor.u32 %v9265_v9, %v9262_v56  ;;  %v27430_v56 = vshrl.u32 %v24043_v27, 16  ;;  %v27431_v9 = vshll.u32 %v24043_v27, 16 }
 0x2d2   : > { %19840 = vmatmul.mubr.msk.bf16.gmra.mrb[20].mxu0 %vm494_vm2, %v24332_v43 }
 0x2d3   : > { %19178 = vmatmul.mubr.msk.bf16.gmra.mrb[40].mxu1 %vm494_vm2, %v24041_v51  ;;  %19843 = vmatprep.mubr.msk.bf16.mxu0 %vm494_vm2, %v24339_v23  ;;  %v24358_v51 = vsel %vm3636_vm8, %v9230_v1, %v9239_v3  ;;  %v27424_v1 = vshrl.u32 %v24020_v62, 16 }
 0x2d4   : > { %19181 = vmatprep.mubr.msk.bf16.mxu1 %vm494_vm2, %v24067_v58  ;;  %v9256_v58 = vrot.slane %v27418_v5, 5  ;;  %v27422_v5 = vshll.u32 %v24022_v0, 16 }
 0x2d6   : > { %v9257_v3 = vor.u32 %v9256_v58, %v9253_v38  ;;  %v9280_v38 = vrot.slane %v27423_v22, 4  ;;  %v9283_v58 = vrot.slane %v27422_v5, 5  ;;  %v27434_v5 = vshrl.u32 %v24047_v44, 16 }
 0x2d8   : > { %v24388_v8 = vsel %vm3636_vm8, %v9248_v50, %v9257_v3  ;;  %v9284_v55 = vor.u32 %v9283_v58, %v9280_v38  ;;  %v3648_v22 = vrot.slane %v27434_v5, 4  ;;  %v27621_v38 = vshrl.u32 %v24049_v11, 16 }
 0x2da   : > { %19844 = vmatmul.mubr.msk.bf16.gmra.mrb[24].mxu0 %vm494_vm2, %v24358_v51  ;;  %v9298_v58 = vrot.slane %v27621_v38, 4  ;;  %v27624_v38 = vld [vmem:[#allocation20_spill] sm:$0xff] }
 0x2db   : > { %19182 = vmatmul.mubr.msk.bf16.gmra.mrb[44].mxu1 %vm494_vm2, %v24073_v14  ;;  %19847 = vmatprep.mubr.msk.bf16.mxu0 %vm494_vm2, %v24365_v25  ;;  %v9271_v14 = vrot.slane %v27424_v1, 4  ;;  %v27435_v1 = vshll.u32 %v24049_v11, 16  ;;  %v27625_v11 = vld [vmem:[#allocation23_spill] sm:$0xff] }
 0x2dc   : > { %19185 = vmatprep.mubr.msk.bf16.mxu1 %vm494_vm2, %v24093_v26  ;;  %v24391_v26 = vsel %vm3636_vm8, %v9257_v3, %v9266_v10  ;;  %v3638_v3 = vshrl.u32 %v24045_v53, 16  ;;  %v9292_v53 = vrot.slane %v27431_v9, 5 }
 0x2dd   : > { %v9275_v50 = vor.u32 %v9274_v15, %v9271_v14  ;;  %v9289_v15 = vrot.slane %v27430_v56, 4  ;;  %v3111_v14 = vld [vmem:[#allocation2 + $0xf8] sm:$0x3]  ;;  %v9301_v56 = vrot.slane %v27435_v1, 5 }
 0x2de   : > { %v3640_v16 = vrot.slane %v3638_v3, 4  ;;  %v27622_v3 = vld [vmem:[#allocation16_spill] sm:$0xff] }
 0x2df   : > { %v24429_v9 = vsel %vm3636_vm8, %v9275_v50, %v9284_v55  ;;  %v9293_v27 = vor.u32 %v9292_v53, %v9289_v15  ;;  %v9302_v15 = vor.u32 %v9301_v56, %v9298_v58  ;;  %v27623_v53 = vld [vmem:[#allocation17_spill] sm:$0xff]  ;;  %v27627_v56 = vshll.u32 %v27622_v3, 16 }
 0x2e0   : > { %v3644_v7 = vor.u32 %v3643_v45, %v3640_v16  ;;  %v27444_v45 = vshll.u32 %v24075_v61, 16 }
 0x2e1   : > { %v3660_v58 = vrot.slane %v27627_v56, 5  ;;  %v24462_v1 = vsel %vm3636_vm8, %v9293_v27, %v9302_v15 }
 0x2e2   : > { %19848 = vmatmul.mubr.msk.bf16.gmra.mrb[28].mxu0 %vm494_vm2, %v24388_v8 }
 0x2e3   : > { %19186 = vmatmul.mubr.msk.bf16.gmra.mrb[48].mxu1 %vm494_vm2, %v24097_v59  ;;  %19851 = vmatprep.mubr.msk.bf16.mxu0 %vm494_vm2, %v24391_v26  ;;  %v27620_v59 = vshll.u32 %v24047_v44, 16  ;;  %v24454_v44 = vsel %vm3636_vm8, %v9284_v55, %v9293_v27 }
 0x2e4   : > { %19189 = vmatprep.mubr.msk.bf16.mxu1 %vm494_vm2, %v24112_v13  ;;  %v24418_v13 = vsel %vm3636_vm8, %v9266_v10, %v9275_v50  ;;  %v3205_v10 = vrot.slane %v3111_v14, 4  ;;  %v17187_v50 = vld [vmem:[%s27283_s1 + $0xe] sm:$0x3]  ;;  %v27443_v14 = vshrl.u32 %v27623_v53, 16 }
 0x2e5   : > { %v3651_v0 = vrot.slane %v27620_v59, 5  ;;  %v4499_v16 = vand.u32 %v17187_v50, %v22413_v6  ;;  %v27628_v59 = vshrl.u32 %v24075_v61, 16 }
 0x2e6   : > { %v3666_v55 = vrot.slane %v27443_v14, 4  ;;  %v27632_v14 = vld [vmem:[#allocation19_spill] sm:$0xff] }
 0x2e7   : > { %19259 = vmatprep.subr.bf16.mxu1 %v4499_v16  ;;  %v9307_v5 = vrot.slane %v27628_v59, 4 }
 0x2ea   : > { %19852 = vmatmul.mubr.msk.bf16.gmra.mrb[32].mxu0 %vm494_vm2, %v24418_v13 }
 0x2eb   : > { %19190 = vmatmul.mubr.msk.bf16.gmra.mrb[52].mxu1 %vm494_vm2, %v24115_v41  ;;  %19855 = vmatprep.mubr.msk.bf16.mxu0 %vm494_vm2, %v24429_v9  ;;  %v3652_v41 = vor.u32 %v3651_v0, %v3648_v22  ;;  %v27626_v0 = vshrl.u32 %v27622_v3, 16  ;;  %v27630_v3 = vshrl.u32 %v27624_v38, 16 }
 0x2ec   : > { %19193 = vmatprep.mubr.msk.bf16.mxu1 %vm494_vm2, %v24134_v49  ;;  %v3206_v49 = vsel %vm3145_vm7, %v27625_v11, %v3205_v10  ;;  %v9310_v11 = vrot.slane %v27444_v45, 5  ;;  %v27629_v10 = vshll.u32 %v27623_v53, 16  ;;  %v27447_v45 = vshll.u32 %v27632_v14, 16  ;;  %vm26428_vm7 = vmor %vm895_vm0, %vm14398_vm15 }
 0x2ed   : > { %v3657_v22 = vrot.slane %v27626_v0, 4  ;;  %v3653_v50 = vsel %vm3636_vm8, %v3644_v7, %v3652_v41  ;;  %v9316_v56 = vrot.slane %v27630_v3, 4  ;;  %v27631_v7 = vshll.u32 %v27624_v38, 16 }
 0x2ee   : > { %v3669_v0 = vrot.slane %v27629_v10, 5  ;;  %v9311_v59 = vor.u32 %v9310_v11, %v9307_v5  ;;  %v27448_v10 = vshrl.u32 %v27632_v14, 16  ;;  %vm14446_vm0 = vcmask 125954  }
 0x2ef   : > { %v9319_v62 = vrot.slane %v27631_v7, 5  ;;  %v3661_v27 = vor.u32 %v3660_v58, %v3657_v22  ;;  %v9328_v22 = vrot.slane %v27447_v45, 5  ;;  %vm14448_vm15 = vcmask 124928  }
 0x2f0   : > { %v3670_v3 = vor.u32 %v3669_v0, %v3666_v55  ;;  %v9325_v38 = vrot.slane %v27448_v10, 4  ;;  %v27634_v55 = vld [vmem:[#allocation12_spill] sm:$0xff] }
 0x2f1   : > { %v9320_v53 = vor.u32 %v9319_v62, %v9316_v56  ;;  %v3662_v7 = vsel %vm3636_vm8, %v3652_v41, %v3661_v27  ;;  %v9337_v62 = vrot.slane %v27634_v55, 5 }
 0x2f2   : > { %19856 = vmatmul.mubr.msk.bf16.gmra.mrb[36].mxu0 %vm494_vm2, %v24454_v44  ;;  %v3671_v58 = vsel %vm3636_vm8, %v3661_v27, %v3670_v3  ;;  %v9329_v41 = vor.u32 %v9328_v22, %v9325_v38 }
 0x2f3   : > { %19194 = vmatmul.mubr.msk.bf16.gmra.mrb[56].mxu1 %vm494_vm2, %v3206_v49  ;;  %19859 = vmatprep.mubr.msk.bf16.mxu0 %vm494_vm2, %v24462_v1  ;;  %v24486_v49 = vsel %vm3636_vm8, %v9302_v15, %v9311_v59  ;;  %v24494_v5 = vsel %vm3636_vm8, %v9311_v59, %v9320_v53  ;;  %v27635_v15 = vld [vmem:[#allocation21_spill] sm:$0xff]  ;;  %v27636_v59 = vld [vmem:[#allocation22_spill] sm:$0xff] }
 0x2f4   : > { %19199 = vmatprep.mubr.msk.bf16.mxu1 %vm494_vm2, %v3653_v50  ;;  %v27633_v50 = vld [vmem:[#allocation11_spill] sm:$0xff]  ;;  %v27456_v0 = vshrl.u32 %v27635_v15, 16  ;;  %v27451_v56 = vshll.u32 %v27635_v15, 16  ;;  %v27450_v45 = vshrl.u32 %v27636_v59, 16  ;;  %v27449_v10 = vshll.u32 %v27636_v59, 16 }
 0x2f5   : > { %v9334_v11 = vrot.slane %v27633_v50, 4  ;;  %v24511_v55 = vsel %vm3636_vm8, %v9320_v53, %v9329_v41  ;;  %v24533_v53 = vld [vmem:[#allocation2 + $0x100] sm:$0xff] }
 0x2f6   : > { %v9346_v38 = vrot.slane %v27451_v56, 5  ;;  %v24553_v56 = vld [vmem:[#allocation2 + $0x110] sm:$0x7] }
 0x2f7   : > { %v9338_v27 = vor.u32 %v9337_v62, %v9334_v11  ;;  %v9352_v11 = vrot.slane %v27450_v45, 4  ;;  %v27452_v62 = vshll.u32 %v24533_v53, 16 }
 0x2f9   : > { %v24518_v22 = vsel %vm3636_vm8, %v9329_v41, %v9338_v27 }
 0x2fa   : > { %19860 = vmatmul.mubr.msk.bf16.gmra.mrb[40].mxu0 %vm494_vm2, %v24486_v49 }
 0x2fb   : > { %19200 = vmatmul.mubr.msk.bf16.vlgmr.msra.gmra.mrb[0].mxu1 %vm494_vm2, %v3662_v7  ;;  %19863 = vmatprep.mubr.msk.bf16.mxu0 %vm494_vm2, %v24494_v5  ;;  %v3680_v7 = vsel %vm3636_vm8, %v3670_v3, %v24167_v24  ;;  %v27454_v3 = vshrl.u32 %v24533_v53, 16 }
 0x2fc   : > { %19203 = vmatprep.mubr.msk.bf16.mxu1 %vm494_vm2, %v3671_v58  ;;  %19260 = vmatpush3.bf16.msra.mxu1 %v4499_v16  ;;  %v9343_v58 = vrot.slane %v27456_v0, 4  ;;  %v9355_v16 = vrot.slane %v27449_v10, 5  ;;  %v27455_v10 = vshll.u32 %v24138_v40, 16 }
 0x2fe   : > { %v24531_v24 = vor.u32 %v9346_v38, %v9343_v58  ;;  %v9356_v41 = vor.u32 %v9355_v16, %v9352_v11  ;;  %v9364_v58 = vrot.slane %v27452_v62, 5  ;;  %v9373_v16 = vrot.slane %v27455_v10, 5 }
 0x2ff   : > { %v9377_v62 = vshrl.u32 %v24553_v56, 16 }
 0x300   : > { %v24541_v45 = vsel %vm3636_vm8, %v9338_v27, %v24531_v24  ;;  %v9357_v38 = vsel %vm3636_vm8, %v24531_v24, %v9356_v41 }
 0x301   : > { %v9379_v0 = vrot.slane %v9377_v62, 4  ;;  %v24576_v62 = vrot.slane %v23839_v37, 5 }
 0x302   : > { %19864 = vmatmul.mubr.msk.bf16.gmra.mrb[44].mxu0 %vm494_vm2, %v24511_v55 }
 0x303   : > { %19204 = vmatmul.mubr.msk.bf16.gmra.mrb[4].mxu1 %vm494_vm2, %v3680_v7  ;;  %19867 = vmatprep.mubr.msk.bf16.mxu0 %vm494_vm2, %v24518_v22  ;;  %v27453_v7 = vshrl.u32 %v24138_v40, 16  ;;  %v24566_v40 = vld [vmem:[#allocation2 + $0x20] sm:$0xe0] }
 0x304   : > { %19207 = vmatprep.mubr.msk.bf16.mxu1 %vm494_vm2, %v24197_v19  ;;  %v9361_v19 = vrot.slane %v27454_v3, 4 }
 0x305   : > { %v9370_v11 = vrot.slane %v27453_v7, 4  ;;  %v9380_v7 = vshll.u32 %v24553_v56, 16 }
 0x306   : > { %v9365_v27 = vor.u32 %v9364_v58, %v9361_v19  ;;  %v9816_v19 = vrot.slane %v24566_v40, 5 }
 0x307   : > { %v9374_v3 = vor.u32 %v9373_v16, %v9370_v11  ;;  %v9382_v50 = vrot.slane %v9380_v7, 5 }
 0x308   : > { %v9366_v10 = vsel %vm3636_vm8, %v9356_v41, %v9365_v27  ;;  %v9818_v7 = vsel %vm4346_vm9, %v9816_v19, %v24576_v62 }
 0x30a   : > { %19868 = vmatmul.mubr.msk.bf16.gmra.mrb[48].mxu0 %vm494_vm2, %v24541_v45 }
 0x30b   : > { %19208 = vmatmul.mubr.msk.bf16.gmra.mrb[8].mxu1 %vm494_vm2, %v24211_v39  ;;  %19871 = vmatprep.mubr.msk.bf16.mxu0 %vm494_vm2, %v9357_v38  ;;  %v9375_v39 = vsel %vm3636_vm8, %v9365_v27, %v9374_v3 }
 0x30c   : > { %19211 = vmatprep.mubr.msk.bf16.mxu1 %vm494_vm2, %v24228_v20  ;;  %v9383_v20 = vor.u32 %v9382_v50, %v9379_v0 }
 0x30e   : > { %v9384_v41 = vsel %vm3636_vm8, %v9374_v3, %v9383_v20  ;;  %v9825_v3 = vrot.slane %v23880_v30, 5 }
 0x312   : > { %19872 = vmatmul.mubr.msk.bf16.gmra.mrb[52].mxu0 %vm494_vm2, %v9366_v10  ;;  %v17559_v10 = vld [vmem:[%s27283_s1 + $0x26] sm:$0x3] }
 0x313   : > { %19212 = vmatmul.mubr.msk.bf16.gmra.mrb[12].mxu1 %vm494_vm2, %v24235_v32  ;;  %19875 = vmatprep.mubr.msk.bf16.mxu0 %vm494_vm2, %v9375_v39  ;;  %v9819_v32 = vrot.slane %v23853_v18, 5 }
 0x314   : > { %19215 = vmatprep.mubr.msk.bf16.mxu1 %vm494_vm2, %v24254_v48  ;;  %v9821_v48 = vrot.slane %v23858_v36, 5 }
 0x315   : > { %v24594_v50 = vsel %vm4346_vm9, %v24576_v62, %v9819_v32 }
 0x316   : > { %v24600_v0 = vsel %vm4346_vm9, %v9819_v32, %v9821_v48 }
 0x31a   : > { %19876 = vmatmul.mubr.msk.bf16.gmra.mrb[56].mxu0 %vm494_vm2, %v9384_v41 }
 0x31b   : > { %19216 = vmatmul.mubr.msk.bf16.gmra.mrb[16].mxu1 %vm494_vm2, %v24261_v47  ;;  %19881 = vmatprep.mubr.msk.bf16.mxu0 %vm494_vm2, %v9818_v7  ;;  %v24597_v47 = vand.u32 %v17559_v10, %v22413_v6 }
 0x31c   : > { %19219 = vmatprep.mubr.msk.bf16.mxu1 %vm494_vm2, %v24280_v54  ;;  %v9823_v54 = vrot.slane %v23872_v33, 5 }
 0x31e   : > { %v24615_v58 = vsel %vm4346_vm9, %v9821_v48, %v9823_v54 }
 0x322   : > { %19882 = vmatmul.mubr.msk.bf16.vlgmr.msra.gmra.mrb[0].mxu0 %vm494_vm2, %v24594_v50 }
 0x323   : > { %19220 = vmatmul.mubr.msk.bf16.gmra.mrb[20].mxu1 %vm494_vm2, %v24287_v57  ;;  %19942 = vmatpush3.bf16.msra.mxu0 %v24208_v17  ;;  %v24618_v57 = vsel %vm4346_vm9, %v9823_v54, %v9825_v3  ;;  %v9827_v17 = vrot.slane %v23900_v2, 5 }
 0x324   : > { %19223 = vmatprep.mubr.msk.bf16.mxu1 %vm494_vm2, %v24306_v12  ;;  %19885 = vmatprep.mubr.msk.bf16.mxu0 %vm494_vm2, %v24600_v0  ;;  %v9829_v12 = vrot.slane %v23902_v35, 5 }
 0x325   : > { %20003 = vmatprep.subr.bf16.mxu0 %v24597_v47  ;;  %v24631_v38 = vsel %vm4346_vm9, %v9825_v3, %v9827_v17 }
 0x326   : > { %v24634_v11 = vsel %vm4346_vm9, %v9827_v17, %v9829_v12 }
 0x32a   : > { %19886 = vmatmul.mubr.msk.bf16.gmra.mrb[4].mxu0 %vm494_vm2, %v24615_v58 }
 0x32b   : > { %19224 = vmatmul.mubr.msk.bf16.gmra.mrb[24].mxu1 %vm494_vm2, %v24313_v60  ;;  %19889 = vmatprep.mubr.msk.bf16.mxu0 %vm494_vm2, %v24618_v57  ;;  %v9831_v60 = vrot.slane %v23920_v4, 5 }
 0x32c   : > { %19227 = vmatprep.mubr.msk.bf16.mxu1 %vm494_vm2, %v24332_v43  ;;  %v9833_v43 = vrot.slane %v23922_v29, 5 }
 0x32d   : > { %v24647_v16 = vsel %vm4346_vm9, %v9829_v12, %v9831_v60  ;;  %v27639_v12 = vld [vmem:[#allocation15_spill] sm:$0xff] }
 0x32e   : > { %v24650_v27 = vsel %vm4346_vm9, %v9831_v60, %v9833_v43  ;;  %v9853_v60 = vrot.slane %v27639_v12, 5 }
 0x332   : > { %19890 = vmatmul.mubr.msk.bf16.gmra.mrb[8].mxu0 %vm494_vm2, %v24631_v38 }
 0x333   : > { %19228 = vmatmul.mubr.msk.bf16.gmra.mrb[28].mxu1 %vm494_vm2, %v24339_v23  ;;  %19893 = vmatprep.mubr.msk.bf16.mxu0 %vm494_vm2, %v24634_v11  ;;  %v9835_v23 = vrot.slane %v23940_v46, 5 }
 0x334   : > { %19231 = vmatprep.mubr.msk.bf16.mxu1 %vm494_vm2, %v24358_v51  ;;  %v9837_v51 = vrot.slane %v23942_v31, 5 }
 0x335   : > { %v24663_v39 = vsel %vm4346_vm9, %v9833_v43, %v9835_v23 }
 0x336   : > { %v24666_v20 = vsel %vm4346_vm9, %v9835_v23, %v9837_v51 }
 0x33a   : > { %19894 = vmatmul.mubr.msk.bf16.gmra.mrb[12].mxu0 %vm494_vm2, %v24647_v16 }
 0x33b   : > { %19232 = vmatmul.mubr.msk.bf16.gmra.mrb[32].mxu1 %vm494_vm2, %v24365_v25  ;;  %19897 = vmatprep.mubr.msk.bf16.mxu0 %vm494_vm2, %v24650_v27  ;;  %v9841_v25 = vrot.slane %v23962_v63, 5 }
 0x33c   : > { %19235 = vmatprep.mubr.msk.bf16.mxu1 %vm494_vm2, %v24388_v8  ;;  %v9839_v8 = vrot.slane %v23960_v21, 5 }
 0x33e   : > { %v24679_v19 = vsel %vm4346_vm9, %v9837_v51, %v9839_v8  ;;  %v24682_v41 = vsel %vm4346_vm9, %v9839_v8, %v9841_v25  ;;  %v17218_v8 = vld [vmem:[%s27283_s1 + $0x10] sm:$0x3] }
 0x342   : > { %19898 = vmatmul.mubr.msk.bf16.gmra.mrb[16].mxu0 %vm494_vm2, %v24663_v39 }
 0x343   : > { %19236 = vmatmul.mubr.msk.bf16.gmra.mrb[36].mxu1 %vm494_vm2, %v24391_v26  ;;  %19901 = vmatprep.mubr.msk.bf16.mxu0 %vm494_vm2, %v24666_v20  ;;  %v9843_v26 = vrot.slane %v23980_v42, 5 }
 0x344   : > { %19239 = vmatprep.mubr.msk.bf16.mxu1 %vm494_vm2, %v24418_v13  ;;  %v9845_v13 = vrot.slane %v23982_v34, 5 }
 0x345   : > { %v24695_v7 = vsel %vm4346_vm9, %v9841_v25, %v9843_v26 }
 0x346   : > { %v24698_v32 = vsel %vm4346_vm9, %v9843_v26, %v9845_v13  ;;  %v27640_v26 = vld [vmem:[#allocation14_spill] sm:$0xff] }
 0x34a   : > { %19902 = vmatmul.mubr.msk.bf16.gmra.mrb[20].mxu0 %vm494_vm2, %v24679_v19 }
 0x34b   : > { %19240 = vmatmul.mubr.msk.bf16.gmra.mrb[40].mxu1 %vm494_vm2, %v24429_v9  ;;  %19905 = vmatprep.mubr.msk.bf16.mxu0 %vm494_vm2, %v24682_v41  ;;  %v9849_v9 = vrot.slane %v24002_v52, 5 }
 0x34c   : > { %19243 = vmatprep.mubr.msk.bf16.mxu1 %vm494_vm2, %v24454_v44  ;;  %v9847_v44 = vrot.slane %v24000_v28, 5 }
 0x34e   : > { %v24711_v48 = vsel %vm4346_vm9, %v9845_v13, %v9847_v44  ;;  %v24714_v10 = vsel %vm4346_vm9, %v9847_v44, %v9849_v9  ;;  %v9855_v13 = vrot.slane %v27640_v26, 5  ;;  %v5062_v44 = vand.u32 %v17218_v8, %v22413_v6  ;;  %v27643_v8 = vld [vmem:[#allocation16_spill] sm:$0xff] }
 0x350   : > { %19321 = vmatprep.subr.bf16.mxu1 %v5062_v44 }
 0x352   : > { %19906 = vmatmul.mubr.msk.bf16.gmra.mrb[24].mxu0 %vm494_vm2, %v24695_v7 }
 0x353   : > { %19244 = vmatmul.mubr.msk.bf16.gmra.mrb[44].mxu1 %vm494_vm2, %v24462_v1  ;;  %19909 = vmatprep.mubr.msk.bf16.mxu0 %vm494_vm2, %v24698_v32  ;;  %v24716_v1 = vld [vmem:[#allocation2 + $0xf8] sm:$0x7] }
 0x354   : > { %19247 = vmatprep.mubr.msk.bf16.mxu1 %vm494_vm2, %v24486_v49  ;;  %27637 = vst [vmem:[#allocation23_spill] sm:$0xff] %v24716_v1  ;;  %v27638_v49 = vld [vmem:[#allocation13_spill] sm:$0xff]  ;;  %v3907_v3 = vshrl.u32 %v24716_v1, 16  ;;  %v3910_v17 = vshll.u32 %v24716_v1, 16 }
 0x355   : > { %v9851_v54 = vrot.slane %v27638_v49, 5 }
 0x356   : > { %v3912_v23 = vrot.slane %v3910_v17, 5 }
 0x357   : > { %v24731_v43 = vsel %vm4346_vm9, %v9849_v9, %v9851_v54  ;;  %v24734_v51 = vsel %vm4346_vm9, %v9851_v54, %v9853_v60  ;;  %v27641_v9 = vld [vmem:[#allocation10_spill] sm:$0xff] }
 0x358   : > { %v4348_v54 = vrot.slane %v27641_v9, 5 }
 0x35a   : > { %19910 = vmatmul.mubr.msk.bf16.gmra.mrb[28].mxu0 %vm494_vm2, %v24711_v48 }
 0x35b   : > { %19248 = vmatmul.mubr.msk.bf16.gmra.mrb[48].mxu1 %vm494_vm2, %v24494_v5  ;;  %19913 = vmatprep.mubr.msk.bf16.mxu0 %vm494_vm2, %v24714_v10  ;;  %v3909_v5 = vrot.slane %v3907_v3, 4  ;;  %v27642_v3 = vld [vmem:[#allocation18_spill] sm:$0xff] }
 0x35c   : > { %19251 = vmatprep.mubr.msk.bf16.mxu1 %vm494_vm2, %v24511_v55  ;;  %v24736_v55 = vld [vmem:[#allocation2 + $0x8] sm:$0xe0]  ;;  %v9857_v17 = vrot.slane %v27642_v3, 5  ;;  %v4350_v3 = vrot.slane %v27643_v8, 5 }
 0x35d   : > { %v3913_v25 = vor.u32 %v3912_v23, %v3909_v5 }
 0x35e   : > { %v24761_v23 = vsel %vm4346_vm9, %v9855_v13, %v9857_v17 }
 0x35f   : > { %v3914_v1 = vsel %vm3636_vm8, %v24531_v24, %v3913_v25  ;;  %v9859_v24 = vrot.slane %v24075_v61, 5  ;;  %vm14408_vm8 = vcmask 123904  }
 0x362   : > { %19914 = vmatmul.mubr.msk.bf16.gmra.mrb[32].mxu0 %vm494_vm2, %v24731_v43 }
 0x363   : > { %19252 = vmatmul.mubr.msk.bf16.gmra.mrb[52].mxu1 %vm494_vm2, %v24518_v22  ;;  %19917 = vmatprep.mubr.msk.bf16.mxu0 %vm494_vm2, %v24734_v51  ;;  %v4347_v22 = vrot.slane %v24736_v55, 5 }
 0x364   : > { %19255 = vmatprep.mubr.msk.bf16.mxu1 %vm494_vm2, %v24541_v45  ;;  %v24757_v45 = vsel %vm4346_vm9, %v9853_v60, %v9855_v13  ;;  %v27644_v60 = vld [vmem:[#allocation17_spill] sm:$0xff]  ;;  %v4351_v13 = vsel %vm4346_vm9, %v4348_v54, %v4350_v3 }
 0x365   : > { %v4349_v5 = vsel %vm4346_vm9, %v4347_v22, %v4348_v54  ;;  %v4352_v25 = vrot.slane %v27644_v60, 5  ;;  %v27645_v22 = vld [vmem:[#allocation20_spill] sm:$0xff]  ;;  %v9863_v54 = vrot.slane %v27632_v14, 5  ;;  %v27648_v14 = vshrl.u32 %v23839_v37, 16 }
 0x366   : > { %v9861_v9 = vrot.slane %v27645_v22, 5  ;;  %v24788_v22 = vld [vmem:[#allocation2 + $0xe8] sm:$0xff] }
 0x367   : > { %v4353_v26 = vsel %vm4346_vm9, %v4350_v3, %v4352_v25  ;;  %27646 = vst [vmem:[#allocation13_spill] sm:$0xff] %v24788_v22  ;;  %v4355_v3 = vsel %vm4346_vm9, %v4352_v25, %v24576_v62  ;;  %v9869_v62 = vrot.slane %v27636_v59, 5  ;;  %v27647_v25 = vld [vmem:[#allocation24_spill] sm:$0xff]  ;;  %v10314_v60 = vrot.slane %v27648_v14, 5 }
 0x36a   : > { %19918 = vmatmul.mubr.msk.bf16.gmra.mrb[36].mxu0 %vm494_vm2, %v24757_v45 }
 0x36b   : > { %19256 = vmatmul.mubr.msk.bf16.gmra.mrb[56].mxu1 %vm494_vm2, %v3914_v1  ;;  %19921 = vmatprep.mubr.msk.bf16.mxu0 %vm494_vm2, %v24761_v23  ;;  %v24775_v1 = vsel %vm4346_vm9, %v9857_v17, %v9859_v24  ;;  %v9865_v17 = vrot.slane %v24788_v22, 5 }
 0x36c   : > { %19261 = vmatprep.mubr.msk.bf16.mxu1 %vm494_vm2, %v4349_v5  ;;  %v24779_v5 = vsel %vm4346_vm9, %v9859_v24, %v9861_v9  ;;  %v24794_v24 = vsel %vm4346_vm9, %v9861_v9, %v9863_v54 }
 0x372   : > { %19922 = vmatmul.mubr.msk.bf16.gmra.mrb[40].mxu0 %vm494_vm2, %v24775_v1 }
 0x373   : > { %19262 = vmatmul.mubr.msk.bf16.vlgmr.msra.gmra.mrb[0].mxu1 %vm494_vm2, %v4351_v13  ;;  %19925 = vmatprep.mubr.msk.bf16.mxu0 %vm494_vm2, %v24779_v5  ;;  %v24797_v13 = vsel %vm4346_vm9, %v9863_v54, %v9865_v17  ;;  %v9873_v54 = vrot.slane %v27647_v25, 5 }
 0x374   : > { %19265 = vmatprep.mubr.msk.bf16.mxu1 %vm494_vm2, %v4353_v26  ;;  %19322 = vmatpush3.bf16.msra.mxu1 %v5062_v44  ;;  %v24807_v26 = vrot.slane %v27635_v15, 5 }
 0x376   : > { %v24812_v44 = vsel %vm4346_vm9, %v9865_v17, %v24807_v26  ;;  %v9870_v9 = vsel %vm4346_vm9, %v24807_v26, %v9869_v62  ;;  %v10307_v17 = vshrl.u32 %v24566_v40, 16 }
 0x378   : > { %v10309_v59 = vrot.slane %v10307_v17, 5 }
 0x37a   : > { %19926 = vmatmul.mubr.msk.bf16.gmra.mrb[44].mxu0 %vm494_vm2, %v24794_v24 }
 0x37b   : > { %19266 = vmatmul.mubr.msk.bf16.gmra.mrb[4].mxu1 %vm494_vm2, %v4355_v3  ;;  %19929 = vmatprep.mubr.msk.bf16.mxu0 %vm494_vm2, %v24797_v13  ;;  %v10310_v3 = vshll.u32 %v24566_v40, 16  ;;  %v9875_v40 = vrot.slane %v24553_v56, 5  ;;  %v27653_v56 = vshll.u32 %v23858_v36, 16 }
 0x37c   : > { %19269 = vmatprep.mubr.msk.bf16.mxu1 %vm494_vm2, %v24594_v50  ;;  %v9871_v50 = vrot.slane %v24533_v53, 5 }
 0x37d   : > { %v10312_v15 = vrot.slane %v10310_v3, 6  ;;  %v9876_v14 = vsel %vm4346_vm9, %v9873_v54, %v9875_v40 }
 0x37e   : > { %v9872_v22 = vsel %vm4346_vm9, %v9869_v62, %v9871_v50 }
 0x37f   : > { %v10313_v62 = vor.u32 %v10312_v15, %v10309_v59  ;;  %v10323_v15 = vrot.slane %v27653_v56, 6  ;;  %v27661_v56 = vshll.u32 %v23902_v35, 16 }
 0x382   : > { %19930 = vmatmul.mubr.msk.bf16.gmra.mrb[48].mxu0 %vm494_vm2, %v24812_v44 }
 0x383   : > { %19270 = vmatmul.mubr.msk.bf16.gmra.mrb[8].mxu1 %vm494_vm2, %v24600_v0  ;;  %19933 = vmatprep.mubr.msk.bf16.mxu0 %vm494_vm2, %v9870_v9  ;;  %v9874_v0 = vsel %vm4346_vm9, %v9871_v50, %v9873_v54  ;;  %v27654_v54 = vshrl.u32 %v23872_v33, 16 }
 0x384   : > { %19273 = vmatprep.mubr.msk.bf16.mxu1 %vm494_vm2, %v24615_v58  ;;  %v27649_v58 = vshll.u32 %v23839_v37, 16  ;;  %v27650_v37 = vshrl.u32 %v23853_v18, 16 }
 0x386   : > { %v10315_v9 = vrot.slane %v27649_v58, 6  ;;  %v10318_v17 = vrot.slane %v27650_v37, 5  ;;  %v27655_v58 = vshll.u32 %v23872_v33, 16 }
 0x388   : > { %v24840_v50 = vor.u32 %v10315_v9, %v10314_v60  ;;  %v17590_v60 = vld [vmem:[%s27283_s1 + $0x28] sm:$0x3]  ;;  %v10327_v9 = vrot.slane %v27655_v58, 6  ;;  %v27664_v58 = vshrl.u32 %v23922_v29, 16 }
 0x389   : > { %v24875_v37 = vand.u32 %v17590_v60, %v22413_v6 }
 0x38a   : > { %19934 = vmatmul.mubr.msk.bf16.gmra.mrb[52].mxu0 %vm494_vm2, %v9872_v22  ;;  %v10317_v22 = vsel %vm4837_vm10, %v10313_v62, %v24840_v50  ;;  %v27657_v62 = vshll.u32 %v23880_v30, 16 }
 0x38b   : > { %19274 = vmatmul.mubr.msk.bf16.gmra.mrb[12].mxu1 %vm494_vm2, %v24618_v57  ;;  %19937 = vmatprep.mubr.msk.bf16.mxu0 %vm494_vm2, %v9874_v0  ;;  %v27651_v57 = vshll.u32 %v23853_v18, 16 }
 0x38c   : > { %19277 = vmatprep.mubr.msk.bf16.mxu1 %vm494_vm2, %v24631_v38  ;;  %v27652_v38 = vshrl.u32 %v23858_v36, 16 }
 0x38d   : > { %v10319_v3 = vrot.slane %v27651_v57, 6 }
 0x38e   : > { %v10322_v0 = vrot.slane %v27652_v38, 5 }
 0x38f   : > { %v10320_v18 = vor.u32 %v10319_v3, %v10318_v17 }
 0x390   : > { %v10324_v59 = vor.u32 %v10323_v15, %v10322_v0  ;;  %v10339_v15 = vrot.slane %v27661_v56, 6  ;;  %v27671_v56 = vshll.u32 %v23960_v21, 16 }
 0x391   : > { %v24864_v36 = vsel %vm4837_vm10, %v24840_v50, %v10320_v18 }
 0x392   : > { %19938 = vmatmul.mubr.msk.bf16.gmra.mrb[56].mxu0 %vm494_vm2, %v9876_v14  ;;  %v10331_v14 = vrot.slane %v27657_v62, 6  ;;  %v24878_v17 = vsel %vm4837_vm10, %v10320_v18, %v10324_v59 }
 0x393   : > { %19278 = vmatmul.mubr.msk.bf16.gmra.mrb[16].mxu1 %vm494_vm2, %v24634_v11  ;;  %19943 = vmatprep.mubr.msk.bf16.mxu0 %vm494_vm2, %v10317_v22  ;;  %v10326_v11 = vrot.slane %v27654_v54, 5  ;;  %v27659_v22 = vshll.u32 %v23900_v2, 16  ;;  %v27663_v54 = vshll.u32 %v23920_v4, 16 }
 0x394   : > { %19281 = vmatprep.mubr.msk.bf16.mxu1 %vm494_vm2, %v24647_v16  ;;  %v27656_v16 = vshrl.u32 %v23880_v30, 16 }
 0x395   : > { %v10328_v33 = vor.u32 %v10327_v9, %v10326_v11  ;;  %v10335_v38 = vrot.slane %v27659_v22, 6  ;;  %v27665_v9 = vshll.u32 %v23922_v29, 16  ;;  %v27666_v29 = vshrl.u32 %v23940_v46, 16 }
 0x396   : > { %v10330_v40 = vrot.slane %v27656_v16, 5 }
 0x397   : > { %v24891_v57 = vsel %vm4837_vm10, %v10324_v59, %v10328_v33  ;;  %v10347_v16 = vrot.slane %v27665_v9, 6  ;;  %v27676_v9 = vshrl.u32 %v23982_v34, 16 }
 0x398   : > { %v10332_v30 = vor.u32 %v10331_v14, %v10330_v40  ;;  %v10350_v14 = vrot.slane %v27666_v29, 5 }
 0x39a   : > { %19944 = vmatmul.mubr.msk.bf16.vlgmr.msra.gmra.mrb[0].mxu0 %vm494_vm2, %v24864_v36 }
 0x39b   : > { %19282 = vmatmul.mubr.msk.bf16.gmra.mrb[20].mxu1 %vm494_vm2, %v24650_v27  ;;  %20004 = vmatpush3.bf16.msra.mxu0 %v24597_v47  ;;  %v27658_v27 = vshrl.u32 %v23900_v2, 16  ;;  %v24898_v47 = vsel %vm4837_vm10, %v10328_v33, %v10332_v30  ;;  %v27667_v33 = vshll.u32 %v23940_v46, 16 }
 0x39c   : > { %19285 = vmatprep.mubr.msk.bf16.mxu1 %vm494_vm2, %v24663_v39  ;;  %19947 = vmatprep.mubr.msk.bf16.mxu0 %vm494_vm2, %v24878_v17  ;;  %v27660_v39 = vshrl.u32 %v23902_v35, 16  ;;  %v27662_v35 = vshrl.u32 %v23920_v4, 16 }
 0x39d   : > { %20065 = vmatprep.subr.bf16.mxu0 %v24875_v37  ;;  %v10334_v3 = vrot.slane %v27658_v27, 5  ;;  %v27668_v27 = vshrl.u32 %v23942_v31, 16 }
 0x39e   : > { %v10338_v0 = vrot.slane %v27660_v39, 5  ;;  %v10342_v60 = vrot.slane %v27662_v35, 5 }
 0x39f   : > { %v10336_v2 = vor.u32 %v10335_v38, %v10334_v3  ;;  %v27669_v3 = vshll.u32 %v23942_v31, 16  ;;  %v27670_v31 = vshrl.u32 %v23960_v21, 16 }
 0x3a0   : > { %v10340_v18 = vor.u32 %v10339_v15, %v10338_v0 }
 0x3a1   : > { %v24913_v59 = vsel %vm4837_vm10, %v10332_v30, %v10336_v2  ;;  %v10355_v22 = vrot.slane %v27669_v3, 6  ;;  %v10358_v0 = vrot.slane %v27670_v31, 5 }
 0x3a2   : > { %19948 = vmatmul.mubr.msk.bf16.gmra.mrb[4].mxu0 %vm494_vm2, %v24891_v57  ;;  %v24920_v11 = vsel %vm4837_vm10, %v10336_v2, %v10340_v18  ;;  %v27672_v2 = vshrl.u32 %v23962_v63, 16 }
 0x3a3   : > { %19286 = vmatmul.mubr.msk.bf16.gmra.mrb[24].mxu1 %vm494_vm2, %v24666_v20  ;;  %19951 = vmatprep.mubr.msk.bf16.mxu0 %vm494_vm2, %v24898_v47  ;;  %v10343_v20 = vrot.slane %v27663_v54, 6 }
 0x3a4   : > { %19289 = vmatprep.mubr.msk.bf16.mxu1 %vm494_vm2, %v24679_v19  ;;  %v10346_v19 = vrot.slane %v27664_v58, 5  ;;  %v27675_v58 = vshll.u32 %v23980_v42, 16 }
 0x3a5   : > { %v10344_v4 = vor.u32 %v10343_v20, %v10342_v60 }
 0x3a6   : > { %v10348_v40 = vor.u32 %v10347_v16, %v10346_v19  ;;  %v27677_v16 = vshll.u32 %v23982_v34, 16  ;;  %v27678_v34 = vshrl.u32 %v24000_v28, 16 }
 0x3a7   : > { %v24935_v62 = vsel %vm4837_vm10, %v10340_v18, %v10344_v4  ;;  %v27673_v18 = vshll.u32 %v23962_v63, 16  ;;  %v27674_v63 = vshrl.u32 %v23980_v42, 16 }
 0x3a8   : > { %v24942_v30 = vsel %vm4837_vm10, %v10344_v4, %v10348_v40  ;;  %v10371_v4 = vrot.slane %v27677_v16, 6 }
 0x3a9   : > { %v10363_v35 = vrot.slane %v27673_v18, 6  ;;  %v10366_v20 = vrot.slane %v27674_v63, 5  ;;  %v4842_v18 = vshll.u32 %v24736_v55, 16 }
 0x3aa   : > { %19952 = vmatmul.mubr.msk.bf16.gmra.mrb[8].mxu0 %vm494_vm2, %v24913_v59 }
 0x3ab   : > { %19290 = vmatmul.mubr.msk.bf16.gmra.mrb[28].mxu1 %vm494_vm2, %v24682_v41  ;;  %19955 = vmatprep.mubr.msk.bf16.mxu0 %vm494_vm2, %v24920_v11  ;;  %v10351_v41 = vrot.slane %v27667_v33, 6  ;;  %v27679_v33 = vshll.u32 %v24000_v28, 16 }
 0x3ac   : > { %19293 = vmatprep.mubr.msk.bf16.mxu1 %vm494_vm2, %v24695_v7  ;;  %v10354_v7 = vrot.slane %v27668_v27, 5  ;;  %v27680_v27 = vshrl.u32 %v24002_v52, 16 }
 0x3ad   : > { %v10352_v46 = vor.u32 %v10351_v41, %v10350_v14  ;;  %v10374_v14 = vrot.slane %v27678_v34, 5 }
 0x3ae   : > { %v10356_v38 = vor.u32 %v10355_v22, %v10354_v7  ;;  %v27681_v7 = vshll.u32 %v24002_v52, 16  ;;  %v27683_v52 = vshll.u32 %v27638_v49, 16 }
 0x3af   : > { %v24957_v39 = vsel %vm4837_vm10, %v10348_v40, %v10352_v46 }
 0x3b0   : > { %v24964_v15 = vsel %vm4837_vm10, %v10352_v46, %v10356_v38  ;;  %v10379_v3 = vrot.slane %v27681_v7, 6  ;;  %v27682_v46 = vshrl.u32 %v27638_v49, 16  ;;  %v10383_v31 = vrot.slane %v27683_v52, 6 }
 0x3b1   : > { %v4839_v49 = vshrl.u32 %v24736_v55, 16  ;;  %v27696_v52 = vshrl.u32 %v27643_v8, 16 }
 0x3b2   : > { %19956 = vmatmul.mubr.msk.bf16.gmra.mrb[12].mxu0 %vm494_vm2, %v24935_v62 }
 0x3b3   : > { %19294 = vmatmul.mubr.msk.bf16.gmra.mrb[32].mxu1 %vm494_vm2, %v24698_v32  ;;  %19959 = vmatprep.mubr.msk.bf16.mxu0 %vm494_vm2, %v24942_v30  ;;  %v10359_v32 = vrot.slane %v27671_v56, 6  ;;  %v27684_v56 = vshrl.u32 %v27639_v12, 16  ;;  %v4841_v16 = vrot.slane %v4839_v49, 5  ;;  %v27699_v49 = vshll.u32 %v24075_v61, 16 }
 0x3b4   : > { %19297 = vmatprep.mubr.msk.bf16.mxu1 %vm494_vm2, %v24711_v48  ;;  %v10362_v48 = vrot.slane %v27672_v2, 5 }
 0x3b5   : > { %v10360_v21 = vor.u32 %v10359_v32, %v10358_v0  ;;  %v27685_v32 = vshll.u32 %v27639_v12, 16 }
 0x3b6   : > { %v10364_v60 = vor.u32 %v10363_v35, %v10362_v48 }
 0x3b7   : > { %v24979_v54 = vsel %vm4837_vm10, %v10356_v38, %v10360_v21  ;;  %v10382_v38 = vrot.slane %v27682_v46, 5  ;;  %v10387_v2 = vrot.slane %v27685_v32, 6 }
 0x3b8   : > { %v24986_v19 = vsel %vm4837_vm10, %v10360_v21, %v10364_v60  ;;  %v27686_v21 = vld [vmem:[#allocation14_spill] sm:$0xff] }
 0x3b9   : > { %v10384_v48 = vor.u32 %v10383_v31, %v10382_v38  ;;  %v27688_v63 = vshll.u32 %v27686_v21, 16  ;;  %v4850_v31 = vrot.slane %v27696_v52, 5  ;;  %v27711_v52 = vld [vmem:[#allocation9_spill] sm:$0xff] }
 0x3ba   : > { %19960 = vmatmul.mubr.msk.bf16.gmra.mrb[16].mxu0 %vm494_vm2, %v24957_v39 }
 0x3bb   : > { %19298 = vmatmul.mubr.msk.bf16.gmra.mrb[36].mxu1 %vm494_vm2, %v24714_v10  ;;  %19963 = vmatprep.mubr.msk.bf16.mxu0 %vm494_vm2, %v24964_v15  ;;  %v10367_v10 = vrot.slane %v27675_v58, 6  ;;  %v27689_v58 = vld [vmem:[#allocation10_spill] sm:$0xff] }
 0x3bc   : > { %19301 = vmatprep.mubr.msk.bf16.mxu1 %vm494_vm2, %v24731_v43  ;;  %v10370_v43 = vrot.slane %v27676_v9, 5  ;;  %v27691_v9 = vshll.u32 %v27689_v58, 16 }
 0x3bd   : > { %v10368_v42 = vor.u32 %v10367_v10, %v10366_v20  ;;  %v10391_v20 = vrot.slane %v27688_v63, 6  ;;  %v27690_v10 = vshrl.u32 %v27689_v58, 16  ;;  %v27703_v63 = vld [vmem:[#allocation20_spill] sm:$0xff] }
 0x3be   : > { %v10372_v40 = vor.u32 %v10371_v4, %v10370_v43  ;;  %v4847_v43 = vrot.slane %v27691_v9, 6  ;;  %v4844_v4 = vrot.slane %v4842_v18, 6  ;;  %v27700_v18 = vld [vmem:[#allocation17_spill] sm:$0xff]  ;;  %v27705_v58 = vshll.u32 %v27703_v63, 16 }
 0x3bf   : > { %v25001_v29 = vsel %vm4837_vm10, %v10364_v60, %v10368_v42  ;;  %v27687_v60 = vshrl.u32 %v27686_v21, 16 }
 0x3c0   : > { %v25008_v41 = vsel %vm4837_vm10, %v10368_v42, %v10372_v40  ;;  %v27692_v42 = vld [vmem:[#allocation18_spill] sm:$0xff] }
 0x3c1   : > { %v27693_v55 = vshrl.u32 %v27692_v42, 16  ;;  %v27694_v34 = vshll.u32 %v27692_v42, 16  ;;  %v27706_v42 = vld [vmem:[#allocation19_spill] sm:$0xff] }
 0x3c2   : > { %19964 = vmatmul.mubr.msk.bf16.gmra.mrb[20].mxu0 %vm494_vm2, %v24979_v54 }
 0x3c3   : > { %19302 = vmatmul.mubr.msk.bf16.gmra.mrb[40].mxu1 %vm494_vm2, %v24734_v51  ;;  %19967 = vmatprep.mubr.msk.bf16.mxu0 %vm494_vm2, %v24986_v19  ;;  %v10375_v51 = vrot.slane %v27679_v33, 6 }
 0x3c4   : > { %19305 = vmatprep.mubr.msk.bf16.mxu1 %vm494_vm2, %v24757_v45  ;;  %v10378_v45 = vrot.slane %v27680_v27, 5 }
 0x3c5   : > { %v10376_v28 = vor.u32 %v10375_v51, %v10374_v14  ;;  %v10395_v14 = vrot.slane %v27694_v34, 6  ;;  %v27695_v51 = vld [vmem:[#allocation23_spill] sm:$0xff]  ;;  %v27708_v34 = vshll.u32 %v27706_v42, 16 }
 0x3c6   : > { %v10380_v22 = vor.u32 %v10379_v3, %v10378_v45  ;;  %v4406_v27 = vrot.slane %v27695_v51, 5  ;;  %v17249_v3 = vld [vmem:[%s27283_s1 + $0x12] sm:$0x3] }
 0x3c7   : > { %v25027_v0 = vsel %vm4837_vm10, %v10372_v40, %v10376_v28  ;;  %v10394_v40 = vrot.slane %v27693_v55, 5  ;;  %v27707_v55 = vshrl.u32 %v27706_v42, 16 }
 0x3c8   : > { %v25047_v12 = vsel %vm4837_vm10, %v10380_v22, %v10384_v48  ;;  %v4407_v46 = vsel %vm4346_vm9, %v24807_v26, %v4406_v27  ;;  %v10399_v26 = vrot.slane %v27699_v49, 6 }
 0x3ca   : > { %19968 = vmatmul.mubr.msk.bf16.gmra.mrb[24].mxu0 %vm494_vm2, %v25001_v29 }
 0x3cb   : > { %19306 = vmatmul.mubr.msk.bf16.gmra.mrb[44].mxu1 %vm494_vm2, %v24761_v23  ;;  %19971 = vmatprep.mubr.msk.bf16.mxu0 %vm494_vm2, %v25008_v41  ;;  %v25030_v23 = vsel %vm4837_vm10, %v10376_v28, %v10380_v22  ;;  %v4845_v28 = vor.u32 %v4844_v4, %v4841_v16  ;;  %v10396_v22 = vor.u32 %v10395_v14, %v10394_v40  ;;  %v10406_v40 = vrot.slane %v27707_v55, 5 }
 0x3cc   : > { %19309 = vmatprep.mubr.msk.bf16.mxu1 %vm494_vm2, %v24775_v1  ;;  %v10386_v1 = vrot.slane %v27684_v56, 5  ;;  %v27697_v56 = vshll.u32 %v27643_v8, 16  ;;  %v27704_v8 = vshrl.u32 %v27703_v63, 16  ;;  %v10407_v14 = vrot.slane %v27708_v34, 6 }
 0x3ce   : > { %v10388_v35 = vor.u32 %v10387_v2, %v10386_v1  ;;  %v27698_v2 = vshrl.u32 %v24075_v61, 16 }
 0x3d0   : > { %v25062_v33 = vsel %vm4837_vm10, %v10384_v48, %v10388_v35  ;;  %v10398_v48 = vrot.slane %v27698_v2, 5 }
 0x3d2   : > { %19972 = vmatmul.mubr.msk.bf16.gmra.mrb[28].mxu0 %vm494_vm2, %v25027_v0 }
 0x3d3   : > { %19310 = vmatmul.mubr.msk.bf16.gmra.mrb[48].mxu1 %vm494_vm2, %v24779_v5  ;;  %19975 = vmatprep.mubr.msk.bf16.mxu0 %vm494_vm2, %v25030_v23  ;;  %v10390_v5 = vrot.slane %v27687_v60, 5  ;;  %v27702_v60 = vshll.u32 %v27700_v18, 16 }
 0x3d4   : > { %19313 = vmatprep.mubr.msk.bf16.mxu1 %vm494_vm2, %v24794_v24  ;;  %v4846_v24 = vrot.slane %v27690_v10, 5  ;;  %v10403_v10 = vrot.slane %v27705_v58, 6  ;;  %v27719_v58 = vshll.u32 %v24533_v53, 16 }
 0x3d5   : > { %v10392_v45 = vor.u32 %v10391_v20, %v10390_v5  ;;  %v4855_v5 = vrot.slane %v27702_v60, 6  ;;  %v10402_v20 = vrot.slane %v27704_v8, 5  ;;  %v27718_v8 = vshrl.u32 %v24533_v53, 16 }
 0x3d6   : > { %v4848_v7 = vor.u32 %v4847_v43, %v4846_v24  ;;  %v10400_v24 = vor.u32 %v10399_v26, %v10398_v48 }
 0x3d7   : > { %v25080_v38 = vsel %vm4837_vm10, %v10388_v35, %v10392_v45  ;;  %v25088_v32 = vsel %vm4837_vm10, %v10392_v45, %v10396_v22  ;;  %v27701_v35 = vshrl.u32 %v27700_v18, 16  ;;  %v10404_v43 = vor.u32 %v10403_v10, %v10402_v20  ;;  %v27709_v45 = vld [vmem:[#allocation11_spill] sm:$0xff]  ;;  %v27715_v18 = vld [vmem:[#allocation22_spill] sm:$0xff] }
 0x3d8   : > { %v4849_v1 = vsel %vm4837_vm10, %v4845_v28, %v4848_v7  ;;  %v25110_v4 = vsel %vm4837_vm10, %v10396_v22, %v10400_v24  ;;  %v27710_v28 = vld [vmem:[#allocation12_spill] sm:$0xff]  ;;  %v10422_v20 = vrot.slane %v27718_v8, 5  ;;  %v10423_v10 = vrot.slane %v27719_v58, 6 }
 0x3d9   : > { %v4854_v21 = vrot.slane %v27701_v35, 5  ;;  %v25118_v27 = vsel %vm4837_vm10, %v10400_v24, %v10404_v43  ;;  %v27716_v35 = vshrl.u32 %v27715_v18, 16  ;;  %v22247_v8 = vld [vmem:[#allocation2 + $0x68] sm:$0xff] }
 0x3da   : > { %19976 = vmatmul.mubr.msk.bf16.gmra.mrb[32].mxu0 %vm494_vm2, %v25047_v12  ;;  %v10424_v53 = vor.u32 %v10423_v10, %v10422_v20  ;;  %v10887_v20 = vrot.slane %v22247_v8, 6  ;;  %v22261_v8 = vld [vmem:[#allocation2 + $0x18] sm:$0xff] }
 0x3db   : > { %19314 = vmatmul.mubr.msk.bf16.gmra.mrb[52].mxu1 %vm494_vm2, %v24797_v13  ;;  %19979 = vmatprep.mubr.msk.bf16.mxu0 %vm494_vm2, %v25062_v33  ;;  %v5555_v13 = vand.u32 %v17249_v3, %v22413_v6  ;;  %v4856_v9 = vor.u32 %v4855_v5, %v4854_v21  ;;  %v10410_v3 = vrot.slane %v27709_v45, 5  ;;  %v27717_v21 = vshll.u32 %v27715_v18, 16 }
 0x3dc   : > { %19317 = vmatprep.mubr.msk.bf16.mxu1 %vm494_vm2, %v24812_v44  ;;  %v4851_v44 = vrot.slane %v27697_v56, 6 }
 0x3dd   : > { %19383 = vmatprep.subr.bf16.mxu1 %v5555_v13  ;;  %v10419_v60 = vrot.slane %v27717_v21, 6 }
 0x3de   : > { %v4852_v61 = vor.u32 %v4851_v44, %v4850_v31  ;;  %v4861_v31 = vsel %vm4837_vm10, %v4856_v9, %v24840_v50  ;;  %v27712_v44 = vld [vmem:[#allocation21_spill] sm:$0xff] }
 0x3df   : > { %v27714_v48 = vshll.u32 %v27712_v44, 16 }
 0x3e0   : > { %v4853_v16 = vsel %vm4837_vm10, %v4848_v7, %v4852_v61  ;;  %v4857_v51 = vsel %vm4837_vm10, %v4852_v61, %v4856_v9  ;;  %v10408_v7 = vor.u32 %v10407_v14, %v10406_v40  ;;  %v27721_v9 = vshll.u32 %v27647_v25, 16 }
 0x3e1   : > { %v10415_v49 = vrot.slane %v27714_v48, 6 }
 0x3e2   : > { %19980 = vmatmul.mubr.msk.bf16.gmra.mrb[36].mxu0 %vm494_vm2, %v25080_v38  ;;  %v25132_v56 = vsel %vm4837_vm10, %v10404_v43, %v10408_v7  ;;  %v10427_v43 = vrot.slane %v27721_v9, 6 }
 0x3e3   : > { %19318 = vmatmul.mubr.msk.bf16.gmra.mrb[56].mxu1 %vm494_vm2, %v4407_v46  ;;  %19983 = vmatprep.mubr.msk.bf16.mxu0 %vm494_vm2, %v25088_v32  ;;  %v10411_v46 = vrot.slane %v27710_v28, 6 }
 0x3e4   : > { %19323 = vmatprep.mubr.msk.bf16.mxu1 %vm494_vm2, %v4849_v1  ;;  %v27713_v1 = vshrl.u32 %v27712_v44, 16  ;;  %v17621_v44 = vld [vmem:[%s27283_s1 + $0x2a] sm:$0x3] }
 0x3e5   : > { %v10412_v22 = vor.u32 %v10411_v46, %v10410_v3  ;;  %v22239_v3 = vld [vmem:[#allocation2 + $0x28] sm:$0xff] }
 0x3e6   : > { %v10414_v2 = vrot.slane %v27713_v1, 5  ;;  %v25187_v28 = vrot.slane %v22239_v3, 6 }
 0x3e7   : > { %v25139_v26 = vsel %vm4837_vm10, %v10408_v7, %v10412_v22 }
 0x3e8   : > { %v25152_v50 = vor.u32 %v10415_v49, %v10414_v2  ;;  %v22243_v49 = vld [vmem:[#allocation2 + $0x48] sm:$0xff] }
 0x3e9   : > { %v10879_v18 = vrot.slane %v22243_v49, 6 }
 0x3ea   : > { %19984 = vmatmul.mubr.msk.bf16.gmra.mrb[40].mxu0 %vm494_vm2, %v25110_v4  ;;  %v25156_v63 = vsel %vm4837_vm10, %v10412_v22, %v25152_v50  ;;  %v22241_v22 = vld [vmem:[#allocation2 + $0x38] sm:$0xff] }
 0x3eb   : > { %19324 = vmatmul.mubr.msk.bf16.vlgmr.msra.gmra.mrb[0].mxu1 %vm494_vm2, %v4853_v16  ;;  %19987 = vmatprep.mubr.msk.bf16.mxu0 %vm494_vm2, %v25118_v27  ;;  %v25168_v16 = vld [vmem:[#allocation2 + $0x110] sm:$0xf] }
 0x3ec   : > { %19327 = vmatprep.mubr.msk.bf16.mxu1 %vm494_vm2, %v4857_v51  ;;  %19384 = vmatpush3.bf16.msra.mxu1 %v5555_v13  ;;  %v10418_v13 = vrot.slane %v27716_v35, 5  ;;  %v10431_v42 = vshrl.u32 %v25168_v16, 16  ;;  %v10434_v55 = vshll.u32 %v25168_v16, 16  ;;  %v10865_v51 = vld [vmem:[#allocation2 + $0x20] sm:$0xc0] }
 0x3ed   : > { %20693 = vmatprep.subr.bf16.mxu1 %v27711_v52  ;;  %v10870_v45 = vrot.slane %v10865_v51, 6 }
 0x3ee   : > { %v10420_v5 = vor.u32 %v10419_v60, %v10418_v13  ;;  %v10433_v34 = vrot.slane %v10431_v42, 5  ;;  %v10436_v14 = vrot.slane %v10434_v55, 6  ;;  %v22245_v13 = vld [vmem:[#allocation2 + $0x58] sm:$0xff] }
 0x3ef   : > { %v10872_v7 = vsel %vm896_vm1, %v10870_v45, %v25187_v28  ;;  %v10883_v21 = vrot.slane %v22245_v13, 6  ;;  %v22260_v13 = vld [vmem:[#allocation2 + $0xc8] sm:$0xff] }
 0x3f0   : > { %v10421_v61 = vsel %vm4837_vm10, %v25152_v50, %v10420_v5  ;;  %v10425_v40 = vsel %vm4837_vm10, %v10420_v5, %v10424_v53 }
 0x3f2   : > { %19988 = vmatmul.mubr.msk.bf16.gmra.mrb[44].mxu0 %vm494_vm2, %v25132_v56 }
 0x3f3   : > { %19328 = vmatmul.mubr.msk.bf16.gmra.mrb[4].mxu1 %vm494_vm2, %v4861_v31  ;;  %19991 = vmatprep.mubr.msk.bf16.mxu0 %vm494_vm2, %v25139_v26  ;;  %v10875_v31 = vrot.slane %v22241_v22, 6 }
 0x3f4   : > { %19331 = vmatprep.mubr.msk.bf16.mxu1 %vm494_vm2, %v24864_v36  ;;  %v27720_v36 = vshrl.u32 %v27647_v25, 16 }
 0x3f6   : > { %v10426_v24 = vrot.slane %v27720_v36, 5 }
 0x3f8   : > { %v10428_v25 = vor.u32 %v10427_v43, %v10426_v24  ;;  %v22251_v43 = vld [vmem:[#allocation2 + $0x88] sm:$0xff] }
 0x3fa   : > { %19992 = vmatmul.mubr.msk.bf16.gmra.mrb[48].mxu0 %vm494_vm2, %v25156_v63 }
 0x3fb   : > { %19332 = vmatmul.mubr.msk.bf16.gmra.mrb[8].mxu1 %vm494_vm2, %v24878_v17  ;;  %19995 = vmatprep.mubr.msk.bf16.mxu0 %vm494_vm2, %v10421_v61  ;;  %v10429_v17 = vsel %vm4837_vm10, %v10424_v53, %v10428_v25  ;;  %v22249_v61 = vld [vmem:[#allocation2 + $0x78] sm:$0xff]  ;;  %v10895_v53 = vrot.slane %v22251_v43, 6 }
 0x3fc   : > { %19335 = vmatprep.mubr.msk.bf16.mxu1 %vm494_vm2, %v24891_v57  ;;  %v10437_v57 = vor.u32 %v10436_v14, %v10433_v34  ;;  %v10891_v36 = vrot.slane %v22249_v61, 6 }
 0x3fe   : > { %v10438_v46 = vsel %vm4837_vm10, %v10428_v25, %v10437_v57  ;;  %v22253_v25 = vld [vmem:[#allocation2 + $0x98] sm:$0xff] }
 0x402   : > { %19996 = vmatmul.mubr.msk.bf16.gmra.mrb[52].mxu0 %vm494_vm2, %v10425_v40  ;;  %v10899_v40 = vrot.slane %v22253_v25, 6 }
 0x403   : > { %19336 = vmatmul.mubr.msk.bf16.gmra.mrb[12].mxu1 %vm494_vm2, %v24898_v47  ;;  %19999 = vmatprep.mubr.msk.bf16.mxu0 %vm494_vm2, %v10429_v17  ;;  %v22240_v47 = vld [vmem:[#allocation2 + $0x30] sm:$0xff]  ;;  %v22255_v17 = vld [vmem:[#allocation2 + $0xa8] sm:$0xff] }
 0x404   : > { %19339 = vmatprep.mubr.msk.bf16.mxu1 %vm494_vm2, %v24913_v59  ;;  %v10873_v59 = vrot.slane %v22240_v47, 6  ;;  %v10903_v51 = vrot.slane %v22255_v17, 6  ;;  %v22257_v47 = vld [vmem:[#allocation2 + $0xb8] sm:$0xff] }
 0x406   : > { %v25203_v1 = vsel %vm896_vm1, %v25187_v28, %v10873_v59  ;;  %v25209_v2 = vsel %vm896_vm1, %v10873_v59, %v10875_v31  ;;  %v10907_v59 = vrot.slane %v22257_v47, 6  ;;  %v456_v47 = vld [vmem:[%s22430_s29 + $0x230] sm:$0xff] }
 0x40a   : > { %20000 = vmatmul.mubr.msk.bf16.gmra.mrb[56].mxu0 %vm494_vm2, %v10438_v46 }
 0x40b   : > { %19340 = vmatmul.mubr.msk.bf16.gmra.mrb[16].mxu1 %vm494_vm2, %v24920_v11  ;;  %20005 = vmatprep.mubr.msk.bf16.mxu0 %vm494_vm2, %v10872_v7  ;;  %v25206_v11 = vand.u32 %v17621_v44, %v22413_v6 }
 0x40c   : > { %19343 = vmatprep.mubr.msk.bf16.mxu1 %vm494_vm2, %v24935_v62  ;;  %v22242_v62 = vld [vmem:[#allocation2 + $0x40] sm:$0xff] }
 0x40d   : > { %v10877_v48 = vrot.slane %v22242_v62, 6 }
 0x40f   : > { %v25222_v35 = vsel %vm896_vm1, %v10875_v31, %v10877_v48 }
 0x412   : > { %20006 = vmatmul.mubr.msk.bf16.vlgmr.msra.gmra.mrb[0].mxu0 %vm494_vm2, %v25203_v1 }
 0x413   : > { %19344 = vmatmul.mubr.msk.bf16.gmra.mrb[20].mxu1 %vm494_vm2, %v24942_v30  ;;  %20066 = vmatpush3.bf16.msra.mxu0 %v24875_v37  ;;  %v25225_v30 = vsel %vm896_vm1, %v10877_v48, %v10879_v18  ;;  %v22244_v37 = vld [vmem:[#allocation2 + $0x50] sm:$0xff]  ;;  %v22258_v48 = vld [vmem:[#allocation2 + $0xc0] sm:$0xff] }
 0x414   : > { %19347 = vmatprep.mubr.msk.bf16.mxu1 %vm494_vm2, %v24957_v39  ;;  %20009 = vmatprep.mubr.msk.bf16.mxu0 %vm494_vm2, %v25209_v2  ;;  %v10881_v39 = vrot.slane %v22244_v37, 6  ;;  %v10909_v49 = vrot.slane %v22258_v48, 6  ;;  %v22259_v37 = vld [vmem:[#allocation2 + $0x10] sm:$0xff] }
 0x415   : > { %20127 = vmatprep.subr.bf16.mxu0 %v25206_v11 }
 0x416   : > { %v25236_v60 = vsel %vm896_vm1, %v10879_v18, %v10881_v39  ;;  %v25239_v5 = vsel %vm896_vm1, %v10881_v39, %v10883_v21  ;;  %v5404_v39 = vrot.slane %v22259_v37, 6  ;;  %v25428_v37 = vld [vmem:[#allocation2 + $0x40] sm:$0xff] }
 0x41a   : > { %20010 = vmatmul.mubr.msk.bf16.gmra.mrb[4].mxu0 %vm494_vm2, %v25222_v35 }
 0x41b   : > { %19348 = vmatmul.mubr.msk.bf16.gmra.mrb[24].mxu1 %vm494_vm2, %v24964_v15  ;;  %20013 = vmatprep.mubr.msk.bf16.mxu0 %vm494_vm2, %v25225_v30  ;;  %v22246_v15 = vld [vmem:[#allocation2 + $0x60] sm:$0xff] }
 0x41c   : > { %19351 = vmatprep.mubr.msk.bf16.mxu1 %vm494_vm2, %v24979_v54  ;;  %v10885_v54 = vrot.slane %v22246_v15, 6  ;;  %v25340_v15 = vsel %vm896_vm1, %v10907_v59, %v10909_v49 }
 0x41e   : > { %v25250_v58 = vsel %vm896_vm1, %v10883_v21, %v10885_v54  ;;  %v25253_v10 = vsel %vm896_vm1, %v10885_v54, %v10887_v20  ;;  %v10911_v21 = vrot.slane %v22260_v13, 6  ;;  %v25526_v13 = vld [vmem:[#allocation2 + $0xc0] sm:$0xff] }
 0x422   : > { %20014 = vmatmul.mubr.msk.bf16.gmra.mrb[8].mxu0 %vm494_vm2, %v25236_v60 }
 0x423   : > { %19352 = vmatmul.mubr.msk.bf16.gmra.mrb[28].mxu1 %vm494_vm2, %v24986_v19  ;;  %20017 = vmatprep.mubr.msk.bf16.mxu0 %vm494_vm2, %v25239_v5  ;;  %v22248_v19 = vld [vmem:[#allocation2 + $0x70] sm:$0xff] }
 0x424   : > { %19355 = vmatprep.mubr.msk.bf16.mxu1 %vm494_vm2, %v25001_v29  ;;  %v10889_v29 = vrot.slane %v22248_v19, 6 }
 0x426   : > { %v25264_v24 = vsel %vm896_vm1, %v10887_v20, %v10889_v29  ;;  %v25267_v9 = vsel %vm896_vm1, %v10889_v29, %v10891_v36  ;;  %v5406_v20 = vrot.slane %v22261_v8, 6  ;;  %v22263_v29 = vld [vmem:[#allocation2 + $0x20] sm:$0xff] }
 0x427   : > { %v5408_v61 = vrot.slane %v22263_v29, 6  ;;  %v25551_v8 = vld [vmem:[#allocation2 + $0xe0] sm:$0xff]  ;;  %v25561_v29 = vld [vmem:[#allocation2 + $0xf0] sm:$0xff] }
 0x42a   : > { %20018 = vmatmul.mubr.msk.bf16.gmra.mrb[12].mxu0 %vm494_vm2, %v25250_v58 }
 0x42b   : > { %19356 = vmatmul.mubr.msk.bf16.gmra.mrb[32].mxu1 %vm494_vm2, %v25008_v41  ;;  %20021 = vmatprep.mubr.msk.bf16.mxu0 %vm494_vm2, %v25253_v10  ;;  %v22250_v41 = vld [vmem:[#allocation2 + $0x80] sm:$0xff] }
 0x42c   : > { %19359 = vmatprep.mubr.msk.bf16.mxu1 %vm494_vm2, %v25027_v0  ;;  %v10893_v0 = vrot.slane %v22250_v41, 6 }
 0x42e   : > { %v25278_v42 = vsel %vm896_vm1, %v10891_v36, %v10893_v0  ;;  %v25281_v55 = vsel %vm896_vm1, %v10893_v0, %v10895_v53  ;;  %v22264_v36 = vld [vmem:[#allocation2 + $0xd8] sm:$0xff]  ;;  %v5407_v0 = vsel %vm896_vm1, %v5404_v39, %v5406_v20 }
 0x42f   : > { %v10915_v41 = vrot.slane %v22264_v36, 6  ;;  %v22274_v36 = vld [vmem:[#allocation2 + $0x98] sm:$0xff] }
 0x432   : > { %20022 = vmatmul.mubr.msk.bf16.gmra.mrb[16].mxu0 %vm494_vm2, %v25264_v24 }
 0x433   : > { %19360 = vmatmul.mubr.msk.bf16.gmra.mrb[36].mxu1 %vm494_vm2, %v25030_v23  ;;  %20025 = vmatprep.mubr.msk.bf16.mxu0 %vm494_vm2, %v25267_v9  ;;  %v22252_v23 = vld [vmem:[#allocation2 + $0x90] sm:$0xff] }
 0x434   : > { %19363 = vmatprep.mubr.msk.bf16.mxu1 %vm494_vm2, %v25047_v12  ;;  %v10897_v12 = vrot.slane %v22252_v23, 6 }
 0x436   : > { %v25292_v34 = vsel %vm896_vm1, %v10895_v53, %v10897_v12  ;;  %v25295_v14 = vsel %vm896_vm1, %v10897_v12, %v10899_v40  ;;  %v5409_v53 = vsel %vm896_vm1, %v5406_v20, %v5408_v61  ;;  %v22265_v12 = vld [vmem:[#allocation2 + $0xe0] sm:$0xff] }
 0x437   : > { %v10917_v25 = vrot.slane %v22265_v12, 6  ;;  %v22271_v20 = vld [vmem:[#allocation2 + $0x80] sm:$0xff]  ;;  %v25580_v12 = vld [vmem:[#allocation2 + $0x108] sm:$0xff] }
 0x439   : > { %v25371_v17 = vsel %vm896_vm1, %v10915_v41, %v10917_v25 }
 0x43a   : > { %20026 = vmatmul.mubr.msk.bf16.gmra.mrb[20].mxu0 %vm494_vm2, %v25278_v42 }
 0x43b   : > { %19364 = vmatmul.mubr.msk.bf16.gmra.mrb[40].mxu1 %vm494_vm2, %v25062_v33  ;;  %20029 = vmatprep.mubr.msk.bf16.mxu0 %vm494_vm2, %v25281_v55  ;;  %v22254_v33 = vld [vmem:[#allocation2 + $0xa0] sm:$0xff] }
 0x43c   : > { %19367 = vmatprep.mubr.msk.bf16.mxu1 %vm494_vm2, %v25080_v38  ;;  %v10901_v38 = vrot.slane %v22254_v33, 6 }
 0x43e   : > { %v25306_v57 = vsel %vm896_vm1, %v10899_v40, %v10901_v38  ;;  %v25309_v45 = vsel %vm896_vm1, %v10901_v38, %v10903_v51  ;;  %v27722_v40 = vld [vmem:[#allocation13_spill] sm:$0xff]  ;;  %v5411_v38 = vsel %vm896_vm1, %v5408_v61, %v25187_v28 }
 0x43f   : > { %v10919_v33 = vrot.slane %v27722_v40, 6  ;;  %v22267_v28 = vld [vmem:[#allocation2 + $0xf8] sm:$0xff]  ;;  %v22273_v61 = vld [vmem:[#allocation2 + $0x90] sm:$0xff] }
 0x442   : > { %20030 = vmatmul.mubr.msk.bf16.gmra.mrb[24].mxu0 %vm494_vm2, %v25292_v34 }
 0x443   : > { %19368 = vmatmul.mubr.msk.bf16.gmra.mrb[44].mxu1 %vm494_vm2, %v25088_v32  ;;  %20033 = vmatprep.mubr.msk.bf16.mxu0 %vm494_vm2, %v25295_v14  ;;  %v25311_v32 = vld [vmem:[#allocation2 + $0xf8] sm:$0xf] }
 0x444   : > { %19371 = vmatprep.mubr.msk.bf16.mxu1 %vm494_vm2, %v25110_v4  ;;  %v22256_v4 = vld [vmem:[#allocation2 + $0xb0] sm:$0xff]  ;;  %v4963_v46 = vshrl.u32 %v25311_v32, 16  ;;  %v4966_v7 = vshll.u32 %v25311_v32, 16 }
 0x445   : > { %v10905_v3 = vrot.slane %v22256_v4, 6 }
 0x446   : > { %v4968_v31 = vrot.slane %v4966_v7, 6 }
 0x447   : > { %v25324_v22 = vsel %vm896_vm1, %v10903_v51, %v10905_v3  ;;  %v25327_v44 = vsel %vm896_vm1, %v10905_v3, %v10907_v59  ;;  %v25374_v51 = vsel %vm896_vm1, %v10917_v25, %v10919_v33  ;;  %v10923_v3 = vrot.slane %v22267_v28, 6  ;;  %v457_v59 = vld [vmem:[%s22430_s29 + $0x238] sm:$0xff] }
 0x448   : > { %v27510_v28 = vshll.u32 %v25428_v37, 16 }
 0x44a   : > { %20034 = vmatmul.mubr.msk.bf16.gmra.mrb[28].mxu0 %vm494_vm2, %v25306_v57 }
 0x44b   : > { %19372 = vmatmul.mubr.msk.bf16.gmra.mrb[48].mxu1 %vm494_vm2, %v25118_v27  ;;  %20037 = vmatprep.mubr.msk.bf16.mxu0 %vm494_vm2, %v25309_v45  ;;  %v4965_v27 = vrot.slane %v4963_v46, 5 }
 0x44c   : > { %19375 = vmatprep.mubr.msk.bf16.mxu1 %vm494_vm2, %v25132_v56  ;;  %v5397_v56 = vld [vmem:[#allocation2 + $0x8] sm:$0xc0] }
 0x44d   : > { %v4969_v62 = vor.u32 %v4968_v31, %v4965_v27  ;;  %v5403_v18 = vrot.slane %v5397_v56, 6  ;;  %v493_v27 = vpack.c.bf16 %v457_v59, %v456_v47  ;;  %v22269_v56 = vld [vmem:[#allocation2 + $0x108] sm:$0xff]  ;;  %v27506_v47 = vshrl.u32 %v25428_v37, 16 }
 0x44f   : > { %v5405_v54 = vsel %vm896_vm1, %v5403_v18, %v5404_v39  ;;  %530 = vst.msk [vmem:[#allocation2 + $0x118] sm:$0xff] %vm494_vm2, %v493_v27  ;;  %v25411_v18 = vld [vmem:[#allocation2 + $0x30] sm:$0xff]  ;;  %v25524_v39 = vld [vmem:[#allocation2 + $0xb8] sm:$0xff]  ;;  %v22279_v27 = vld [vmem:[#allocation2 + $0xc0] sm:$0xff] }
 0x450   : > { %v11818_v25 = vshrl.u32 %v25411_v18, 16 }
 0x452   : > { %20038 = vmatmul.mubr.msk.bf16.gmra.mrb[32].mxu0 %vm494_vm2, %v25324_v22 }
 0x453   : > { %19376 = vmatmul.mubr.msk.bf16.gmra.mrb[52].mxu1 %vm494_vm2, %v25139_v26  ;;  %20041 = vmatprep.mubr.msk.bf16.mxu0 %vm494_vm2, %v25327_v44  ;;  %v4970_v26 = vsel %vm4837_vm10, %v25152_v50, %v4969_v62  ;;  %v22262_v50 = vld [vmem:[#allocation2 + $0xd0] sm:$0xff]  ;;  %v10927_v62 = vrot.slane %v22269_v56, 6  ;;  %v11833_v56 = vrot.slane %v27510_v28, 1  ;;  %vm14438_vm10 = vcmask 1045508  }
 0x454   : > { %19379 = vmatprep.mubr.msk.bf16.mxu1 %vm494_vm2, %v25156_v63  ;;  %v25344_v63 = vsel %vm896_vm1, %v10909_v49, %v10911_v21  ;;  %v10913_v19 = vrot.slane %v22262_v50, 6  ;;  %v22272_v50 = vld [vmem:[#allocation2 + $0x88] sm:$0xff] }
 0x456   : > { %v25354_v43 = vsel %vm896_vm1, %v10911_v21, %v10913_v19  ;;  %v25358_v23 = vsel %vm896_vm1, %v10913_v19, %v10915_v41  ;;  %v5462_v21 = vrot.slane %v25311_v32, 6  ;;  %v25549_v32 = vld [vmem:[#allocation2 + $0xd8] sm:$0xff]  ;;  %v25559_v19 = vld [vmem:[#allocation2 + $0xe8] sm:$0xff] }
 0x457   : > { %v25569_v41 = vld [vmem:[#allocation2 + $0xf8] sm:$0xff] }
 0x45a   : > { %20042 = vmatmul.mubr.msk.bf16.gmra.mrb[36].mxu0 %vm494_vm2, %v25340_v15 }
 0x45b   : > { %19380 = vmatmul.mubr.msk.bf16.gmra.mrb[56].mxu1 %vm494_vm2, %v4970_v26  ;;  %20045 = vmatprep.mubr.msk.bf16.mxu0 %vm494_vm2, %v25344_v63 }
 0x45c   : > { %19385 = vmatprep.mubr.msk.bf16.mxu1 %vm494_vm2, %v5405_v54  ;;  %v25541_v54 = vld [vmem:[#allocation2 + $0xd0] sm:$0xff] }
 0x462   : > { %20046 = vmatmul.mubr.msk.bf16.gmra.mrb[40].mxu0 %vm494_vm2, %v25354_v43 }
 0x463   : > { %19386 = vmatmul.mubr.msk.bf16.vlgmr.msra.gmra.mrb[0].mxu1 %vm494_vm2, %v5407_v0  ;;  %20049 = vmatprep.mubr.msk.bf16.mxu0 %vm494_vm2, %v25358_v23  ;;  %v25571_v0 = vld [vmem:[#allocation2 + $0x100] sm:$0xff] }
 0x464   : > { %19389 = vmatprep.mubr.msk.bf16.mxu1 %vm494_vm2, %v5409_v53  ;;  %20694 = vmatpush3.bf16.msra.mxu1 %v27711_v52  ;;  %v22266_v52 = vld [vmem:[#allocation2 + $0xf0] sm:$0xff]  ;;  %v22276_v53 = vld [vmem:[#allocation2 + $0xa8] sm:$0xff] }
 0x465   : > { %v25383_v4 = vrot.slane %v22266_v52, 6 }
 0x467   : > { %v25387_v46 = vsel %vm896_vm1, %v10919_v33, %v25383_v4  ;;  %v10924_v7 = vsel %vm896_vm1, %v25383_v4, %v10923_v3  ;;  %v5463_v26 = vsel %vm896_vm1, %v25383_v4, %v5462_v21  ;;  %v25583_v33 = vld [vmem:[#allocation2 + $0x110] sm:$0xff] }
 0x46a   : > { %20050 = vmatmul.mubr.msk.bf16.gmra.mrb[44].mxu0 %vm494_vm2, %v25371_v17 }
 0x46b   : > { %19390 = vmatmul.mubr.msk.bf16.gmra.mrb[4].mxu1 %vm494_vm2, %v5411_v38  ;;  %20053 = vmatprep.mubr.msk.bf16.mxu0 %vm494_vm2, %v25374_v51 }
 0x46c   : > { %19393 = vmatprep.mubr.msk.bf16.mxu1 %vm494_vm2, %v25203_v1  ;;  %v22268_v1 = vld [vmem:[#allocation2 + $0x100] sm:$0xff] }
 0x46d   : > { %v10925_v31 = vrot.slane %v22268_v1, 6  ;;  %v22280_v1 = vld [vmem:[#allocation2 + $0xc8] sm:$0xff] }
 0x46f   : > { %v10926_v48 = vsel %vm896_vm1, %v10923_v3, %v10925_v31  ;;  %v10928_v49 = vsel %vm896_vm1, %v10925_v31, %v10927_v62  ;;  %v11386_v3 = vld [vmem:[#allocation2 + $0x118] sm:$0x3f] }
 0x472   : > { %20054 = vmatmul.mubr.msk.bf16.gmra.mrb[48].mxu0 %vm494_vm2, %v25387_v46 }
 0x473   : > { %19394 = vmatmul.mubr.msk.bf16.gmra.mrb[8].mxu1 %vm494_vm2, %v25209_v2  ;;  %20057 = vmatprep.mubr.msk.bf16.mxu0 %vm494_vm2, %v10924_v7  ;;  %v10929_v2 = vrot.slane %v25168_v16, 6  ;;  %v25423_v16 = vld [vmem:[#allocation2 + $0x38] sm:$0xff] }
 0x474   : > { %19397 = vmatprep.mubr.msk.bf16.mxu1 %vm494_vm2, %v25222_v35  ;;  %v27511_v38 = vshll.u32 %v25423_v16, 16 }
 0x475   : > { %v10930_v35 = vsel %vm896_vm1, %v10927_v62, %v10929_v2  ;;  %v11837_v62 = vor.u32 %v27506_v47, %v11833_v56 }
 0x476   : > { %v11826_v4 = vrot.slane %v27511_v38, 1  ;;  %v25860_v38 = vld [vmem:[#allocation2 + $0x118] sm:$0x7f] }
 0x47a   : > { %20058 = vmatmul.mubr.msk.bf16.gmra.mrb[52].mxu0 %vm494_vm2, %v10926_v48 }
 0x47b   : > { %19398 = vmatmul.mubr.msk.bf16.gmra.mrb[12].mxu1 %vm494_vm2, %v25225_v30  ;;  %20061 = vmatprep.mubr.msk.bf16.mxu0 %vm494_vm2, %v10928_v49  ;;  %v17652_v30 = vld [vmem:[%s27283_s1 + $0x2c] sm:$0x3]  ;;  %v17683_v49 = vld [vmem:[%s27283_s1 + $0x2e] sm:$0x3] }
 0x47c   : > { %19401 = vmatprep.mubr.msk.bf16.mxu1 %vm494_vm2, %v25236_v60  ;;  %v25426_v60 = vand.u32 %v17652_v30, %v22413_v6 }
 0x482   : > { %20062 = vmatmul.mubr.msk.bf16.gmra.mrb[56].mxu0 %vm494_vm2, %v10930_v35 }
 0x483   : > { %19402 = vmatmul.mubr.msk.bf16.gmra.mrb[16].mxu1 %vm494_vm2, %v25239_v5  ;;  %20067 = vmatprep.mubr.msk.bf16.mxu0 %vm494_vm2, %v25411_v18  ;;  %v25440_v5 = vld [vmem:[#allocation2 + $0x48] sm:$0xff] }
 0x484   : > { %19405 = vmatprep.mubr.msk.bf16.mxu1 %vm494_vm2, %v25250_v58  ;;  %v25442_v58 = vld [vmem:[#allocation2 + $0x50] sm:$0xff]  ;;  %v27503_v59 = vshll.u32 %v25440_v5, 16 }
 0x485   : > { %v27498_v2 = vshll.u32 %v25442_v58, 16  ;;  %v27502_v30 = vshrl.u32 %v25442_v58, 16 }
 0x486   : > { %v11840_v48 = vrot.slane %v27503_v59, 1 }
 0x48a   : > { %20068 = vmatmul.mubr.msk.bf16.vlgmr.msra.gmra.mrb[0].mxu0 %vm494_vm2, %v25423_v16 }
 0x48b   : > { %19406 = vmatmul.mubr.msk.bf16.gmra.mrb[20].mxu1 %vm494_vm2, %v25253_v10  ;;  %20128 = vmatpush3.bf16.msra.mxu0 %v25206_v11  ;;  %v25452_v11 = vld [vmem:[#allocation2 + $0x58] sm:$0xff]  ;;  %v25454_v10 = vld [vmem:[#allocation2 + $0x60] sm:$0xff] }
 0x48c   : > { %19409 = vmatprep.mubr.msk.bf16.mxu1 %vm494_vm2, %v25264_v24  ;;  %20071 = vmatprep.mubr.msk.bf16.mxu0 %vm494_vm2, %v25428_v37  ;;  %v25464_v24 = vld [vmem:[#allocation2 + $0x68] sm:$0xff]  ;;  %v27495_v21 = vshll.u32 %v25452_v11, 16 }
 0x48d   : > { %20189 = vmatprep.subr.bf16.mxu0 %v25426_v60 }
 0x492   : > { %20072 = vmatmul.mubr.msk.bf16.gmra.mrb[4].mxu0 %vm494_vm2, %v25440_v5 }
 0x493   : > { %19410 = vmatmul.mubr.msk.bf16.gmra.mrb[24].mxu1 %vm494_vm2, %v25267_v9  ;;  %20075 = vmatprep.mubr.msk.bf16.mxu0 %vm494_vm2, %v25442_v58  ;;  %v25466_v9 = vld [vmem:[#allocation2 + $0x70] sm:$0xff] }
 0x494   : > { %19413 = vmatprep.mubr.msk.bf16.mxu1 %vm494_vm2, %v25278_v42  ;;  %v25476_v42 = vld [vmem:[#allocation2 + $0x78] sm:$0xff] }
 0x49a   : > { %20076 = vmatmul.mubr.msk.bf16.gmra.mrb[8].mxu0 %vm494_vm2, %v25452_v11 }
 0x49b   : > { %19414 = vmatmul.mubr.msk.bf16.gmra.mrb[28].mxu1 %vm494_vm2, %v25281_v55  ;;  %20079 = vmatprep.mubr.msk.bf16.mxu0 %vm494_vm2, %v25454_v10  ;;  %v25478_v55 = vld [vmem:[#allocation2 + $0x80] sm:$0xff] }
 0x49c   : > { %19417 = vmatprep.mubr.msk.bf16.mxu1 %vm494_vm2, %v25292_v34  ;;  %v25488_v34 = vld [vmem:[#allocation2 + $0x88] sm:$0xff] }
 0x4a2   : > { %20080 = vmatmul.mubr.msk.bf16.gmra.mrb[12].mxu0 %vm494_vm2, %v25464_v24 }
 0x4a3   : > { %19418 = vmatmul.mubr.msk.bf16.gmra.mrb[32].mxu1 %vm494_vm2, %v25295_v14  ;;  %20083 = vmatprep.mubr.msk.bf16.mxu0 %vm494_vm2, %v25466_v9  ;;  %v25490_v14 = vld [vmem:[#allocation2 + $0x90] sm:$0xff] }
 0x4a4   : > { %19421 = vmatprep.mubr.msk.bf16.mxu1 %vm494_vm2, %v25306_v57  ;;  %v25500_v57 = vld [vmem:[#allocation2 + $0x98] sm:$0xff] }
 0x4aa   : > { %20084 = vmatmul.mubr.msk.bf16.gmra.mrb[16].mxu0 %vm494_vm2, %v25476_v42 }
 0x4ab   : > { %19422 = vmatmul.mubr.msk.bf16.gmra.mrb[36].mxu1 %vm494_vm2, %v25309_v45  ;;  %20087 = vmatprep.mubr.msk.bf16.mxu0 %vm494_vm2, %v25478_v55  ;;  %v25502_v45 = vld [vmem:[#allocation2 + $0xa0] sm:$0xff] }
 0x4ac   : > { %19425 = vmatprep.mubr.msk.bf16.mxu1 %vm494_vm2, %v25324_v22  ;;  %v25512_v22 = vld [vmem:[#allocation2 + $0xa8] sm:$0xff] }
 0x4b2   : > { %20088 = vmatmul.mubr.msk.bf16.gmra.mrb[20].mxu0 %vm494_vm2, %v25488_v34 }
 0x4b3   : > { %19426 = vmatmul.mubr.msk.bf16.gmra.mrb[40].mxu1 %vm494_vm2, %v25327_v44  ;;  %20091 = vmatprep.mubr.msk.bf16.mxu0 %vm494_vm2, %v25490_v14  ;;  %v25514_v44 = vld [vmem:[#allocation2 + $0xb0] sm:$0xff] }
 0x4b4   : > { %19429 = vmatprep.mubr.msk.bf16.mxu1 %vm494_vm2, %v25340_v15  ;;  %v25539_v15 = vld [vmem:[#allocation2 + $0xc8] sm:$0xff] }
 0x4ba   : > { %20092 = vmatmul.mubr.msk.bf16.gmra.mrb[24].mxu0 %vm494_vm2, %v25500_v57 }
 0x4bb   : > { %19430 = vmatmul.mubr.msk.bf16.gmra.mrb[44].mxu1 %vm494_vm2, %v25344_v63  ;;  %20095 = vmatprep.mubr.msk.bf16.mxu0 %vm494_vm2, %v25502_v45  ;;  %v22270_v63 = vld [vmem:[#allocation2 + $0x78] sm:$0xff] }
 0x4bc   : > { %19433 = vmatprep.mubr.msk.bf16.mxu1 %vm494_vm2, %v25354_v43  ;;  %v22275_v43 = vld [vmem:[#allocation2 + $0xa0] sm:$0xff] }
 0x4c2   : > { %20096 = vmatmul.mubr.msk.bf16.gmra.mrb[28].mxu0 %vm494_vm2, %v25512_v22 }
 0x4c3   : > { %19434 = vmatmul.mubr.msk.bf16.gmra.mrb[48].mxu1 %vm494_vm2, %v25358_v23  ;;  %20099 = vmatprep.mubr.msk.bf16.mxu0 %vm494_vm2, %v25514_v44  ;;  %v11820_v23 = vshll.u32 %v25411_v18, 16  ;;  %v27504_v18 = vshrl.u32 %v25440_v5, 16 }
 0x4c4   : > { %19437 = vmatprep.mubr.msk.bf16.mxu1 %vm494_vm2, %v25371_v17  ;;  %v22277_v17 = vld [vmem:[#allocation2 + $0xb0] sm:$0xff] }
 0x4c5   : > { %v11822_v40 = vrot.slane %v11820_v23, 1  ;;  %v27490_v23 = vshll.u32 %v25454_v10, 16 }
 0x4c7   : > { %v11823_v52 = vor.u32 %v11822_v40, %v11818_v25  ;;  %v27496_v25 = vshrl.u32 %v25452_v11, 16 }
 0x4c9   : > { %v11827_v7 = vsel %vm565_vm3, %v11823_v52, %v11826_v4  ;;  %v22283_v52 = vld [vmem:[#allocation2 + $0xe0] sm:$0xff] }
 0x4ca   : > { %20100 = vmatmul.mubr.msk.bf16.gmra.mrb[32].mxu0 %vm494_vm2, %v25524_v39 }
 0x4cb   : > { %19438 = vmatmul.mubr.msk.bf16.gmra.mrb[52].mxu1 %vm494_vm2, %v25374_v51  ;;  %20103 = vmatprep.mubr.msk.bf16.mxu0 %vm494_vm2, %v25526_v13  ;;  %v22278_v51 = vld [vmem:[#allocation2 + $0xb8] sm:$0xff] }
 0x4cc   : > { %19441 = vmatprep.mubr.msk.bf16.mxu1 %vm494_vm2, %v25387_v46  ;;  %v27512_v46 = vshrl.u32 %v25423_v16, 16 }
 0x4ce   : > { %v11830_v31 = vor.u32 %v27512_v46, %v11826_v4  ;;  %v11861_v4 = vrot.slane %v27490_v23, 1 }
 0x4d0   : > { %v11834_v35 = vsel %vm565_vm3, %v11830_v31, %v11833_v56  ;;  %v27482_v31 = vshll.u32 %v25466_v9, 16 }
 0x4d2   : > { %20104 = vmatmul.mubr.msk.bf16.gmra.mrb[36].mxu0 %vm494_vm2, %v25539_v15 }
 0x4d3   : > { %19442 = vmatmul.mubr.msk.bf16.gmra.mrb[56].mxu1 %vm494_vm2, %v5463_v26  ;;  %20107 = vmatprep.mubr.msk.bf16.mxu0 %vm494_vm2, %v25541_v54  ;;  %v25620_v26 = vand.u32 %v17683_v49, %v22413_v6  ;;  %v27486_v49 = vshrl.u32 %v25466_v9, 16 }
 0x4d4   : > { %19471 = vmatprep.mubr.msk.bf16.mxu1 %vm494_vm2, %v22270_v63  ;;  %v11841_v63 = vsel %vm565_vm3, %v11837_v62, %v11840_v48  ;;  %v27488_v62 = vshrl.u32 %v25464_v24, 16 }
 0x4da   : > { %20108 = vmatmul.mubr.msk.bf16.gmra.mrb[40].mxu0 %vm494_vm2, %v25549_v32 }
 0x4db   : > { %19472 = vmatmul.mubr.msk.bf16.vlgmr.msra.gmra.mrb[24].mxu1 %vm494_vm2, %v22271_v20  ;;  %20111 = vmatprep.mubr.msk.bf16.mxu0 %vm494_vm2, %v25551_v8  ;;  %v22281_v20 = vld [vmem:[#allocation2 + $0xd0] sm:$0xff] }
 0x4dc   : > { %19475 = vmatprep.mubr.msk.bf16.mxu1 %vm494_vm2, %v22272_v50  ;;  %v11847_v50 = vrot.slane %v27498_v2, 1 }
 0x4e2   : > { %20112 = vmatmul.mubr.msk.bf16.gmra.mrb[44].mxu0 %vm494_vm2, %v25559_v19 }
 0x4e3   : > { %19476 = vmatmul.mubr.msk.bf16.gmra.mrb[28].mxu1 %vm494_vm2, %v22273_v61  ;;  %20115 = vmatprep.mubr.msk.bf16.mxu0 %vm494_vm2, %v25561_v29  ;;  %v22282_v61 = vld [vmem:[#allocation2 + $0xd8] sm:$0xff] }
 0x4e4   : > { %19479 = vmatprep.mubr.msk.bf16.mxu1 %vm494_vm2, %v22274_v36  ;;  %v11844_v36 = vor.u32 %v27504_v18, %v11840_v48 }
 0x4ea   : > { %20116 = vmatmul.mubr.msk.bf16.gmra.mrb[48].mxu0 %vm494_vm2, %v25569_v41 }
 0x4eb   : > { %19480 = vmatmul.mubr.msk.bf16.gmra.mrb[32].mxu1 %vm494_vm2, %v22275_v43  ;;  %20119 = vmatprep.mubr.msk.bf16.mxu0 %vm494_vm2, %v25571_v0  ;;  %v11851_v43 = vor.u32 %v27502_v30, %v11847_v50 }
 0x4ec   : > { %19483 = vmatprep.mubr.msk.bf16.mxu1 %vm494_vm2, %v22276_v53  ;;  %v11854_v53 = vrot.slane %v27495_v21, 1 }
 0x4ee   : > { %v11855_v40 = vsel %vm565_vm3, %v11851_v43, %v11854_v53 }
 0x4f2   : > { %20120 = vmatmul.mubr.msk.bf16.gmra.mrb[52].mxu0 %vm494_vm2, %v25580_v12 }
 0x4f3   : > { %19484 = vmatmul.mubr.msk.bf16.gmra.mrb[36].mxu1 %vm494_vm2, %v22277_v17  ;;  %20123 = vmatprep.mubr.msk.bf16.mxu0 %vm494_vm2, %v25583_v33  ;;  %v27494_v17 = vshrl.u32 %v25454_v10, 16 }
 0x4f4   : > { %19487 = vmatprep.mubr.msk.bf16.mxu1 %vm494_vm2, %v22278_v51  ;;  %v27487_v51 = vshll.u32 %v25464_v24, 16 }
 0x4fa   : > { %20124 = vmatmul.mubr.msk.bf16.gmra.mrb[56].mxu0 %vm494_vm2, %v11386_v3  ;;  %v22284_v3 = vld [vmem:[#allocation2 + $0xe8] sm:$0xff] }
 0x4fb   : > { %19488 = vmatmul.mubr.msk.bf16.gmra.mrb[40].mxu1 %vm494_vm2, %v22279_v27  ;;  %20129 = vmatprep.mubr.msk.bf16.mxu0 %vm494_vm2, %v11827_v7  ;;  %v11858_v7 = vor.u32 %v27496_v25, %v11854_v53  ;;  %v11865_v27 = vor.u32 %v27494_v17, %v11861_v4  ;;  %v27474_v53 = vshll.u32 %v25478_v55, 16 }
 0x4fc   : > { %19491 = vmatprep.mubr.msk.bf16.mxu1 %vm494_vm2, %v22280_v1  ;;  %v11868_v1 = vrot.slane %v27487_v51, 1 }
 0x4fd   : > { %v11862_v56 = vsel %vm565_vm3, %v11858_v7, %v11861_v4  ;;  %v27464_v7 = vshll.u32 %v25488_v34, 16 }
 0x4fe   : > { %v11869_v48 = vsel %vm565_vm3, %v11865_v27, %v11868_v1  ;;  %v11889_v27 = vrot.slane %v27474_v53, 1 }
 0x502   : > { %20130 = vmatmul.mubr.msk.bf16.vlgmr.msra.gmra.mrb[0].mxu0 %vm494_vm2, %v11834_v35  ;;  %v27479_v35 = vshll.u32 %v25476_v42, 16 }
 0x503   : > { %19492 = vmatmul.mubr.msk.bf16.gmra.mrb[44].mxu1 %vm494_vm2, %v22281_v20  ;;  %20190 = vmatpush3.bf16.msra.mxu0 %v25426_v60  ;;  %v11848_v60 = vsel %vm565_vm3, %v11844_v36, %v11847_v50  ;;  %v11875_v20 = vrot.slane %v27482_v31, 1  ;;  %v22286_v50 = vld [vmem:[#allocation2 + $0xf8] sm:$0xff] }
 0x504   : > { %19495 = vmatprep.mubr.msk.bf16.mxu1 %vm494_vm2, %v22282_v61  ;;  %20133 = vmatprep.mubr.msk.bf16.mxu0 %vm494_vm2, %v11841_v63  ;;  %v22285_v63 = vld [vmem:[#allocation2 + $0xf0] sm:$0xff]  ;;  %v11872_v61 = vor.u32 %v27488_v62, %v11868_v1  ;;  %v11882_v43 = vrot.slane %v27479_v35, 1 }
 0x505   : > { %20251 = vmatprep.subr.bf16.mxu0 %v25620_v26  ;;  %v11879_v36 = vor.u32 %v27486_v49, %v11875_v20 }
 0x507   : > { %v11883_v4 = vsel %vm565_vm3, %v11879_v36, %v11882_v43  ;;  %v27467_v36 = vshrl.u32 %v25490_v14, 16 }
 0x50a   : > { %20134 = vmatmul.mubr.msk.bf16.gmra.mrb[4].mxu0 %vm494_vm2, %v11848_v60  ;;  %v5919_v60 = vld [vmem:[#allocation2 + $0x100] sm:$0x3f] }
 0x50b   : > { %19496 = vmatmul.mubr.msk.bf16.gmra.mrb[48].mxu1 %vm494_vm2, %v22283_v52  ;;  %20137 = vmatprep.mubr.msk.bf16.mxu0 %vm494_vm2, %v11855_v40  ;;  %v11876_v40 = vsel %vm565_vm3, %v11872_v61, %v11875_v20  ;;  %v27480_v52 = vshrl.u32 %v25476_v42, 16 }
 0x50c   : > { %19499 = vmatprep.mubr.msk.bf16.mxu1 %vm494_vm2, %v22284_v3  ;;  %v27478_v3 = vshrl.u32 %v25478_v55, 16 }
 0x50d   : > { %v11886_v1 = vor.u32 %v27480_v52, %v11882_v43 }
 0x50f   : > { %v11890_v20 = vsel %vm565_vm3, %v11886_v1, %v11889_v27  ;;  %v27469_v1 = vshll.u32 %v25502_v45, 16 }
 0x512   : > { %20138 = vmatmul.mubr.msk.bf16.gmra.mrb[8].mxu0 %vm494_vm2, %v11862_v56  ;;  %v11893_v56 = vor.u32 %v27478_v3, %v11889_v27 }
 0x513   : > { %19500 = vmatmul.mubr.msk.bf16.gmra.mrb[52].mxu1 %vm494_vm2, %v22285_v63  ;;  %20141 = vmatprep.mubr.msk.bf16.mxu0 %vm494_vm2, %v11869_v48  ;;  %v11896_v48 = vrot.slane %v27464_v7, 1  ;;  %v27465_v63 = vshll.u32 %v25490_v14, 16 }
 0x514   : > { %19503 = vmatprep.mubr.msk.bf16.mxu1 %vm494_vm2, %v22286_v50  ;;  %v27468_v50 = vshrl.u32 %v25488_v34, 16 }
 0x515   : > { %v11897_v61 = vsel %vm565_vm3, %v11893_v56, %v11896_v48  ;;  %v11903_v43 = vrot.slane %v27465_v63, 1  ;;  %v27471_v63 = vshrl.u32 %v25502_v45, 16 }
 0x51a   : > { %20142 = vmatmul.mubr.msk.bf16.gmra.mrb[12].mxu0 %vm494_vm2, %v11876_v40  ;;  %v11900_v40 = vor.u32 %v27468_v50, %v11896_v48  ;;  %v11917_v48 = vrot.slane %v27469_v1, 1  ;;  %v27475_v1 = vshrl.u32 %v25514_v44, 16 }
 0x51b   : > { %19504 = vmatmul.mubr.msk.bf16.gmra.mrb[56].mxu1 %vm494_vm2, %v5919_v60  ;;  %20145 = vmatprep.mubr.msk.bf16.mxu0 %vm494_vm2, %v11883_v4  ;;  %v27466_v60 = vshll.u32 %v25500_v57, 16  ;;  %v11907_v4 = vor.u32 %v27467_v36, %v11903_v43 }
 0x51c   : > { %v11904_v56 = vsel %vm565_vm3, %v11900_v40, %v11903_v43  ;;  %v11921_v43 = vor.u32 %v27471_v63, %v11917_v48 }
 0x51d   : > { %v11910_v27 = vrot.slane %v27466_v60, 1 }
 0x51f   : > { %v11911_v7 = vsel %vm565_vm3, %v11907_v4, %v11910_v27  ;;  %v27473_v4 = vshll.u32 %v25514_v44, 16 }
 0x522   : > { %20146 = vmatmul.mubr.msk.bf16.gmra.mrb[16].mxu0 %vm494_vm2, %v11890_v20  ;;  %v27472_v20 = vshrl.u32 %v25500_v57, 16 }
 0x523   : > { %20149 = vmatprep.mubr.msk.bf16.mxu0 %vm494_vm2, %v11897_v61  ;;  %v27470_v61 = vshll.u32 %v25512_v22, 16 }
 0x524   : > { %v11914_v60 = vor.u32 %v27472_v20, %v11910_v27  ;;  %v11931_v27 = vrot.slane %v27473_v4, 1 }
 0x525   : > { %v11924_v40 = vrot.slane %v27470_v61, 1 }
 0x526   : > { %v11918_v36 = vsel %vm565_vm3, %v11914_v60, %v11917_v48  ;;  %v11935_v60 = vor.u32 %v27475_v1, %v11931_v27  ;;  %v27483_v1 = vshrl.u32 %v25526_v13, 16 }
 0x527   : > { %v11925_v50 = vsel %vm565_vm3, %v11921_v43, %v11924_v40 }
 0x52a   : > { %20150 = vmatmul.mubr.msk.bf16.gmra.mrb[20].mxu0 %vm494_vm2, %v11904_v56  ;;  %v27477_v56 = vshrl.u32 %v25512_v22, 16 }
 0x52b   : > { %20153 = vmatprep.mubr.msk.bf16.mxu0 %vm494_vm2, %v11911_v7  ;;  %v27476_v7 = vshll.u32 %v25524_v39, 16 }
 0x52c   : > { %v11928_v61 = vor.u32 %v27477_v56, %v11924_v40 }
 0x52d   : > { %v11938_v48 = vrot.slane %v27476_v7, 1  ;;  %v27484_v7 = vshll.u32 %v25539_v15, 16 }
 0x52e   : > { %v11932_v4 = vsel %vm565_vm3, %v11928_v61, %v11931_v27 }
 0x52f   : > { %v11939_v40 = vsel %vm565_vm3, %v11935_v60, %v11938_v48  ;;  %v11952_v60 = vrot.slane %v27484_v7, 1  ;;  %v27492_v7 = vshll.u32 %v25549_v32, 16 }
 0x532   : > { %20154 = vmatmul.mubr.msk.bf16.gmra.mrb[24].mxu0 %vm494_vm2, %v11918_v36  ;;  %v27481_v36 = vshll.u32 %v25526_v13, 16 }
 0x533   : > { %20157 = vmatprep.mubr.msk.bf16.mxu0 %vm494_vm2, %v11925_v50  ;;  %v27485_v50 = vshrl.u32 %v25524_v39, 16 }
 0x534   : > { %v11945_v56 = vrot.slane %v27481_v36, 1 }
 0x535   : > { %v11942_v61 = vor.u32 %v27485_v50, %v11938_v48 }
 0x536   : > { %v25738_v43 = vpop.f32.mrb[0].mxu1  ;;  %v11949_v27 = vor.u32 %v27483_v1, %v11945_v56  ;;  %v27491_v1 = vshrl.u32 %v25541_v54, 16 }
 0x537   : > { %v25740_v63 = vpop.f32.mrb[1].mxu1  ;;  %v11946_v36 = vsel %vm565_vm3, %v11942_v61, %v11945_v56 }
 0x538   : > { %v25743_v20 = vpop.f32.mrb[2].mxu1  ;;  %v11953_v48 = vsel %vm565_vm3, %v11949_v27, %v11952_v60  ;;  %v11966_v27 = vrot.slane %v27492_v7, 1  ;;  %v27500_v7 = vshll.u32 %v25559_v19, 16 }
 0x539   : > { %v25747_v53 = vpop.f32.mrb[3].mxu1 }
 0x53a   : > { %20158 = vmatmul.mubr.msk.bf16.gmra.mrb[28].mxu0 %vm494_vm2, %v11932_v4  ;;  %v27489_v4 = vshll.u32 %v25541_v54, 16 }
 0x53b   : > { %20161 = vmatprep.mubr.msk.bf16.mxu0 %vm494_vm2, %v11939_v40  ;;  %v27493_v40 = vshrl.u32 %v25539_v15, 16 }
 0x53c   : > { %v11959_v50 = vrot.slane %v27489_v4, 1 }
 0x53d   : > { %v11956_v56 = vor.u32 %v27493_v40, %v11952_v60 }
 0x53e   : > { %v25762_v3 = vpop.f32.mrb[4].mxu1  ;;  %v11963_v61 = vor.u32 %v27491_v1, %v11959_v50  ;;  %v27499_v1 = vshrl.u32 %v25551_v8, 16 }
 0x53f   : > { %v25764_v35 = vpop.f32.mrb[5].mxu1  ;;  %v11960_v4 = vsel %vm565_vm3, %v11956_v56, %v11959_v50 }
 0x540   : > { %v25767_v52 = vpop.f32.mrb[6].mxu1  ;;  %v11967_v60 = vsel %vm565_vm3, %v11963_v61, %v11966_v27  ;;  %v11980_v61 = vrot.slane %v27500_v7, 1  ;;  %v27508_v7 = vshll.u32 %v25569_v41, 16 }
 0x541   : > { %v25771_v31 = vpop.f32.mrb[7].mxu1 }
 0x542   : > { %20162 = vmatmul.mubr.msk.bf16.gmra.mrb[32].mxu0 %vm494_vm2, %v11946_v36  ;;  %v27497_v36 = vshll.u32 %v25551_v8, 16 }
 0x543   : > { %20165 = vmatprep.mubr.msk.bf16.mxu0 %vm494_vm2, %v11953_v48  ;;  %v27501_v48 = vshrl.u32 %v25549_v32, 16 }
 0x544   : > { %v11973_v40 = vrot.slane %v27497_v36, 1 }
 0x545   : > { %v11970_v50 = vor.u32 %v27501_v48, %v11966_v27 }
 0x546   : > { %v25786_v49 = vpop.f32.mrb[8].mxu1  ;;  %v11977_v56 = vor.u32 %v27499_v1, %v11973_v40  ;;  %v27507_v1 = vshrl.u32 %v25561_v29, 16 }
 0x547   : > { %v25788_v51 = vpop.f32.mrb[9].mxu1  ;;  %v11974_v36 = vsel %vm565_vm3, %v11970_v50, %v11973_v40 }
 0x548   : > { %v25791_v62 = vpop.f32.mrb[10].mxu1  ;;  %v11981_v27 = vsel %vm565_vm3, %v11977_v56, %v11980_v61  ;;  %v11994_v56 = vrot.slane %v27508_v7, 1  ;;  %v27516_v7 = vshll.u32 %v25580_v12, 16 }
 0x549   : > { %v25795_v23 = vpop.f32.mrb[11].mxu1 }
 0x54a   : > { %20166 = vmatmul.mubr.msk.bf16.gmra.mrb[36].mxu0 %vm494_vm2, %v11960_v4  ;;  %v27505_v4 = vshll.u32 %v25561_v29, 16 }
 0x54b   : > { %20169 = vmatprep.mubr.msk.bf16.mxu0 %vm494_vm2, %v11967_v60  ;;  %v27509_v60 = vshrl.u32 %v25559_v19, 16 }
 0x54c   : > { %v11987_v48 = vrot.slane %v27505_v4, 1 }
 0x54d   : > { %v11984_v40 = vor.u32 %v27509_v60, %v11980_v61 }
 0x54e   : > { %v25810_v17 = vpop.f32.mrb[12].mxu1  ;;  %v11991_v50 = vor.u32 %v27507_v1, %v11987_v48  ;;  %v27515_v1 = vshrl.u32 %v25571_v0, 16 }
 0x54f   : > { %v25812_v21 = vpop.f32.mrb[13].mxu1  ;;  %v11988_v4 = vsel %vm565_vm3, %v11984_v40, %v11987_v48 }
 0x550   : > { %v25815_v25 = vpop.f32.mrb[14].mxu1  ;;  %v11995_v61 = vsel %vm565_vm3, %v11991_v50, %v11994_v56  ;;  %v12008_v50 = vrot.slane %v27516_v7, 1  ;;  %v27518_v7 = vshrl.u32 %v25583_v33, 16 }
 0x551   : > { %v25819_v2 = vpop.f32.mrb[15].mxu1 }
 0x552   : > { %20170 = vmatmul.mubr.msk.bf16.gmra.mrb[40].mxu0 %vm494_vm2, %v11974_v36  ;;  %v27513_v36 = vshll.u32 %v25571_v0, 16 }
 0x553   : > { %20173 = vmatprep.mubr.msk.bf16.mxu0 %vm494_vm2, %v11981_v27  ;;  %v27514_v27 = vshrl.u32 %v25569_v41, 16 }
 0x554   : > { %v12001_v60 = vrot.slane %v27513_v36, 1 }
 0x555   : > { %v11998_v48 = vor.u32 %v27514_v27, %v11994_v56  ;;  %v27519_v56 = vshrl.u32 %v25580_v12, 16 }
 0x556   : > { %v25834_v30 = vpop.f32.mrb[16].mxu1  ;;  %v12005_v40 = vor.u32 %v27515_v1, %v12001_v60 }
 0x557   : > { %v25836_v59 = vpop.f32.mrb[17].mxu1 }
 0x558   : > { %v25839_v18 = vpop.f32.mrb[18].mxu1  ;;  %v12009_v1 = vsel %vm565_vm3, %v12005_v40, %v12008_v50 }
 0x559   : > { %27723 = vst [vmem:[#allocation15_spill] sm:$0xff] %v25839_v18  ;;  %v25843_v47 = vpop.f32.mrb[19].mxu1  ;;  %v27758_v18 = vshll.u32 %v25423_v16, 16 }
 0x55a   : > { %27724 = vst [vmem:[#allocation16_spill] sm:$0xff] %v25843_v47  ;;  %20174 = vmatmul.mubr.msk.bf16.gmra.mrb[44].mxu0 %vm494_vm2, %v11988_v4  ;;  %v27517_v4 = vshll.u32 %v25583_v33, 16  ;;  %v25884_v47 = vld [vmem:[#allocation2 + $0x30] sm:$0xfe] }
 0x55b   : > { %20177 = vmatprep.mubr.msk.bf16.mxu0 %vm494_vm2, %v11995_v61  ;;  %v12002_v61 = vsel %vm565_vm3, %v11998_v48, %v12001_v60  ;;  %v12012_v60 = vor.u32 %v27519_v56, %v12008_v50  ;;  %v12488_v50 = vrot.slane %v25423_v16, 1 }
 0x55e   : > { %v25858_v28 = vpop.f32.mrb[20].mxu1 }
 0x55f   : > { %27725 = vst [vmem:[#allocation24_spill] sm:$0xff] %v25858_v28  ;;  %v25862_v46 = vpop.f32.mrb[21].mxu1  ;;  %v12021_v28 = vshll.u32 %v25860_v38, 16 }
 0x560   : > { %27726 = vst [vmem:[#allocation14_spill] sm:$0xff] %v25862_v46  ;;  %v25865_v36 = vpop.f32.mrb[22].mxu1  ;;  %v12015_v46 = vrot.slane %v27517_v4, 1 }
 0x561   : > { %27727 = vst [vmem:[#allocation10_spill] sm:$0xff] %v25865_v36  ;;  %v25869_v27 = vpop.f32.mrb[23].mxu1 }
 0x562   : > { %27728 = vst [vmem:[#allocation18_spill] sm:$0xff] %v25869_v27  ;;  %20178 = vmatmul.mubr.msk.bf16.gmra.mrb[48].mxu0 %vm494_vm2, %v12002_v61  ;;  %v12019_v48 = vor.u32 %v27518_v7, %v12015_v46  ;;  %v12023_v27 = vrot.slane %v12021_v28, 1  ;;  %v12016_v40 = vsel %vm565_vm3, %v12012_v60, %v12015_v46  ;;  %v12025_v61 = vshrl.u32 %v25860_v38, 16  ;;  %v17714_v60 = vld [vmem:[%s27283_s1 + $0x30] sm:$0x3] }
 0x563   : > { %20181 = vmatprep.mubr.msk.bf16.mxu0 %vm494_vm2, %v12009_v1  ;;  %v12487_v1 = vrot.slane %v25884_v47, 1  ;;  %v12490_v28 = vrot.slane %v25428_v37, 1  ;;  %v12492_v46 = vrot.slane %v25440_v5, 1 }
 0x564   : > { %v12024_v36 = vsel %vm565_vm3, %v12019_v48, %v12023_v27  ;;  %v12027_v4 = vor.u32 %v12025_v61, %v12023_v27  ;;  %v25902_v27 = vand.u32 %v17714_v60, %v22413_v6  ;;  %v12498_v6 = vrot.slane %v25454_v10, 1 }
 0x565   : > { %v12489_v7 = vsel %vm1545_vm4, %v12487_v1, %v12488_v50  ;;  %v12493_v48 = vsel %vm1545_vm4, %v12490_v28, %v12492_v46 }
 0x56a   : > { %20182 = vmatmul.mubr.msk.bf16.gmra.mrb[52].mxu0 %vm494_vm2, %v12016_v40 }
 0x56b   : > { %20185 = vmatprep.mubr.msk.bf16.mxu0 %vm494_vm2, %v12024_v36  ;;  %v12491_v36 = vsel %vm1545_vm4, %v12488_v50, %v12490_v28  ;;  %v12502_v28 = vrot.slane %v25466_v9, 1 }
 0x572   : > { %20186 = vmatmul.mubr.msk.bf16.gmra.mrb[56].mxu0 %vm494_vm2, %v12027_v4  ;;  %v12496_v4 = vrot.slane %v25452_v11, 1 }
 0x573   : > { %20191 = vmatprep.mubr.msk.bf16.mxu0 %vm494_vm2, %v12489_v7  ;;  %v12494_v7 = vrot.slane %v25442_v58, 1 }
 0x574   : > { %v12499_v1 = vsel %vm1545_vm4, %v12496_v4, %v12498_v6 }
 0x575   : > { %v12495_v40 = vsel %vm1545_vm4, %v12492_v46, %v12494_v7  ;;  %v12497_v61 = vsel %vm1545_vm4, %v12494_v7, %v12496_v4  ;;  %v12504_v46 = vrot.slane %v25476_v42, 1  ;;  %v12508_v7 = vrot.slane %v25488_v34, 1 }
 0x57a   : > { %20192 = vmatmul.mubr.msk.bf16.vlgmr.msra.gmra.mrb[0].mxu0 %vm494_vm2, %v12491_v36  ;;  %v12505_v36 = vsel %vm1545_vm4, %v12502_v28, %v12504_v46 }
 0x57b   : > { %20252 = vmatpush3.bf16.msra.mxu0 %v25620_v26  ;;  %20195 = vmatprep.mubr.msk.bf16.mxu0 %vm494_vm2, %v12493_v48  ;;  %v12500_v26 = vrot.slane %v25464_v24, 1  ;;  %v12506_v48 = vrot.slane %v25478_v55, 1 }
 0x57c   : > { %20313 = vmatprep.subr.bf16.mxu0 %v25902_v27 }
 0x57d   : > { %v12501_v50 = vsel %vm1545_vm4, %v12498_v6, %v12500_v26  ;;  %v12503_v60 = vsel %vm1545_vm4, %v12500_v26, %v12502_v28  ;;  %v12507_v4 = vsel %vm1545_vm4, %v12504_v46, %v12506_v48  ;;  %v12512_v6 = vrot.slane %v25500_v57, 1 }
 0x57e   : > { %v12516_v28 = vrot.slane %v25512_v22, 1 }
 0x582   : > { %20196 = vmatmul.mubr.msk.bf16.gmra.mrb[4].mxu0 %vm494_vm2, %v12495_v40  ;;  %v12509_v40 = vsel %vm1545_vm4, %v12506_v48, %v12508_v7  ;;  %v12520_v48 = vrot.slane %v25524_v39, 1 }
 0x583   : > { %20199 = vmatprep.mubr.msk.bf16.mxu0 %vm494_vm2, %v12497_v61  ;;  %v12510_v61 = vrot.slane %v25490_v14, 1 }
 0x585   : > { %v12511_v26 = vsel %vm1545_vm4, %v12508_v7, %v12510_v61 }
 0x58a   : > { %20200 = vmatmul.mubr.msk.bf16.gmra.mrb[8].mxu0 %vm494_vm2, %v12499_v1  ;;  %v12513_v1 = vsel %vm1545_vm4, %v12510_v61, %v12512_v6 }
 0x58b   : > { %20203 = vmatprep.mubr.msk.bf16.mxu0 %vm494_vm2, %v12501_v50  ;;  %v12514_v50 = vrot.slane %v25502_v45, 1 }
 0x58d   : > { %v12515_v46 = vsel %vm1545_vm4, %v12512_v6, %v12514_v50 }
 0x592   : > { %20204 = vmatmul.mubr.msk.bf16.gmra.mrb[12].mxu0 %vm494_vm2, %v12503_v60  ;;  %v12517_v60 = vsel %vm1545_vm4, %v12514_v50, %v12516_v28  ;;  %v12524_v50 = vrot.slane %v25539_v15, 1 }
 0x593   : > { %20207 = vmatprep.mubr.msk.bf16.mxu0 %vm494_vm2, %v12505_v36  ;;  %v12518_v36 = vrot.slane %v25514_v44, 1 }
 0x595   : > { %v12519_v61 = vsel %vm1545_vm4, %v12516_v28, %v12518_v36  ;;  %v12521_v6 = vsel %vm1545_vm4, %v12518_v36, %v12520_v48 }
 0x59a   : > { %20208 = vmatmul.mubr.msk.bf16.gmra.mrb[16].mxu0 %vm494_vm2, %v12507_v4 }
 0x59b   : > { %20211 = vmatprep.mubr.msk.bf16.mxu0 %vm494_vm2, %v12509_v40 }
 0x5a2   : > { %20212 = vmatmul.mubr.msk.bf16.gmra.mrb[20].mxu0 %vm494_vm2, %v12511_v26 }
 0x5a3   : > { %20215 = vmatprep.mubr.msk.bf16.mxu0 %vm494_vm2, %v12513_v1  ;;  %v12522_v1 = vrot.slane %v25526_v13, 1 }
 0x5a5   : > { %v12523_v28 = vsel %vm1545_vm4, %v12520_v48, %v12522_v1  ;;  %v12525_v36 = vsel %vm1545_vm4, %v12522_v1, %v12524_v50 }
 0x5aa   : > { %20216 = vmatmul.mubr.msk.bf16.gmra.mrb[24].mxu0 %vm494_vm2, %v12515_v46 }
 0x5ab   : > { %20219 = vmatprep.mubr.msk.bf16.mxu0 %vm494_vm2, %v12517_v60 }
 0x5ae   : > { %v25946_v7 = vpop.f32.mrb[24].mxu1 }
 0x5af   : > { %27729 = vst [vmem:[#allocation23_spill] sm:$0xff] %v25946_v7  ;;  %v25948_v4 = vpop.f32.mrb[25].mxu1 }
 0x5b0   : > { %27730 = vst [vmem:[#allocation17_spill] sm:$0xff] %v25948_v4  ;;  %v25950_v40 = vpop.f32.mrb[26].mxu1 }
 0x5b1   : > { %27731 = vst [vmem:[#allocation20_spill] sm:$0xff] %v25950_v40  ;;  %v25953_v26 = vpop.f32.mrb[27].mxu1 }
 0x5b2   : > { %27732 = vst [vmem:[#allocation19_spill] sm:$0xff] %v25953_v26  ;;  %20220 = vmatmul.mubr.msk.bf16.gmra.mrb[28].mxu0 %vm494_vm2, %v12519_v61  ;;  %v12526_v61 = vrot.slane %v25541_v54, 1 }
 0x5b3   : > { %20223 = vmatprep.mubr.msk.bf16.mxu0 %vm494_vm2, %v12521_v6  ;;  %v12528_v6 = vrot.slane %v25549_v32, 1 }
 0x5b4   : > { %v12527_v48 = vsel %vm1545_vm4, %v12524_v50, %v12526_v61 }
 0x5b5   : > { %v12529_v1 = vsel %vm1545_vm4, %v12526_v61, %v12528_v6 }
 0x5b6   : > { %v25960_v46 = vpop.f32.mrb[28].mxu1 }
 0x5b7   : > { %27733 = vst [vmem:[#allocation11_spill] sm:$0xff] %v25960_v46  ;;  %v25962_v60 = vpop.f32.mrb[29].mxu1 }
 0x5b8   : > { %27734 = vst [vmem:[#allocation12_spill] sm:$0xff] %v25962_v60  ;;  %v25964_v56 = vpop.f32.mrb[30].mxu1 }
 0x5b9   : > { %27735 = vst [vmem:[#allocation9_spill] sm:$0xff] %v25964_v56  ;;  %v25967_v40 = vpop.f32.mrb[31].mxu1 }
 0x5ba   : > { %27736 = vst [vmem:[#allocation21_spill] sm:$0xff] %v25967_v40  ;;  %20224 = vmatmul.mubr.msk.bf16.gmra.mrb[32].mxu0 %vm494_vm2, %v12523_v28  ;;  %v12530_v28 = vrot.slane %v25551_v8, 1 }
 0x5bb   : > { %20227 = vmatprep.mubr.msk.bf16.mxu0 %vm494_vm2, %v12525_v36  ;;  %v12532_v36 = vrot.slane %v25559_v19, 1 }
 0x5bc   : > { %v12531_v50 = vsel %vm1545_vm4, %v12528_v6, %v12530_v28 }
 0x5bd   : > { %v12533_v61 = vsel %vm1545_vm4, %v12530_v28, %v12532_v36 }
 0x5be   : > { %v25974_v26 = vpop.f32.mrb[32].mxu1 }
 0x5bf   : > { %27737 = vst [vmem:[#allocation22_spill] sm:$0xff] %v25974_v26  ;;  %v25976_v46 = vpop.f32.mrb[33].mxu1 }
 0x5c0   : > { %27738 = vst [vmem:[#allocation13_spill] sm:$0xff] %v25976_v46  ;;  %v25978_v60 = vpop.f32.mrb[34].mxu1 }
 0x5c1   : > { %27739 = vst [vmem:[#allocation25_spill] sm:$0xff] %v25978_v60  ;;  %v25981_v56 = vpop.f32.mrb[35].mxu1 }
 0x5c2   : > { %27740 = vst [vmem:[#allocation26_spill] sm:$0xff] %v25981_v56  ;;  %20228 = vmatmul.mubr.msk.bf16.gmra.mrb[36].mxu0 %vm494_vm2, %v12527_v48  ;;  %v12534_v48 = vrot.slane %v25561_v29, 1 }
 0x5c3   : > { %20231 = vmatprep.mubr.msk.bf16.mxu0 %vm494_vm2, %v12529_v1  ;;  %v12536_v1 = vrot.slane %v25569_v41, 1 }
 0x5c4   : > { %v12535_v6 = vsel %vm1545_vm4, %v12532_v36, %v12534_v48 }
 0x5c5   : > { %v12537_v28 = vsel %vm1545_vm4, %v12534_v48, %v12536_v1 }
 0x5c6   : > { %v25988_v40 = vpop.f32.mrb[36].mxu1 }
 0x5c7   : > { %27741 = vst [vmem:[#allocation27_spill] sm:$0xff] %v25988_v40  ;;  %v25990_v26 = vpop.f32.mrb[37].mxu1 }
 0x5c8   : > { %27742 = vst [vmem:[#allocation28_spill] sm:$0xff] %v25990_v26  ;;  %v25992_v46 = vpop.f32.mrb[38].mxu1 }
 0x5c9   : > { %27743 = vst [vmem:[#allocation29_spill] sm:$0xff] %v25992_v46  ;;  %v25995_v60 = vpop.f32.mrb[39].mxu1 }
 0x5ca   : > { %27744 = vst [vmem:[#allocation30_spill] sm:$0xff] %v25995_v60  ;;  %20232 = vmatmul.mubr.msk.bf16.gmra.mrb[40].mxu0 %vm494_vm2, %v12531_v50  ;;  %v12538_v50 = vrot.slane %v25571_v0, 1 }
 0x5cb   : > { %20235 = vmatprep.mubr.msk.bf16.mxu0 %vm494_vm2, %v12533_v61  ;;  %v12540_v61 = vrot.slane %v25580_v12, 1 }
 0x5cc   : > { %v12539_v36 = vsel %vm1545_vm4, %v12536_v1, %v12538_v50 }
 0x5cd   : > { %v12541_v48 = vsel %vm1545_vm4, %v12538_v50, %v12540_v61 }
 0x5ce   : > { %v26002_v56 = vpop.f32.mrb[40].mxu1 }
 0x5cf   : > { %27745 = vst [vmem:[#allocation31_spill] sm:$0xff] %v26002_v56  ;;  %v26004_v40 = vpop.f32.mrb[41].mxu1 }
 0x5d0   : > { %27746 = vst [vmem:[#allocation32_spill] sm:$0xff] %v26004_v40  ;;  %v26006_v26 = vpop.f32.mrb[42].mxu1 }
 0x5d1   : > { %27747 = vst [vmem:[#allocation33_spill] sm:$0xff] %v26006_v26  ;;  %v26009_v46 = vpop.f32.mrb[43].mxu1 }
 0x5d2   : > { %27748 = vst [vmem:[#allocation34_spill] sm:$0xff] %v26009_v46  ;;  %20236 = vmatmul.mubr.msk.bf16.gmra.mrb[44].mxu0 %vm494_vm2, %v12535_v6  ;;  %v12542_v6 = vrot.slane %v25583_v33, 1 }
 0x5d3   : > { %20239 = vmatprep.mubr.msk.bf16.mxu0 %vm494_vm2, %v12537_v28  ;;  %v12544_v28 = vrot.slane %v25860_v38, 1  ;;  %v27757_v38 = vshrl.u32 %v25423_v16, 16 }
 0x5d4   : > { %v12543_v50 = vsel %vm1545_vm4, %v12540_v61, %v12542_v6 }
 0x5d5   : > { %v12983_v7 = vrot.slane %v27757_v38, 1 }
 0x5d6   : > { %v26016_v60 = vpop.f32.mrb[44].mxu1 }
 0x5d7   : > { %27749 = vst [vmem:[#allocation35_spill] sm:$0xff] %v26016_v60  ;;  %v26018_v56 = vpop.f32.mrb[45].mxu1  ;;  %v12976_v60 = vshrl.u32 %v25884_v47, 16 }
 0x5d8   : > { %27750 = vst [vmem:[#allocation36_spill] sm:$0xff] %v26018_v56  ;;  %v26020_v40 = vpop.f32.mrb[46].mxu1  ;;  %v12979_v56 = vshll.u32 %v25884_v47, 16  ;;  %v12984_v47 = vrot.slane %v27758_v18, 2 }
 0x5d9   : > { %27751 = vst [vmem:[#allocation37_spill] sm:$0xff] %v26020_v40  ;;  %v26023_v26 = vpop.f32.mrb[47].mxu1 }
 0x5da   : > { %27752 = vst [vmem:[#allocation38_spill] sm:$0xff] %v26023_v26  ;;  %20240 = vmatmul.mubr.msk.bf16.gmra.mrb[48].mxu0 %vm494_vm2, %v12539_v36  ;;  %v12545_v36 = vsel %vm1545_vm4, %v12542_v6, %v12544_v28  ;;  %v12981_v4 = vrot.slane %v12979_v56, 2  ;;  %v27759_v6 = vshll.u32 %v25428_v37, 16  ;;  %v27760_v56 = vshrl.u32 %v25428_v37, 16 }
 0x5db   : > { %20243 = vmatprep.mubr.msk.bf16.mxu0 %vm494_vm2, %v12541_v48  ;;  %v12978_v48 = vrot.slane %v12976_v60, 1 }
 0x5dc   : > { %v12988_v60 = vrot.slane %v27759_v6, 2 }
 0x5de   : > { %v26032_v46 = vpop.f32.mrb[48].mxu1 }
 0x5df   : > { %27753 = vst [vmem:[#allocation39_spill] sm:$0xff] %v26032_v46  ;;  %v26034_v40 = vpop.f32.mrb[49].mxu1 }
 0x5e0   : > { %27754 = vst [vmem:[#allocation40_spill] sm:$0xff] %v26034_v40  ;;  %v26036_v1 = vpop.f32.mrb[50].mxu1  ;;  %v12982_v40 = vor.u32 %v12981_v4, %v12978_v48 }
 0x5e1   : > { %27755 = vst [vmem:[#allocation41_spill] sm:$0xff] %v26036_v1  ;;  %v26040_v26 = vpop.f32.mrb[51].mxu1  ;;  %v12985_v1 = vor.u32 %v12984_v47, %v12983_v7  ;;  %v27764_v7 = vshll.u32 %v25440_v5, 16 }
 0x5e2   : > { %27756 = vst [vmem:[#allocation42_spill] sm:$0xff] %v26040_v26  ;;  %20244 = vmatmul.mubr.msk.bf16.gmra.mrb[52].mxu0 %vm494_vm2, %v12543_v50  ;;  %v12987_v26 = vrot.slane %v27760_v56, 1  ;;  %v27763_v50 = vshrl.u32 %v25440_v5, 16  ;;  %v27766_v5 = vshll.u32 %v25442_v58, 16 }
 0x5e3   : > { %20247 = vmatprep.mubr.msk.bf16.mxu0 %vm494_vm2, %v12545_v36  ;;  %v12986_v18 = vsel %vm27521_vm5, %v12982_v40, %v12985_v1  ;;  %v12992_v36 = vrot.slane %v27764_v7, 2 }
 0x5e4   : > { %v12991_v4 = vrot.slane %v27763_v50, 1  ;;  %v12989_v48 = vor.u32 %v12988_v60, %v12987_v26  ;;  %v12996_v7 = vrot.slane %v27766_v5, 2  ;;  %v27768_v26 = vshrl.u32 %v25452_v11, 16 }
 0x5e6   : > { %v26048_v46 = vpop.f32.mrb[52].mxu1  ;;  %v12993_v47 = vor.u32 %v12992_v36, %v12991_v4  ;;  %v12990_v40 = vsel %vm27521_vm5, %v12985_v1, %v12989_v48  ;;  %v12999_v60 = vrot.slane %v27768_v26, 1  ;;  %v27770_v36 = vshrl.u32 %v25454_v10, 16 }
 0x5e7   : > { %v26050_v61 = vpop.f32.mrb[53].mxu1 }
 0x5e8   : > { %v26056_v38 = vpop.f32.mrb[54].mxu1  ;;  %v13003_v5 = vrot.slane %v27770_v36, 1  ;;  %v27776_v36 = vshrl.u32 %v25476_v42, 16 }
 0x5e9   : > { %27761 = vst [vmem:[#allocation43_spill] sm:$0xff] %v26056_v38  ;;  %v26058_v16 = vpop.f32.mrb[55].mxu1 }
 0x5ea   : > { %27762 = vst [vmem:[#allocation44_spill] sm:$0xff] %v26058_v16  ;;  %20248 = vmatmul.mubr.msk.bf16.gmra.mrb[56].mxu0 %vm494_vm2, %v12544_v28  ;;  %v27765_v16 = vshrl.u32 %v25442_v58, 16  ;;  %v12994_v28 = vsel %vm27521_vm5, %v12989_v48, %v12993_v47  ;;  %v27771_v48 = vshll.u32 %v25454_v10, 16 }
 0x5eb   : > { %20253 = vmatprep.mubr.msk.bf16.mxu0 %vm494_vm2, %v12986_v18  ;;  %v27769_v18 = vshll.u32 %v25452_v11, 16  ;;  %v27772_v11 = vshrl.u32 %v25464_v24, 16 }
 0x5ec   : > { %v12995_v50 = vrot.slane %v27765_v16, 1 }
 0x5ed   : > { %v13000_v4 = vrot.slane %v27769_v18, 2  ;;  %v13007_v18 = vrot.slane %v27772_v11, 1  ;;  %v27779_v11 = vshll.u32 %v25478_v55, 16 }
 0x5ee   : > { %v26067_v37 = vpop.f32.mrb[56].mxu1  ;;  %v12997_v1 = vor.u32 %v12996_v7, %v12995_v50 }
 0x5ef   : > { %v26069_v6 = vpop.f32.mrb[57].mxu1  ;;  %v13001_v16 = vor.u32 %v13000_v4, %v12999_v60  ;;  %v27775_v60 = vshll.u32 %v25466_v9, 16 }
 0x5f0   : > { %v26071_v56 = vpop.f32.mrb[58].mxu1  ;;  %v12998_v58 = vsel %vm27521_vm5, %v12993_v47, %v12997_v1 }
 0x5f1   : > { %v26078_v38 = vpop.f32.mrb[59].mxu1  ;;  %v13002_v26 = vsel %vm27521_vm5, %v12997_v1, %v13001_v16  ;;  %v13012_v4 = vrot.slane %v27775_v60, 2  ;;  %v27782_v60 = vshrl.u32 %v25490_v14, 16 }
 0x5f2   : > { %27767 = vst [vmem:[#allocation45_spill] sm:$0xff] %v26078_v38  ;;  %20254 = vmatmul.mubr.msk.bf16.vlgmr.msra.gmra.mrb[0].mxu0 %vm494_vm2, %v12990_v40  ;;  %v13004_v38 = vrot.slane %v27771_v48, 2  ;;  %v27773_v40 = vshll.u32 %v25464_v24, 16  ;;  %v13015_v24 = vrot.slane %v27776_v36, 1  ;;  %v27777_v48 = vshll.u32 %v25476_v42, 16 }
 0x5f3   : > { %20314 = vmatpush3.bf16.msra.mxu0 %v25902_v27  ;;  %20257 = vmatprep.mubr.msk.bf16.mxu0 %vm494_vm2, %v12994_v28  ;;  %v27774_v28 = vshrl.u32 %v25466_v9, 16 }
 0x5f4   : > { %v13008_v27 = vrot.slane %v27773_v40, 2  ;;  %v13005_v50 = vor.u32 %v13004_v38, %v13003_v5 }
 0x5f5   : > { %v13011_v10 = vrot.slane %v27774_v28, 1 }
 0x5f6   : > { %v13009_v47 = vor.u32 %v13008_v27, %v13007_v18  ;;  %v13006_v7 = vsel %vm27521_vm5, %v13001_v16, %v13005_v50  ;;  %v13020_v18 = vrot.slane %v27779_v11, 2  ;;  %v27780_v27 = vshrl.u32 %v25488_v34, 16 }
 0x5f7   : > { %v13013_v38 = vor.u32 %v13012_v4, %v13011_v10  ;;  %v27783_v4 = vshll.u32 %v25490_v14, 16 }
 0x5f8   : > { %v13010_v1 = vsel %vm27521_vm5, %v13005_v50, %v13009_v47  ;;  %v13023_v42 = vrot.slane %v27780_v27, 1  ;;  %v27781_v50 = vshll.u32 %v25488_v34, 16  ;;  %v27789_v27 = vshll.u32 %v25512_v22, 16 }
 0x5f9   : > { %v13014_v5 = vsel %vm27521_vm5, %v13009_v47, %v13013_v38 }
 0x5fa   : > { %20258 = vmatmul.mubr.msk.bf16.gmra.mrb[4].mxu0 %vm494_vm2, %v12998_v58  ;;  %v13016_v58 = vrot.slane %v27777_v48, 2  ;;  %v27785_v48 = vshll.u32 %v25500_v57, 16 }
 0x5fb   : > { %20261 = vmatprep.mubr.msk.bf16.mxu0 %vm494_vm2, %v13002_v26  ;;  %v27778_v26 = vshrl.u32 %v25478_v55, 16  ;;  %v13027_v55 = vrot.slane %v27782_v60, 1 }
 0x5fc   : > { %v13017_v16 = vor.u32 %v13016_v58, %v13015_v24  ;;  %v27784_v24 = vshrl.u32 %v25500_v57, 16  ;;  %v13032_v58 = vrot.slane %v27785_v48, 2 }
 0x5fd   : > { %v13019_v9 = vrot.slane %v27778_v26, 1  ;;  %v27786_v26 = vshrl.u32 %v25502_v45, 16 }
 0x5fe   : > { %v13018_v40 = vsel %vm27521_vm5, %v13013_v38, %v13017_v16  ;;  %v13031_v34 = vrot.slane %v27784_v24, 1 }
 0x5ff   : > { %v13021_v28 = vor.u32 %v13020_v18, %v13019_v9  ;;  %v13035_v14 = vrot.slane %v27786_v26, 1  ;;  %v27787_v9 = vshll.u32 %v25502_v45, 16  ;;  %v27796_v26 = vshrl.u32 %v25539_v15, 16 }
 0x601   : > { %v13022_v10 = vsel %vm27521_vm5, %v13017_v16, %v13021_v28  ;;  %v13033_v16 = vor.u32 %v13032_v58, %v13031_v34  ;;  %v13036_v11 = vrot.slane %v27787_v9, 2  ;;  %v27794_v58 = vshrl.u32 %v25526_v13, 16 }
 0x602   : > { %20262 = vmatmul.mubr.msk.bf16.gmra.mrb[8].mxu0 %vm494_vm2, %v13006_v7  ;;  %v13024_v7 = vrot.slane %v27781_v50, 2 }
 0x603   : > { %20265 = vmatprep.mubr.msk.bf16.mxu0 %vm494_vm2, %v13010_v1  ;;  %v13028_v1 = vrot.slane %v27783_v4, 2  ;;  %v13037_v50 = vor.u32 %v13036_v11, %v13035_v14  ;;  %v27792_v4 = vshrl.u32 %v25524_v39, 16  ;;  %v27797_v14 = vshll.u32 %v25539_v15, 16 }
 0x604   : > { %v13025_v47 = vor.u32 %v13024_v7, %v13023_v42  ;;  %v13040_v42 = vrot.slane %v27789_v27, 2  ;;  %v27799_v27 = vshll.u32 %v25541_v54, 16 }
 0x605   : > { %v13029_v38 = vor.u32 %v13028_v1, %v13027_v55  ;;  %v27793_v1 = vshll.u32 %v25524_v39, 16  ;;  %v13055_v39 = vrot.slane %v27796_v26, 1  ;;  %v13056_v9 = vrot.slane %v27797_v14, 2 }
 0x606   : > { %v13026_v36 = vsel %vm27521_vm5, %v13021_v28, %v13025_v47  ;;  %v13038_v28 = vsel %vm27521_vm5, %v13033_v16, %v13037_v50  ;;  %v27809_v14 = vshll.u32 %v25569_v41, 16 }
 0x607   : > { %v13034_v18 = vsel %vm27521_vm5, %v13029_v38, %v13033_v16 }
 0x60a   : > { %20266 = vmatmul.mubr.msk.bf16.gmra.mrb[12].mxu0 %vm494_vm2, %v13014_v5  ;;  %v13030_v5 = vsel %vm27521_vm5, %v13025_v47, %v13029_v38  ;;  %v27790_v47 = vshrl.u32 %v25514_v44, 16  ;;  %v27795_v38 = vshll.u32 %v25526_v13, 16 }
 0x60b   : > { %20269 = vmatprep.mubr.msk.bf16.mxu0 %vm494_vm2, %v13018_v40  ;;  %v27788_v40 = vshrl.u32 %v25512_v22, 16  ;;  %v13047_v22 = vrot.slane %v27792_v4, 1  ;;  %v27803_v4 = vshll.u32 %v25551_v8, 16 }
 0x60c   : > { %v13043_v45 = vrot.slane %v27790_v47, 1  ;;  %v13052_v16 = vrot.slane %v27795_v38, 2  ;;  %v27806_v38 = vshrl.u32 %v25561_v29, 16 }
 0x60d   : > { %v13039_v57 = vrot.slane %v27788_v40, 1 }
 0x60f   : > { %v13041_v7 = vor.u32 %v13040_v42, %v13039_v57  ;;  %v27798_v57 = vshrl.u32 %v25541_v54, 16  ;;  %v13060_v42 = vrot.slane %v27799_v27, 2 }
 0x611   : > { %v13042_v55 = vsel %vm27521_vm5, %v13037_v50, %v13041_v7  ;;  %v13059_v13 = vrot.slane %v27798_v57, 1  ;;  %v27810_v57 = vshrl.u32 %v25571_v0, 16 }
 0x612   : > { %20270 = vmatmul.mubr.msk.bf16.gmra.mrb[16].mxu0 %vm494_vm2, %v13022_v10  ;;  %v27791_v10 = vshll.u32 %v25514_v44, 16  ;;  %v13051_v44 = vrot.slane %v27794_v58, 1 }
 0x613   : > { %20273 = vmatprep.mubr.msk.bf16.mxu0 %vm494_vm2, %v13026_v36  ;;  %v13048_v36 = vrot.slane %v27793_v1, 2 }
 0x614   : > { %v13044_v60 = vrot.slane %v27791_v10, 2  ;;  %v13053_v11 = vor.u32 %v13052_v16, %v13051_v44  ;;  %v27807_v16 = vshll.u32 %v25561_v29, 16  ;;  %v13083_v29 = vrot.slane %v27810_v57, 1 }
 0x615   : > { %v13049_v34 = vor.u32 %v13048_v36, %v13047_v22  ;;  %v13068_v22 = vrot.slane %v27803_v4, 2  ;;  %v27804_v36 = vshrl.u32 %v25559_v19, 16 }
 0x616   : > { %v13045_v24 = vor.u32 %v13044_v60, %v13043_v45  ;;  %v13061_v45 = vor.u32 %v13060_v42, %v13059_v13  ;;  %v27811_v13 = vshll.u32 %v25571_v0, 16 }
 0x617   : > { %v13054_v40 = vsel %vm27521_vm5, %v13049_v34, %v13053_v11 }
 0x618   : > { %v13046_v48 = vsel %vm27521_vm5, %v13041_v7, %v13045_v24  ;;  %v27800_v7 = vshrl.u32 %v25549_v32, 16  ;;  %v13084_v27 = vrot.slane %v27811_v13, 2  ;;  %v22292_v13 = vld [vmem:[#allocation2 + $0x60] sm:$0xff] }
 0x61a   : > { %20274 = vmatmul.mubr.msk.bf16.gmra.mrb[20].mxu0 %vm494_vm2, %v13030_v5  ;;  %v13050_v5 = vsel %vm27521_vm5, %v13045_v24, %v13049_v34  ;;  %v13063_v15 = vrot.slane %v27800_v7, 1  ;;  %v27805_v24 = vshll.u32 %v25559_v19, 16  ;;  %v27813_v7 = vshll.u32 %v25580_v12, 16 }
 0x61b   : > { %20277 = vmatprep.mubr.msk.bf16.mxu0 %vm494_vm2, %v13034_v18  ;;  %v13057_v18 = vor.u32 %v13056_v9, %v13055_v39  ;;  %v27808_v39 = vshrl.u32 %v25569_v41, 16  ;;  %v13080_v9 = vrot.slane %v27809_v14, 2 }
 0x61c   : > { %v13072_v34 = vrot.slane %v27805_v24, 2 }
 0x61d   : > { %v13058_v50 = vsel %vm27521_vm5, %v13053_v11, %v13057_v18  ;;  %v13062_v60 = vsel %vm27521_vm5, %v13057_v18, %v13061_v45  ;;  %v13079_v19 = vrot.slane %v27808_v39, 1 }
 0x61f   : > { %v13081_v18 = vor.u32 %v13080_v9, %v13079_v19  ;;  %v22290_v9 = vld [vmem:[#allocation2 + $0x50] sm:$0xff] }
 0x622   : > { %20278 = vmatmul.mubr.msk.bf16.gmra.mrb[24].mxu0 %vm494_vm2, %v13038_v28  ;;  %v27801_v28 = vshll.u32 %v25549_v32, 16  ;;  %v13071_v32 = vrot.slane %v27804_v36, 1 }
 0x623   : > { %20281 = vmatprep.mubr.msk.bf16.mxu0 %vm494_vm2, %v13042_v55  ;;  %v27802_v55 = vshrl.u32 %v25551_v8, 16  ;;  %v13075_v8 = vrot.slane %v27806_v38, 1 }
 0x624   : > { %v13064_v47 = vrot.slane %v27801_v28, 2  ;;  %v13073_v58 = vor.u32 %v13072_v34, %v13071_v32  ;;  %v26218_v28 = vld [vmem:[#allocation2 + $0x118] sm:$0xff] }
 0x625   : > { %v13067_v54 = vrot.slane %v27802_v55, 1  ;;  %v13099_v0 = vshll.u32 %v26218_v28, 16  ;;  %v27814_v55 = vshrl.u32 %v25583_v33, 16 }
 0x626   : > { %v13065_v10 = vor.u32 %v13064_v47, %v13063_v15  ;;  %v13088_v15 = vrot.slane %v27813_v7, 2  ;;  %v13085_v47 = vor.u32 %v13084_v27, %v13083_v29  ;;  %v13546_v27 = vrot.slane %v22292_v13, 2 }
 0x627   : > { %v13101_v36 = vrot.slane %v13099_v0, 2 }
 0x628   : > { %v13066_v1 = vsel %vm27521_vm5, %v13061_v45, %v13065_v10 }
 0x62a   : > { %20282 = vmatmul.mubr.msk.bf16.gmra.mrb[28].mxu0 %vm494_vm2, %v13046_v48  ;;  %v13069_v48 = vor.u32 %v13068_v22, %v13067_v54  ;;  %v13091_v54 = vrot.slane %v27814_v55, 1  ;;  %v22296_v55 = vld [vmem:[#allocation2 + $0x80] sm:$0xff] }
 0x62b   : > { %20285 = vmatprep.mubr.msk.bf16.mxu0 %vm494_vm2, %v13050_v5  ;;  %v13076_v5 = vrot.slane %v27807_v16, 2  ;;  %v22288_v16 = vld [vmem:[#allocation2 + $0x40] sm:$0xff] }
 0x62c   : > { %v13070_v44 = vsel %vm27521_vm5, %v13065_v10, %v13069_v48  ;;  %v13074_v26 = vsel %vm27521_vm5, %v13069_v48, %v13073_v58  ;;  %v13096_v10 = vshrl.u32 %v26218_v28, 16 }
 0x62d   : > { %v13077_v11 = vor.u32 %v13076_v5, %v13075_v8  ;;  %v13538_v5 = vrot.slane %v22288_v16, 2 }
 0x62f   : > { %v13082_v42 = vsel %vm27521_vm5, %v13077_v11, %v13081_v18 }
 0x632   : > { %20286 = vmatmul.mubr.msk.bf16.gmra.mrb[32].mxu0 %vm494_vm2, %v13054_v40  ;;  %v13078_v40 = vsel %vm27521_vm5, %v13073_v58, %v13077_v11  ;;  %v13530_v58 = vld [vmem:[#allocation2 + $0x30] sm:$0xfc]  ;;  %v13542_v11 = vrot.slane %v22290_v9, 2 }
 0x633   : > { %20289 = vmatprep.mubr.msk.bf16.mxu0 %vm494_vm2, %v13058_v50  ;;  %v27812_v50 = vshrl.u32 %v25580_v12, 16  ;;  %v27815_v12 = vshll.u32 %v25583_v33, 16  ;;  %v13535_v33 = vrot.slane %v13530_v58, 2 }
 0x635   : > { %v13087_v41 = vrot.slane %v27812_v50, 1  ;;  %v13092_v4 = vrot.slane %v27815_v12, 2  ;;  %v22297_v12 = vld [vmem:[#allocation2 + $0x88] sm:$0xff] }
 0x637   : > { %v13089_v45 = vor.u32 %v13088_v15, %v13087_v41  ;;  %v13093_v32 = vor.u32 %v13092_v4, %v13091_v54  ;;  %v22294_v15 = vld [vmem:[#allocation2 + $0x70] sm:$0xff]  ;;  %v13554_v54 = vrot.slane %v22296_v55, 2  ;;  %v13556_v4 = vrot.slane %v22297_v12, 2 }
 0x638   : > { %v22310_v12 = vld [vmem:[#allocation2 + $0xf0] sm:$0xff] }
 0x639   : > { %v13090_v22 = vsel %vm27521_vm5, %v13085_v47, %v13089_v45  ;;  %v13094_v34 = vsel %vm27521_vm5, %v13089_v45, %v13093_v32  ;;  %v22295_v45 = vld [vmem:[#allocation2 + $0x78] sm:$0xff] }
 0x63a   : > { %20290 = vmatmul.mubr.msk.bf16.gmra.mrb[36].mxu0 %vm494_vm2, %v13062_v60  ;;  %v13086_v60 = vsel %vm27521_vm5, %v13081_v18, %v13085_v47  ;;  %v22291_v18 = vld [vmem:[#allocation2 + $0x58] sm:$0xff]  ;;  %v13550_v47 = vrot.slane %v22294_v15, 2 }
 0x63b   : > { %20293 = vmatprep.mubr.msk.bf16.mxu0 %vm494_vm2, %v13066_v1  ;;  %v13098_v1 = vrot.slane %v13096_v10, 1  ;;  %v13552_v10 = vrot.slane %v22295_v45, 2  ;;  %v22308_v45 = vld [vmem:[#allocation2 + $0xe0] sm:$0xff] }
 0x63d   : > { %v13102_v24 = vor.u32 %v13101_v36, %v13098_v1  ;;  %v13557_v1 = vsel %vm27520_vm6, %v13554_v54, %v13556_v4  ;;  %v22298_v36 = vld [vmem:[#allocation2 + $0x90] sm:$0xff] }
 0x63f   : > { %v13103_v48 = vsel %vm27521_vm5, %v13093_v32, %v13102_v24  ;;  %v13558_v32 = vrot.slane %v22298_v36, 2 }
 0x642   : > { %20294 = vmatmul.mubr.msk.bf16.gmra.mrb[40].mxu0 %vm494_vm2, %v13070_v44  ;;  %v22287_v44 = vld [vmem:[#allocation2 + $0x38] sm:$0xff] }
 0x643   : > { %20297 = vmatprep.mubr.msk.bf16.mxu0 %vm494_vm2, %v13074_v26  ;;  %v13536_v38 = vrot.slane %v22287_v44, 2  ;;  %v22289_v26 = vld [vmem:[#allocation2 + $0x48] sm:$0xff] }
 0x644   : > { %v13540_v39 = vrot.slane %v22289_v26, 2  ;;  %v22302_v26 = vld [vmem:[#allocation2 + $0xb0] sm:$0xff] }
 0x645   : > { %v13537_v8 = vsel %vm27520_vm6, %v13535_v33, %v13536_v38  ;;  %v13539_v19 = vsel %vm27520_vm6, %v13536_v38, %v13538_v5  ;;  %v22300_v33 = vld [vmem:[#allocation2 + $0xa0] sm:$0xff]  ;;  %v22301_v38 = vld [vmem:[#allocation2 + $0xa8] sm:$0xff] }
 0x646   : > { %v13541_v14 = vsel %vm27520_vm6, %v13538_v5, %v13540_v39  ;;  %v13543_v57 = vsel %vm27520_vm6, %v13540_v39, %v13542_v11  ;;  %v13562_v44 = vrot.slane %v22300_v33, 2  ;;  %v13566_v39 = vrot.slane %v22302_v26, 2 }
 0x64a   : > { %20298 = vmatmul.mubr.msk.bf16.gmra.mrb[44].mxu0 %vm494_vm2, %v13078_v40  ;;  %v13544_v40 = vrot.slane %v22291_v18, 2  ;;  %v22304_v18 = vld [vmem:[#allocation2 + $0xc0] sm:$0xff] }
 0x64b   : > { %20301 = vmatprep.mubr.msk.bf16.mxu0 %vm494_vm2, %v13082_v42  ;;  %v22293_v42 = vld [vmem:[#allocation2 + $0x68] sm:$0xff] }
 0x64c   : > { %v13545_v29 = vsel %vm27520_vm6, %v13542_v11, %v13544_v40  ;;  %v13548_v50 = vrot.slane %v22293_v42, 2  ;;  %v13547_v41 = vsel %vm27520_vm6, %v13544_v40, %v13546_v27  ;;  %v13570_v40 = vrot.slane %v22304_v18, 2  ;;  %v22306_v42 = vld [vmem:[#allocation2 + $0xd0] sm:$0xff] }
 0x64e   : > { %v13549_v7 = vsel %vm27520_vm6, %v13546_v27, %v13548_v50  ;;  %v13551_v0 = vsel %vm27520_vm6, %v13548_v50, %v13550_v47  ;;  %v13574_v50 = vrot.slane %v22306_v42, 2 }
 0x652   : > { %20302 = vmatmul.mubr.msk.bf16.gmra.mrb[48].mxu0 %vm494_vm2, %v13086_v60  ;;  %v13553_v60 = vsel %vm27520_vm6, %v13550_v47, %v13552_v10 }
 0x653   : > { %20305 = vmatprep.mubr.msk.bf16.mxu0 %vm494_vm2, %v13090_v22  ;;  %v13555_v22 = vsel %vm27520_vm6, %v13552_v10, %v13554_v54  ;;  %v13578_v10 = vrot.slane %v22308_v45, 2 }
 0x65a   : > { %20306 = vmatmul.mubr.msk.bf16.gmra.mrb[52].mxu0 %vm494_vm2, %v13094_v34 }
 0x65b   : > { %20309 = vmatprep.mubr.msk.bf16.mxu0 %vm494_vm2, %v13103_v48  ;;  %v13559_v48 = vsel %vm27520_vm6, %v13556_v4, %v13558_v32  ;;  %v13582_v4 = vrot.slane %v22310_v12, 2 }
 0x662   : > { %20310 = vmatmul.mubr.msk.bf16.gmra.mrb[56].mxu0 %vm494_vm2, %v13102_v24  ;;  %v22299_v24 = vld [vmem:[#allocation2 + $0x98] sm:$0xff] }
 0x663   : > { %20315 = vmatprep.mubr.msk.bf16.mxu0 %vm494_vm2, %v13537_v8  ;;  %v13560_v34 = vrot.slane %v22299_v24, 2  ;;  %v13564_v8 = vrot.slane %v22301_v38, 2  ;;  %v22312_v24 = vld [vmem:[#allocation2 + $0x100] sm:$0xff]  ;;  %v22314_v38 = vld [vmem:[#allocation2 + $0x110] sm:$0xff] }
 0x665   : > { %v13561_v58 = vsel %vm27520_vm6, %v13558_v32, %v13560_v34  ;;  %v13563_v16 = vsel %vm27520_vm6, %v13560_v34, %v13562_v44  ;;  %v13565_v5 = vsel %vm27520_vm6, %v13562_v44, %v13564_v8  ;;  %v13567_v9 = vsel %vm27520_vm6, %v13564_v8, %v13566_v39 }
 0x666   : > { %v13586_v34 = vrot.slane %v22312_v24, 2  ;;  %v13590_v8 = vrot.slane %v22314_v38, 2 }
 0x66a   : > { %20316 = vmatmul.mubr.msk.bf16.vlgmr.msra.gmra.mrb[0].mxu0 %vm494_vm2, %v13539_v19  ;;  %v22303_v19 = vld [vmem:[#allocation2 + $0xb8] sm:$0xff] }
 0x66b   : > { %20319 = vmatprep.mubr.msk.bf16.mxu0 %vm494_vm2, %v13541_v14  ;;  %v13568_v14 = vrot.slane %v22303_v19, 2  ;;  %v22327_v19 = vmov 0.0  }
 0x66c   : > { %20375 = vmatprep.subr.bf16.mxu1 %v22327_v19  ;;  %20377 = vmatprep.mubr.msk.bf16.mxu1 %vm22328_vm11, %v22327_v19 }
 0x66d   : > { %v13569_v11 = vsel %vm27520_vm6, %v13566_v39, %v13568_v14  ;;  %v13571_v13 = vsel %vm27520_vm6, %v13568_v14, %v13570_v40  ;;  %v22150_v39 = vld [vmem:[%s27285_s3 + $0x8] sm:$0xff]   ;;  %v26307_v14 = vld [vmem:[%s27284_s2] ss:$0 sm:$0xff] }
 0x66e   : > { %20376 = vmatpush3.bf16.msra.mxu1 %v22150_v39 }
 0x66f   : > { %20397 = vmatprep.subr.bf16.mxu1 %v22327_v19 }
 0x672   : > { %20320 = vmatmul.mubr.msk.bf16.gmra.mrb[4].mxu0 %vm494_vm2, %v13543_v57  ;;  %v22305_v57 = vld [vmem:[#allocation2 + $0xc8] sm:$0xff] }
 0x673   : > { %20323 = vmatprep.mubr.msk.bf16.mxu0 %vm494_vm2, %v13545_v29  ;;  %v13572_v29 = vrot.slane %v22305_v57, 2 }
 0x675   : > { %v13573_v27 = vsel %vm27520_vm6, %v13570_v40, %v13572_v29  ;;  %v13575_v15 = vsel %vm27520_vm6, %v13572_v29, %v13574_v50 }
 0x67a   : > { %20324 = vmatmul.mubr.msk.bf16.gmra.mrb[8].mxu0 %vm494_vm2, %v13547_v41  ;;  %v22307_v41 = vld [vmem:[#allocation2 + $0xd8] sm:$0xff] }
 0x67b   : > { %20327 = vmatprep.mubr.msk.bf16.mxu0 %vm494_vm2, %v13549_v7  ;;  %v13576_v7 = vrot.slane %v22307_v41, 2 }
 0x67d   : > { %v13577_v47 = vsel %vm27520_vm6, %v13574_v50, %v13576_v7  ;;  %v13579_v55 = vsel %vm27520_vm6, %v13576_v7, %v13578_v10 }
 0x682   : > { %20328 = vmatmul.mubr.msk.bf16.gmra.mrb[12].mxu0 %vm494_vm2, %v13551_v0  ;;  %v22309_v0 = vld [vmem:[#allocation2 + $0xe8] sm:$0xff] }
 0x683   : > { %20331 = vmatprep.mubr.msk.bf16.mxu0 %vm494_vm2, %v13553_v60  ;;  %v13580_v60 = vrot.slane %v22309_v0, 2 }
 0x685   : > { %v13581_v54 = vsel %vm27520_vm6, %v13578_v10, %v13580_v60  ;;  %v13583_v36 = vsel %vm27520_vm6, %v13580_v60, %v13582_v4 }
 0x68a   : > { %20332 = vmatmul.mubr.msk.bf16.gmra.mrb[16].mxu0 %vm494_vm2, %v13555_v22  ;;  %v22311_v22 = vld [vmem:[#allocation2 + $0xf8] sm:$0xff] }
 0x68b   : > { %20335 = vmatprep.mubr.msk.bf16.mxu0 %vm494_vm2, %v13557_v1  ;;  %v13584_v1 = vrot.slane %v22311_v22, 2 }
 0x68d   : > { %v13585_v32 = vsel %vm27520_vm6, %v13582_v4, %v13584_v1  ;;  %v13587_v33 = vsel %vm27520_vm6, %v13584_v1, %v13586_v34 }
 0x692   : > { %20336 = vmatmul.mubr.msk.bf16.gmra.mrb[20].mxu0 %vm494_vm2, %v13559_v48  ;;  %v22313_v48 = vld [vmem:[#allocation2 + $0x108] sm:$0xff] }
 0x693   : > { %20339 = vmatprep.mubr.msk.bf16.mxu0 %vm494_vm2, %v13561_v58  ;;  %v13588_v58 = vrot.slane %v22313_v48, 2 }
 0x695   : > { %v13589_v44 = vsel %vm27520_vm6, %v13586_v34, %v13588_v58 }
 0x69a   : > { %20340 = vmatmul.mubr.msk.bf16.gmra.mrb[24].mxu0 %vm494_vm2, %v13563_v16  ;;  %v13592_v16 = vrot.slane %v26218_v28, 2 }
 0x69b   : > { %20343 = vmatprep.mubr.msk.bf16.mxu0 %vm494_vm2, %v13565_v5  ;;  %v13591_v5 = vsel %vm27520_vm6, %v13588_v58, %v13590_v8 }
 0x69c   : > { %v13593_v26 = vsel %vm27520_vm6, %v13590_v8, %v13592_v16  ;;  %vm26473_vm6 = vmor %vm896_vm1, %vm14438_vm10  ;;  %vm14478_vm1 = vcmask 1046532   ;;  %vm14486_vm10 = vcmask 125955  }
 0x69d   : > { %vm26514_vm5 = vmor %vm4346_vm9, %vm14478_vm1 }
 0x6a2   : > { %20344 = vmatmul.mubr.msk.bf16.gmra.mrb[28].mxu0 %vm494_vm2, %v13567_v9 }
 0x6a3   : > { %20347 = vmatprep.mubr.msk.bf16.mxu0 %vm494_vm2, %v13569_v11 }
 0x6aa   : > { %20348 = vmatmul.mubr.msk.bf16.gmra.mrb[32].mxu0 %vm494_vm2, %v13571_v13 }
 0x6ab   : > { %20351 = vmatprep.mubr.msk.bf16.mxu0 %vm494_vm2, %v13573_v27  ;;  %v26316_v27 = vld [vmem:[%s27284_s2 + $0x1] ss:$0 sm:$0xff] }
 0x6b2   : > { %20352 = vmatmul.mubr.msk.bf16.gmra.mrb[36].mxu0 %vm494_vm2, %v13575_v15 }
 0x6b3   : > { %20355 = vmatprep.mubr.msk.bf16.mxu0 %vm494_vm2, %v13577_v47 }
 0x6ba   : > { %20356 = vmatmul.mubr.msk.bf16.gmra.mrb[40].mxu0 %vm494_vm2, %v13579_v55 }
 0x6bb   : > { %20359 = vmatprep.mubr.msk.bf16.mxu0 %vm494_vm2, %v13581_v54 }
 0x6c2   : > { %20360 = vmatmul.mubr.msk.bf16.gmra.mrb[44].mxu0 %vm494_vm2, %v13583_v36 }
 0x6c3   : > { %20363 = vmatprep.mubr.msk.bf16.mxu0 %vm494_vm2, %v13585_v32 }
 0x6ca   : > { %20364 = vmatmul.mubr.msk.bf16.gmra.mrb[48].mxu0 %vm494_vm2, %v13587_v33 }
 0x6cb   : > { %20367 = vmatprep.mubr.msk.bf16.mxu0 %vm494_vm2, %v13589_v44 }
 0x6d2   : > { %20368 = vmatmul.mubr.msk.bf16.gmra.mrb[52].mxu0 %vm494_vm2, %v13591_v5 }
 0x6d3   : > { %20371 = vmatprep.mubr.msk.bf16.mxu0 %vm494_vm2, %v13593_v26 }
 0x6da   : > { %20372 = vmatmul.mubr.msk.bf16.gmra.mrb[56].mxu0 %vm494_vm2, %v13592_v16  ;;  %vm14406_vm2 = vcmask 125953  }
 0x73d   : > { %v20317_v28 = vpop.f32.mrb[0].mxu0 }
 0x73e   : > { %v20695_v9 = vadd.f32 %v20317_v28, %v25738_v43  ;;  %v13721_v11 = vpop.f32.mrb[1].mxu0 }
 0x73f   : > { %v20696_v18 = vadd.f32 %v13721_v11, %v25740_v63  ;;  %v20318_v40 = vpop.f32.mrb[2].mxu0  ;;  %v26324_v63 = vld [vmem:[%s27284_s2 + $0x2] ss:$0 sm:$0xff] }
 0x740   : > { %v14029_v57 = vadd.f32 %v20695_v9, %v26307_v14  ;;  %v20697_v29 = vadd.f32 %v20318_v40, %v25743_v20  ;;  %v13724_v13 = vpop.f32.mrb[3].mxu0 }
 0x741   : > { %v14027_v42 = vadd.f32 %v20696_v18, %v26307_v14  ;;  %v20698_v50 = vadd.f32 %v13724_v13, %v25747_v53 }
 0x742   : > { %v14089_v41 = vmax.f32 %v14029_v57, 0.0  ;;  %v14030_v43 = vadd.f32 %v20697_v29, %v26307_v14 }
 0x743   : > { %v14087_v7 = vmax.f32 %v14027_v42, 0.0  ;;  %v14028_v20 = vadd.f32 %v20698_v50, %v26307_v14 }
 0x744   : > { %v14153_v15 = vmul.f32 %v26316_v27, %v14089_v41  ;;  %v14090_v47 = vmax.f32 %v14030_v43, 0.0 }
 0x745   : > { %v14151_v45 = vmul.f32 %v26316_v27, %v14087_v7  ;;  %v14088_v10 = vmax.f32 %v14028_v20, 0.0  ;;  %v20321_v0 = vpop.f32.mrb[4].mxu0 }
 0x746   : > { %v14217_v53 = vadd.f32 %v26324_v63, %v14153_v15  ;;  %v14154_v60 = vmul.f32 %v26316_v27, %v14090_v47  ;;  %v20699_v55 = vadd.f32 %v20321_v0, %v25762_v3  ;;  %v13737_v54 = vpop.f32.mrb[5].mxu0 }
 0x747   : > { %v14215_v12 = vadd.f32 %v26324_v63, %v14151_v45  ;;  %v14152_v4 = vmul.f32 %v26316_v27, %v14088_v10  ;;  %v20700_v22 = vadd.f32 %v13737_v54, %v25764_v35  ;;  %v20322_v1 = vpop.f32.mrb[6].mxu0 }
 0x748   : > { %14278 = vst.msk [vmem:[#allocation3 + $0x10] sm:$0xff] %vm14275_vm12, %v14217_v53  ;;  %v14218_v36 = vadd.f32 %v26324_v63, %v14154_v60  ;;  %v14033_v32 = vadd.f32 %v20699_v55, %v26307_v14  ;;  %v20701_v24 = vadd.f32 %v20322_v1, %v25767_v52  ;;  %v13740_v34 = vpop.f32.mrb[7].mxu0 }
 0x749   : > { %14276 = vst.msk [vmem:[#allocation3] sm:$0xff] %vm14275_vm12, %v14215_v12  ;;  %v14216_v3 = vadd.f32 %v26324_v63, %v14152_v4  ;;  %v14031_v48 = vadd.f32 %v20700_v22, %v26307_v14  ;;  %v20702_v58 = vadd.f32 %v13740_v34, %v25771_v31 }
 0x74a   : > { %14279 = vst.msk [vmem:[#allocation3 + $0x18] sm:$0xff] %vm14275_vm12, %v14218_v36  ;;  %v14093_v35 = vmax.f32 %v14033_v32, 0.0  ;;  %v14034_v33 = vadd.f32 %v20701_v24, %v26307_v14 }
 0x74b   : > { %14277 = vst.msk [vmem:[#allocation3 + $0x8] sm:$0xff] %vm14275_vm12, %v14216_v3  ;;  %v14091_v44 = vmax.f32 %v14031_v48, 0.0  ;;  %v14032_v38 = vadd.f32 %v20702_v58, %v26307_v14 }
 0x74c   : > { %v14157_v52 = vmul.f32 %v26316_v27, %v14093_v35  ;;  %v14094_v8 = vmax.f32 %v14034_v33, 0.0 }
 0x74d   : > { %v14155_v16 = vmul.f32 %v26316_v27, %v14091_v44  ;;  %v14092_v5 = vmax.f32 %v14032_v38, 0.0  ;;  %v20325_v26 = vpop.f32.mrb[8].mxu0 }
 0x74e   : > { %v14221_v39 = vadd.f32 %v26324_v63, %v14157_v52  ;;  %v14158_v31 = vmul.f32 %v26316_v27, %v14094_v8  ;;  %v20703_v28 = vadd.f32 %v20325_v26, %v25786_v49  ;;  %v13753_v9 = vpop.f32.mrb[9].mxu0 }
 0x74f   : > { %v14219_v11 = vadd.f32 %v26324_v63, %v14155_v16  ;;  %v14156_v18 = vmul.f32 %v26316_v27, %v14092_v5  ;;  %v20704_v40 = vadd.f32 %v13753_v9, %v25788_v51  ;;  %v20326_v13 = vpop.f32.mrb[10].mxu0  ;;  %v14339_v60 = vld [vmem:[#allocation3 + $0x10] ss:$2 sm:$0x3] }
 0x750   : > { %14282 = vst.msk [vmem:[#allocation3 + $0x30] sm:$0xff] %vm14275_vm12, %v14221_v39  ;;  %v14222_v57 = vadd.f32 %v26324_v63, %v14158_v31  ;;  %v14037_v29 = vadd.f32 %v20703_v28, %v26307_v14  ;;  %v20705_v50 = vadd.f32 %v20326_v13, %v25791_v62  ;;  %v13756_v41 = vpop.f32.mrb[11].mxu0  ;;  %v14343_v4 = vld [vmem:[#allocation3 + $0x11] ss:$2 sm:$0x3] }
 0x751   : > { %14280 = vst.msk [vmem:[#allocation3 + $0x20] sm:$0xff] %vm14275_vm12, %v14219_v11  ;;  %v14220_v42 = vadd.f32 %v26324_v63, %v14156_v18  ;;  %v14035_v49 = vadd.f32 %v20704_v40, %v26307_v14  ;;  %v20706_v51 = vadd.f32 %v13756_v41, %v25795_v23  ;;  %v14353_v52 = vmax.f32 %v14339_v60, %v14343_v4 }
 0x752   : > { %14283 = vst.msk [vmem:[#allocation3 + $0x38] sm:$0xff] %vm14275_vm12, %v14222_v57  ;;  %v14097_v43 = vmax.f32 %v14037_v29, 0.0  ;;  %v14038_v20 = vadd.f32 %v20705_v50, %v26307_v14  ;;  %v14337_v45 = vld [vmem:[#allocation3] ss:$2 sm:$0xff]  ;;  %v14341_v10 = vld [vmem:[#allocation3 + $0x1] ss:$2 sm:$0xff] }
 0x753   : > { %14281 = vst.msk [vmem:[#allocation3 + $0x28] sm:$0xff] %vm14275_vm12, %v14220_v42  ;;  %v14095_v7 = vmax.f32 %v14035_v49, 0.0  ;;  %v14036_v47 = vadd.f32 %v20706_v51, %v26307_v14  ;;  %v14352_v24 = vmax.f32 %v14337_v45, %v14341_v10 }
 0x754   : > { %v14161_v15 = vmul.f32 %v26316_v27, %v14097_v43  ;;  %v14098_v62 = vmax.f32 %v14038_v20, 0.0 }
 0x755   : > { %v14159_v0 = vmul.f32 %v26316_v27, %v14095_v7  ;;  %v20329_v53 = vpop.f32.mrb[12].mxu0  ;;  %v14096_v54 = vmax.f32 %v14036_v47, 0.0 }
 0x756   : > { %v14225_v55 = vadd.f32 %v26324_v63, %v14161_v15  ;;  %v20707_v23 = vadd.f32 %v20329_v53, %v25810_v17  ;;  %v13769_v12 = vpop.f32.mrb[13].mxu0  ;;  %v14162_v1 = vmul.f32 %v26316_v27, %v14098_v62 }
 0x757   : > { %v14223_v22 = vadd.f32 %v26324_v63, %v14159_v0  ;;  %v20708_v36 = vadd.f32 %v13769_v12, %v25812_v21  ;;  %v20330_v32 = vpop.f32.mrb[14].mxu0  ;;  %v14160_v48 = vmul.f32 %v26316_v27, %v14096_v54 }
 0x758   : > { %v14345_v34 = vld [vmem:[#allocation3 + $0x18] ss:$2 sm:$0xff]  ;;  %v14349_v3 = vld [vmem:[#allocation3 + $0x19] ss:$2 sm:$0xff]  ;;  %14286 = vst.msk [vmem:[#allocation3 + $0x50] sm:$0xff] %vm14275_vm12, %v14225_v55  ;;  %v14041_v58 = vadd.f32 %v20707_v23, %v26307_v14  ;;  %v20709_v17 = vadd.f32 %v20330_v32, %v25815_v25  ;;  %v13772_v35 = vpop.f32.mrb[15].mxu0  ;;  %v14226_v44 = vadd.f32 %v26324_v63, %v14162_v1 }
 0x759   : > { %v14354_v33 = vmax.f32 %v14345_v34, %v14349_v3  ;;  %14284 = vst.msk [vmem:[#allocation3 + $0x40] sm:$0xff] %vm14275_vm12, %v14223_v22  ;;  %v14039_v21 = vadd.f32 %v20708_v36, %v26307_v14  ;;  %v20710_v38 = vadd.f32 %v13772_v35, %v25819_v2  ;;  %v14224_v5 = vadd.f32 %v26324_v63, %v14160_v48  ;;  %v14370_v53 = vld [vmem:[#allocation3 + $0x30] ss:$2 sm:$0xff]  ;;  %v14374_v60 = vld [vmem:[#allocation3 + $0x31] ss:$2 sm:$0xff] }
 0x75a   : > { %v14347_v8 = vld [vmem:[#allocation3 + $0x28] ss:$2 sm:$0x3]  ;;  %v14351_v16 = vld [vmem:[#allocation3 + $0x29] ss:$2 sm:$0x3]  ;;  %v14042_v26 = vadd.f32 %v20709_v17, %v26307_v14 }
 0x75b   : > { %v14356_v39 = vmax.f32 %v14352_v24, %v14354_v33  ;;  %v14355_v31 = vmax.f32 %v14347_v8, %v14351_v16  ;;  %14287 = vst.msk [vmem:[#allocation3 + $0x58] sm:$0xff] %vm14275_vm12, %v14226_v44  ;;  %v14101_v25 = vmax.f32 %v14041_v58, 0.0  ;;  %v14099_v28 = vmax.f32 %v14039_v21, 0.0  ;;  %14285 = vst.msk [vmem:[#allocation3 + $0x48] sm:$0xff] %vm14275_vm12, %v14224_v5  ;;  %v27817_v1 = vld [vmem:[#allocation16_spill] sm:$0xff] }
 0x75c   : > { %v14102_v9 = vmax.f32 %v14042_v26, 0.0  ;;  %v14040_v11 = vadd.f32 %v20710_v38, %v26307_v14  ;;  %v14385_v58 = vmax.f32 %v14370_v53, %v14374_v60  ;;  %v27818_v26 = vld [vmem:[#allocation24_spill] sm:$0xff] }
 0x75d   : > { %v17935_v2 = vpack.c.bf16 %v14356_v39, %v14356_v39  ;;  %v14357_v18 = vmax.f32 %v14353_v52, %v14355_v31  ;;  %v14165_v40 = vmul.f32 %v26316_v27, %v14101_v25  ;;  %v14163_v57 = vmul.f32 %v26316_v27, %v14099_v28  ;;  %v20333_v29 = vpop.f32.mrb[16].mxu0 }
 0x75e   : > { %v14166_v13 = vmul.f32 %v26316_v27, %v14102_v9  ;;  %v14100_v42 = vmax.f32 %v14040_v11, 0.0  ;;  %v20711_v49 = vadd.f32 %v20333_v29, %v25834_v30  ;;  %v13785_v50 = vpop.f32.mrb[17].mxu0  ;;  %v27816_v30 = vld [vmem:[#allocation15_spill] sm:$0xff]  ;;  %v27819_v11 = vld [vmem:[#allocation14_spill] sm:$0xff] }
 0x75f   : > { %14366 = vst.msk [vmem:[#allocation4] sm:$0xf] %vm14335_vm13, %v17935_v2  ;;  %v17936_v41 = vpack.c.bf16 %v14357_v18, %v14357_v18  ;;  %v14229_v43 = vadd.f32 %v26324_v63, %v14165_v40  ;;  %v14227_v51 = vadd.f32 %v26324_v63, %v14163_v57  ;;  %v20712_v7 = vadd.f32 %v13785_v50, %v25836_v59  ;;  %v20334_v20 = vpop.f32.mrb[18].mxu0 }
 0x760   : > { %v14372_v15 = vld [vmem:[#allocation3 + $0x40] ss:$2 sm:$0x3]  ;;  %v14376_v47 = vld [vmem:[#allocation3 + $0x41] ss:$2 sm:$0x3]  ;;  %v14230_v45 = vadd.f32 %v26324_v63, %v14166_v13  ;;  %v14164_v10 = vmul.f32 %v26316_v27, %v14100_v42  ;;  %v14045_v0 = vadd.f32 %v20711_v49, %v26307_v14  ;;  %v20713_v62 = vadd.f32 %v20334_v20, %v27816_v30 }
 0x761   : > { %14368 = vst.msk [vmem:[#allocation4 + $0x4] sm:$0x1] %vm14367_vm14, %v17936_v41  ;;  %v14386_v55 = vmax.f32 %v14372_v15, %v14376_v47  ;;  %v14043_v59 = vadd.f32 %v20712_v7, %v26307_v14  ;;  %v13788_v54 = vpop.f32.mrb[19].mxu0  ;;  %v27820_v49 = vld [vmem:[#allocation10_spill] sm:$0xff] }
 0x762   : > { %14290 = vst.msk [vmem:[#allocation3 + $0x70] sm:$0xff] %vm14275_vm12, %v14229_v43  ;;  %14288 = vst.msk [vmem:[#allocation3 + $0x60] sm:$0xff] %vm14275_vm12, %v14227_v51  ;;  %v14380_v23 = vld [vmem:[#allocation3 + $0x58] ss:$2 sm:$0x3]  ;;  %v14228_v4 = vadd.f32 %v26324_v63, %v14164_v10  ;;  %v14046_v22 = vadd.f32 %v20713_v62, %v26307_v14  ;;  %v20714_v36 = vadd.f32 %v13788_v54, %v27817_v1  ;;  %v14105_v3 = vmax.f32 %v14045_v0, 0.0 }
 0x763   : > { %v14384_v12 = vld [vmem:[#allocation3 + $0x59] ss:$2 sm:$0x3]  ;;  %14291 = vst.msk [vmem:[#allocation3 + $0x78] sm:$0xff] %vm14275_vm12, %v14230_v45  ;;  %v14378_v24 = vld [vmem:[#allocation3 + $0x48] ss:$2 sm:$0xff] }
 0x764   : > { %v14388_v32 = vmax.f32 %v14380_v23, %v14384_v12  ;;  %v14382_v34 = vld [vmem:[#allocation3 + $0x49] ss:$2 sm:$0xff]  ;;  %v14103_v48 = vmax.f32 %v14043_v59, 0.0  ;;  %14289 = vst.msk [vmem:[#allocation3 + $0x68] sm:$0xff] %vm14275_vm12, %v14228_v4  ;;  %v14106_v35 = vmax.f32 %v14046_v22, 0.0  ;;  %v14044_v33 = vadd.f32 %v20714_v36, %v26307_v14  ;;  %v27821_v20 = vld [vmem:[#allocation18_spill] sm:$0xff] }
 0x765   : > { %v14387_v17 = vmax.f32 %v14378_v24, %v14382_v34  ;;  %v14169_v21 = vmul.f32 %v26316_v27, %v14105_v3  ;;  %v20337_v52 = vpop.f32.mrb[20].mxu0  ;;  %v27824_v36 = vld [vmem:[#allocation23_spill] sm:$0xff] }
 0x766   : > { %v14390_v44 = vmax.f32 %v14386_v55, %v14388_v32  ;;  %v14167_v38 = vmul.f32 %v26316_v27, %v14103_v48  ;;  %v14170_v16 = vmul.f32 %v26316_v27, %v14106_v35  ;;  %v14104_v5 = vmax.f32 %v14044_v33, 0.0  ;;  %v13801_v31 = vpop.f32.mrb[21].mxu0 }
 0x767   : > { %v14389_v8 = vmax.f32 %v14385_v58, %v14387_v17  ;;  %v20715_v39 = vadd.f32 %v20337_v52, %v27818_v26  ;;  %v14233_v28 = vadd.f32 %v26324_v63, %v14169_v21  ;;  %v20716_v2 = vadd.f32 %v13801_v31, %v27819_v11  ;;  %v20338_v18 = vpop.f32.mrb[22].mxu0  ;;  %v27825_v58 = vld [vmem:[#allocation17_spill] sm:$0xff] }
 0x768   : > { %v17938_v25 = vpack.c.bf16 %v14390_v44, %v14390_v44  ;;  %v14231_v9 = vadd.f32 %v26324_v63, %v14167_v38  ;;  %v14234_v57 = vadd.f32 %v26324_v63, %v14170_v16  ;;  %v14168_v29 = vmul.f32 %v26316_v27, %v14104_v5  ;;  %v13804_v41 = vpop.f32.mrb[23].mxu0 }
 0x769   : > { %v17937_v40 = vpack.c.bf16 %v14389_v8, %v14389_v8  ;;  %v14049_v13 = vadd.f32 %v20715_v39, %v26307_v14  ;;  %14294 = vst.msk [vmem:[#allocation3 + $0x90] sm:$0xff] %vm14275_vm12, %v14233_v28  ;;  %v14047_v42 = vadd.f32 %v20716_v2, %v26307_v14  ;;  %v20717_v50 = vadd.f32 %v20338_v18, %v27820_v49  ;;  %v14413_v4 = vld [vmem:[#allocation3 + $0x70] ss:$2 sm:$0x3] }
 0x76a   : > { %14292 = vst.msk [vmem:[#allocation3 + $0x80] sm:$0xff] %vm14275_vm12, %v14231_v9  ;;  %14295 = vst.msk [vmem:[#allocation3 + $0x98] sm:$0xff] %vm14275_vm12, %v14234_v57  ;;  %v14232_v51 = vadd.f32 %v26324_v63, %v14168_v29  ;;  %v20718_v15 = vadd.f32 %v13804_v41, %v27821_v20  ;;  %v14402_v0 = vrot.slane %v17938_v25, 7  ;;  %v14417_v34 = vld [vmem:[#allocation3 + $0x71] ss:$2 sm:$0x3] }
 0x76b   : > { %v14400_v43 = vrot.slane %v17937_v40, 7  ;;  %v14109_v7 = vmax.f32 %v14049_v13, 0.0  ;;  %v14107_v45 = vmax.f32 %v14047_v42, 0.0  ;;  %v14050_v10 = vadd.f32 %v20717_v50, %v26307_v14  ;;  %v14411_v60 = vld [vmem:[#allocation3 + $0x60] ss:$2 sm:$0xff] }
 0x76c   : > { %14293 = vst.msk [vmem:[#allocation3 + $0x88] sm:$0xff] %vm14275_vm12, %v14232_v51  ;;  %v14048_v53 = vadd.f32 %v20718_v15, %v26307_v14  ;;  %v14415_v55 = vld [vmem:[#allocation3 + $0x61] ss:$2 sm:$0xff]  ;;  %v14427_v18 = vmax.f32 %v14413_v4, %v14417_v34 }
 0x76d   : > { %v14401_v30 = vrot.slane %v14400_v43, 4  ;;  %14407 = vst.msk [vmem:[#allocation4 + $0x4] sm:$0xe] %vm14406_vm2, %v14400_v43  ;;  %v14173_v62 = vmul.f32 %v26316_v27, %v14109_v7  ;;  %v14171_v59 = vmul.f32 %v26316_v27, %v14107_v45  ;;  %v14110_v54 = vmax.f32 %v14050_v10, 0.0  ;;  %v20341_v23 = vpop.f32.mrb[24].mxu0  ;;  %v27826_v8 = vld [vmem:[#allocation20_spill] sm:$0xff] }
 0x76e   : > { %v14108_v1 = vmax.f32 %v14048_v53, 0.0  ;;  %v20719_v32 = vadd.f32 %v20341_v23, %v27824_v36  ;;  %v13817_v24 = vpop.f32.mrb[25].mxu0  ;;  %v14426_v33 = vmax.f32 %v14411_v60, %v14415_v55  ;;  %v27827_v25 = vld [vmem:[#allocation19_spill] sm:$0xff]  ;;  %v27829_v55 = vld [vmem:[#allocation12_spill] sm:$0xff]  ;;  %v27830_v36 = vld [vmem:[#allocation9_spill] sm:$0xff] }
 0x76f   : > { %v14403_v12 = vsel %vm26428_vm7, %v14401_v30, %v14402_v0  ;;  %v14237_v22 = vadd.f32 %v26324_v63, %v14173_v62  ;;  %v14235_v3 = vadd.f32 %v26324_v63, %v14171_v59  ;;  %v14174_v48 = vmul.f32 %v26316_v27, %v14110_v54  ;;  %v20342_v35 = vpop.f32.mrb[26].mxu0  ;;  %v27828_v53 = vld [vmem:[#allocation11_spill] sm:$0xff] }
 0x770   : > { %14409 = vst.msk [vmem:[#allocation4 + $0x8] sm:$0x3] %vm14408_vm8, %v14403_v12  ;;  %v20720_v17 = vadd.f32 %v13817_v24, %v27825_v58  ;;  %v14172_v38 = vmul.f32 %v26316_v27, %v14108_v1  ;;  %v14053_v52 = vadd.f32 %v20719_v32, %v26307_v14  ;;  %v20721_v16 = vadd.f32 %v20342_v35, %v27826_v8  ;;  %v13820_v5 = vpop.f32.mrb[27].mxu0  ;;  %v27833_v8 = vld [vmem:[#allocation21_spill] sm:$0xff] }
 0x771   : > { %v14419_v44 = vld [vmem:[#allocation3 + $0x78] ss:$2 sm:$0xff]  ;;  %v14423_v21 = vld [vmem:[#allocation3 + $0x79] ss:$2 sm:$0xff]  ;;  %14298 = vst.msk [vmem:[#allocation3 + $0xb0] sm:$0xff] %vm14275_vm12, %v14237_v22  ;;  %14296 = vst.msk [vmem:[#allocation3 + $0xa0] sm:$0xff] %vm14275_vm12, %v14235_v3  ;;  %v14238_v39 = vadd.f32 %v26324_v63, %v14174_v48  ;;  %v20722_v28 = vadd.f32 %v13820_v5, %v27827_v25 }
 0x772   : > { %v14428_v26 = vmax.f32 %v14419_v44, %v14423_v21  ;;  %v14051_v31 = vadd.f32 %v20720_v17, %v26307_v14  ;;  %v14236_v9 = vadd.f32 %v26324_v63, %v14172_v38  ;;  %v14113_v11 = vmax.f32 %v14053_v52, 0.0  ;;  %v14451_v34 = vld [vmem:[#allocation3 + $0x90] ss:$2 sm:$0xff] }
 0x773   : > { %v14054_v2 = vadd.f32 %v20721_v16, %v26307_v14  ;;  %v14421_v57 = vld [vmem:[#allocation3 + $0x88] ss:$2 sm:$0x3]  ;;  %v14425_v29 = vld [vmem:[#allocation3 + $0x89] ss:$2 sm:$0x3]  ;;  %v14052_v13 = vadd.f32 %v20722_v28, %v26307_v14 }
 0x774   : > { %v14430_v40 = vmax.f32 %v14426_v33, %v14428_v26  ;;  %14299 = vst.msk [vmem:[#allocation3 + $0xb8] sm:$0xff] %vm14275_vm12, %v14238_v39  ;;  %v14429_v42 = vmax.f32 %v14421_v57, %v14425_v29  ;;  %14297 = vst.msk [vmem:[#allocation3 + $0xa8] sm:$0xff] %vm14275_vm12, %v14236_v9  ;;  %v14177_v49 = vmul.f32 %v26316_v27, %v14113_v11  ;;  %v14111_v50 = vmax.f32 %v14051_v31, 0.0  ;;  %v14455_v33 = vld [vmem:[#allocation3 + $0x91] ss:$2 sm:$0xff] }
 0x775   : > { %v14114_v41 = vmax.f32 %v14054_v2, 0.0  ;;  %v14112_v51 = vmax.f32 %v14052_v13, 0.0  ;;  %v20345_v7 = vpop.f32.mrb[28].mxu0  ;;  %v14466_v2 = vmax.f32 %v14451_v34, %v14455_v33 }
 0x776   : > { %v17939_v43 = vpack.c.bf16 %v14430_v40, %v14430_v40  ;;  %v14431_v20 = vmax.f32 %v14427_v18, %v14429_v42  ;;  %v14241_v15 = vadd.f32 %v26324_v63, %v14177_v49  ;;  %v14175_v45 = vmul.f32 %v26316_v27, %v14111_v50  ;;  %v13833_v0 = vpop.f32.mrb[29].mxu0  ;;  %v27834_v50 = vld [vmem:[#allocation22_spill] sm:$0xff] }
 0x777   : > { %v14178_v10 = vmul.f32 %v26316_v27, %v14114_v41  ;;  %v14176_v62 = vmul.f32 %v26316_v27, %v14112_v51  ;;  %v20723_v60 = vadd.f32 %v20345_v7, %v27828_v53  ;;  %v20724_v59 = vadd.f32 %v13833_v0, %v27829_v55  ;;  %v20346_v54 = vpop.f32.mrb[30].mxu0 }
 0x778   : > { %v14440_v30 = vrot.slane %v17939_v43, 6  ;;  %v17940_v23 = vpack.c.bf16 %v14431_v20, %v14431_v20  ;;  %v14453_v12 = vld [vmem:[#allocation3 + $0xa0] ss:$2 sm:$0x3]  ;;  %14302 = vst.msk [vmem:[#allocation3 + $0xd0] sm:$0xff] %vm14275_vm12, %v14241_v15  ;;  %v14239_v22 = vadd.f32 %v26324_v63, %v14175_v45  ;;  %v20725_v32 = vadd.f32 %v20346_v54, %v27830_v36  ;;  %v13836_v35 = vpop.f32.mrb[31].mxu0 }
 0x779   : > { %v14457_v4 = vld [vmem:[#allocation3 + $0xa1] ss:$2 sm:$0x3]  ;;  %v14242_v1 = vadd.f32 %v26324_v63, %v14178_v10  ;;  %v14240_v58 = vadd.f32 %v26324_v63, %v14176_v62  ;;  %v14057_v17 = vadd.f32 %v20723_v60, %v26307_v14  ;;  %v14055_v38 = vadd.f32 %v20724_v59, %v26307_v14  ;;  %v27835_v20 = vld [vmem:[#allocation13_spill] sm:$0xff]  ;;  %v26495_v45 = vld [vmem:[#allocation4 + $0x4] sm:$0xf] }
 0x77a   : > { %v14441_v24 = vrot.slane %v14440_v30, 4  ;;  %14447 = vst.msk [vmem:[#allocation4 + $0x8] sm:$0xc] %vm14446_vm0, %v14440_v30  ;;  %v14467_v48 = vmax.f32 %v14453_v12, %v14457_v4  ;;  %v14442_v44 = vrot.slane %v17940_v23, 6  ;;  %v14058_v52 = vadd.f32 %v20725_v32, %v26307_v14  ;;  %v27836_v23 = vld [vmem:[#allocation25_spill] sm:$0xff]  ;;  %v27837_v4 = vld [vmem:[#allocation26_spill] sm:$0xff] }
 0x77b   : > { %v14461_v21 = vld [vmem:[#allocation3 + $0xb8] ss:$2 sm:$0x3]  ;;  %14300 = vst.msk [vmem:[#allocation3 + $0xc0] sm:$0xff] %vm14275_vm12, %v14239_v22  ;;  %14303 = vst.msk [vmem:[#allocation3 + $0xd8] sm:$0xff] %vm14275_vm12, %v14242_v1  ;;  %v20726_v16 = vadd.f32 %v13836_v35, %v27833_v8  ;;  %v14117_v39 = vmax.f32 %v14057_v17, 0.0 }
 0x77c   : > { %v14465_v5 = vld [vmem:[#allocation3 + $0xb9] ss:$2 sm:$0x3]  ;;  %v14459_v26 = vld [vmem:[#allocation3 + $0xa8] ss:$2 sm:$0xff]  ;;  %14301 = vst.msk [vmem:[#allocation3 + $0xc8] sm:$0xff] %vm14275_vm12, %v14240_v58  ;;  %v14443_v31 = vsel %vm26473_vm6, %v14441_v24, %v14442_v44 }
 0x77d   : > { %v14469_v25 = vmax.f32 %v14461_v21, %v14465_v5  ;;  %v14463_v28 = vld [vmem:[#allocation3 + $0xa9] ss:$2 sm:$0xff]  ;;  %v14115_v9 = vmax.f32 %v14055_v38, 0.0  ;;  %v14118_v11 = vmax.f32 %v14058_v52, 0.0  ;;  %14449 = vst.msk [vmem:[#allocation4 + $0xc] sm:$0x7] %vm14448_vm15, %v14443_v31  ;;  %v14181_v40 = vmul.f32 %v26316_v27, %v14117_v39 }
 0x77e   : > { %v14468_v18 = vmax.f32 %v14459_v26, %v14463_v28  ;;  %v14056_v57 = vadd.f32 %v20726_v16, %v26307_v14  ;;  %v20349_v29 = vpop.f32.mrb[32].mxu0  ;;  %v14697_v1 = vld [vmem:[#allocation4] sm:$0xf]  ;;  %v27840_v31 = vld [vmem:[#allocation27_spill] sm:$0xff] }
 0x77f   : > { %v14471_v13 = vmax.f32 %v14467_v48, %v14469_v25  ;;  %v14179_v42 = vmul.f32 %v26316_v27, %v14115_v9  ;;  %v14182_v49 = vmul.f32 %v26316_v27, %v14118_v11  ;;  %v20727_v41 = vadd.f32 %v20349_v29, %v27834_v50  ;;  %v13849_v43 = vpop.f32.mrb[33].mxu0  ;;  %v27841_v11 = vld [vmem:[#allocation28_spill] sm:$0xff] }
 0x780   : > { %v14470_v51 = vmax.f32 %v14466_v2, %v14468_v18  ;;  %v14245_v7 = vadd.f32 %v26324_v63, %v14181_v40  ;;  %v20728_v15 = vadd.f32 %v13849_v43, %v27835_v20  ;;  %v20350_v62 = vpop.f32.mrb[34].mxu0  ;;  %v14116_v60 = vmax.f32 %v14056_v57, 0.0  ;;  %v27842_v20 = vld [vmem:[#allocation29_spill] sm:$0xff] }
 0x781   : > { %v17942_v10 = vpack.c.bf16 %v14471_v13, %v14471_v13  ;;  %v14243_v0 = vadd.f32 %v26324_v63, %v14179_v42  ;;  %v14246_v30 = vadd.f32 %v26324_v63, %v14182_v49  ;;  %v14061_v55 = vadd.f32 %v20727_v41, %v26307_v14  ;;  %v13852_v54 = vpop.f32.mrb[35].mxu0 }
 0x782   : > { %v17941_v53 = vpack.c.bf16 %v14470_v51, %v14470_v51  ;;  %14306 = vst.msk [vmem:[#allocation3 + $0xf0] sm:$0xff] %vm14275_vm12, %v14245_v7  ;;  %v14059_v59 = vadd.f32 %v20728_v15, %v26307_v14  ;;  %v20729_v12 = vadd.f32 %v20350_v62, %v27836_v23  ;;  %v20730_v22 = vadd.f32 %v13852_v54, %v27837_v4 }
 0x783   : > { %14304 = vst.msk [vmem:[#allocation3 + $0xe0] sm:$0xff] %vm14275_vm12, %v14243_v0  ;;  %14307 = vst.msk [vmem:[#allocation3 + $0xf8] sm:$0xff] %vm14275_vm12, %v14246_v30  ;;  %v14180_v32 = vmul.f32 %v26316_v27, %v14116_v60  ;;  %v14121_v24 = vmax.f32 %v14061_v55, 0.0  ;;  %v26508_v34 = vcombine.low %v14697_v1, %v26495_v45  ;;  %v14482_v33 = vrot.slane %v17942_v10, 5  ;;  %v14490_v21 = vld [vmem:[#allocation3 + $0xc0] ss:$2 sm:$0xff] }
 0x784   : > { %v14480_v36 = vrot.slane %v17941_v53, 5  ;;  %v14119_v48 = vmax.f32 %v14059_v59, 0.0  ;;  %v14062_v58 = vadd.f32 %v20729_v12, %v26307_v14  ;;  %v14060_v17 = vadd.f32 %v20730_v22, %v26307_v14  ;;  %v14494_v16 = vld [vmem:[#allocation3 + $0xc1] ss:$2 sm:$0xff] }
 0x785   : > { %v14244_v38 = vadd.f32 %v26324_v63, %v14180_v32  ;;  %v14185_v52 = vmul.f32 %v26316_v27, %v14121_v24  ;;  %v20353_v8 = vpop.f32.mrb[36].mxu0  ;;  %v14741_v40 = vshll.u32 %v26508_v34, 16  ;;  %v14505_v41 = vmax.f32 %v14490_v21, %v14494_v16  ;;  %v27843_v10 = vld [vmem:[#allocation30_spill] sm:$0xff]  ;;  %v14492_v30 = vld [vmem:[#allocation3 + $0xd0] ss:$2 sm:$0x3] }
 0x786   : > { %v14481_v44 = vrot.slane %v14480_v36, 4  ;;  %14487 = vst.msk [vmem:[#allocation4 + $0xc] sm:$0x8] %vm14486_vm10, %v14480_v36  ;;  %v14183_v5 = vmul.f32 %v26316_v27, %v14119_v48  ;;  %v14122_v26 = vmax.f32 %v14062_v58, 0.0  ;;  %v14120_v39 = vmax.f32 %v14060_v17, 0.0  ;;  %v13865_v28 = vpop.f32.mrb[37].mxu0 }
 0x787   : > { %v20731_v25 = vadd.f32 %v20353_v8, %v27840_v31  ;;  %14305 = vst.msk [vmem:[#allocation3 + $0xe8] sm:$0xff] %vm14275_vm12, %v14244_v38  ;;  %v14249_v9 = vadd.f32 %v26324_v63, %v14185_v52  ;;  %v20732_v2 = vadd.f32 %v13865_v28, %v27841_v11  ;;  %v20354_v18 = vpop.f32.mrb[38].mxu0  ;;  %v14496_v59 = vld [vmem:[#allocation3 + $0xd1] ss:$2 sm:$0x3]  ;;  %v14743_v36 = vrot.slane %v14741_v40, 1 }
 0x788   : > { %v14483_v57 = vsel %vm26514_vm5, %v14481_v44, %v14482_v33  ;;  %v14247_v29 = vadd.f32 %v26324_v63, %v14183_v5  ;;  %v14186_v13 = vmul.f32 %v26316_v27, %v14122_v26  ;;  %v14184_v42 = vmul.f32 %v26316_v27, %v14120_v39  ;;  %v13868_v50 = vpop.f32.mrb[39].mxu0  ;;  %v27844_v8 = vld [vmem:[#allocation31_spill] sm:$0xff]  ;;  %v27845_v11 = vld [vmem:[#allocation32_spill] sm:$0xff] }
 0x789   : > { %v14065_v49 = vadd.f32 %v20731_v25, %v26307_v14  ;;  %14488 = vst.msk [vmem:[#allocation4 + $0x10] sm:$0xf] %vm14335_vm13, %v14483_v57  ;;  %v14063_v7 = vadd.f32 %v20732_v2, %v26307_v14  ;;  %v20733_v15 = vadd.f32 %v20354_v18, %v27842_v20  ;;  %v20734_v0 = vadd.f32 %v13868_v50, %v27843_v10 }
 0x78a   : > { %v14498_v43 = vld [vmem:[#allocation3 + $0xd8] ss:$2 sm:$0xff]  ;;  %v14502_v51 = vld [vmem:[#allocation3 + $0xd9] ss:$2 sm:$0xff]  ;;  %14310 = vst.msk [vmem:[#allocation3 + $0x110] sm:$0xff] %vm14275_vm12, %v14249_v9  ;;  %14308 = vst.msk [vmem:[#allocation3 + $0x100] sm:$0xff] %vm14275_vm12, %v14247_v29  ;;  %v14250_v53 = vadd.f32 %v26324_v63, %v14186_v13  ;;  %v14248_v60 = vadd.f32 %v26324_v63, %v14184_v42  ;;  %v14506_v33 = vmax.f32 %v14492_v30, %v14496_v59 }
 0x78b   : > { %v14507_v62 = vmax.f32 %v14498_v43, %v14502_v51  ;;  %v14125_v55 = vmax.f32 %v14065_v49, 0.0  ;;  %v14123_v54 = vmax.f32 %v14063_v7, 0.0  ;;  %v14066_v23 = vadd.f32 %v20733_v15, %v26307_v14  ;;  %v14522_v28 = vld [vmem:[#allocation3 + $0xf0] ss:$2 sm:$0xff]  ;;  %v14526_v51 = vld [vmem:[#allocation3 + $0xf1] ss:$2 sm:$0xff] }
 0x78c   : > { %v14064_v12 = vadd.f32 %v20734_v0, %v26307_v14  ;;  %14311 = vst.msk [vmem:[#allocation3 + $0x118] sm:$0xff] %vm14275_vm12, %v14250_v53  ;;  %14309 = vst.msk [vmem:[#allocation3 + $0x108] sm:$0xff] %vm14275_vm12, %v14248_v60  ;;  %v14739_v17 = vshrl.u32 %v26508_v34, 16  ;;  %v22154_v30 = vld [vmem:[%s27285_s3] sm:$0xff]  }
 0x78d   : > { %v14509_v4 = vmax.f32 %v14505_v41, %v14507_v62  ;;  %v14189_v22 = vmul.f32 %v26316_v27, %v14125_v55  ;;  %v26546_v1 = vld [vmem:[#allocation4 + $0x8] sm:$0xff]   ;;  %v14187_v32 = vmul.f32 %v26316_v27, %v14123_v54  ;;  %v14126_v24 = vmax.f32 %v14066_v23, 0.0  ;;  %v20357_v58 = vpop.f32.mrb[40].mxu0  ;;  %v27846_v41 = vld [vmem:[#allocation33_spill] sm:$0xff]  ;;  %v27847_v59 = vld [vmem:[#allocation34_spill] sm:$0xff] }
 0x78e   : > { %v14124_v48 = vmax.f32 %v14064_v12, 0.0  ;;  %v14500_v21 = vld [vmem:[#allocation3 + $0xe8] ss:$2 sm:$0x3]  ;;  %v20735_v16 = vadd.f32 %v20357_v58, %v27844_v8  ;;  %v13881_v25 = vpop.f32.mrb[41].mxu0  ;;  %v14744_v40 = vor.u32 %v14743_v36, %v14739_v17  ;;  %v14746_v57 = vshll.u32 %v26546_v1, 16 }
 0x78f   : > { %v17943_v44 = vpack.c.bf16 %v14509_v4, %v14509_v4  ;;  %v14504_v38 = vld [vmem:[#allocation3 + $0xe9] ss:$2 sm:$0x3]  ;;  %v14253_v52 = vadd.f32 %v26324_v63, %v14189_v22  ;;  %v14251_v26 = vadd.f32 %v26324_v63, %v14187_v32  ;;  %v14190_v39 = vmul.f32 %v26316_v27, %v14126_v24  ;;  %v20358_v18 = vpop.f32.mrb[42].mxu0 }
 0x790   : > { %v14508_v5 = vmax.f32 %v14500_v21, %v14504_v38  ;;  %v14188_v31 = vmul.f32 %v26316_v27, %v14124_v48  ;;  %v14069_v9 = vadd.f32 %v20735_v16, %v26307_v14  ;;  %v20736_v2 = vadd.f32 %v13881_v25, %v27845_v11  ;;  %v13884_v10 = vpop.f32.mrb[43].mxu0 }
 0x791   : > { %14519 = vst.msk [vmem:[#allocation4 + $0x14] sm:$0xf] %vm14335_vm13, %v17943_v44  ;;  %v14524_v13 = vld [vmem:[#allocation3 + $0x100] ss:$2 sm:$0x3]  ;;  %v14254_v49 = vadd.f32 %v26324_v63, %v14190_v39  ;;  %v20737_v43 = vadd.f32 %v20358_v18, %v27846_v41  ;;  %v14748_v0 = vrot.slane %v14746_v57, 1  ;;  %v20738_v54 = vadd.f32 %v13884_v10, %v27847_v59 }
 0x792   : > { %14314 = vst.msk [vmem:[#allocation3 + $0x130] sm:$0xff] %vm14275_vm12, %v14253_v52  ;;  %v14510_v29 = vmax.f32 %v14506_v33, %v14508_v5  ;;  %v14528_v42 = vld [vmem:[#allocation3 + $0x101] ss:$2 sm:$0x3]  ;;  %14312 = vst.msk [vmem:[#allocation3 + $0x120] sm:$0xff] %vm14275_vm12, %v14251_v26  ;;  %v14252_v50 = vadd.f32 %v26324_v63, %v14188_v31  ;;  %v14129_v20 = vmax.f32 %v14069_v9, 0.0  ;;  %v14067_v15 = vadd.f32 %v20736_v2, %v26307_v14 }
 0x793   : > { %v14538_v7 = vmax.f32 %v14524_v13, %v14528_v42  ;;  %v14532_v53 = vld [vmem:[#allocation3 + $0x118] ss:$2 sm:$0x3]  ;;  %v14536_v60 = vld [vmem:[#allocation3 + $0x119] ss:$2 sm:$0x3]  ;;  %v14070_v55 = vadd.f32 %v20737_v43, %v26307_v14  ;;  %v14749_v32 = vsel %vm565_vm3, %v14744_v40, %v14748_v0  ;;  %v14537_v24 = vmax.f32 %v14522_v28, %v14526_v51 }
 0x794   : > { %v17944_v62 = vpack.c.bf16 %v14510_v29, %v14510_v29  ;;  %14315 = vst.msk [vmem:[#allocation3 + $0x138] sm:$0xff] %vm14275_vm12, %v14254_v49  ;;  %14313 = vst.msk [vmem:[#allocation3 + $0x128] sm:$0xff] %vm14275_vm12, %v14252_v50  ;;  %v14540_v23 = vmax.f32 %v14532_v53, %v14536_v60  ;;  %v14530_v12 = vld [vmem:[#allocation3 + $0x108] ss:$2 sm:$0xff]  ;;  %v14534_v4 = vld [vmem:[#allocation3 + $0x109] ss:$2 sm:$0xff]  ;;  %v14193_v22 = vmul.f32 %v26316_v27, %v14129_v20  ;;  %20378 = vmatmul.mubr.msk.bf16.vlgmr.msra.gmra.mrb[60].mxu1 %vm14275_vm12, %v14749_v32 }
 0x795   : > { %v14127_v36 = vmax.f32 %v14067_v15, 0.0  ;;  %v14539_v48 = vmax.f32 %v14530_v12, %v14534_v4  ;;  %v14130_v58 = vmax.f32 %v14070_v55, 0.0  ;;  %v14068_v17 = vadd.f32 %v20738_v54, %v26307_v14  ;;  %v20361_v33 = vpop.f32.mrb[44].mxu0  ;;  %v27848_v52 = vld [vmem:[#allocation35_spill] sm:$0xff]  ;;  %20381 = vmatprep.mubr.msk.bf16.mxu1 %vm22328_vm11, %v22327_v19  ;;  %v27849_v39 = vld [vmem:[#allocation36_spill] sm:$0xff]  ;;  %20398 = vmatpush3.bf16.msra.mxu1 %v22154_v30  ;;  %v27850_v50 = vld [vmem:[#allocation37_spill] sm:$0xff] }
 0x796   : > { %14520 = vst.msk [vmem:[#allocation4 + $0x18] sm:$0x1] %vm14367_vm14, %v17944_v62  ;;  %v14542_v44 = vmax.f32 %v14538_v7, %v14540_v23  ;;  %v14257_v21 = vadd.f32 %v26324_v63, %v14193_v22  ;;  %v20739_v8 = vadd.f32 %v20361_v33, %v27848_v52  ;;  %v13897_v16 = vpop.f32.mrb[45].mxu0  ;;  %v14750_v18 = vshrl.u32 %v26546_v1, 16  ;;  %20419 = vmatprep.subr.bf16.mxu1 %v22327_v19  ;;  %v27851_v43 = vld [vmem:[#allocation38_spill] sm:$0xff]  ;;  %v27852_v32 = vld [vmem:[#allocation39_spill] sm:$0xff] }
 0x797   : > { %v14191_v38 = vmul.f32 %v26316_v27, %v14127_v36  ;;  %v14541_v5 = vmax.f32 %v14537_v24, %v14539_v48  ;;  %v14194_v26 = vmul.f32 %v26316_v27, %v14130_v58  ;;  %v20740_v31 = vadd.f32 %v13897_v16, %v27849_v39  ;;  %v20362_v11 = vpop.f32.mrb[46].mxu0  ;;  %v27853_v33 = vld [vmem:[#allocation40_spill] sm:$0xff] }
 0x798   : > { %v17946_v25 = vpack.c.bf16 %v14542_v44, %v14542_v44  ;;  %14318 = vst.msk [vmem:[#allocation3 + $0x150] sm:$0xff] %vm14275_vm12, %v14257_v21  ;;  %v14128_v9 = vmax.f32 %v14068_v17, 0.0  ;;  %v26586_v2 = vld [vmem:[#allocation4 + $0x10] sm:$0xff]   ;;  %v14073_v29 = vadd.f32 %v20739_v8, %v26307_v14  ;;  %v13900_v42 = vpop.f32.mrb[47].mxu0  ;;  %v20741_v41 = vadd.f32 %v20362_v11, %v27850_v50 }
 0x799   : > { %v14255_v28 = vadd.f32 %v26324_v63, %v14191_v38  ;;  %v17945_v40 = vpack.c.bf16 %v14541_v5, %v14541_v5  ;;  %v14258_v57 = vadd.f32 %v26324_v63, %v14194_v26  ;;  %v14071_v13 = vadd.f32 %v20740_v31, %v26307_v14  ;;  %v14560_v52 = vld [vmem:[#allocation3 + $0x130] ss:$2 sm:$0x3]  ;;  %v26619_v5 = vld [vmem:[%s27284_s2] ss:$0 sm:$0xff] }
 0x79a   : > { %v14192_v49 = vmul.f32 %v26316_v27, %v14128_v9  ;;  %v20742_v51 = vadd.f32 %v13900_v42, %v27851_v43  ;;  %v14133_v20 = vmax.f32 %v14073_v29, 0.0  ;;  %v14752_v10 = vor.u32 %v14750_v18, %v14748_v0  ;;  %v27854_v9 = vld [vmem:[#allocation41_spill] sm:$0xff]  ;;  %v27855_v18 = vld [vmem:[#allocation42_spill] sm:$0xff] }
 0x79b   : > { %14316 = vst.msk [vmem:[#allocation3 + $0x140] sm:$0xff] %vm14275_vm12, %v14255_v28  ;;  %v14549_v7 = vrot.slane %v17945_v40, 7  ;;  %14319 = vst.msk [vmem:[#allocation3 + $0x158] sm:$0xff] %vm14275_vm12, %v14258_v57  ;;  %v14131_v15 = vmax.f32 %v14071_v13, 0.0  ;;  %v14074_v62 = vadd.f32 %v20741_v41, %v26307_v14  ;;  %v14754_v60 = vshll.u32 %v26586_v2, 16 }
 0x79c   : > { %v14256_v30 = vadd.f32 %v26324_v63, %v14192_v49  ;;  %v14072_v53 = vadd.f32 %v20742_v51, %v26307_v14  ;;  %v14551_v55 = vrot.slane %v17946_v25, 7  ;;  %v14558_v54 = vld [vmem:[#allocation3 + $0x120] ss:$2 sm:$0xff]  ;;  %v14197_v23 = vmul.f32 %v26316_v27, %v14133_v20  ;;  %v14562_v22 = vld [vmem:[#allocation3 + $0x121] ss:$2 sm:$0xff] }
 0x79d   : > { %v14550_v59 = vrot.slane %v14549_v7, 4  ;;  %14555 = vst.msk [vmem:[#allocation4 + $0x18] sm:$0xe] %vm14406_vm2, %v14549_v7  ;;  %v14195_v12 = vmul.f32 %v26316_v27, %v14131_v15  ;;  %v20365_v4 = vpop.f32.mrb[48].mxu0  ;;  %v14134_v0 = vmax.f32 %v14074_v62, 0.0  ;;  %v26607_v48 = vrot.slane %v14754_v60, 1 }
 0x79e   : > { %14317 = vst.msk [vmem:[#allocation3 + $0x148] sm:$0xff] %vm14275_vm12, %v14256_v30  ;;  %v14132_v36 = vmax.f32 %v14072_v53, 0.0  ;;  %v20743_v24 = vadd.f32 %v20365_v4, %v27852_v32  ;;  %v13913_v14 = vpop.f32.mrb[49].mxu0  ;;  %v14261_v58 = vadd.f32 %v26324_v63, %v14197_v23  ;;  %v14573_v31 = vmax.f32 %v14558_v54, %v14562_v22  ;;  %v14564_v57 = vld [vmem:[#allocation3 + $0x131] ss:$2 sm:$0x3] }
 0x79f   : > { %v14259_v17 = vadd.f32 %v26324_v63, %v14195_v12  ;;  %v20744_v44 = vadd.f32 %v13913_v14, %v27853_v33  ;;  %v20366_v21 = vpop.f32.mrb[50].mxu0  ;;  %v14552_v38 = vsel %vm26428_vm7, %v14550_v59, %v14551_v55  ;;  %v14198_v8 = vmul.f32 %v26316_v27, %v14134_v0  ;;  %v26634_v13 = vld [vmem:[%s27284_s2 + $0x2] ss:$0 sm:$0xff]  ;;  %v26647_v20 = vld [vmem:[%s27284_s2 + $0x1] ss:$0 sm:$0xff] }
 0x7a0   : > { %v14196_v16 = vmul.f32 %v26316_v27, %v14132_v36  ;;  %v14077_v26 = vadd.f32 %v26619_v5, %v20743_v24  ;;  %v14757_v63 = vsel %vm565_vm3, %v14752_v10, %v26607_v48  ;;  %v13916_v39 = vpop.f32.mrb[51].mxu0  ;;  %14556 = vst.msk [vmem:[#allocation4 + $0x1c] sm:$0x3] %vm14408_vm8, %v14552_v38  ;;  %v20745_v11 = vadd.f32 %v20366_v21, %v27854_v9 }
 0x7a1   : > { %14322 = vst.msk [vmem:[#allocation3 + $0x170] sm:$0xff] %vm14275_vm12, %v14261_v58  ;;  %14320 = vst.msk [vmem:[#allocation3 + $0x160] sm:$0xff] %vm14275_vm12, %v14259_v17  ;;  %v14075_v27 = vadd.f32 %v26619_v5, %v20744_v44  ;;  %20382 = vmatmul.mubr.msk.bf16.gmra.mrb[64].mxu1 %vm14275_vm12, %v14757_v63  ;;  %v20746_v40 = vadd.f32 %v13916_v39, %v27855_v18  ;;  %v14262_v42 = vadd.f32 %v26634_v13, %v14198_v8 }
 0x7a2   : > { %v14566_v25 = vld [vmem:[#allocation3 + $0x138] ss:$2 sm:$0xff]  ;;  %v14570_v28 = vld [vmem:[#allocation3 + $0x139] ss:$2 sm:$0xff]  ;;  %v14260_v49 = vadd.f32 %v26634_v13, %v14196_v16  ;;  %v14137_v50 = vmax.f32 %v14077_v26, 0.0  ;;  %20385 = vmatprep.mubr.msk.bf16.mxu1 %vm22328_vm11, %v22327_v19  ;;  %v14078_v43 = vadd.f32 %v26619_v5, %v20745_v11  ;;  %v14574_v10 = vmax.f32 %v14560_v52, %v14564_v57  ;;  %v27857_v11 = vld [vmem:[#allocation44_spill] sm:$0xff] }
 0x7a3   : > { %v14575_v29 = vmax.f32 %v14566_v25, %v14570_v28  ;;  %v14135_v41 = vmax.f32 %v14075_v27, 0.0  ;;  %v14076_v51 = vadd.f32 %v26619_v5, %v20746_v40  ;;  %14323 = vst.msk [vmem:[#allocation3 + $0x178] sm:$0xff] %vm14275_vm12, %v14262_v42  ;;  %v14594_v12 = vld [vmem:[#allocation3 + $0x150] ss:$2 sm:$0xff]  ;;  %v14598_v44 = vld [vmem:[#allocation3 + $0x151] ss:$2 sm:$0xff] }
 0x7a4   : > { %14321 = vst.msk [vmem:[#allocation3 + $0x168] sm:$0xff] %vm14275_vm12, %v14260_v49  ;;  %v14201_v15 = vmul.f32 %v26647_v20, %v14137_v50  ;;  %v14138_v54 = vmax.f32 %v14078_v43, 0.0  ;;  %v14609_v40 = vmax.f32 %v14594_v12, %v14598_v44 }
 0x7a5   : > { %v14577_v7 = vmax.f32 %v14573_v31, %v14575_v29  ;;  %v14568_v30 = vld [vmem:[#allocation3 + $0x148] ss:$2 sm:$0x3]  ;;  %v14572_v62 = vld [vmem:[#allocation3 + $0x149] ss:$2 sm:$0x3]  ;;  %v14199_v53 = vmul.f32 %v26647_v20, %v14135_v41 }
 0x7a6   : > { %v14576_v55 = vmax.f32 %v14568_v30, %v14572_v62  ;;  %v14265_v59 = vadd.f32 %v26634_v13, %v14201_v15  ;;  %v20369_v23 = vpop.f32.mrb[52].mxu0  ;;  %v14136_v22 = vmax.f32 %v14076_v51, 0.0  ;;  %v14202_v58 = vmul.f32 %v26647_v20, %v14138_v54 }
 0x7a7   : > { %v17947_v60 = vpack.c.bf16 %v14577_v7, %v14577_v7  ;;  %v14263_v4 = vadd.f32 %v26634_v13, %v14199_v53  ;;  %v20747_v0 = vadd.f32 %v20369_v23, %v26048_v46  ;;  %v13929_v36 = vpop.f32.mrb[53].mxu0  ;;  %v27856_v46 = vld [vmem:[#allocation43_spill] sm:$0xff] }
 0x7a8   : > { %v14578_v24 = vmax.f32 %v14574_v10, %v14576_v55  ;;  %v14596_v14 = vld [vmem:[#allocation3 + $0x160] ss:$2 sm:$0x3]  ;;  %14326 = vst.msk [vmem:[#allocation3 + $0x190] sm:$0xff] %vm14275_vm12, %v14265_v59  ;;  %v20748_v17 = vadd.f32 %v13929_v36, %v26050_v61  ;;  %v20370_v33 = vpop.f32.mrb[54].mxu0  ;;  %v14200_v38 = vmul.f32 %v26647_v20, %v14136_v22  ;;  %v14266_v31 = vadd.f32 %v26634_v13, %v14202_v58 }
 0x7a9   : > { %v14585_v32 = vrot.slane %v17947_v60, 6  ;;  %v14600_v21 = vld [vmem:[#allocation3 + $0x161] ss:$2 sm:$0x3]  ;;  %14324 = vst.msk [vmem:[#allocation3 + $0x180] sm:$0xff] %vm14275_vm12, %v14263_v4  ;;  %v14081_v52 = vadd.f32 %v26619_v5, %v20747_v0  ;;  %v20749_v8 = vadd.f32 %v20370_v33, %v27856_v46  ;;  %v13932_v16 = vpop.f32.mrb[55].mxu0 }
 0x7aa   : > { %v17948_v63 = vpack.c.bf16 %v14578_v24, %v14578_v24  ;;  %v14610_v39 = vmax.f32 %v14596_v14, %v14600_v21  ;;  %v14604_v61 = vld [vmem:[#allocation3 + $0x178] ss:$2 sm:$0x3]  ;;  %v14608_v25 = vld [vmem:[#allocation3 + $0x179] ss:$2 sm:$0x3]  ;;  %v14264_v28 = vadd.f32 %v26634_v13, %v14200_v38  ;;  %v14079_v27 = vadd.f32 %v26619_v5, %v20748_v17 }
 0x7ab   : > { %v14586_v26 = vrot.slane %v14585_v32, 4  ;;  %14591 = vst.msk [vmem:[#allocation4 + $0x1c] sm:$0xc] %vm14446_vm0, %v14585_v32  ;;  %v14082_v9 = vadd.f32 %v26619_v5, %v20749_v8  ;;  %v20750_v18 = vadd.f32 %v13932_v16, %v27857_v11  ;;  %v14612_v29 = vmax.f32 %v14604_v61, %v14608_v25  ;;  %v14602_v42 = vld [vmem:[#allocation3 + $0x168] ss:$2 sm:$0xff] }
 0x7ac   : > { %v14587_v57 = vrot.slane %v17948_v63, 6  ;;  %v14606_v49 = vld [vmem:[#allocation3 + $0x169] ss:$2 sm:$0xff]  ;;  %14327 = vst.msk [vmem:[#allocation3 + $0x198] sm:$0xff] %vm14275_vm12, %v14266_v31  ;;  %v14141_v50 = vmax.f32 %v14081_v52, 0.0  ;;  %14325 = vst.msk [vmem:[#allocation3 + $0x188] sm:$0xff] %vm14275_vm12, %v14264_v28 }
 0x7ad   : > { %v14611_v41 = vmax.f32 %v14602_v42, %v14606_v49  ;;  %v14139_v43 = vmax.f32 %v14079_v27, 0.0  ;;  %v14142_v51 = vmax.f32 %v14082_v9, 0.0  ;;  %v14080_v7 = vadd.f32 %v26619_v5, %v20750_v18  ;;  %v20373_v15 = vpop.f32.mrb[56].mxu0  ;;  %v27858_v21 = vld [vmem:[#allocation45_spill] sm:$0xff] }
 0x7ae   : > { %v14614_v10 = vmax.f32 %v14610_v39, %v14612_v29  ;;  %v14205_v30 = vmul.f32 %v26647_v20, %v14141_v50  ;;  %v20751_v62 = vadd.f32 %v20373_v15, %v26067_v37  ;;  %v13945_v53 = vpop.f32.mrb[57].mxu0  ;;  %v14588_v60 = vsel %vm26473_vm6, %v14586_v26, %v14587_v57 }
 0x7af   : > { %v14613_v55 = vmax.f32 %v14609_v40, %v14611_v41  ;;  %v14203_v59 = vmul.f32 %v26647_v20, %v14139_v43  ;;  %v14206_v54 = vmul.f32 %v26647_v20, %v14142_v51  ;;  %v20752_v23 = vadd.f32 %v13945_v53, %v26069_v6  ;;  %14592 = vst.msk [vmem:[#allocation4 + $0x20] sm:$0x7] %vm14448_vm15, %v14588_v60  ;;  %v20374_v0 = vpop.f32.mrb[58].mxu0  ;;  %v14632_v41 = vld [vmem:[#allocation3 + $0x190] ss:$2 sm:$0x3] }
 0x7b0   : > { %v17950_v12 = vpack.c.bf16 %v14614_v10, %v14614_v10  ;;  %v14269_v4 = vadd.f32 %v26634_v13, %v14205_v30  ;;  %v14140_v22 = vmax.f32 %v14080_v7, 0.0  ;;  %v14085_v32 = vadd.f32 %v26619_v5, %v20751_v62  ;;  %v13948_v24 = vpop.f32.mrb[59].mxu0  ;;  %v14636_v43 = vld [vmem:[#allocation3 + $0x191] ss:$2 sm:$0x3] }
 0x7b1   : > { %v17949_v36 = vpack.c.bf16 %v14613_v55, %v14613_v55  ;;  %v14267_v37 = vadd.f32 %v26634_v13, %v14203_v59  ;;  %v14270_v3 = vadd.f32 %v26634_v13, %v14206_v54  ;;  %v14083_v58 = vadd.f32 %v26619_v5, %v20752_v23 }
 0x7b2   : > { %v26682_v14 = vld [vmem:[#allocation4 + $0x18] sm:$0xff]   ;;  %14330 = vst.msk [vmem:[#allocation3 + $0x1b0] sm:$0xff] %vm14275_vm12, %v14269_v4  ;;  %v14204_v6 = vmul.f32 %v26647_v20, %v14140_v22  ;;  %v20753_v17 = vadd.f32 %v20374_v0, %v26071_v56  ;;  %v14145_v44 = vmax.f32 %v14085_v32, 0.0  ;;  %v20754_v38 = vadd.f32 %v13948_v24, %v27858_v21 }
 0x7b3   : > { %v14621_v33 = vrot.slane %v17949_v36, 5  ;;  %14328 = vst.msk [vmem:[#allocation3 + $0x1a0] sm:$0xff] %vm14275_vm12, %v14267_v37  ;;  %14331 = vst.msk [vmem:[#allocation3 + $0x1b8] sm:$0xff] %vm14275_vm12, %v14270_v3  ;;  %v14762_v52 = vshll.u32 %v26682_v14, 16  ;;  %v14143_v8 = vmax.f32 %v14083_v58, 0.0  ;;  %v14758_v26 = vshrl.u32 %v26586_v2, 16 }
 0x7b4   : > { %v14268_v46 = vadd.f32 %v26634_v13, %v14204_v6  ;;  %v14086_v16 = vadd.f32 %v26619_v5, %v20753_v17  ;;  %v14623_v63 = vrot.slane %v17950_v12, 5  ;;  %v14209_v56 = vmul.f32 %v26647_v20, %v14145_v44  ;;  %v14630_v40 = vld [vmem:[#allocation3 + $0x180] ss:$2 sm:$0xff]  ;;  %v14634_v57 = vld [vmem:[#allocation3 + $0x181] ss:$2 sm:$0xff] }
 0x7b5   : > { %v14622_v39 = vrot.slane %v14621_v33, 4  ;;  %14627 = vst.msk [vmem:[#allocation4 + $0x20] sm:$0x8] %vm14486_vm10, %v14621_v33  ;;  %v14084_v31 = vadd.f32 %v26619_v5, %v20754_v38  ;;  %v14207_v61 = vmul.f32 %v26647_v20, %v14143_v8  ;;  %v14760_v28 = vor.u32 %v14758_v26, %v26607_v48 }
 0x7b6   : > { %14329 = vst.msk [vmem:[#allocation3 + $0x1a8] sm:$0xff] %vm14275_vm12, %v14268_v46  ;;  %v14146_v25 = vmax.f32 %v14086_v16, 0.0  ;;  %v14764_v27 = vrot.slane %v14762_v52, 1  ;;  %v14273_v9 = vadd.f32 %v26634_v13, %v14209_v56  ;;  %v14645_v51 = vmax.f32 %v14630_v40, %v14634_v57  ;;  %v15874_v40 = vld [vmem:[#allocation4 + $0x8] sm:$0x8]  ;;  %v26752_v57 = vld [vmem:[#allocation4 + $0x10] sm:$0xff]  }
 0x7b7   : > { %v14144_v11 = vmax.f32 %v14084_v31, 0.0  ;;  %v14624_v18 = vsel %vm26514_vm5, %v14622_v39, %v14623_v63  ;;  %v14271_v29 = vadd.f32 %v26634_v13, %v14207_v61  ;;  %v14646_v62 = vmax.f32 %v14632_v41, %v14636_v43 }
 0x7b8   : > { %v14210_v5 = vmul.f32 %v26647_v20, %v14146_v25  ;;  %v14765_v42 = vsel %vm565_vm3, %v14760_v28, %v14764_v27  ;;  %14628 = vst.msk [vmem:[#allocation4 + $0x24] sm:$0xf] %vm14335_vm13, %v14624_v18  ;;  %v14766_v60 = vshrl.u32 %v26682_v14, 16  ;;  %v14976_v22 = vrot.slane %v26682_v14, 1 }
 0x7b9   : > { %14334 = vst.msk [vmem:[#allocation3 + $0x1d0] sm:$0xff] %vm14275_vm12, %v14273_v9  ;;  %v14208_v48 = vmul.f32 %v26647_v20, %v14144_v11  ;;  %20386 = vmatmul.mubr.msk.bf16.gmra.mrb[68].mxu1 %vm14275_vm12, %v14765_v42  ;;  %14332 = vst.msk [vmem:[#allocation3 + $0x1c0] sm:$0xff] %vm14275_vm12, %v14271_v29  ;;  %v22157_v11 = vld [vmem:[%s27285_s3 + $0x10] sm:$0xff]  }
 0x7ba   : > { %v14638_v49 = vld [vmem:[#allocation3 + $0x198] ss:$2 sm:$0xff]  ;;  %v14642_v50 = vld [vmem:[#allocation3 + $0x199] ss:$2 sm:$0xff]  ;;  %v14274_v35 = vadd.f32 %v26634_v13, %v14210_v5  ;;  %20389 = vmatprep.mubr.msk.bf16.mxu1 %vm22328_vm11, %v22327_v19  ;;  %v14768_v17 = vor.u32 %v14766_v60, %v14764_v27  ;;  %v26745_v27 = vld [vmem:[#allocation4 + $0xc] sm:$0xf] }
 0x7bb   : > { %v14647_v7 = vmax.f32 %v14638_v49, %v14642_v50  ;;  %v14272_v15 = vadd.f32 %v26634_v13, %v14208_v48  ;;  %v14662_v13 = vld [vmem:[#allocation3 + $0x1b0] ss:$2 sm:$0xff]  ;;  %v14666_v0 = vld [vmem:[#allocation3 + $0x1b1] ss:$2 sm:$0xff]  ;;  %v17858_v29 = vcombine.low %v15874_v40, %v26745_v27  ;;  %v15883_v49 = vrot.slane %v26752_v57, 3 }
 0x7bc   : > { %14336 = vst.msk [vmem:[#allocation3 + $0x1d8] sm:$0xf] %vm14335_vm13, %v14274_v35  ;;  %v26719_v55 = vld [vmem:[#allocation4 + $0x20] sm:$0xf]  ;;  %v14677_v21 = vmax.f32 %v14662_v13, %v14666_v0  ;;  %v26756_v5 = vld [vmem:[#allocation4 + $0x18] sm:$0xff]  }
 0x7bd   : > { %v14640_v20 = vld [vmem:[#allocation3 + $0x1a8] ss:$2 sm:$0x3]  ;;  %v14644_v10 = vld [vmem:[#allocation3 + $0x1a9] ss:$2 sm:$0x3]  ;;  %v14649_v30 = vmax.f32 %v14645_v51, %v14647_v7 }
 0x7be   : > { %14333 = vst.msk [vmem:[#allocation3 + $0x1c8] sm:$0xff] %vm14275_vm12, %v14272_v15  ;;  %v14648_v53 = vmax.f32 %v14640_v20, %v14644_v10  ;;  %v15882_v48 = vrot.slane %v17858_v29, 3  ;;  %v15885_v50 = vrot.slane %v26756_v5, 3  ;;  %v14964_v10 = vld [vmem:[#allocation4] sm:$0xe]  ;;  %v22159_v60 = vld [vmem:[%s27285_s3 + $0x18] sm:$0xff]  }
 0x7bf   : > { %v14709_v59 = vld [vmem:[#allocation4 + $0x24] sm:$0xf]  ;;  %v17951_v54 = vpack.c.bf16 %v14649_v30, %v14649_v30  ;;  %v17790_v30 = vcombine.low %v14964_v10, %v26495_v45  ;;  %v26869_v40 = vld [vmem:[#allocation4 + $0x1c] sm:$0xff]  }
 0x7c0   : > { %v14650_v23 = vmax.f32 %v14646_v62, %v14648_v53  ;;  %v26722_v12 = vcombine.low %v26719_v55, %v14709_v59  ;;  %v14664_v4 = vld [vmem:[#allocation3 + $0x1c0] ss:$2 sm:$0x3]  ;;  %v14668_v37 = vld [vmem:[#allocation3 + $0x1c1] ss:$2 sm:$0x3] }
 0x7c1   : > { %14659 = vst.msk [vmem:[#allocation4 + $0x28] sm:$0xf] %vm14335_vm13, %v17951_v54  ;;  %v14678_v52 = vmax.f32 %v14664_v4, %v14668_v37  ;;  %v26760_v42 = vld [vmem:[#allocation4 + $0x20] sm:$0xff]   ;;  %v14972_v62 = vrot.slane %v26546_v1, 1  ;;  %v14971_v53 = vrot.slane %v17790_v30, 1 }
 0x7c2   : > { %v17952_v36 = vpack.c.bf16 %v14650_v23, %v14650_v23  ;;  %v14770_v3 = vshll.u32 %v26722_v12, 16  ;;  %v14978_v44 = vrot.slane %v26722_v12, 1  ;;  %v14774_v31 = vshrl.u32 %v26722_v12, 16  ;;  %v14706_v15 = vld [vmem:[#allocation4 + $0x24] sm:$0x7] }
 0x7c3   : > { %v14672_v32 = vld [vmem:[#allocation3 + $0x1d8] ss:$2 sm:$0x3]  ;;  %v14676_v24 = vld [vmem:[#allocation3 + $0x1d9] ss:$2 sm:$0x3]  ;;  %v17781_v20 = vcombine.low %v26719_v55, %v14706_v15  ;;  %v14973_v59 = vsel %vm1545_vm4, %v14971_v53, %v14972_v62 }
 0x7c4   : > { %14660 = vst.msk [vmem:[#allocation4 + $0x2c] sm:$0x1] %vm14367_vm14, %v17952_v36  ;;  %v14772_v33 = vrot.slane %v14770_v3, 1  ;;  %v14680_v46 = vmax.f32 %v14672_v32, %v14676_v24  ;;  %v26735_v16 = vsel %vm1545_vm4, %v14976_v22, %v14978_v44  ;;  %v14974_v55 = vrot.slane %v26586_v2, 1  ;;  %v22162_v13 = vld [vmem:[%s27285_s3 + $0x20] sm:$0xff]  }
 0x7c5   : > { %v14670_v6 = vld [vmem:[#allocation3 + $0x1c8] ss:$2 sm:$0xff]  ;;  %v14674_v58 = vld [vmem:[#allocation3 + $0x1c9] ss:$2 sm:$0xff]  ;;  %v22164_v36 = vld [vmem:[#allocation4 + $0x1c] sm:$0xff]   ;;  %vm27864_vm14 = vcmask 1045504  }
 0x7c6   : > { %v14679_v38 = vmax.f32 %v14670_v6, %v14674_v58  ;;  %v14773_v8 = vsel %vm565_vm3, %v14768_v17, %v14772_v33  ;;  %v14682_v39 = vmax.f32 %v14678_v52, %v14680_v46  ;;  %v14776_v61 = vor.u32 %v14774_v31, %v14772_v33  ;;  %v26847_v6 = vld [vmem:[#allocation4 + $0x8] sm:$0xf]  ;;  %v26850_v17 = vld [vmem:[#allocation4 + $0xc] sm:$0xff]   ;;  %v15235_v33 = vld [vmem:[#allocation4 + $0x4] sm:$0xe] }
 0x7c7   : > { %20390 = vmatmul.mubr.msk.bf16.gmra.mrb[72].mxu1 %vm14275_vm12, %v14773_v8  ;;  %vm15881_vm3 = vcmask 1044480   ;;  %v14975_v45 = vsel %vm1545_vm4, %v14972_v62, %v14974_v55  ;;  %v15127_v37 = vrot.slane %v22164_v36, 1  ;;  %v15438_v36 = vrot.slane %v26850_v17, 2 }
 0x7c8   : > { %v14681_v26 = vmax.f32 %v14677_v21, %v14679_v38  ;;  %20393 = vmatprep.mubr.msk.bf16.mxu1 %vm22328_vm11, %v22327_v19  ;;  %v17954_v25 = vpack.c.bf16 %v14682_v39, %v14682_v39  ;;  %v26770_v35 = vsel %vm15881_vm3, %v15882_v48, %v15883_v49  ;;  %v26774_v41 = vsel %vm15881_vm3, %v15883_v49, %v15885_v50  ;;  %v22165_v32 = vld [vmem:[#allocation4 + $0x24] sm:$0xff]  }
 0x7c9   : > { %v15129_v24 = vrot.slane %v22165_v32, 1  ;;  %v15286_v21 = vshrl.u32 %v26850_v17, 16  ;;  %v15289_v38 = vshll.u32 %v26850_v17, 16  ;;  %v15304_v48 = vshrl.u32 %v26869_v40, 16  ;;  %v22174_v32 = vld [vmem:[%s27285_s3 + $0x30] sm:$0xff]  }
 0x7ca   : > { %v17953_v63 = vpack.c.bf16 %v14681_v26, %v14681_v26  ;;  %v14691_v28 = vrot.slane %v17954_v25, 7  ;;  %v26858_v26 = vld [vmem:[#allocation4 + $0x14] sm:$0xff]   ;;  %v15307_v49 = vshll.u32 %v26869_v40, 16 }
 0x7cb   : > { %v15130_v58 = vsel %vm1545_vm4, %v15127_v37, %v15129_v24  ;;  %v15288_v8 = vrot.slane %v15286_v21, 1  ;;  %v15295_v31 = vshrl.u32 %v26858_v26, 16  ;;  %v15442_v21 = vrot.slane %v26869_v40, 2  ;;  %v22177_v40 = vld [vmem:[%s27285_s3 + $0x38] sm:$0xff]  }
 0x7cc   : > { %v14689_v56 = vrot.slane %v17953_v63, 7  ;;  %v15309_v15 = vrot.slane %v15307_v49, 2  ;;  %v15597_v49 = vrot.slane %v26756_v5, 2 }
 0x7ce   : > { %14695 = vst.msk [vmem:[#allocation4 + $0x2c] sm:$0xe] %vm14406_vm2, %v14689_v56  ;;  %v14690_v9 = vrot.slane %v14689_v56, 4  ;;  %vm27865_vm2 = vmmov %vm27864_vm14 }
 0x7cf   : > { %20394 = vmatmul.mubr.msk.bf16.gmra.mrb[76].mxu1 %vm14275_vm12, %v14776_v61  ;;  %v15298_v61 = vshll.u32 %v26858_v26, 16  ;;  %vm27868_vm0 = vmmov %vm27865_vm2 }
 0x7d0   : > { %20399 = vmatprep.mubr.msk.bf16.mxu1 %vm22328_vm11, %v22327_v19  ;;  %v14692_v18 = vsel %vm26428_vm7, %v14690_v9, %v14691_v28  ;;  %v22168_v28 = vld [vmem:[%s27285_s3 + $0x28] sm:$0xff]   ;;  %vm27866_vm7 = vmmov %vm27865_vm2 }
 0x7d1   : > { %14696 = vst.msk [vmem:[#allocation4 + $0x30] sm:$0x3] %vm14408_vm8, %v14692_v18  ;;  %v15300_v18 = vrot.slane %v15298_v61, 2  ;;  %vm27867_vm8 = vmmov %vm27865_vm2 }
 0x7d2   : > { %vm27869_vm15 = vmmov %vm27868_vm0 }
 0x7d3   : > { %vm27870_vm1 = vmmov %vm27868_vm0 }
 0x7d4   : > { %vm27871_vm10 = vmmov %vm27868_vm0 }
 0x7d5   : > { %v26764_v47 = vld [vmem:[#allocation4 + $0x28] sm:$0xff]  }
 0x7d6   : > { %v15889_v43 = vrot.slane %v26764_v47, 3 }
 0x7d7   : > { %20400 = vmatmul.mubr.msk.bf16.vlgmr.msra.gmra.mrb[80].mxu1 %vm14275_vm12, %v26508_v34  ;;  %v15887_v34 = vrot.slane %v26760_v42, 3 }
 0x7d8   : > { %20420 = vmatpush3.bf16.msra.mxu1 %v22157_v11  ;;  %20403 = vmatprep.mubr.msk.bf16.mxu1 %vm22328_vm11, %v22327_v19  ;;  %v15297_v11 = vrot.slane %v15295_v31, 1  ;;  %v15552_v31 = vld [vmem:[#allocation4 + $0x8] sm:$0xc] }
 0x7d9   : > { %20441 = vmatprep.subr.bf16.mxu1 %v22327_v19  ;;  %v26778_v51 = vsel %vm15881_vm3, %v15885_v50, %v15887_v34  ;;  %v26783_v7 = vsel %vm15881_vm3, %v15887_v34, %v15889_v43  ;;  %v15306_v34 = vrot.slane %v15304_v48, 1  ;;  %v17835_v61 = vcombine.low %v15552_v31, %v26745_v27 }
 0x7da   : > { %v15301_v29 = vor.u32 %v15300_v18, %v15297_v11 }
 0x7db   : > { %v15310_v10 = vor.u32 %v15309_v15, %v15306_v34  ;;  %v15594_v18 = vrot.slane %v17835_v61, 2 }
 0x7df   : > { %20404 = vmatmul.mubr.msk.bf16.gmra.mrb[84].mxu1 %vm14275_vm12, %v26546_v1  ;;  %v14977_v1 = vsel %vm1545_vm4, %v14974_v55, %v14976_v22  ;;  %v22163_v22 = vld [vmem:[#allocation4 + $0x14] sm:$0xff]  }
 0x7e0   : > { %20407 = vmatprep.mubr.msk.bf16.mxu1 %vm22328_vm11, %v22327_v19  ;;  %v15125_v12 = vrot.slane %v22163_v22, 1 }
 0x7e2   : > { %v15128_v3 = vsel %vm1545_vm4, %v15125_v12, %v15127_v37 }
 0x7e7   : > { %20408 = vmatmul.mubr.msk.bf16.gmra.mrb[88].mxu1 %vm14275_vm12, %v26586_v2  ;;  %v22161_v2 = vld [vmem:[#allocation4 + $0xc] sm:$0xff]  }
 0x7e8   : > { %20411 = vmatprep.mubr.msk.bf16.mxu1 %vm22328_vm11, %v22327_v19  ;;  %v15123_v54 = vrot.slane %v22161_v2, 1 }
 0x7ea   : > { %v15126_v0 = vsel %vm1545_vm4, %v15123_v54, %v15125_v12  ;;  %v15430_v12 = vld [vmem:[#allocation4 + $0x4] sm:$0xc] }
 0x7ef   : > { %20412 = vmatmul.mubr.msk.bf16.gmra.mrb[92].mxu1 %vm14275_vm12, %v26682_v14  ;;  %v22160_v14 = vld [vmem:[#allocation4 + $0x4] sm:$0xfe]  }
 0x7f0   : > { %20415 = vmatprep.mubr.msk.bf16.mxu1 %vm22328_vm11, %v22327_v19  ;;  %v15122_v23 = vrot.slane %v22160_v14, 1 }
 0x7f2   : > { %v15124_v4 = vsel %vm1545_vm4, %v15122_v23, %v15123_v54  ;;  %vm27859_vm4 = vsmask.f32 6400 }
 0x7f3   : > { %vm27860_vm5 = vmmov %vm27859_vm4 }
 0x7f4   : > { %vm27861_vm6 = vmmov %vm27859_vm4 }
 0x7f5   : > { %v15311_v53 = vsel %vm27861_vm6, %v15301_v29, %v15310_v10  ;;  %vm27862_vm9 = vmmov %vm27859_vm4  ;;  %vm15716_vm6 = vsmask.f32 5376 }
 0x7f6   : > { %vm27863_vm13 = vmmov %vm27859_vm4 }
 0x7f7   : > { %20416 = vmatmul.mubr.msk.bf16.gmra.mrb[96].mxu1 %vm14275_vm12, %v17781_v20  ;;  %v22171_v20 = vld [vmem:[#allocation4 + $0x24] sm:$0xff]  }
 0x7f8   : > { %20421 = vmatprep.mubr.msk.bf16.mxu1 %vm22328_vm11, %v22327_v19  ;;  %v15313_v30 = vshrl.u32 %v22171_v20, 16  ;;  %v15316_v62 = vshll.u32 %v22171_v20, 16 }
 0x7ff   : > { %20422 = vmatmul.mubr.msk.bf16.vlgmr.msra.gmra.mrb[100].mxu1 %vm14275_vm12, %v14973_v59  ;;  %v15318_v59 = vrot.slane %v15316_v62, 2 }
 0x800   : > { %20442 = vmatpush3.bf16.msra.mxu1 %v22159_v60  ;;  %20425 = vmatprep.mubr.msk.bf16.mxu1 %vm22328_vm11, %v22327_v19  ;;  %v15315_v60 = vrot.slane %v15313_v30, 1  ;;  %v15599_v30 = vrot.slane %v26760_v42, 2 }
 0x801   : > { %20463 = vmatprep.subr.bf16.mxu1 %v22327_v19 }
 0x802   : > { %v15319_v55 = vor.u32 %v15318_v59, %v15315_v60 }
 0x807   : > { %20426 = vmatmul.mubr.msk.bf16.gmra.mrb[104].mxu1 %vm14275_vm12, %v14975_v45  ;;  %v22172_v45 = vld [vmem:[#allocation4 + $0x2c] ss:$0 sps:$4 sm:$0x11]  }
 0x808   : > { %20429 = vmatprep.mubr.msk.bf16.mxu1 %vm22328_vm11, %v22327_v19  ;;  %v15322_v2 = vshll.u32 %v22172_v45, 16 }
 0x80f   : > { %20430 = vmatmul.mubr.msk.bf16.gmra.mrb[108].mxu1 %vm14275_vm12, %v14977_v1  ;;  %v15320_v1 = vsel %vm27862_vm9, %v15310_v10, %v15319_v55  ;;  %vm16092_vm9 = vcmask 257026  }
 0x810   : > { %20433 = vmatprep.mubr.msk.bf16.mxu1 %vm22328_vm11, %v22327_v19 }
 0x817   : > { %20434 = vmatmul.mubr.msk.bf16.gmra.mrb[112].mxu1 %vm14275_vm12, %v26735_v16  ;;  %v15291_v16 = vrot.slane %v15289_v38, 2 }
 0x818   : > { %20437 = vmatprep.mubr.msk.bf16.mxu1 %vm22328_vm11, %v22327_v19 }
 0x819   : > { %v15292_v56 = vor.u32 %v15291_v16, %v15288_v8 }
 0x81b   : > { %v15302_v50 = vsel %vm27860_vm5, %v15292_v56, %v15301_v29  ;;  %vm27873_vm5 = vmmov %vm27868_vm0 }
 0x81f   : > { %20438 = vmatmul.mubr.msk.bf16.gmra.mrb[116].mxu1 %vm14275_vm12, %v14978_v44  ;;  %v17812_v44 = vcombine.low %v15235_v33, %v26847_v6 }
 0x820   : > { %20443 = vmatprep.mubr.msk.bf16.mxu1 %vm22328_vm11, %v22327_v19 }
 0x821   : > { %v15278_v52 = vshrl.u32 %v17812_v44, 16  ;;  %v15281_v46 = vshll.u32 %v17812_v44, 16 }
 0x823   : > { %v15280_v63 = vrot.slane %v15278_v52, 1  ;;  %v15283_v39 = vrot.slane %v15281_v46, 2  ;;  %v15444_v52 = vrot.slane %v22171_v20, 2 }
 0x825   : > { %v15284_v25 = vor.u32 %v15283_v39, %v15280_v63  ;;  %v15446_v39 = vrot.slane %v22172_v45, 2  ;;  %v15600_v45 = vsel %vm27871_vm10, %v15597_v49, %v15599_v30 }
 0x827   : > { %20444 = vmatmul.mubr.msk.bf16.vlgmr.msra.gmra.mrb[120].mxu1 %vm14275_vm12, %v15124_v4  ;;  %v15293_v9 = vsel %vm27859_vm4, %v15284_v25, %v15292_v56  ;;  %v15447_v56 = vsel %vm27868_vm0, %v15444_v52, %v15446_v39  ;;  %vm27872_vm4 = vmmov %vm27868_vm0  ;;  %v15738_v39 = vshll.u32 %v26756_v5, 16 }
 0x828   : > { %20464 = vmatpush3.bf16.msra.mxu1 %v22162_v13  ;;  %20447 = vmatprep.mubr.msk.bf16.mxu1 %vm22328_vm11, %v22327_v19  ;;  %v15324_v13 = vrot.slane %v15322_v2, 2  ;;  %v15601_v2 = vrot.slane %v26764_v47, 2 }
 0x829   : > { %20485 = vmatprep.subr.bf16.mxu1 %v22327_v19 }
 0x82a   : > { %v15325_v22 = vsel %vm27863_vm13, %v15319_v55, %v15324_v13  ;;  %vm16062_vm13 = vcmask 259072  }
 0x82f   : > { %20448 = vmatmul.mubr.msk.bf16.gmra.mrb[124].mxu1 %vm14275_vm12, %v15126_v0  ;;  %v17826_v0 = vcombine.low %v15430_v12, %v26847_v6  ;;  %v15440_v6 = vrot.slane %v26858_v26, 2  ;;  %v15445_v26 = vsel %vm27867_vm8, %v15442_v21, %v15444_v52  ;;  %v22181_v12 = vld [vmem:[#allocation4 + $0x30] ss:$0 sps:$4 sm:$0x11]   ;;  %vm16753_vm8 = vcmask 523264  }
 0x830   : > { %20451 = vmatprep.mubr.msk.bf16.mxu1 %vm22328_vm11, %v22327_v19 }
 0x831   : > { %v15441_v17 = vsel %vm27865_vm2, %v15438_v36, %v15440_v6  ;;  %v15443_v38 = vsel %vm27866_vm7, %v15440_v6, %v15442_v21  ;;  %vm16126_vm2 = vcmask 261126   ;;  %vm16735_vm7 = vcmask 521216  }
 0x837   : > { %20452 = vmatmul.mubr.msk.bf16.gmra.mrb[128].mxu1 %vm14275_vm12, %v15128_v3  ;;  %v15437_v3 = vrot.slane %v17826_v0, 2 }
 0x838   : > { %20455 = vmatprep.mubr.msk.bf16.mxu1 %vm22328_vm11, %v22327_v19 }
 0x839   : > { %v15439_v33 = vsel %vm27864_vm14, %v15437_v3, %v15438_v36  ;;  %v15603_v36 = vrot.slane %v22181_v12, 2  ;;  %v15726_v3 = vshrl.u32 %v26752_v57, 16  ;;  %vm16109_vm14 = vcmask 259076  }
 0x83b   : > { %v15604_v21 = vsel %vm27873_vm5, %v15601_v2, %v15603_v36  ;;  %v27013_v36 = vld [vmem:[#allocation4 + $0x30] ss:$0 sps:$4 sm:$0x33]  }
 0x83f   : > { %20456 = vmatmul.mubr.msk.bf16.gmra.mrb[132].mxu1 %vm14275_vm12, %v15130_v58 }
 0x840   : > { %20459 = vmatprep.mubr.msk.bf16.mxu1 %vm22328_vm11, %v22327_v19 }
 0x847   : > { %20460 = vmatmul.mubr.msk.bf16.gmra.mrb[136].mxu1 %vm14275_vm12, %v15129_v24 }
 0x848   : > { %20465 = vmatprep.mubr.msk.bf16.mxu1 %vm22328_vm11, %v22327_v19 }
 0x84f   : > { %20466 = vmatmul.mubr.msk.bf16.vlgmr.msra.gmra.mrb[140].mxu1 %vm14275_vm12, %v15293_v9 }
 0x850   : > { %20486 = vmatpush3.bf16.msra.mxu1 %v22168_v28  ;;  %20469 = vmatprep.mubr.msk.bf16.mxu1 %vm22328_vm11, %v22327_v19  ;;  %v15595_v28 = vrot.slane %v26752_v57, 2 }
 0x851   : > { %20507 = vmatprep.subr.bf16.mxu1 %v22327_v19 }
 0x852   : > { %v15596_v48 = vsel %vm27869_vm15, %v15594_v18, %v15595_v28  ;;  %v15598_v20 = vsel %vm27870_vm1, %v15595_v28, %v15597_v49  ;;  %v22182_v28 = vld [vmem:[%s27285_s3 + $0x40] sm:$0xff]   ;;  %v15744_v49 = vshrl.u32 %v26760_v42, 16 }
 0x857   : > { %20470 = vmatmul.mubr.msk.bf16.gmra.mrb[144].mxu1 %vm14275_vm12, %v15302_v50 }
 0x858   : > { %20473 = vmatprep.mubr.msk.bf16.mxu1 %vm22328_vm11, %v22327_v19 }
 0x85f   : > { %20474 = vmatmul.mubr.msk.bf16.gmra.mrb[148].mxu1 %vm14275_vm12, %v15311_v53 }
 0x860   : > { %20477 = vmatprep.mubr.msk.bf16.mxu1 %vm22328_vm11, %v22327_v19 }
 0x867   : > { %20478 = vmatmul.mubr.msk.bf16.gmra.mrb[152].mxu1 %vm14275_vm12, %v15320_v1  ;;  %v26887_v14 = vpop.f32.mrb[60].mxu1 }
 0x868   : > { %20481 = vmatprep.mubr.msk.bf16.mxu1 %vm22328_vm11, %v22327_v19  ;;  %v20379_v54 = vpop.f32.mrb[61].mxu1 }
 0x869   : > { %v26891_v23 = vpop.f32.mrb[62].mxu1 }
 0x86a   : > { %v20380_v4 = vpop.f32.mrb[63].mxu1 }
 0x86f   : > { %20482 = vmatmul.mubr.msk.bf16.gmra.mrb[156].mxu1 %vm14275_vm12, %v15325_v22  ;;  %v15602_v22 = vsel %vm27872_vm4, %v15599_v30, %v15601_v2 }
 0x870   : > { %20487 = vmatprep.mubr.msk.bf16.mxu1 %vm22328_vm11, %v22327_v19 }
 0x874   : > { %v26899_v37 = vpop.f32.mrb[64].mxu1 }
 0x875   : > { %v20383_v24 = vpop.f32.mrb[65].mxu1 }
 0x876   : > { %v26904_v58 = vpop.f32.mrb[66].mxu1 }
 0x877   : > { %v20384_v44 = vpop.f32.mrb[67].mxu1  ;;  %20488 = vmatmul.mubr.msk.bf16.vlgmr.msra.gmra.mrb[160].mxu1 %vm14275_vm12, %v15439_v33  ;;  %v15718_v33 = vshrl.u32 %v17835_v61, 16 }
 0x878   : > { %20508 = vmatpush3.bf16.msra.mxu1 %v22174_v32  ;;  %20491 = vmatprep.mubr.msk.bf16.mxu1 %vm22328_vm11, %v22327_v19  ;;  %v15721_v44 = vshll.u32 %v17835_v61, 16 }
 0x879   : > { %20529 = vmatprep.subr.bf16.mxu1 %v22327_v19 }
 0x87f   : > { %20492 = vmatmul.mubr.msk.bf16.gmra.mrb[164].mxu1 %vm14275_vm12, %v15441_v17 }
 0x880   : > { %20495 = vmatprep.mubr.msk.bf16.mxu1 %vm22328_vm11, %v22327_v19 }
 0x887   : > { %20496 = vmatmul.mubr.msk.bf16.gmra.mrb[168].mxu1 %vm14275_vm12, %v15443_v38  ;;  %v15728_v38 = vrot.slane %v15726_v3, 2 }
 0x888   : > { %20499 = vmatprep.mubr.msk.bf16.mxu1 %vm22328_vm11, %v22327_v19 }
 0x88c   : > { %v14848_v46 = vpop.f32.mrb[68].mxu1 }
 0x88d   : > { %v20387_v8 = vpop.f32.mrb[69].mxu1 }
 0x88e   : > { %v14851_v16 = vpop.f32.mrb[70].mxu1  ;;  %v15720_v8 = vrot.slane %v15718_v33, 2 }
 0x88f   : > { %20500 = vmatmul.mubr.msk.bf16.gmra.mrb[172].mxu1 %vm14275_vm12, %v15445_v26  ;;  %v20388_v63 = vpop.f32.mrb[71].mxu1 }
 0x890   : > { %20503 = vmatprep.mubr.msk.bf16.mxu1 %vm22328_vm11, %v22327_v19  ;;  %v15735_v63 = vshrl.u32 %v26756_v5, 16 }
 0x897   : > { %20504 = vmatmul.mubr.msk.bf16.gmra.mrb[176].mxu1 %vm14275_vm12, %v15447_v56 }
 0x898   : > { %20509 = vmatprep.mubr.msk.bf16.mxu1 %vm22328_vm11, %v22327_v19 }
 0x89a   : > { %v26930_v25 = vpop.f32.mrb[72].mxu1 }
 0x89b   : > { %v20391_v9 = vpop.f32.mrb[73].mxu1 }
 0x89c   : > { %v26933_v11 = vpop.f32.mrb[74].mxu1 }
 0x89d   : > { %v20392_v29 = vpop.f32.mrb[75].mxu1 }
 0x89e   : > { %v15737_v29 = vrot.slane %v15735_v63, 2 }
 0x89f   : > { %20510 = vmatmul.mubr.msk.bf16.vlgmr.msra.gmra.mrb[180].mxu1 %vm14275_vm12, %v15596_v48  ;;  %v15740_v48 = vrot.slane %v15738_v39, 3 }
 0x8a0   : > { %20530 = vmatpush3.bf16.msra.mxu1 %v22177_v40  ;;  %20513 = vmatprep.mubr.msk.bf16.mxu1 %vm22328_vm11, %v22327_v19 }
 0x8a1   : > { %20551 = vmatprep.subr.bf16.mxu1 %v22327_v19 }
 0x8a2   : > { %v26943_v27 = vpop.f32.mrb[76].mxu1 }
 0x8a3   : > { %v20395_v50 = vpop.f32.mrb[77].mxu1 }
 0x8a4   : > { %v26946_v34 = vpop.f32.mrb[78].mxu1 }
 0x8a5   : > { %v20396_v15 = vpop.f32.mrb[79].mxu1 }
 0x8a7   : > { %20514 = vmatmul.mubr.msk.bf16.gmra.mrb[184].mxu1 %vm14275_vm12, %v15598_v20 }
 0x8a8   : > { %20517 = vmatprep.mubr.msk.bf16.mxu1 %vm22328_vm11, %v22327_v19 }
 0x8aa   : > { %v14925_v10 = vpop.f32.mrb[80].mxu1 }
 0x8ab   : > { %v26954_v62 = vadd.f32 %v14925_v10, %v26887_v14  ;;  %v20401_v53 = vpop.f32.mrb[81].mxu1 }
 0x8ac   : > { %v14928_v60 = vpop.f32.mrb[82].mxu1 }
 0x8ad   : > { %v26957_v59 = vadd.f32 %v14928_v60, %v26891_v23  ;;  %v20402_v55 = vpop.f32.mrb[83].mxu1  ;;  %v15746_v60 = vrot.slane %v15744_v49, 2 }
 0x8af   : > { %20518 = vmatmul.mubr.msk.bf16.gmra.mrb[188].mxu1 %vm14275_vm12, %v15600_v45 }
 0x8b0   : > { %20521 = vmatprep.mubr.msk.bf16.mxu1 %vm22328_vm11, %v22327_v19 }
 0x8b2   : > { %v14933_v1 = vpop.f32.mrb[84].mxu1 }
 0x8b3   : > { %v26965_v54 = vadd.f32 %v14933_v1, %v26899_v37  ;;  %v20405_v14 = vpop.f32.mrb[85].mxu1  ;;  %v15729_v37 = vshll.u32 %v26752_v57, 16  ;;  %v15723_v57 = vrot.slane %v15721_v44, 3 }
 0x8b4   : > { %v14936_v13 = vpop.f32.mrb[86].mxu1 }
 0x8b5   : > { %v26968_v4 = vadd.f32 %v14936_v13, %v26904_v58  ;;  %v20406_v23 = vpop.f32.mrb[87].mxu1  ;;  %v15731_v52 = vrot.slane %v15729_v37, 3  ;;  %v15724_v61 = vor.u32 %v15723_v57, %v15720_v8 }
 0x8b7   : > { %20522 = vmatmul.mubr.msk.bf16.gmra.mrb[192].mxu1 %vm14275_vm12, %v15602_v22  ;;  %v15732_v26 = vor.u32 %v15731_v52, %v15728_v38 }
 0x8b8   : > { %20525 = vmatprep.mubr.msk.bf16.mxu1 %vm22328_vm11, %v22327_v19 }
 0x8b9   : > { %v15733_v40 = vsel %vm15716_vm6, %v15724_v61, %v15732_v26 }
 0x8ba   : > { %v14941_v0 = vpop.f32.mrb[88].mxu1 }
 0x8bb   : > { %v26976_v32 = vadd.f32 %v14941_v0, %v14848_v46  ;;  %v20409_v24 = vpop.f32.mrb[89].mxu1 }
 0x8bc   : > { %v14944_v58 = vpop.f32.mrb[90].mxu1  ;;  %v15765_v24 = vshll.u32 %v27013_v36, 16 }
 0x8bd   : > { %v26978_v6 = vadd.f32 %v14944_v58, %v14851_v16  ;;  %v20410_v17 = vpop.f32.mrb[91].mxu1 }
 0x8be   : > { %v15767_v52 = vrot.slane %v15765_v24, 3 }
 0x8bf   : > { %20526 = vmatmul.mubr.msk.bf16.gmra.mrb[196].mxu1 %vm14275_vm12, %v15604_v21 }
 0x8c0   : > { %20531 = vmatprep.mubr.msk.bf16.mxu1 %vm22328_vm11, %v22327_v19 }
 0x8c2   : > { %v14949_v46 = vpop.f32.mrb[92].mxu1 }
 0x8c3   : > { %v26987_v16 = vadd.f32 %v14949_v46, %v26930_v25  ;;  %v20413_v56 = vpop.f32.mrb[93].mxu1  ;;  %v15741_v25 = vor.u32 %v15740_v48, %v15737_v29 }
 0x8c4   : > { %v14952_v31 = vpop.f32.mrb[94].mxu1 }
 0x8c5   : > { %v26993_v9 = vadd.f32 %v14952_v31, %v26933_v11  ;;  %v20414_v18 = vpop.f32.mrb[95].mxu1  ;;  %v15747_v11 = vshll.u32 %v26760_v42, 16  ;;  %v15742_v53 = vsel %vm15716_vm6, %v15732_v26, %v15741_v25  ;;  %v15753_v42 = vshrl.u32 %v26764_v47, 16 }
 0x8c7   : > { %20532 = vmatmul.mubr.msk.bf16.vlgmr.msra.gmra.mrb[200].mxu1 %vm14275_vm12, %v15733_v40  ;;  %v15749_v55 = vrot.slane %v15747_v11, 3  ;;  %v15755_v12 = vrot.slane %v15753_v42, 2 }
 0x8c8   : > { %20552 = vmatpush3.bf16.msra.mxu1 %v22182_v28  ;;  %20535 = vmatprep.mubr.msk.bf16.mxu1 %vm22328_vm11, %v22327_v19 }
 0x8c9   : > { %20573 = vmatprep.subr.bf16.mxu1 %v22327_v19  ;;  %v15750_v1 = vor.u32 %v15749_v55, %v15746_v60  ;;  %v15891_v55 = vrot.slane %v27013_v36, 3 }
 0x8ca   : > { %v14957_v5 = vpop.f32.mrb[96].mxu1 }
 0x8cb   : > { %v14958_v50 = vadd.f32 %v14957_v5, %v26943_v27  ;;  %v20417_v15 = vpop.f32.mrb[97].mxu1  ;;  %v15756_v27 = vshll.u32 %v26764_v47, 16  ;;  %v15751_v22 = vsel %vm15716_vm6, %v15741_v25, %v15750_v1 }
 0x8cc   : > { %v14960_v20 = vpop.f32.mrb[98].mxu1 }
 0x8cd   : > { %v14961_v10 = vadd.f32 %v14960_v20, %v26946_v34  ;;  %v20418_v30 = vpop.f32.mrb[99].mxu1  ;;  %v15758_v0 = vrot.slane %v15756_v27, 3 }
 0x8cf   : > { %20536 = vmatmul.mubr.msk.bf16.gmra.mrb[204].mxu1 %vm14275_vm12, %v15742_v53  ;;  %v15759_v37 = vor.u32 %v15758_v0, %v15755_v12 }
 0x8d0   : > { %20539 = vmatprep.mubr.msk.bf16.mxu1 %vm22328_vm11, %v22327_v19 }
 0x8d1   : > { %v15760_v21 = vsel %vm15716_vm6, %v15750_v1, %v15759_v37 }
 0x8d2   : > { %v15035_v45 = vpop.f32.mrb[100].mxu1 }
 0x8d3   : > { %v15074_v2 = vadd.f32 %v15035_v45, %v26954_v62  ;;  %v20423_v14 = vpop.f32.mrb[101].mxu1  ;;  %v15762_v62 = vshrl.u32 %v27013_v36, 16 }
 0x8d4   : > { %v15038_v34 = vpop.f32.mrb[102].mxu1 }
 0x8d5   : > { %v15075_v13 = vadd.f32 %v15038_v34, %v26957_v59  ;;  %v20424_v23 = vpop.f32.mrb[103].mxu1  ;;  %v15764_v38 = vrot.slane %v15762_v62, 2 }
 0x8d7   : > { %20540 = vmatmul.mubr.msk.bf16.gmra.mrb[208].mxu1 %vm14275_vm12, %v15751_v22  ;;  %v15768_v57 = vor.u32 %v15767_v52, %v15764_v38 }
 0x8d8   : > { %20543 = vmatprep.mubr.msk.bf16.mxu1 %vm22328_vm11, %v22327_v19 }
 0x8da   : > { %v15043_v3 = vpop.f32.mrb[104].mxu1 }
 0x8db   : > { %v15076_v59 = vadd.f32 %v15043_v3, %v26965_v54  ;;  %v20427_v58 = vpop.f32.mrb[105].mxu1 }
 0x8dc   : > { %v15046_v33 = vpop.f32.mrb[106].mxu1 }
 0x8dd   : > { %v15077_v44 = vadd.f32 %v15046_v33, %v26968_v4  ;;  %v20428_v17 = vpop.f32.mrb[107].mxu1  ;;  %v15769_v4 = vsel %vm15716_vm6, %v15759_v37, %v15768_v57 }
 0x8df   : > { %20544 = vmatmul.mubr.msk.bf16.gmra.mrb[212].mxu1 %vm14275_vm12, %v15760_v21 }
 0x8e0   : > { %20547 = vmatprep.mubr.msk.bf16.mxu1 %vm22328_vm11, %v22327_v19 }
 0x8e2   : > { %v15051_v8 = vpop.f32.mrb[108].mxu1 }
 0x8e3   : > { %v15078_v46 = vadd.f32 %v15051_v8, %v26976_v32  ;;  %v20431_v26 = vpop.f32.mrb[109].mxu1 }
 0x8e4   : > { %v15054_v54 = vpop.f32.mrb[110].mxu1 }
 0x8e5   : > { %v15079_v63 = vadd.f32 %v15054_v54, %v26978_v6  ;;  %v20432_v39 = vpop.f32.mrb[111].mxu1 }
 0x8e7   : > { %20548 = vmatmul.mubr.msk.bf16.gmra.mrb[216].mxu1 %vm14275_vm12, %v15769_v4 }
 0x8e8   : > { %20553 = vmatprep.mubr.msk.bf16.mxu1 %vm22328_vm11, %v22327_v19 }
 0x8ea   : > { %v15059_v56 = vpop.f32.mrb[112].mxu1 }
 0x8eb   : > { %v15080_v31 = vadd.f32 %v15059_v56, %v26987_v16  ;;  %v20435_v61 = vpop.f32.mrb[113].mxu1 }
 0x8ec   : > { %v15062_v28 = vpop.f32.mrb[114].mxu1 }
 0x8ed   : > { %v15081_v18 = vadd.f32 %v15062_v28, %v26993_v9  ;;  %v20436_v32 = vpop.f32.mrb[115].mxu1 }
 0x8ef   : > { %20554 = vmatmul.mubr.msk.bf16.vlgmr.msra.gmra.mrb[220].mxu1 %vm14275_vm12, %v26770_v35 }
 0x8f0   : > { %20557 = vmatprep.mubr.msk.bf16.mxu1 %vm22328_vm11, %v22327_v19 }
 0x8f2   : > { %v15067_v6 = vpop.f32.mrb[116].mxu1 }
 0x8f3   : > { %v15082_v40 = vadd.f32 %v15067_v6, %v14958_v50  ;;  %v20439_v29 = vpop.f32.mrb[117].mxu1 }
 0x8f4   : > { %v15070_v48 = vpop.f32.mrb[118].mxu1 }
 0x8f5   : > { %v15083_v5 = vadd.f32 %v15070_v48, %v14961_v10  ;;  %v20440_v25 = vpop.f32.mrb[119].mxu1 }
 0x8f7   : > { %20558 = vmatmul.mubr.msk.bf16.gmra.mrb[224].mxu1 %vm14275_vm12, %v26774_v41 }
 0x8f8   : > { %20561 = vmatprep.mubr.msk.bf16.mxu1 %vm22328_vm11, %v22327_v19 }
 0x8fa   : > { %v15186_v16 = vpop.f32.mrb[120].mxu1 }
 0x8fb   : > { %v15225_v9 = vadd.f32 %v15186_v16, %v15074_v2  ;;  %v20445_v49 = vpop.f32.mrb[121].mxu1  ;;  %v15892_v2 = vsel %vm15881_vm3, %v15889_v43, %v15891_v55  ;;  %vm16075_vm3 = vcmask 254976  }
 0x8fc   : > { %v15189_v11 = vpop.f32.mrb[122].mxu1 }
 0x8fd   : > { %v15226_v35 = vadd.f32 %v15189_v11, %v15075_v13  ;;  %v20446_v15 = vpop.f32.mrb[123].mxu1 }
 0x8ff   : > { %20562 = vmatmul.mubr.msk.bf16.gmra.mrb[228].mxu1 %vm14275_vm12, %v26778_v51 }
 0x900   : > { %20565 = vmatprep.mubr.msk.bf16.mxu1 %vm22328_vm11, %v22327_v19 }
 0x902   : > { %v15194_v50 = vpop.f32.mrb[124].mxu1 }
 0x903   : > { %v15227_v20 = vadd.f32 %v15194_v50, %v15076_v59  ;;  %v20449_v10 = vpop.f32.mrb[125].mxu1 }
 0x904   : > { %v15197_v30 = vpop.f32.mrb[126].mxu1 }
 0x905   : > { %v15228_v41 = vadd.f32 %v15197_v30, %v15077_v44  ;;  %v20450_v53 = vpop.f32.mrb[127].mxu1 }
 0x907   : > { %20566 = vmatmul.mubr.msk.bf16.gmra.mrb[232].mxu1 %vm14275_vm12, %v26783_v7 }
 0x908   : > { %20569 = vmatprep.mubr.msk.bf16.mxu1 %vm22328_vm11, %v22327_v19 }
 0x90a   : > { %v15202_v60 = vpop.f32.mrb[128].mxu1 }
 0x90b   : > { %v15229_v45 = vadd.f32 %v15202_v60, %v15078_v46  ;;  %v20453_v51 = vpop.f32.mrb[129].mxu1 }
 0x90c   : > { %v15205_v1 = vpop.f32.mrb[130].mxu1 }
 0x90d   : > { %v15230_v42 = vadd.f32 %v15205_v1, %v15079_v63  ;;  %v20454_v27 = vpop.f32.mrb[131].mxu1 }
 0x90f   : > { %20570 = vmatmul.mubr.msk.bf16.gmra.mrb[236].mxu1 %vm14275_vm12, %v15892_v2  ;;  %vm16052_vm12 = vcmask 261120  }
 0x910   : > { %20577 = vmatprep.mubr.msk.bf16.mxu1 %vm22328_vm11, %v22327_v19 }
 0x912   : > { %v15210_v7 = vpop.f32.mrb[132].mxu1 }
 0x913   : > { %v15231_v14 = vadd.f32 %v15210_v7, %v15080_v31  ;;  %v20457_v34 = vpop.f32.mrb[133].mxu1 }
 0x914   : > { %v15213_v13 = vpop.f32.mrb[134].mxu1 }
 0x915   : > { %v15232_v23 = vadd.f32 %v15213_v13, %v15081_v18  ;;  %v20458_v22 = vpop.f32.mrb[135].mxu1 }
 0x91a   : > { %v15218_v12 = vpop.f32.mrb[136].mxu1 }
 0x91b   : > { %v15233_v0 = vadd.f32 %v15218_v12, %v15082_v40  ;;  %v20461_v36 = vpop.f32.mrb[137].mxu1 }
 0x91c   : > { %v15221_v3 = vpop.f32.mrb[138].mxu1 }
 0x91d   : > { %v15234_v37 = vadd.f32 %v15221_v3, %v15083_v5  ;;  %v20462_v62 = vpop.f32.mrb[139].mxu1  ;;  %v22184_v3 = vld [vmem:[%s27287_s5 + $0x10] sm:$0xff]  }
 0x91e   : > { %20574 = vmatpush3.bf16.msra.mxu1 %v22184_v3  ;;  %v27074_v3 = vld [vmem:[%s27286_s4] ss:$0 sm:$0xff] }
 0x91f   : > { %20575 = vmatprep.subr.bf16.mxu1 %v22327_v19 }
 0x922   : > { %v15381_v47 = vpop.f32.mrb[140].mxu1 }
 0x923   : > { %v15420_v24 = vadd.f32 %v15381_v47, %v15225_v9  ;;  %v20467_v43 = vpop.f32.mrb[141].mxu1 }
 0x924   : > { %v15384_v59 = vpop.f32.mrb[142].mxu1 }
 0x925   : > { %v15421_v58 = vadd.f32 %v15384_v59, %v15226_v35  ;;  %v20468_v33 = vpop.f32.mrb[143].mxu1 }
 0x92a   : > { %v15389_v44 = vpop.f32.mrb[144].mxu1 }
 0x92b   : > { %v15422_v17 = vadd.f32 %v15389_v44, %v15227_v20  ;;  %v20471_v21 = vpop.f32.mrb[145].mxu1 }
 0x92c   : > { %v15392_v38 = vpop.f32.mrb[146].mxu1 }
 0x92d   : > { %v15423_v52 = vadd.f32 %v15392_v38, %v15228_v41  ;;  %v20472_v8 = vpop.f32.mrb[147].mxu1 }
 0x932   : > { %v15397_v57 = vpop.f32.mrb[148].mxu1 }
 0x933   : > { %v15424_v46 = vadd.f32 %v15397_v57, %v15229_v45  ;;  %v20475_v26 = vpop.f32.mrb[149].mxu1 }
 0x934   : > { %v15400_v54 = vpop.f32.mrb[150].mxu1 }
 0x935   : > { %v15425_v63 = vadd.f32 %v15400_v54, %v15230_v42  ;;  %v20476_v39 = vpop.f32.mrb[151].mxu1 }
 0x93a   : > { %v15405_v4 = vpop.f32.mrb[152].mxu1 }
 0x93b   : > { %v15426_v56 = vadd.f32 %v15405_v4, %v15231_v14  ;;  %v20479_v31 = vpop.f32.mrb[153].mxu1 }
 0x93c   : > { %v15408_v61 = vpop.f32.mrb[154].mxu1 }
 0x93d   : > { %v15427_v28 = vadd.f32 %v15408_v61, %v15232_v23  ;;  %v20480_v18 = vpop.f32.mrb[155].mxu1 }
 0x942   : > { %v15413_v32 = vpop.f32.mrb[156].mxu1 }
 0x943   : > { %v15428_v6 = vadd.f32 %v15413_v32, %v15233_v0  ;;  %v20483_v40 = vpop.f32.mrb[157].mxu1 }
 0x944   : > { %v15416_v29 = vpop.f32.mrb[158].mxu1 }
 0x945   : > { %v15429_v48 = vadd.f32 %v15416_v29, %v15234_v37  ;;  %v20484_v5 = vpop.f32.mrb[159].mxu1 }
 0x94a   : > { %v15503_v25 = vpop.f32.mrb[160].mxu1 }
 0x94b   : > { %v15542_v16 = vadd.f32 %v15503_v25, %v15420_v24  ;;  %v20489_v9 = vpop.f32.mrb[161].mxu1 }
 0x94c   : > { %v15506_v49 = vpop.f32.mrb[162].mxu1 }
 0x94d   : > { %v15543_v11 = vadd.f32 %v15506_v49, %v15421_v58  ;;  %v20490_v35 = vpop.f32.mrb[163].mxu1 }
 0x952   : > { %v15511_v15 = vpop.f32.mrb[164].mxu1 }
 0x953   : > { %v15544_v50 = vadd.f32 %v15511_v15, %v15422_v17  ;;  %v20493_v20 = vpop.f32.mrb[165].mxu1 }
 0x954   : > { %v15514_v10 = vpop.f32.mrb[166].mxu1 }
 0x955   : > { %v15545_v30 = vadd.f32 %v15514_v10, %v15423_v52  ;;  %v20494_v41 = vpop.f32.mrb[167].mxu1  ;;  %v22185_v52 = vld [vmem:[%s27287_s5 + $0x18] sm:$0xff]  }
 0x956   : > { %20576 = vmatpush3.bf16.msra.mxu1 %v22185_v52 }
 0x957   : > { %20581 = vmatprep.subr.bf16.mxu1 %v22327_v19 }
 0x95a   : > { %v15519_v53 = vpop.f32.mrb[168].mxu1 }
 0x95b   : > { %v15546_v60 = vadd.f32 %v15519_v53, %v15424_v46  ;;  %v20497_v55 = vpop.f32.mrb[169].mxu1 }
 0x95c   : > { %v15522_v45 = vpop.f32.mrb[170].mxu1 }
 0x95d   : > { %v15547_v51 = vadd.f32 %v15522_v45, %v15425_v63  ;;  %v20498_v1 = vpop.f32.mrb[171].mxu1 }
 0x962   : > { %v15527_v42 = vpop.f32.mrb[172].mxu1 }
 0x963   : > { %v15548_v27 = vadd.f32 %v15527_v42, %v15426_v56  ;;  %v20501_v2 = vpop.f32.mrb[173].mxu1 }
 0x964   : > { %v15530_v7 = vpop.f32.mrb[174].mxu1 }
 0x965   : > { %v15549_v14 = vadd.f32 %v15530_v7, %v15427_v28  ;;  %v20502_v34 = vpop.f32.mrb[175].mxu1 }
 0x96a   : > { %v15535_v13 = vpop.f32.mrb[176].mxu1 }
 0x96b   : > { %v15550_v23 = vadd.f32 %v15535_v13, %v15428_v6  ;;  %v20505_v22 = vpop.f32.mrb[177].mxu1 }
 0x96c   : > { %v15538_v12 = vpop.f32.mrb[178].mxu1 }
 0x96d   : > { %v15551_v0 = vadd.f32 %v15538_v12, %v15429_v48  ;;  %v20506_v36 = vpop.f32.mrb[179].mxu1 }
 0x972   : > { %v15660_v37 = vpop.f32.mrb[180].mxu1 }
 0x973   : > { %v15699_v62 = vadd.f32 %v15660_v37, %v15542_v16  ;;  %v20511_v47 = vpop.f32.mrb[181].mxu1 }
 0x974   : > { %v15663_v24 = vpop.f32.mrb[182].mxu1 }
 0x975   : > { %v15700_v43 = vadd.f32 %v15663_v24, %v15543_v11  ;;  %v20512_v59 = vpop.f32.mrb[183].mxu1 }
 0x97a   : > { %v15668_v58 = vpop.f32.mrb[184].mxu1 }
 0x97b   : > { %v15701_v33 = vadd.f32 %v15668_v58, %v15544_v50  ;;  %v20515_v44 = vpop.f32.mrb[185].mxu1  ;;  %v27080_v58 = vld [vmem:[%s27286_s4 + $0x1] ss:$0 sm:$0xff] }
 0x97c   : > { %v15671_v17 = vpop.f32.mrb[186].mxu1 }
 0x97d   : > { %v15702_v21 = vadd.f32 %v15671_v17, %v15545_v30  ;;  %v20516_v38 = vpop.f32.mrb[187].mxu1  ;;  %v27086_v17 = vld [vmem:[%s27286_s4 + $0x2] ss:$0 sm:$0xff] }
 0x982   : > { %v15676_v8 = vpop.f32.mrb[188].mxu1 }
 0x983   : > { %v15703_v57 = vadd.f32 %v15676_v8, %v15546_v60  ;;  %v20519_v46 = vpop.f32.mrb[189].mxu1 }
 0x984   : > { %v15679_v26 = vpop.f32.mrb[190].mxu1 }
 0x985   : > { %v15704_v54 = vadd.f32 %v15679_v26, %v15547_v51  ;;  %v20520_v63 = vpop.f32.mrb[191].mxu1 }
 0x98a   : > { %v15684_v39 = vpop.f32.mrb[192].mxu1 }
 0x98b   : > { %v15705_v4 = vadd.f32 %v15684_v39, %v15548_v27  ;;  %v20523_v56 = vpop.f32.mrb[193].mxu1 }
 0x98c   : > { %v15687_v31 = vpop.f32.mrb[194].mxu1 }
 0x98d   : > { %v15706_v61 = vadd.f32 %v15687_v31, %v15549_v14  ;;  %v20524_v28 = vpop.f32.mrb[195].mxu1 }
 0x992   : > { %v15692_v18 = vpop.f32.mrb[196].mxu1 }
 0x993   : > { %v15707_v32 = vadd.f32 %v15692_v18, %v15550_v23  ;;  %v20527_v6 = vpop.f32.mrb[197].mxu1 }
 0x994   : > { %v15695_v40 = vpop.f32.mrb[198].mxu1 }
 0x995   : > { %v15708_v29 = vadd.f32 %v15695_v40, %v15551_v0  ;;  %v20528_v48 = vpop.f32.mrb[199].mxu1 }
 0x99a   : > { %v15825_v5 = vpop.f32.mrb[200].mxu1 }
 0x99b   : > { %v15864_v25 = vadd.f32 %v15825_v5, %v15699_v62  ;;  %v20533_v16 = vpop.f32.mrb[201].mxu1 }
 0x99c   : > { %v15828_v9 = vpop.f32.mrb[202].mxu1 }
 0x99d   : > { %v15865_v49 = vadd.f32 %v15828_v9, %v15700_v43  ;;  %v20534_v11 = vpop.f32.mrb[203].mxu1 }
 0x9a2   : > { %v15833_v35 = vpop.f32.mrb[204].mxu1 }
 0x9a3   : > { %v15866_v15 = vadd.f32 %v15833_v35, %v15701_v33  ;;  %v20537_v50 = vpop.f32.mrb[205].mxu1 }
 0x9a4   : > { %v15836_v20 = vpop.f32.mrb[206].mxu1 }
 0x9a5   : > { %v15867_v10 = vadd.f32 %v15836_v20, %v15702_v21  ;;  %v20538_v30 = vpop.f32.mrb[207].mxu1 }
 0x9aa   : > { %v15841_v41 = vpop.f32.mrb[208].mxu1 }
 0x9ab   : > { %v15868_v53 = vadd.f32 %v15841_v41, %v15703_v57  ;;  %v20541_v60 = vpop.f32.mrb[209].mxu1 }
 0x9ac   : > { %v15844_v55 = vpop.f32.mrb[210].mxu1 }
 0x9ad   : > { %v15869_v45 = vadd.f32 %v15844_v55, %v15704_v54  ;;  %v20542_v51 = vpop.f32.mrb[211].mxu1 }
 0x9b2   : > { %v15849_v1 = vpop.f32.mrb[212].mxu1 }
 0x9b3   : > { %v15870_v42 = vadd.f32 %v15849_v1, %v15705_v4  ;;  %v20545_v27 = vpop.f32.mrb[213].mxu1 }
 0x9b4   : > { %v15852_v2 = vpop.f32.mrb[214].mxu1 }
 0x9b5   : > { %v27065_v7 = vadd.f32 %v15852_v2, %v15706_v61  ;;  %v20546_v14 = vpop.f32.mrb[215].mxu1 }
 0x9ba   : > { %v15857_v34 = vpop.f32.mrb[216].mxu1 }
 0x9bb   : > { %v27067_v13 = vadd.f32 %v15857_v34, %v15707_v32  ;;  %v20549_v23 = vpop.f32.mrb[217].mxu1 }
 0x9bc   : > { %v15860_v22 = vpop.f32.mrb[218].mxu1 }
 0x9bd   : > { %v27069_v12 = vadd.f32 %v15860_v22, %v15708_v29  ;;  %v20550_v0 = vpop.f32.mrb[219].mxu1 }
 0x9c2   : > { %v15948_v36 = vpop.f32.mrb[220].mxu1 }
 0x9c3   : > { %v15987_v37 = vadd.f32 %v15948_v36, %v15864_v25  ;;  %v20555_v62 = vpop.f32.mrb[221].mxu1 }
 0x9c4   : > { %v15951_v47 = vpop.f32.mrb[222].mxu1 }
 0x9c5   : > { %v16004_v24 = vadd.f32 %v27074_v3, %v15987_v37  ;;  %v15988_v43 = vadd.f32 %v15951_v47, %v15865_v49  ;;  %v20556_v59 = vpop.f32.mrb[223].mxu1 }
 0x9c7   : > { %v16014_v33 = vmax.f32 %v16004_v24, 0.0  ;;  %v16005_v44 = vadd.f32 %v27074_v3, %v15988_v43 }
 0x9c9   : > { %v16028_v21 = vmul.f32 %v27080_v58, %v16014_v33  ;;  %v16015_v38 = vmax.f32 %v16005_v44, 0.0 }
 0x9ca   : > { %v15956_v52 = vpop.f32.mrb[224].mxu1 }
 0x9cb   : > { %v16042_v8 = vadd.f32 %v27086_v17, %v16028_v21  ;;  %v16029_v57 = vmul.f32 %v27080_v58, %v16015_v38  ;;  %v15989_v46 = vadd.f32 %v15956_v52, %v15866_v15  ;;  %v20559_v26 = vpop.f32.mrb[225].mxu1 }
 0x9cc   : > { %v15959_v54 = vpop.f32.mrb[226].mxu1 }
 0x9cd   : > { %16053 = vst.msk [vmem:[#allocation5] sm:$0xff] %vm16052_vm12, %v16042_v8  ;;  %v16043_v63 = vadd.f32 %v27086_v17, %v16029_v57  ;;  %v16006_v39 = vadd.f32 %v27074_v3, %v15989_v46  ;;  %v15990_v4 = vadd.f32 %v15959_v54, %v15867_v10  ;;  %v20560_v56 = vpop.f32.mrb[227].mxu1 }
 0x9cf   : > { %16054 = vst.msk [vmem:[#allocation5 + $0x8] sm:$0xff] %vm16052_vm12, %v16043_v63  ;;  %v16016_v31 = vmax.f32 %v16006_v39, 0.0  ;;  %v16007_v61 = vadd.f32 %v27074_v3, %v15990_v4 }
 0x9d1   : > { %v16030_v28 = vmul.f32 %v27080_v58, %v16016_v31  ;;  %v16017_v18 = vmax.f32 %v16007_v61, 0.0 }
 0x9d2   : > { %v15964_v32 = vpop.f32.mrb[228].mxu1 }
 0x9d3   : > { %v16044_v6 = vadd.f32 %v27086_v17, %v16030_v28  ;;  %v16031_v40 = vmul.f32 %v27080_v58, %v16017_v18  ;;  %v15991_v29 = vadd.f32 %v15964_v32, %v15868_v53  ;;  %v20563_v48 = vpop.f32.mrb[229].mxu1 }
 0x9d4   : > { %v15967_v16 = vpop.f32.mrb[230].mxu1  ;;  %v16064_v15 = vld [vmem:[#allocation5] ss:$2 sm:$0xf] }
 0x9d5   : > { %16055 = vst.msk [vmem:[#allocation5 + $0x10] sm:$0xff] %vm16052_vm12, %v16044_v6  ;;  %v16045_v5 = vadd.f32 %v27086_v17, %v16031_v40  ;;  %v16008_v25 = vadd.f32 %v27074_v3, %v15991_v29  ;;  %v15992_v9 = vadd.f32 %v15967_v16, %v15869_v45  ;;  %v20564_v49 = vpop.f32.mrb[231].mxu1  ;;  %v16066_v20 = vld [vmem:[#allocation5 + $0x1] ss:$2 sm:$0xf] }
 0x9d6   : > { %v16071_v1 = vmax.f32 %v16064_v15, %v16066_v20 }
 0x9d7   : > { %16056 = vst.msk [vmem:[#allocation5 + $0x18] sm:$0xff] %vm16052_vm12, %v16045_v5  ;;  %v16018_v11 = vmax.f32 %v16008_v25, 0.0  ;;  %v16009_v35 = vadd.f32 %v27074_v3, %v15992_v9 }
 0x9d9   : > { %v16032_v50 = vmul.f32 %v27080_v58, %v16018_v11  ;;  %v16019_v10 = vmax.f32 %v16009_v35, 0.0 }
 0x9da   : > { %v15972_v30 = vpop.f32.mrb[232].mxu1 }
 0x9db   : > { %v16046_v41 = vadd.f32 %v27086_v17, %v16032_v50  ;;  %v15993_v53 = vadd.f32 %v15972_v30, %v15870_v42  ;;  %v20567_v60 = vpop.f32.mrb[233].mxu1  ;;  %v16033_v45 = vmul.f32 %v27080_v58, %v16019_v10 }
 0x9dc   : > { %v16068_v55 = vld [vmem:[#allocation5 + $0xa] ss:$2 sm:$0xf]  ;;  %v16070_v51 = vld [vmem:[#allocation5 + $0xb] ss:$2 sm:$0xf] }
 0x9dd   : > { %v16072_v27 = vmax.f32 %v16068_v55, %v16070_v51  ;;  %16057 = vst.msk [vmem:[#allocation5 + $0x20] sm:$0xff] %vm16052_vm12, %v16046_v41  ;;  %v16010_v2 = vadd.f32 %v27074_v3, %v15993_v53  ;;  %v15975_v14 = vpop.f32.mrb[234].mxu1  ;;  %v16047_v34 = vadd.f32 %v27086_v17, %v16033_v45  ;;  %v22187_v45 = vld [vmem:[%s27287_s5 + $0x8] sm:$0xff]  }
 0x9de   : > { %v15994_v23 = vadd.f32 %v15975_v14, %v27065_v7  ;;  %v20568_v36 = vpop.f32.mrb[235].mxu1  ;;  %v16078_v62 = vld [vmem:[#allocation5 + $0x14] ss:$2 sm:$0xf] }
 0x9df   : > { %v16073_v22 = vmax.f32 %v16071_v1, %v16072_v27  ;;  %v16020_v0 = vmax.f32 %v16010_v2, 0.0  ;;  %16058 = vst.msk [vmem:[#allocation5 + $0x28] sm:$0xff] %vm16052_vm12, %v16047_v34  ;;  %v16080_v24 = vld [vmem:[#allocation5 + $0x15] ss:$2 sm:$0xf]  ;;  %v22188_v27 = vld [vmem:[%s27287_s5 + $0x20] sm:$0xff]  }
 0x9e0   : > { %v16011_v42 = vadd.f32 %v27074_v3, %v15994_v23  ;;  %v16085_v8 = vmax.f32 %v16078_v62, %v16080_v24  ;;  %v22189_v14 = vld [vmem:[%s27287_s5 + $0x28] sm:$0xff]   ;;  %v22190_v23 = vld [vmem:[%s27287_s5 + $0x30] sm:$0xff]  }
 0x9e1   : > { %v16074_v37 = vpack.c.bf16 %v16073_v22, %v16073_v22  ;;  %v16034_v47 = vmul.f32 %v27080_v58, %v16020_v0  ;;  %v22191_v0 = vld [vmem:[%s27287_s5 + $0x38] sm:$0xff]  }
 0x9e2   : > { %v16021_v43 = vmax.f32 %v16011_v42, 0.0  ;;  %v15980_v59 = vpop.f32.mrb[236].mxu1 }
 0x9e3   : > { %16076 = vst.msk [vmem:[#allocation6] sm:$0x3] %vm16075_vm3, %v16074_v37  ;;  %v16048_v33 = vadd.f32 %v27086_v17, %v16034_v47  ;;  %v15995_v7 = vadd.f32 %v15980_v59, %v27067_v13  ;;  %v20571_v44 = vpop.f32.mrb[237].mxu1  ;;  %v22192_v37 = vld [vmem:[%s27287_s5 + $0x40] sm:$0xff]  }
 0x9e4   : > { %v16082_v21 = vld [vmem:[#allocation5 + $0x1e] ss:$2 sm:$0xf]  ;;  %v16084_v38 = vld [vmem:[#allocation5 + $0x1f] ss:$2 sm:$0xf]  ;;  %v16035_v52 = vmul.f32 %v27080_v58, %v16021_v43 }
 0x9e5   : > { %v16086_v57 = vmax.f32 %v16082_v21, %v16084_v38  ;;  %16059 = vst.msk [vmem:[#allocation5 + $0x30] sm:$0xff] %vm16052_vm12, %v16048_v33  ;;  %v16012_v46 = vadd.f32 %v27074_v3, %v15995_v7  ;;  %v15983_v26 = vpop.f32.mrb[238].mxu1  ;;  %v22193_v43 = vld [vmem:[%s27287_s5 + $0x48] sm:$0xff]   ;;  %v22194_v7 = vld [vmem:[%s27287_s5 + $0x50] sm:$0xff]   ;;  %v22195_v21 = vld [vmem:[%s27287_s5 + $0x58] sm:$0xff]  }
 0x9e6   : > { %v16049_v54 = vadd.f32 %v27086_v17, %v16035_v52  ;;  %v15996_v63 = vadd.f32 %v15983_v26, %v27069_v12  ;;  %v20572_v39 = vpop.f32.mrb[239].mxu1  ;;  %v16095_v12 = vld [vmem:[#allocation5 + $0x28] ss:$2 sm:$0xf] }
 0x9e7   : > { %v16087_v4 = vmax.f32 %v16085_v8, %v16086_v57  ;;  %v16022_v13 = vmax.f32 %v16012_v46, 0.0  ;;  %v16097_v40 = vld [vmem:[#allocation5 + $0x29] ss:$2 sm:$0xf]  ;;  %v22197_v57 = vld [vmem:[%s27287_s5 + $0x68] sm:$0xff]  }
 0x9e8   : > { %16060 = vst.msk [vmem:[#allocation5 + $0x38] sm:$0xff] %vm16052_vm12, %v16049_v54  ;;  %v16013_v56 = vadd.f32 %v27074_v3, %v15996_v63  ;;  %v16102_v5 = vmax.f32 %v16095_v12, %v16097_v40  ;;  %v22196_v52 = vld [vmem:[%s27287_s5 + $0x60] sm:$0xff]   ;;  %v22198_v54 = vld [vmem:[%s27287_s5 + $0x70] sm:$0xff]   ;;  %v16745_v40 = vld [vmem:[%s27289_s7 + $0x8] sm:$0xff] }
 0x9e9   : > { %v16088_v31 = vpack.c.bf16 %v16087_v4, %v16087_v4  ;;  %v16036_v61 = vmul.f32 %v27080_v58, %v16022_v13  ;;  %v22199_v13 = vld [vmem:[%s27287_s5 + $0x78] sm:$0xff]   ;;  %v16744_v12 = vld [vmem:[%s27289_s7] sm:$0xff] }
 0x9ea   : > { %v16023_v28 = vmax.f32 %v16013_v56, 0.0 }
 0x9eb   : > { %v16090_v18 = vrot.slane %v16088_v31, 6  ;;  %v16050_v32 = vadd.f32 %v27086_v17, %v16036_v61  ;;  %v22200_v61 = vld [vmem:[%s27287_s5 + $0x80] sm:$0xff]  }
 0x9ec   : > { %v16037_v6 = vmul.f32 %v27080_v58, %v16023_v28 }
 0x9ed   : > { %16093 = vst.msk [vmem:[#allocation6] sm:$0xc] %vm16092_vm9, %v16090_v18  ;;  %v22201_v18 = vld [vmem:[%s27287_s5 + $0x88] sm:$0xff]  }
 0x9ee   : > { %16061 = vst.msk [vmem:[#allocation5 + $0x40] sm:$0xff] %vm16052_vm12, %v16050_v32  ;;  %v16051_v29 = vadd.f32 %v27086_v17, %v16037_v6  ;;  %v22186_v17 = vld [vmem:[%s27287_s5] sm:$0xff]  }
 0x9ef   : > { %v16099_v48 = vld [vmem:[#allocation5 + $0x32] ss:$2 sm:$0xf]  ;;  %v16101_v3 = vld [vmem:[#allocation5 + $0x33] ss:$2 sm:$0xf] }
 0x9f0   : > { %v16103_v25 = vmax.f32 %v16099_v48, %v16101_v3  ;;  %16063 = vst.msk [vmem:[#allocation5 + $0x48] sm:$0x3f] %vm16062_vm13, %v16051_v29  ;;  %v16746_v29 = vld [vmem:[%s27289_s7 + $0x10] sm:$0xff]  ;;  %v22329_v48 = vmov 0.0|0.0   ;;  %v20676_v3 = vpack.c.bf16 %v16745_v40, %v16744_v12  ;;  %v16828_v40 = vld [vmem:[%s27291_s9] sm:$0xff] }
 0x9f2   : > { %v16104_v16 = vmax.f32 %v16102_v5, %v16103_v25  ;;  %v16747_v5 = vld [vmem:[%s27289_s7 + $0x18] sm:$0xff] }
 0x9f3   : > { %v20679_v25 = vpack.c.bf16 %v16747_v5, %v16746_v29  ;;  %v16829_v29 = vld [vmem:[%s27291_s9 + $0x8] sm:$0xff] }
 0x9f4   : > { %v16105_v9 = vpack.c.bf16 %v16104_v16, %v16104_v16  ;;  %v16133_v49 = vld [vmem:[#allocation6] sm:$0xf] }
 0x9f5   : > { %v16112_v11 = vld [vmem:[#allocation5 + $0x3c] ss:$2 sm:$0xf]  ;;  %v16114_v35 = vld [vmem:[#allocation5 + $0x3d] ss:$2 sm:$0xf] }
 0x9f6   : > { %v16107_v58 = vrot.slane %v16105_v9, 4  ;;  %v16142_v15 = vshll.u32 %v16133_v49, 16  ;;  %v16119_v10 = vmax.f32 %v16112_v11, %v16114_v35  ;;  %v16140_v41 = vshrl.u32 %v16133_v49, 16  ;;  %v16128_v2 = vld [vmem:[#allocation6] sm:$0x7]  ;;  %v16749_v9 = vld [vmem:[%s27289_s7 + $0x28] sm:$0xff] }
 0x9f7   : > { %v16116_v50 = vld [vmem:[#allocation5 + $0x46] ss:$2 sm:$0xf]  ;;  %v16118_v20 = vld [vmem:[#allocation5 + $0x47] ss:$2 sm:$0xf] }
 0x9f8   : > { %v16120_v30 = vmax.f32 %v16116_v50, %v16118_v20  ;;  %v16144_v53 = vrot.slane %v16142_v15, 1  ;;  %16110 = vst.msk [vmem:[#allocation6] sm:$0x30] %vm16109_vm14, %v16107_v58  ;;  %v16256_v34 = vld [vmem:[#allocation6] sm:$0xe]  ;;  %v16750_v11 = vld [vmem:[%s27289_s7 + $0x30] sm:$0xff] }
 0x9f9   : > { %v16263_v22 = vrot.slane %v16256_v34, 1  ;;  %v16748_v16 = vld [vmem:[%s27289_s7 + $0x20] sm:$0xff]  ;;  %v16751_v35 = vld [vmem:[%s27289_s7 + $0x38] sm:$0xff] }
 0x9fa   : > { %v16121_v60 = vmax.f32 %v16119_v10, %v16120_v30  ;;  %v16145_v55 = vor.u32 %v16144_v53, %v16140_v41  ;;  %v20682_v49 = vpack.c.bf16 %v16749_v9, %v16748_v16  ;;  %v20685_v58 = vpack.c.bf16 %v16751_v35, %v16750_v11 }
 0x9fb   : > { %v20688_v11 = vpack.c.bf16 %v16829_v29, %v16828_v40 }
 0x9fc   : > { %v16122_v51 = vpack.c.bf16 %v16121_v60, %v16121_v60  ;;  %20578 = vmatmul.mubr.msk.bf16.vlgmr.msra.gmra.mrb[240].mxu1 %vm16052_vm12, %v16145_v55 }
 0x9fd   : > { %20582 = vmatpush3.bf16.msra.mxu1 %v22186_v17  ;;  %20585 = vmatprep.mubr.msk.bf16.mxu1 %vm22328_vm11, %v22327_v19 }
 0x9fe   : > { %v16124_v1 = vrot.slane %v16122_v51, 2  ;;  %20583 = vmatprep.subr.bf16.mxu1 %v22327_v19 }
 0x9ff   : > { %v16320_v36 = vld [vmem:[#allocation6] sm:$0x1c] }
 0xa00   : > { %16127 = vst.msk [vmem:[#allocation6] sm:$0xc0] %vm16126_vm2, %v16124_v1  ;;  %v16384_v42 = vld [vmem:[#allocation6] sm:$0x3c]  ;;  %v16327_v62 = vrot.slane %v16320_v36, 2 }
 0xa01   : > { %20584 = vmatpush3.bf16.msra.mxu1 %v22187_v45  ;;  %v16391_v47 = vshrl.u32 %v16384_v42, 16  ;;  %v16394_v24 = vshll.u32 %v16384_v42, 16  ;;  %v16454_v38 = vld [vmem:[#allocation6] sm:$0x38] }
 0xa02   : > { %20589 = vmatprep.subr.bf16.mxu1 %v22327_v19  ;;  %v16461_v8 = vrot.slane %v16454_v38, 3 }
 0xa03   : > { %v16393_v59 = vrot.slane %v16391_v47, 2  ;;  %v16396_v33 = vrot.slane %v16394_v24, 3 }
 0xa04   : > { %20586 = vmatmul.mubr.msk.bf16.vlgmr.msra.gmra.mrb[244].mxu1 %vm16052_vm12, %v16128_v2 }
 0xa05   : > { %20590 = vmatpush3.bf16.msra.mxu1 %v22188_v27  ;;  %20593 = vmatprep.mubr.msk.bf16.mxu1 %vm22328_vm11, %v22327_v19  ;;  %v16397_v44 = vor.u32 %v16396_v33, %v16393_v59 }
 0xa06   : > { %20591 = vmatprep.subr.bf16.mxu1 %v22327_v19 }
 0xa07   : > { %v16518_v46 = vld [vmem:[#allocation6] sm:$0x70] }
 0xa08   : > { %v16582_v26 = vld [vmem:[#allocation6] sm:$0xf0]  ;;  %v16525_v63 = vrot.slane %v16518_v46, 4 }
 0xa09   : > { %20592 = vmatpush3.bf16.msra.mxu1 %v22189_v14  ;;  %v16589_v39 = vshrl.u32 %v16582_v26, 16  ;;  %v16592_v4 = vshll.u32 %v16582_v26, 16  ;;  %v16652_v32 = vld [vmem:[#allocation6] sm:$0xe0] }
 0xa0a   : > { %20597 = vmatprep.subr.bf16.mxu1 %v22327_v19  ;;  %v16659_v6 = vrot.slane %v16652_v32, 5  ;;  %v17929_v32 = vld [vmem:[%s27288_s6 + $0x2] ss:$0 sm:$0xff] }
 0xa0b   : > { %v16591_v56 = vrot.slane %v16589_v39, 4  ;;  %v16594_v31 = vrot.slane %v16592_v4, 5  ;;  %v17927_v39 = vld [vmem:[%s27288_s6] ss:$0 sm:$0xff] }
 0xa0c   : > { %20594 = vmatmul.mubr.msk.bf16.vlgmr.msra.gmra.mrb[248].mxu1 %vm16052_vm12, %v16263_v22 }
 0xa0d   : > { %20598 = vmatpush3.bf16.msra.mxu1 %v22190_v23  ;;  %20601 = vmatprep.mubr.msk.bf16.mxu1 %vm22328_vm11, %v22327_v19  ;;  %v16595_v28 = vor.u32 %v16594_v31, %v16591_v56 }
 0xa0e   : > { %20599 = vmatprep.subr.bf16.mxu1 %v22327_v19 }
 0xa11   : > { %20600 = vmatpush3.bf16.msra.mxu1 %v22191_v0 }
 0xa12   : > { %20605 = vmatprep.subr.bf16.mxu1 %v22327_v19 }
 0xa14   : > { %20602 = vmatmul.mubr.msk.bf16.vlgmr.msra.gmra.mrb[252].mxu1 %vm16052_vm12, %v16327_v62 }
 0xa15   : > { %20606 = vmatpush3.bf16.msra.mxu1 %v22192_v37  ;;  %20609 = vmatprep.mubr.msk.bf16.mxu1 %vm22328_vm11, %v22327_v19 }
 0xa16   : > { %20607 = vmatprep.subr.bf16.mxu1 %v22327_v19 }
 0xa19   : > { %20608 = vmatpush3.bf16.msra.mxu1 %v22193_v43 }
 0xa1a   : > { %20613 = vmatprep.subr.bf16.mxu1 %v22327_v19 }
 0xa1c   : > { %20610 = vmatmul.mubr.msk.bf16.vlgmr.msra.gmra.mrb[0].mxu1 %vm16052_vm12, %v16397_v44 }
 0xa1d   : > { %20614 = vmatpush3.bf16.msra.mxu1 %v22194_v7  ;;  %20617 = vmatprep.mubr.msk.bf16.mxu1 %vm22328_vm11, %v22327_v19 }
 0xa1e   : > { %20615 = vmatprep.subr.bf16.mxu1 %v22327_v19 }
 0xa21   : > { %20616 = vmatpush3.bf16.msra.mxu1 %v22195_v21 }
 0xa22   : > { %20621 = vmatprep.subr.bf16.mxu1 %v22327_v19 }
 0xa24   : > { %20618 = vmatmul.mubr.msk.bf16.vlgmr.msra.gmra.mrb[4].mxu1 %vm16052_vm12, %v16461_v8 }
 0xa25   : > { %20622 = vmatpush3.bf16.msra.mxu1 %v22196_v52  ;;  %20625 = vmatprep.mubr.msk.bf16.mxu1 %vm22328_vm11, %v22327_v19 }
 0xa26   : > { %20623 = vmatprep.subr.bf16.mxu1 %v22327_v19 }
 0xa29   : > { %20624 = vmatpush3.bf16.msra.mxu1 %v22197_v57 }
 0xa2a   : > { %20629 = vmatprep.subr.bf16.mxu1 %v22327_v19 }
 0xa2c   : > { %20626 = vmatmul.mubr.msk.bf16.vlgmr.msra.gmra.mrb[8].mxu1 %vm16052_vm12, %v16525_v63 }
 0xa2d   : > { %20630 = vmatpush3.bf16.msra.mxu1 %v22198_v54  ;;  %20633 = vmatprep.mubr.msk.bf16.mxu1 %vm22328_vm11, %v22327_v19 }
 0xa2e   : > { %20631 = vmatprep.subr.bf16.mxu1 %v22327_v19 }
 0xa31   : > { %20632 = vmatpush3.bf16.msra.mxu1 %v22199_v13 }
 0xa32   : > { %20637 = vmatprep.subr.bf16.mxu1 %v22327_v19 }
 0xa34   : > { %20634 = vmatmul.mubr.msk.bf16.vlgmr.msra.gmra.mrb[12].mxu1 %vm16052_vm12, %v16595_v28  ;;  %v17928_v28 = vld [vmem:[%s27288_s6 + $0x1] ss:$0 sm:$0xff] }
 0xa35   : > { %20638 = vmatpush3.bf16.msra.mxu1 %v22200_v61  ;;  %20641 = vmatprep.mubr.msk.bf16.mxu1 %vm22328_vm11, %v22327_v19 }
 0xa36   : > { %20639 = vmatprep.subr.bf16.mxu1 %v22327_v19 }
 0xa39   : > { %20640 = vmatpush3.bf16.msra.mxu1 %v22201_v18 }
 0xa3a   : > { %20675 = vmatprep.subr.bf16.mxu1 %v22329_v48 }
 0xa3c   : > { %20642 = vmatmul.mubr.msk.bf16.vlgmr.msra.gmra.mrb[16].mxu1 %vm16052_vm12, %v16659_v6 }
 0xa3d   : > { %20661 = vmatprep.mubr.msk.f32.mxu1 %vm22328_vm11, %v22327_v19  ;;  %20677 = vmatpush3.bf16.msra.mxu1 %v20676_v3 }
 0xa3e   : > { %20678 = vmatprep.subr.bf16.mxu1 %v22329_v48 }
 0xa41   : > { %20680 = vmatpush3.bf16.msra.mxu1 %v20679_v25 }
 0xa42   : > { %20681 = vmatprep.subr.bf16.mxu1 %v22329_v48 }
 0xa45   : > { %20683 = vmatpush3.bf16.msra.mxu1 %v20682_v49 }
 0xa46   : > { %20684 = vmatprep.subr.bf16.mxu1 %v22329_v48 }
 0xa49   : > { %20686 = vmatpush3.bf16.msra.mxu1 %v20685_v58  ;;  %v16830_v58 = vld [vmem:[%s27291_s9 + $0x10] sm:$0xff] }
 0xa4a   : > { %20687 = vmatprep.subr.bf16.mxu1 %v22329_v48 }
 0xacf   : > { %v16195_v15 = vpop.f32.mrb[240].mxu1 }
 0xad0   : > { %v20579_v50 = vpop.f32.mrb[241].mxu1 }
 0xad1   : > { %v16198_v20 = vpop.f32.mrb[242].mxu1 }
 0xad2   : > { %v20580_v10 = vpop.f32.mrb[243].mxu1  ;;  %v16752_v20 = vld [vmem:[%s27290_s8] sm:$0x1] }
 0xad7   : > { %v16250_v30 = vpop.f32.mrb[244].mxu1 }
 0xad8   : > { %v16251_v41 = vadd.f32 %v16250_v30, %v16195_v15  ;;  %v20587_v53 = vpop.f32.mrb[245].mxu1  ;;  %v16831_v15 = vld [vmem:[%s27291_s9 + $0x18] sm:$0xff] }
 0xad9   : > { %v16253_v17 = vpop.f32.mrb[246].mxu1  ;;  %v20691_v50 = vpack.c.bf16 %v16831_v15, %v16830_v58  ;;  %v16832_v53 = vld [vmem:[#allocation8] sm:$0x1] }
 0xada   : > { %v20588_v60 = vpop.f32.mrb[247].mxu1 }
 0xadf   : > { %v16313_v55 = vpop.f32.mrb[248].mxu1 }
 0xae0   : > { %v16319_v51 = vadd.f32 %v16313_v55, %v16251_v41  ;;  %v20595_v45 = vpop.f32.mrb[249].mxu1 }
 0xae1   : > { %v16316_v1 = vpop.f32.mrb[250].mxu1 }
 0xae2   : > { %v20596_v27 = vpop.f32.mrb[251].mxu1 }
 0xae7   : > { %v16377_v2 = vpop.f32.mrb[252].mxu1 }
 0xae8   : > { %v16383_v14 = vadd.f32 %v16377_v2, %v16319_v51  ;;  %v20603_v34 = vpop.f32.mrb[253].mxu1 }
 0xae9   : > { %v16380_v23 = vpop.f32.mrb[254].mxu1 }
 0xaea   : > { %v20604_v22 = vpop.f32.mrb[255].mxu1 }
 0xaef   : > { %v16447_v0 = vpop.f32.mrb[0].mxu1 }
 0xaf0   : > { %v16453_v36 = vadd.f32 %v16447_v0, %v16383_v14  ;;  %v20611_v42 = vpop.f32.mrb[1].mxu1 }
 0xaf1   : > { %v16450_v37 = vpop.f32.mrb[2].mxu1 }
 0xaf2   : > { %v20612_v62 = vpop.f32.mrb[3].mxu1 }
 0xaf7   : > { %v16511_v47 = vpop.f32.mrb[4].mxu1 }
 0xaf8   : > { %v16517_v24 = vadd.f32 %v16511_v47, %v16453_v36  ;;  %v20619_v43 = vpop.f32.mrb[5].mxu1 }
 0xaf9   : > { %v16514_v59 = vpop.f32.mrb[6].mxu1 }
 0xafa   : > { %v20620_v33 = vpop.f32.mrb[7].mxu1 }
 0xaff   : > { %v16575_v7 = vpop.f32.mrb[8].mxu1 }
 0xb00   : > { %v16581_v44 = vadd.f32 %v16575_v7, %v16517_v24  ;;  %v20627_v21 = vpop.f32.mrb[9].mxu1 }
 0xb01   : > { %v16578_v38 = vpop.f32.mrb[10].mxu1 }
 0xb02   : > { %v20628_v52 = vpop.f32.mrb[11].mxu1 }
 0xb07   : > { %v16645_v8 = vpop.f32.mrb[12].mxu1 }
 0xb08   : > { %v16651_v57 = vadd.f32 %v16645_v8, %v16581_v44  ;;  %v20635_v46 = vpop.f32.mrb[13].mxu1 }
 0xb09   : > { %v16648_v26 = vpop.f32.mrb[14].mxu1 }
 0xb0a   : > { %v20636_v54 = vpop.f32.mrb[15].mxu1 }
 0xb0f   : > { %v16709_v63 = vpop.f32.mrb[16].mxu1 }
 0xb10   : > { %v16715_v4 = vadd.f32 %v16709_v63, %v16651_v57  ;;  %v20643_v13 = vpop.f32.mrb[17].mxu1 }
 0xb11   : > { %v16712_v56 = vpop.f32.mrb[18].mxu1 }
 0xb12   : > { %v16723_v31 = vadd.f32 %v17927_v39, %v16715_v4  ;;  %v20644_v61 = vpop.f32.mrb[19].mxu1 }
 0xb14   : > { %v16724_v18 = vmax.f32 %v16723_v31, 0.0 }
 0xb16   : > { %v16729_v6 = vmul.f32 %v17928_v28, %v16724_v18 }
 0xb18   : > { %v16734_v12 = vadd.f32 %v17929_v32, %v16729_v6 }
 0xb1a   : > { %16736 = vst.msk [vmem:[#allocation7] sm:$0x3f] %vm16735_vm7, %v16734_v12 }
 0xb21   : > { %v16737_v3 = vld [vmem:[#allocation7] sm:$0x1]  ;;  %v16738_v5 = vld [vmem:[#allocation7 + $0x1] sm:$0x1]  ;;  %v16740_v25 = vld [vmem:[#allocation7 + $0x4] sm:$0x1] }
 0xb22   : > { %v16739_v16 = vmax.f32 %v16737_v3, %v16738_v5  ;;  %v16741_v9 = vld [vmem:[#allocation7 + $0x5] sm:$0x1] }
 0xb23   : > { %v16742_v49 = vmax.f32 %v16740_v25, %v16741_v9 }
 0xb25   : > { %v16743_v35 = vmax.f32 %v16739_v16, %v16742_v49 }
 0xb27   : > { %20662 = vmatmul.mubr.msk.f32.vlgmr.msra.gmra.mrb[20].mxu1 %vm16753_vm8, %v16743_v35 }
 0xb28   : > { %20689 = vmatpush3.bf16.msra.mxu1 %v20688_v11  ;;  %20672 = vmatprep.mubr.msk.f32.mxu1 %vm22328_vm11, %v22327_v19 }
 0xb29   : > { %20690 = vmatprep.subr.bf16.mxu1 %v22329_v48  ;;  %v22330_v48 = vmov 0  }
 0xb2a   : > { %22149 = vset.pattern.permute.xlu0 %v22330_v48 }
 0xb2c   : > { %20692 = vmatpush3.bf16.msra.mxu1 %v20691_v50 }
 0xbfa   : > { %v16823_v10 = vpop.f32.mrb[20].mxu1 }
 0xbfb   : > { %v16824_v30 = vadd.f32 %v16823_v10, %v16752_v20  ;;  %v20663_v41 = vpop.f32.mrb[21].mxu1 }
 0xbfd   : > { %v16827_v19 = vmax.f32 %v16824_v30, 0.0 }
 0xbff   : > { %20673 = vmatmul.mubr.msk.f32.vlgmr.msra.gmra.mrb[22].mxu1 %vm16052_vm12, %v16827_v19 }
 0xcd2   : > { %v16902_v17 = vpop.f32.mrb[22].mxu1 }
 0xcd3   : > { %v16903_v60 = vadd.f32 %v16902_v17, %v16832_v53  ;;  %v20674_v55 = vpop.f32.mrb[23].mxu1 }
 0xcd5   : > { %v17932_v51 = vmul.f32 -1.442695, %v16903_v60 }
 0xcd7   : > { %22202 = vpow2.f32 %v17932_v51 }
 0xce1   : > { %v22203_v45 = vpop.eup %22202 }
 0xce2   : > { %v16909_v1 = vadd.f32 1.0, %v22203_v45 }
 0xce4   : > { %22204 = vrcp.f32 %v16909_v1 }
 0xcee   : > { %v22205_v27 = vpop.eup %22204 }
 0xcef   : > { %16914 = vperm.xlu0 %22149, %v22205_v27  }
 0xd6e   : > { %v16915_v2 = vpop.permute.xlu0 %16914 }
 0xd6f   : > { %16917 = vst [vmem:[%s384_s18] sm:$0x1] %v16915_v2 }
 0xd70 PF: > { %s23_s19 = sadd.s32 1, %s22324_s19  }
 0xd71   : > { %p20_p4 = scmp.ge.s32.totalorder %s23_s19, 4  }
 0xd73   :  { %22 = sbr.rel (!%p20_p4) target bundleno = 3 (0x3), region = 228 }

</bundles_post_ra>
